<compile_context>
chip_gen: v6e
topology: v6e:2x2x1
jax: 0.10.0
libtpu: 0.0.40
codegen_flags: <defaults>
</compile_context>

<pallas_src>
import functools

import numpy as np
import jax
import jax.numpy as jnp
from jax.experimental import pallas as pl
from jax.experimental.pallas import tpu as pltpu


# ----------------------------------------------------------------------------- #
# host-side bilinear (align_corners=True) interpolation matrix
# ----------------------------------------------------------------------------- #
def interp_matrix(n_in, n_out):
    if n_out == 1:
        src = np.zeros((1,), dtype=np.float64)
    else:
        src = np.arange(n_out, dtype=np.float64) * (n_in - 1) / (n_out - 1)
    i0 = np.clip(np.floor(src).astype(np.int64), 0, max(n_in - 2, 0))
    frac = src - i0
    i1 = np.minimum(i0 + 1, n_in - 1)
    m = np.zeros((n_out, n_in), dtype=np.float64)
    np.add.at(m, (np.arange(n_out), i0), 1.0 - frac)
    np.add.at(m, (np.arange(n_out), i1), frac)
    return m.astype(np.float32)


def _round_up(x, m):
    return ((x + m - 1) // m) * m


# ----------------------------------------------------------------------------- #
# Pallas kernel
# ----------------------------------------------------------------------------- #
def _up_kernel(x_ref, ut_ref, w1_ref, s1_ref, b1_ref, w2_ref, s2_ref, b2_ref,
               o_ref, pad1_ref, pad2_ref,
               *, NB, Wo, S, Cin, Cout, lpad, mm_dtype):
    f32 = jnp.float32

    # Re-zero ONLY the Wo+1 border columns the 3x3 taps actually read (interiors are
    # fully overwritten every image; per-step zeroing stays correct when the batch
    # grid axis is sharded across TensorCores).
    zl1 = jnp.zeros((Cin, Wo + 1), mm_dtype)
    zl2 = jnp.zeros((Cout, Wo + 1), mm_dtype)
    pad1_ref[:, lpad - (Wo + 1):lpad] = zl1
    pad1_ref[:, lpad + S:lpad + S + Wo + 1] = zl1
    pad2_ref[:, lpad - (Wo + 1):lpad] = zl2
    pad2_ref[:, lpad + S:lpad + S + Wo + 1] = zl2

    # W-boundary tap masks, generated in-kernel (no HBM input, no VMEM copy).
    # w_pos = column index within a row, computed without integer div/mod.
    col = jax.lax.broadcasted_iota(jnp.int32, (1, S), 1).astype(f32)
    row = jnp.floor((col + 0.5) * (1.0 / Wo))
    w_pos = col - row * Wo
    mask_l = jnp.where(w_pos >= 0.5, 1.0, 0.0).astype(mm_dtype)          # (w-1) in bounds
    mask_r = jnp.where(w_pos <= Wo - 1.5, 1.0, 0.0).astype(mm_dtype)     # (w+1) in bounds

    def conv3x3(pad_ref, w_ref):
        # 9 accumulating MXU matmuls straight off the shifted, zero-bordered buffer
        # (no materialized im2col patches -> no (9*C, S) scratch stores).
        acc = None
        for ky in range(3):
            for kx in range(3):
                off = lpad + (ky - 1) * Wo + (kx - 1)
                piece = pad_ref[:, off:off + S]                 # (C, S) bf16, shifted view
                if kx == 0:
                    piece = piece * mask_l
                elif kx == 2:
                    piece = piece * mask_r
                part = jnp.dot(w_ref[ky * 3 + kx], piece,
                               preferred_element_type=f32)      # (Cout, S)
                acc = part if acc is None else acc + part
        return acc

    # NB images per grid step amortize the per-step pipeline overhead.
    for b in range(NB):
        # ---- bilinear upsample (align_corners=True): one lane-dense MXU matmul ----
        up = jnp.dot(x_ref[b], ut_ref[...], preferred_element_type=f32)   # (Cin, S)
        pad1_ref[:, lpad:lpad + S] = up.astype(mm_dtype)                  # aligned store

        # ---- conv1 3x3 (pad=1, no bias) + BN1 + ReLU (f32 epilogue) ----
        acc1 = conv3x3(pad1_ref, w1_ref)
        h1 = jnp.maximum(acc1 * s1_ref[...] + b1_ref[...], 0.0)
        pad2_ref[:, lpad:lpad + S] = h1.astype(mm_dtype)

        # ---- conv2 3x3 (pad=1, no bias) + BN2 ----
        acc2 = conv3x3(pad2_ref, w2_ref)
        o_ref[b] = acc2 * s2_ref[...] + b2_ref[...]


# ----------------------------------------------------------------------------- #
# wrapper (layout plumbing, parameter repacking, pallas_call)
# ----------------------------------------------------------------------------- #
def up_forward(x_nchw, w1_oihw, s1, b1, w2_oihw, s2, b2,
               scale_factor=2, mm_dtype=jnp.bfloat16):
    N, Cin, H, W = x_nchw.shape
    Cout = w1_oihw.shape[0]
    Ho, Wo = scale_factor * H, scale_factor * W
    S = Ho * Wo
    lpad = _round_up(Wo + 1, 128)           # leading zero border (keeps interior 128-aligned)
    PW = lpad + S + _round_up(Wo + 1, 128)  # padded-buffer width

    # images per grid step (small sizes are per-step-overhead bound)
    NB = 1
    for cand in (4, 2):
        if N % cand == 0:
            NB = cand
            break

    # full bilinear upsample operator, transposed: up_flat = x_flat @ kron(Uh, Uw)^T
    ut = jnp.asarray(np.kron(interp_matrix(H, Ho), interp_matrix(W, Wo)).T).astype(mm_dtype)

    # 3x3 conv weights packed per tap: (9, Cout, Cin), tap index t = ky*3 + kx
    w1t = jnp.transpose(w1_oihw, (2, 3, 0, 1)).reshape(9, Cout, Cin).astype(mm_dtype)
    w2t = jnp.transpose(w2_oihw, (2, 3, 0, 1)).reshape(9, Cout, Cout).astype(mm_dtype)

    s1c = s1.reshape(Cout, 1).astype(jnp.float32)
    b1c = b1.reshape(Cout, 1).astype(jnp.float32)
    s2c = s2.reshape(Cout, 1).astype(jnp.float32)
    b2c = b2.reshape(Cout, 1).astype(jnp.float32)

    # NCHW is already channel-major: flattening the spatial dims is free (no transpose)
    x_cm = x_nchw.reshape(N, Cin, H * W).astype(mm_dtype)

    # per-generation VMEM budget (v7x: 64 MiB/TC, v5e/v6e: 128 MiB)
    try:
        vmem_cap = int(pltpu.get_tpu_info().vmem_capacity_bytes)
    except Exception:
        vmem_cap = 128 * 1024 * 1024
    vmem_limit = max(32 * 1024 * 1024, min(int(0.75 * vmem_cap), 96 * 1024 * 1024))

    kernel = functools.partial(_up_kernel, NB=NB, Wo=Wo, S=S, Cin=Cin, Cout=Cout,
                               lpad=lpad, mm_dtype=mm_dtype)

    out_cm = pl.pallas_call(
        kernel,
        out_shape=jax.ShapeDtypeStruct((N, Cout, S), jnp.float32),
        grid=(N // NB,),
        in_specs=[
            pl.BlockSpec((NB, Cin, H * W), lambda n: (n, 0, 0)),   # x (channel-major)
            pl.BlockSpec((H * W, S), lambda n: (0, 0)),            # upsample operator
            pl.BlockSpec((9, Cout, Cin), lambda n: (0, 0, 0)),     # conv1 per-tap weights
            pl.BlockSpec((Cout, 1), lambda n: (0, 0)),             # bn1 scale
            pl.BlockSpec((Cout, 1), lambda n: (0, 0)),             # bn1 bias
            pl.BlockSpec((9, Cout, Cout), lambda n: (0, 0, 0)),    # conv2 per-tap weights
            pl.BlockSpec((Cout, 1), lambda n: (0, 0)),             # bn2 scale
            pl.BlockSpec((Cout, 1), lambda n: (0, 0)),             # bn2 bias
        ],
        out_specs=pl.BlockSpec((NB, Cout, S), lambda n: (n, 0, 0)),
        scratch_shapes=[
            pltpu.VMEM((Cin, PW), mm_dtype),    # zero-bordered upsample buffer (bf16)
            pltpu.VMEM((Cout, PW), mm_dtype),   # zero-bordered hidden buffer   (bf16)
        ],
        compiler_params=pltpu.CompilerParams(
            dimension_semantics=("parallel",),
            vmem_limit_bytes=vmem_limit),
    )(x_cm, ut, w1t, s1c, b1c, w2t, s2c, b2c)

    # (N, Cout, Ho*Wo) -> NCHW: a free reshape (no transpose)
    return out_cm.reshape(N, Cout, Ho, Wo)


# ----------------------------------------------------------------------------- #
# pure-JAX reference for correctness checking
# ----------------------------------------------------------------------------- #
def up_reference(x_nchw, w1_oihw, s1, b1, w2_oihw, s2, b2, scale_factor=2):
    N, C, H, W = x_nchw.shape
    uh = jnp.asarray(interp_matrix(H, scale_factor * H))
    uw = jnp.asarray(interp_matrix(W, scale_factor * W))
    up = jnp.einsum('oh,pw,nchw->ncop', uh, uw, x_nchw,
                    precision=jax.lax.Precision.HIGHEST)

    def conv(z, w):
        return jax.lax.conv_general_dilated(
            z, w, (1, 1), ((1, 1), (1, 1)),
            dimension_numbers=('NCHW', 'OIHW', 'NCHW'),
            precision=jax.lax.Precision.HIGHEST)

    y = conv(up, w1_oihw) * s1[None, :, None, None] + b1[None, :, None, None]
    y = jnp.maximum(y, 0.0)
    y = conv(y, w2_oihw) * s2[None, :, None, None] + b2[None, :, None, None]
    return y


# ----------------------------------------------------------------------------- #
if __name__ == "__main__":
    N, Cin, Cout, H, W = 2, 4, 8, 16, 16
    key = jax.random.PRNGKey(0)
    ks = jax.random.split(key, 11)

    x = jax.random.normal(ks[0], (N, Cin, H, W), jnp.float32)

    # deterministic synthetic parameters (module __init__ shapes)
    w1_oihw = 0.1 * jax.random.normal(ks[1], (Cout, Cin, 3, 3), jnp.float32)
    w2_oihw = 0.1 * jax.random.normal(ks[2], (Cout, Cout, 3, 3), jnp.float32)
    eps = 1e-5
    g1 = 1.0 + 0.1 * jax.random.normal(ks[3], (Cout,), jnp.float32)
    be1 = 0.1 * jax.random.normal(ks[4], (Cout,), jnp.float32)
    m1 = 0.1 * jax.random.normal(ks[5], (Cout,), jnp.float32)
    v1 = 0.5 + jax.random.uniform(ks[6], (Cout,), jnp.float32)
    g2 = 1.0 + 0.1 * jax.random.normal(ks[7], (Cout,), jnp.float32)
    be2 = 0.1 * jax.random.normal(ks[8], (Cout,), jnp.float32)
    m2 = 0.1 * jax.random.normal(ks[9], (Cout,), jnp.float32)
    v2 = 0.5 + jax.random.uniform(ks[10], (Cout,), jnp.float32)

    # fold BN (inference / running-stats) into per-channel scale & bias
    s1 = g1 / jnp.sqrt(v1 + eps)
    b1 = be1 - m1 * s1
    s2 = g2 / jnp.sqrt(v2 + eps)
    b2 = be2 - m2 * s2

    out = jax.jit(up_forward)(x, w1_oihw, s1, b1, w2_oihw, s2, b2)
    out = jax.block_until_ready(out)

    assert out.shape == (N, Cout, 2 * H, 2 * W), out.shape

    ref = up_reference(x, w1_oihw, s1, b1, w2_oihw, s2, b2)
    err = float(jnp.max(jnp.abs(out - ref)))
    # bf16 MXU operands vs an f32 precision=HIGHEST reference: expected worst-case ~1e-2.
    assert err < 7.5e-2, f"max abs error vs reference: {err}"

    print("KERNEL_OK")
</pallas_src>

<mosaic_0001>
module attributes {stable_mosaic.version = 11 : i64} {
  func.func @_up_kernel(%arg0: i32, %arg1: memref<2x4x256xbf16, #tpu.memory_space<vmem>>, %arg2: memref<256x1024xbf16, #tpu.memory_space<vmem>>, %arg3: memref<9x8x4xbf16, #tpu.memory_space<vmem>>, %arg4: memref<8x1xf32, #tpu.memory_space<vmem>>, %arg5: memref<8x1xf32, #tpu.memory_space<vmem>>, %arg6: memref<9x8x8xbf16, #tpu.memory_space<vmem>>, %arg7: memref<8x1xf32, #tpu.memory_space<vmem>>, %arg8: memref<8x1xf32, #tpu.memory_space<vmem>>, %arg9: memref<2x8x1024xf32, #tpu.memory_space<vmem>>, %arg10: memref<4x1280xbf16, #tpu.memory_space<vmem>>, %arg11: memref<8x1280xbf16, #tpu.memory_space<vmem>>) attributes {dimension_semantics = [#tpu.dimension_semantics<parallel>], iteration_bounds = array<i64: 1>, scalar_prefetch = 0 : i64, scratch_operands = 2 : i64, tpu.core_type = #tpu.core_type<tc>, window_params = [{transform_indices = @transform_0, window_bounds = array<i64: 2, 4, 256>}, {pipeline_mode = #tpu.pipeline_mode<synchronous>, transform_indices = @transform_1, window_bounds = array<i64: 256, 1024>}, {pipeline_mode = #tpu.pipeline_mode<synchronous>, transform_indices = @transform_2, window_bounds = array<i64: 9, 8, 4>}, {pipeline_mode = #tpu.pipeline_mode<synchronous>, transform_indices = @transform_3, window_bounds = array<i64: 8, 1>}, {pipeline_mode = #tpu.pipeline_mode<synchronous>, transform_indices = @transform_4, window_bounds = array<i64: 8, 1>}, {pipeline_mode = #tpu.pipeline_mode<synchronous>, transform_indices = @transform_5, window_bounds = array<i64: 9, 8, 8>}, {pipeline_mode = #tpu.pipeline_mode<synchronous>, transform_indices = @transform_6, window_bounds = array<i64: 8, 1>}, {pipeline_mode = #tpu.pipeline_mode<synchronous>, transform_indices = @transform_7, window_bounds = array<i64: 8, 1>}, {transform_indices = @transform_8, window_bounds = array<i64: 2, 8, 1024>}]} {
    %cst = arith.constant 0.000000e+00 : bf16
    %0 = vector.broadcast %cst : bf16 to vector<4x33xbf16>
    %cst_0 = arith.constant 0.000000e+00 : bf16
    %1 = vector.broadcast %cst_0 : bf16 to vector<8x33xbf16>
    %c0 = arith.constant 0 : index
    %c95 = arith.constant 95 : index
    %2 = vector.load %arg10[%c0, %c95] : memref<4x1280xbf16, #tpu.memory_space<vmem>>, vector<4x33xbf16>
    tpu.vector_store %arg10[%c0, %c95], %0 {strides = array<i32>} : memref<4x1280xbf16, #tpu.memory_space<vmem>>, vector<4x33xbf16>,
    %c0_1 = arith.constant 0 : index
    %c1152 = arith.constant 1152 : index
    %3 = vector.load %arg10[%c0_1, %c1152] : memref<4x1280xbf16, #tpu.memory_space<vmem>>, vector<4x33xbf16>
    tpu.vector_store %arg10[%c0_1, %c1152], %0 {strides = array<i32>} : memref<4x1280xbf16, #tpu.memory_space<vmem>>, vector<4x33xbf16>,
    %c0_2 = arith.constant 0 : index
    %c95_3 = arith.constant 95 : index
    %4 = vector.load %arg11[%c0_2, %c95_3] : memref<8x1280xbf16, #tpu.memory_space<vmem>>, vector<8x33xbf16>
    tpu.vector_store %arg11[%c0_2, %c95_3], %1 {strides = array<i32>} : memref<8x1280xbf16, #tpu.memory_space<vmem>>, vector<8x33xbf16>,
    %c0_4 = arith.constant 0 : index
    %c1152_5 = arith.constant 1152 : index
    %5 = vector.load %arg11[%c0_4, %c1152_5] : memref<8x1280xbf16, #tpu.memory_space<vmem>>, vector<8x33xbf16>
    tpu.vector_store %arg11[%c0_4, %c1152_5], %1 {strides = array<i32>} : memref<8x1280xbf16, #tpu.memory_space<vmem>>, vector<8x33xbf16>,
    %6 = tpu.iota {dimensions = array<i32: 1>} : vector<1x1024xi32>
    %7 = arith.sitofp %6 : vector<1x1024xi32> to vector<1x1024xf32>
    %cst_6 = arith.constant 5.000000e-01 : f32
    %8 = vector.broadcast %cst_6 : f32 to vector<1x1024xf32>
    %9 = arith.addf %7, %8 : vector<1x1024xf32>
    %cst_7 = arith.constant 3.125000e-02 : f32
    %10 = vector.broadcast %cst_7 : f32 to vector<1x1024xf32>
    %11 = arith.mulf %9, %10 : vector<1x1024xf32>
    %12 = math.floor %11 : vector<1x1024xf32>
    %cst_8 = arith.constant 3.200000e+01 : f32
    %13 = vector.broadcast %cst_8 : f32 to vector<1x1024xf32>
    %14 = arith.mulf %12, %13 : vector<1x1024xf32>
    %15 = arith.subf %7, %14 : vector<1x1024xf32>
    %cst_9 = arith.constant 5.000000e-01 : f32
    %16 = vector.broadcast %cst_9 : f32 to vector<1x1024xf32>
    %17 = arith.cmpf oge, %15, %16 : vector<1x1024xf32>
    %cst_10 = arith.constant 1.000000e+00 : f32
    %cst_11 = arith.constant 0.000000e+00 : f32
    %18 = vector.broadcast %cst_10 : f32 to vector<1x1024xf32>
    %19 = vector.broadcast %cst_11 : f32 to vector<1x1024xf32>
    %20 = arith.select %17, %18, %19 : vector<1x1024xi1>, vector<1x1024xf32>
    %21 = arith.truncf %20 : vector<1x1024xf32> to vector<1x1024xbf16>
    %cst_12 = arith.constant 3.050000e+01 : f32
    %22 = vector.broadcast %cst_12 : f32 to vector<1x1024xf32>
    %23 = arith.cmpf ole, %15, %22 : vector<1x1024xf32>
    %cst_13 = arith.constant 1.000000e+00 : f32
    %cst_14 = arith.constant 0.000000e+00 : f32
    %24 = vector.broadcast %cst_13 : f32 to vector<1x1024xf32>
    %25 = vector.broadcast %cst_14 : f32 to vector<1x1024xf32>
    %26 = arith.select %23, %24, %25 : vector<1x1024xi1>, vector<1x1024xf32>
    %27 = arith.truncf %26 : vector<1x1024xf32> to vector<1x1024xbf16>
    %c0_15 = arith.constant 0 : index
    %c0_16 = arith.constant 0 : index
    %c0_17 = arith.constant 0 : index
    %28 = vector.load %arg1[%c0_15, %c0_16, %c0_17] : memref<2x4x256xbf16, #tpu.memory_space<vmem>>, vector<1x4x256xbf16>
    %29 = vector.shape_cast %28 : vector<1x4x256xbf16> to vector<4x256xbf16>
    %c0_18 = arith.constant 0 : index
    %c0_19 = arith.constant 0 : index
    %30 = vector.load %arg2[%c0_18, %c0_19] : memref<256x1024xbf16, #tpu.memory_space<vmem>>, vector<256x1024xbf16>
    %cst_20 = arith.constant dense<0.000000e+00> : vector<4x1024xf32>
    %31 = tpu.matmul %29, %30, %cst_20 {dimension_numbers = #tpu.dot_dimension_numbers<[1], [0], [0], [1], [0, 0, 1, 1], [], []>} : vector<4x256xbf16>, vector<256x1024xbf16>, vector<4x1024xf32> -> vector<4x1024xf32>
    %32 = arith.truncf %31 : vector<4x1024xf32> to vector<4x1024xbf16>
    %c0_21 = arith.constant 0 : index
    %c128 = arith.constant 128 : index
    %33 = vector.load %arg10[%c0_21, %c128] : memref<4x1280xbf16, #tpu.memory_space<vmem>>, vector<4x1024xbf16>
    tpu.vector_store %arg10[%c0_21, %c128], %32 {strides = array<i32>} : memref<4x1280xbf16, #tpu.memory_space<vmem>>, vector<4x1024xbf16>,
    %c0_22 = arith.constant 0 : index
    %c95_23 = arith.constant 95 : index
    %34 = vector.load %arg10[%c0_22, %c95_23] : memref<4x1280xbf16, #tpu.memory_space<vmem>>, vector<4x1024xbf16>
    %35 = vector.broadcast %21 : vector<1x1024xbf16> to vector<4x1024xbf16>
    %36 = arith.mulf %34, %35 : vector<4x1024xbf16>
    %c0_24 = arith.constant 0 : index
    %c0_25 = arith.constant 0 : index
    %c0_26 = arith.constant 0 : index
    %37 = vector.load %arg3[%c0_24, %c0_25, %c0_26] : memref<9x8x4xbf16, #tpu.memory_space<vmem>>, vector<1x8x4xbf16>
    %38 = vector.shape_cast %37 : vector<1x8x4xbf16> to vector<8x4xbf16>
    %cst_27 = arith.constant dense<0.000000e+00> : vector<8x1024xf32>
    %39 = tpu.matmul %38, %36, %cst_27 {dimension_numbers = #tpu.dot_dimension_numbers<[1], [0], [0], [1], [0, 0, 1, 1], [], []>} : vector<8x4xbf16>, vector<4x1024xbf16>, vector<8x1024xf32> -> vector<8x1024xf32>
    %c0_28 = arith.constant 0 : index
    %c96 = arith.constant 96 : index
    %40 = vector.load %arg10[%c0_28, %c96] : memref<4x1280xbf16, #tpu.memory_space<vmem>>, vector<4x1024xbf16>
    %c1 = arith.constant 1 : index
    %c0_29 = arith.constant 0 : index
    %c0_30 = arith.constant 0 : index
    %41 = vector.load %arg3[%c1, %c0_29, %c0_30] : memref<9x8x4xbf16, #tpu.memory_space<vmem>>, vector<1x8x4xbf16>
    %42 = vector.shape_cast %41 : vector<1x8x4xbf16> to vector<8x4xbf16>
    %cst_31 = arith.constant dense<0.000000e+00> : vector<8x1024xf32>
    %43 = tpu.matmul %42, %40, %cst_31 {dimension_numbers = #tpu.dot_dimension_numbers<[1], [0], [0], [1], [0, 0, 1, 1], [], []>} : vector<8x4xbf16>, vector<4x1024xbf16>, vector<8x1024xf32> -> vector<8x1024xf32>
    %44 = arith.addf %39, %43 : vector<8x1024xf32>
    %c0_32 = arith.constant 0 : index
    %c97 = arith.constant 97 : index
    %45 = vector.load %arg10[%c0_32, %c97] : memref<4x1280xbf16, #tpu.memory_space<vmem>>, vector<4x1024xbf16>
    %46 = vector.broadcast %27 : vector<1x1024xbf16> to vector<4x1024xbf16>
    %47 = arith.mulf %45, %46 : vector<4x1024xbf16>
    %c2 = arith.constant 2 : index
    %c0_33 = arith.constant 0 : index
    %c0_34 = arith.constant 0 : index
    %48 = vector.load %arg3[%c2, %c0_33, %c0_34] : memref<9x8x4xbf16, #tpu.memory_space<vmem>>, vector<1x8x4xbf16>
    %49 = vector.shape_cast %48 : vector<1x8x4xbf16> to vector<8x4xbf16>
    %cst_35 = arith.constant dense<0.000000e+00> : vector<8x1024xf32>
    %50 = tpu.matmul %49, %47, %cst_35 {dimension_numbers = #tpu.dot_dimension_numbers<[1], [0], [0], [1], [0, 0, 1, 1], [], []>} : vector<8x4xbf16>, vector<4x1024xbf16>, vector<8x1024xf32> -> vector<8x1024xf32>
    %51 = arith.addf %44, %50 : vector<8x1024xf32>
    %c0_36 = arith.constant 0 : index
    %c127 = arith.constant 127 : index
    %52 = vector.load %arg10[%c0_36, %c127] : memref<4x1280xbf16, #tpu.memory_space<vmem>>, vector<4x1024xbf16>
    %53 = vector.broadcast %21 : vector<1x1024xbf16> to vector<4x1024xbf16>
    %54 = arith.mulf %52, %53 : vector<4x1024xbf16>
    %c3 = arith.constant 3 : index
    %c0_37 = arith.constant 0 : index
    %c0_38 = arith.constant 0 : index
    %55 = vector.load %arg3[%c3, %c0_37, %c0_38] : memref<9x8x4xbf16, #tpu.memory_space<vmem>>, vector<1x8x4xbf16>
    %56 = vector.shape_cast %55 : vector<1x8x4xbf16> to vector<8x4xbf16>
    %cst_39 = arith.constant dense<0.000000e+00> : vector<8x1024xf32>
    %57 = tpu.matmul %56, %54, %cst_39 {dimension_numbers = #tpu.dot_dimension_numbers<[1], [0], [0], [1], [0, 0, 1, 1], [], []>} : vector<8x4xbf16>, vector<4x1024xbf16>, vector<8x1024xf32> -> vector<8x1024xf32>
    %58 = arith.addf %51, %57 : vector<8x1024xf32>
    %c0_40 = arith.constant 0 : index
    %c128_41 = arith.constant 128 : index
    %59 = vector.load %arg10[%c0_40, %c128_41] : memref<4x1280xbf16, #tpu.memory_space<vmem>>, vector<4x1024xbf16>
    %c4 = arith.constant 4 : index
    %c0_42 = arith.constant 0 : index
    %c0_43 = arith.constant 0 : index
    %60 = vector.load %arg3[%c4, %c0_42, %c0_43] : memref<9x8x4xbf16, #tpu.memory_space<vmem>>, vector<1x8x4xbf16>
    %61 = vector.shape_cast %60 : vector<1x8x4xbf16> to vector<8x4xbf16>
    %cst_44 = arith.constant dense<0.000000e+00> : vector<8x1024xf32>
    %62 = tpu.matmul %61, %59, %cst_44 {dimension_numbers = #tpu.dot_dimension_numbers<[1], [0], [0], [1], [0, 0, 1, 1], [], []>} : vector<8x4xbf16>, vector<4x1024xbf16>, vector<8x1024xf32> -> vector<8x1024xf32>
    %63 = arith.addf %58, %62 : vector<8x1024xf32>
    %c0_45 = arith.constant 0 : index
    %c129 = arith.constant 129 : index
    %64 = vector.load %arg10[%c0_45, %c129] : memref<4x1280xbf16, #tpu.memory_space<vmem>>, vector<4x1024xbf16>
    %65 = vector.broadcast %27 : vector<1x1024xbf16> to vector<4x1024xbf16>
    %66 = arith.mulf %64, %65 : vector<4x1024xbf16>
    %c5 = arith.constant 5 : index
    %c0_46 = arith.constant 0 : index
    %c0_47 = arith.constant 0 : index
    %67 = vector.load %arg3[%c5, %c0_46, %c0_47] : memref<9x8x4xbf16, #tpu.memory_space<vmem>>, vector<1x8x4xbf16>
    %68 = vector.shape_cast %67 : vector<1x8x4xbf16> to vector<8x4xbf16>
    %cst_48 = arith.constant dense<0.000000e+00> : vector<8x1024xf32>
    %69 = tpu.matmul %68, %66, %cst_48 {dimension_numbers = #tpu.dot_dimension_numbers<[1], [0], [0], [1], [0, 0, 1, 1], [], []>} : vector<8x4xbf16>, vector<4x1024xbf16>, vector<8x1024xf32> -> vector<8x1024xf32>
    %70 = arith.addf %63, %69 : vector<8x1024xf32>
    %c0_49 = arith.constant 0 : index
    %c159 = arith.constant 159 : index
    %71 = vector.load %arg10[%c0_49, %c159] : memref<4x1280xbf16, #tpu.memory_space<vmem>>, vector<4x1024xbf16>
    %72 = vector.broadcast %21 : vector<1x1024xbf16> to vector<4x1024xbf16>
    %73 = arith.mulf %71, %72 : vector<4x1024xbf16>
    %c6 = arith.constant 6 : index
    %c0_50 = arith.constant 0 : index
    %c0_51 = arith.constant 0 : index
    %74 = vector.load %arg3[%c6, %c0_50, %c0_51] : memref<9x8x4xbf16, #tpu.memory_space<vmem>>, vector<1x8x4xbf16>
    %75 = vector.shape_cast %74 : vector<1x8x4xbf16> to vector<8x4xbf16>
    %cst_52 = arith.constant dense<0.000000e+00> : vector<8x1024xf32>
    %76 = tpu.matmul %75, %73, %cst_52 {dimension_numbers = #tpu.dot_dimension_numbers<[1], [0], [0], [1], [0, 0, 1, 1], [], []>} : vector<8x4xbf16>, vector<4x1024xbf16>, vector<8x1024xf32> -> vector<8x1024xf32>
    %77 = arith.addf %70, %76 : vector<8x1024xf32>
    %c0_53 = arith.constant 0 : index
    %c160 = arith.constant 160 : index
    %78 = vector.load %arg10[%c0_53, %c160] : memref<4x1280xbf16, #tpu.memory_space<vmem>>, vector<4x1024xbf16>
    %c7 = arith.constant 7 : index
    %c0_54 = arith.constant 0 : index
    %c0_55 = arith.constant 0 : index
    %79 = vector.load %arg3[%c7, %c0_54, %c0_55] : memref<9x8x4xbf16, #tpu.memory_space<vmem>>, vector<1x8x4xbf16>
    %80 = vector.shape_cast %79 : vector<1x8x4xbf16> to vector<8x4xbf16>
    %cst_56 = arith.constant dense<0.000000e+00> : vector<8x1024xf32>
    %81 = tpu.matmul %80, %78, %cst_56 {dimension_numbers = #tpu.dot_dimension_numbers<[1], [0], [0], [1], [0, 0, 1, 1], [], []>} : vector<8x4xbf16>, vector<4x1024xbf16>, vector<8x1024xf32> -> vector<8x1024xf32>
    %82 = arith.addf %77, %81 : vector<8x1024xf32>
    %c0_57 = arith.constant 0 : index
    %c161 = arith.constant 161 : index
    %83 = vector.load %arg10[%c0_57, %c161] : memref<4x1280xbf16, #tpu.memory_space<vmem>>, vector<4x1024xbf16>
    %84 = vector.broadcast %27 : vector<1x1024xbf16> to vector<4x1024xbf16>
    %85 = arith.mulf %83, %84 : vector<4x1024xbf16>
    %c8 = arith.constant 8 : index
    %c0_58 = arith.constant 0 : index
    %c0_59 = arith.constant 0 : index
    %86 = vector.load %arg3[%c8, %c0_58, %c0_59] : memref<9x8x4xbf16, #tpu.memory_space<vmem>>, vector<1x8x4xbf16>
    %87 = vector.shape_cast %86 : vector<1x8x4xbf16> to vector<8x4xbf16>
    %cst_60 = arith.constant dense<0.000000e+00> : vector<8x1024xf32>
    %88 = tpu.matmul %87, %85, %cst_60 {dimension_numbers = #tpu.dot_dimension_numbers<[1], [0], [0], [1], [0, 0, 1, 1], [], []>} : vector<8x4xbf16>, vector<4x1024xbf16>, vector<8x1024xf32> -> vector<8x1024xf32>
    %89 = arith.addf %82, %88 : vector<8x1024xf32>
    %c0_61 = arith.constant 0 : index
    %c0_62 = arith.constant 0 : index
    %90 = vector.load %arg4[%c0_61, %c0_62] : memref<8x1xf32, #tpu.memory_space<vmem>>, vector<8x1xf32>
    %91 = vector.broadcast %90 : vector<8x1xf32> to vector<8x1024xf32>
    %92 = arith.mulf %89, %91 : vector<8x1024xf32>
    %c0_63 = arith.constant 0 : index
    %c0_64 = arith.constant 0 : index
    %93 = vector.load %arg5[%c0_63, %c0_64] : memref<8x1xf32, #tpu.memory_space<vmem>>, vector<8x1xf32>
    %94 = vector.broadcast %93 : vector<8x1xf32> to vector<8x1024xf32>
    %95 = arith.addf %92, %94 : vector<8x1024xf32>
    %cst_65 = arith.constant 0.000000e+00 : f32
    %96 = vector.broadcast %cst_65 : f32 to vector<8x1024xf32>
    %97 = arith.maximumf %95, %96 : vector<8x1024xf32>
    %98 = arith.truncf %97 : vector<8x1024xf32> to vector<8x1024xbf16>
    %c0_66 = arith.constant 0 : index
    %c128_67 = arith.constant 128 : index
    %99 = vector.load %arg11[%c0_66, %c128_67] : memref<8x1280xbf16, #tpu.memory_space<vmem>>, vector<8x1024xbf16>
    tpu.vector_store %arg11[%c0_66, %c128_67], %98 {strides = array<i32>} : memref<8x1280xbf16, #tpu.memory_space<vmem>>, vector<8x1024xbf16>,
    %c0_68 = arith.constant 0 : index
    %c95_69 = arith.constant 95 : index
    %100 = vector.load %arg11[%c0_68, %c95_69] : memref<8x1280xbf16, #tpu.memory_space<vmem>>, vector<8x1024xbf16>
    %101 = vector.broadcast %21 : vector<1x1024xbf16> to vector<8x1024xbf16>
    %102 = arith.mulf %100, %101 : vector<8x1024xbf16>
    %c0_70 = arith.constant 0 : index
    %c0_71 = arith.constant 0 : index
    %c0_72 = arith.constant 0 : index
    %103 = vector.load %arg6[%c0_70, %c0_71, %c0_72] : memref<9x8x8xbf16, #tpu.memory_space<vmem>>, vector<1x8x8xbf16>
    %104 = vector.shape_cast %103 : vector<1x8x8xbf16> to vector<8x8xbf16>
    %cst_73 = arith.constant dense<0.000000e+00> : vector<8x1024xf32>
    %105 = tpu.matmul %104, %102, %cst_73 {dimension_numbers = #tpu.dot_dimension_numbers<[1], [0], [0], [1], [0, 0, 1, 1], [], []>} : vector<8x8xbf16>, vector<8x1024xbf16>, vector<8x1024xf32> -> vector<8x1024xf32>
    %c0_74 = arith.constant 0 : index
    %c96_75 = arith.constant 96 : index
    %106 = vector.load %arg11[%c0_74, %c96_75] : memref<8x1280xbf16, #tpu.memory_space<vmem>>, vector<8x1024xbf16>
    %c1_76 = arith.constant 1 : index
    %c0_77 = arith.constant 0 : index
    %c0_78 = arith.constant 0 : index
    %107 = vector.load %arg6[%c1_76, %c0_77, %c0_78] : memref<9x8x8xbf16, #tpu.memory_space<vmem>>, vector<1x8x8xbf16>
    %108 = vector.shape_cast %107 : vector<1x8x8xbf16> to vector<8x8xbf16>
    %cst_79 = arith.constant dense<0.000000e+00> : vector<8x1024xf32>
    %109 = tpu.matmul %108, %106, %cst_79 {dimension_numbers = #tpu.dot_dimension_numbers<[1], [0], [0], [1], [0, 0, 1, 1], [], []>} : vector<8x8xbf16>, vector<8x1024xbf16>, vector<8x1024xf32> -> vector<8x1024xf32>
    %110 = arith.addf %105, %109 : vector<8x1024xf32>
    %c0_80 = arith.constant 0 : index
    %c97_81 = arith.constant 97 : index
    %111 = vector.load %arg11[%c0_80, %c97_81] : memref<8x1280xbf16, #tpu.memory_space<vmem>>, vector<8x1024xbf16>
    %112 = vector.broadcast %27 : vector<1x1024xbf16> to vector<8x1024xbf16>
    %113 = arith.mulf %111, %112 : vector<8x1024xbf16>
    %c2_82 = arith.constant 2 : index
    %c0_83 = arith.constant 0 : index
    %c0_84 = arith.constant 0 : index
    %114 = vector.load %arg6[%c2_82, %c0_83, %c0_84] : memref<9x8x8xbf16, #tpu.memory_space<vmem>>, vector<1x8x8xbf16>
    %115 = vector.shape_cast %114 : vector<1x8x8xbf16> to vector<8x8xbf16>
    %cst_85 = arith.constant dense<0.000000e+00> : vector<8x1024xf32>
    %116 = tpu.matmul %115, %113, %cst_85 {dimension_numbers = #tpu.dot_dimension_numbers<[1], [0], [0], [1], [0, 0, 1, 1], [], []>} : vector<8x8xbf16>, vector<8x1024xbf16>, vector<8x1024xf32> -> vector<8x1024xf32>
    %117 = arith.addf %110, %116 : vector<8x1024xf32>
    %c0_86 = arith.constant 0 : index
    %c127_87 = arith.constant 127 : index
    %118 = vector.load %arg11[%c0_86, %c127_87] : memref<8x1280xbf16, #tpu.memory_space<vmem>>, vector<8x1024xbf16>
    %119 = vector.broadcast %21 : vector<1x1024xbf16> to vector<8x1024xbf16>
    %120 = arith.mulf %118, %119 : vector<8x1024xbf16>
    %c3_88 = arith.constant 3 : index
    %c0_89 = arith.constant 0 : index
    %c0_90 = arith.constant 0 : index
    %121 = vector.load %arg6[%c3_88, %c0_89, %c0_90] : memref<9x8x8xbf16, #tpu.memory_space<vmem>>, vector<1x8x8xbf16>
    %122 = vector.shape_cast %121 : vector<1x8x8xbf16> to vector<8x8xbf16>
    %cst_91 = arith.constant dense<0.000000e+00> : vector<8x1024xf32>
    %123 = tpu.matmul %122, %120, %cst_91 {dimension_numbers = #tpu.dot_dimension_numbers<[1], [0], [0], [1], [0, 0, 1, 1], [], []>} : vector<8x8xbf16>, vector<8x1024xbf16>, vector<8x1024xf32> -> vector<8x1024xf32>
    %124 = arith.addf %117, %123 : vector<8x1024xf32>
    %c0_92 = arith.constant 0 : index
    %c128_93 = arith.constant 128 : index
    %125 = vector.load %arg11[%c0_92, %c128_93] : memref<8x1280xbf16, #tpu.memory_space<vmem>>, vector<8x1024xbf16>
    %c4_94 = arith.constant 4 : index
    %c0_95 = arith.constant 0 : index
    %c0_96 = arith.constant 0 : index
    %126 = vector.load %arg6[%c4_94, %c0_95, %c0_96] : memref<9x8x8xbf16, #tpu.memory_space<vmem>>, vector<1x8x8xbf16>
    %127 = vector.shape_cast %126 : vector<1x8x8xbf16> to vector<8x8xbf16>
    %cst_97 = arith.constant dense<0.000000e+00> : vector<8x1024xf32>
    %128 = tpu.matmul %127, %125, %cst_97 {dimension_numbers = #tpu.dot_dimension_numbers<[1], [0], [0], [1], [0, 0, 1, 1], [], []>} : vector<8x8xbf16>, vector<8x1024xbf16>, vector<8x1024xf32> -> vector<8x1024xf32>
    %129 = arith.addf %124, %128 : vector<8x1024xf32>
    %c0_98 = arith.constant 0 : index
    %c129_99 = arith.constant 129 : index
    %130 = vector.load %arg11[%c0_98, %c129_99] : memref<8x1280xbf16, #tpu.memory_space<vmem>>, vector<8x1024xbf16>
    %131 = vector.broadcast %27 : vector<1x1024xbf16> to vector<8x1024xbf16>
    %132 = arith.mulf %130, %131 : vector<8x1024xbf16>
    %c5_100 = arith.constant 5 : index
    %c0_101 = arith.constant 0 : index
    %c0_102 = arith.constant 0 : index
    %133 = vector.load %arg6[%c5_100, %c0_101, %c0_102] : memref<9x8x8xbf16, #tpu.memory_space<vmem>>, vector<1x8x8xbf16>
    %134 = vector.shape_cast %133 : vector<1x8x8xbf16> to vector<8x8xbf16>
    %cst_103 = arith.constant dense<0.000000e+00> : vector<8x1024xf32>
    %135 = tpu.matmul %134, %132, %cst_103 {dimension_numbers = #tpu.dot_dimension_numbers<[1], [0], [0], [1], [0, 0, 1, 1], [], []>} : vector<8x8xbf16>, vector<8x1024xbf16>, vector<8x1024xf32> -> vector<8x1024xf32>
    %136 = arith.addf %129, %135 : vector<8x1024xf32>
    %c0_104 = arith.constant 0 : index
    %c159_105 = arith.constant 159 : index
    %137 = vector.load %arg11[%c0_104, %c159_105] : memref<8x1280xbf16, #tpu.memory_space<vmem>>, vector<8x1024xbf16>
    %138 = vector.broadcast %21 : vector<1x1024xbf16> to vector<8x1024xbf16>
    %139 = arith.mulf %137, %138 : vector<8x1024xbf16>
    %c6_106 = arith.constant 6 : index
    %c0_107 = arith.constant 0 : index
    %c0_108 = arith.constant 0 : index
    %140 = vector.load %arg6[%c6_106, %c0_107, %c0_108] : memref<9x8x8xbf16, #tpu.memory_space<vmem>>, vector<1x8x8xbf16>
    %141 = vector.shape_cast %140 : vector<1x8x8xbf16> to vector<8x8xbf16>
    %cst_109 = arith.constant dense<0.000000e+00> : vector<8x1024xf32>
    %142 = tpu.matmul %141, %139, %cst_109 {dimension_numbers = #tpu.dot_dimension_numbers<[1], [0], [0], [1], [0, 0, 1, 1], [], []>} : vector<8x8xbf16>, vector<8x1024xbf16>, vector<8x1024xf32> -> vector<8x1024xf32>
    %143 = arith.addf %136, %142 : vector<8x1024xf32>
    %c0_110 = arith.constant 0 : index
    %c160_111 = arith.constant 160 : index
    %144 = vector.load %arg11[%c0_110, %c160_111] : memref<8x1280xbf16, #tpu.memory_space<vmem>>, vector<8x1024xbf16>
    %c7_112 = arith.constant 7 : index
    %c0_113 = arith.constant 0 : index
    %c0_114 = arith.constant 0 : index
    %145 = vector.load %arg6[%c7_112, %c0_113, %c0_114] : memref<9x8x8xbf16, #tpu.memory_space<vmem>>, vector<1x8x8xbf16>
    %146 = vector.shape_cast %145 : vector<1x8x8xbf16> to vector<8x8xbf16>
    %cst_115 = arith.constant dense<0.000000e+00> : vector<8x1024xf32>
    %147 = tpu.matmul %146, %144, %cst_115 {dimension_numbers = #tpu.dot_dimension_numbers<[1], [0], [0], [1], [0, 0, 1, 1], [], []>} : vector<8x8xbf16>, vector<8x1024xbf16>, vector<8x1024xf32> -> vector<8x1024xf32>
    %148 = arith.addf %143, %147 : vector<8x1024xf32>
    %c0_116 = arith.constant 0 : index
    %c161_117 = arith.constant 161 : index
    %149 = vector.load %arg11[%c0_116, %c161_117] : memref<8x1280xbf16, #tpu.memory_space<vmem>>, vector<8x1024xbf16>
    %150 = vector.broadcast %27 : vector<1x1024xbf16> to vector<8x1024xbf16>
    %151 = arith.mulf %149, %150 : vector<8x1024xbf16>
    %c8_118 = arith.constant 8 : index
    %c0_119 = arith.constant 0 : index
    %c0_120 = arith.constant 0 : index
    %152 = vector.load %arg6[%c8_118, %c0_119, %c0_120] : memref<9x8x8xbf16, #tpu.memory_space<vmem>>, vector<1x8x8xbf16>
    %153 = vector.shape_cast %152 : vector<1x8x8xbf16> to vector<8x8xbf16>
    %cst_121 = arith.constant dense<0.000000e+00> : vector<8x1024xf32>
    %154 = tpu.matmul %153, %151, %cst_121 {dimension_numbers = #tpu.dot_dimension_numbers<[1], [0], [0], [1], [0, 0, 1, 1], [], []>} : vector<8x8xbf16>, vector<8x1024xbf16>, vector<8x1024xf32> -> vector<8x1024xf32>
    %155 = arith.addf %148, %154 : vector<8x1024xf32>
    %c0_122 = arith.constant 0 : index
    %c0_123 = arith.constant 0 : index
    %156 = vector.load %arg7[%c0_122, %c0_123] : memref<8x1xf32, #tpu.memory_space<vmem>>, vector<8x1xf32>
    %157 = vector.broadcast %156 : vector<8x1xf32> to vector<8x1024xf32>
    %158 = arith.mulf %155, %157 : vector<8x1024xf32>
    %c0_124 = arith.constant 0 : index
    %c0_125 = arith.constant 0 : index
    %159 = vector.load %arg8[%c0_124, %c0_125] : memref<8x1xf32, #tpu.memory_space<vmem>>, vector<8x1xf32>
    %160 = vector.broadcast %159 : vector<8x1xf32> to vector<8x1024xf32>
    %161 = arith.addf %158, %160 : vector<8x1024xf32>
    %c0_126 = arith.constant 0 : index
    %c0_127 = arith.constant 0 : index
    %c0_128 = arith.constant 0 : index
    %162 = vector.load %arg9[%c0_126, %c0_127, %c0_128] : memref<2x8x1024xf32, #tpu.memory_space<vmem>>, vector<1x8x1024xf32>
    %163 = vector.shape_cast %162 : vector<1x8x1024xf32> to vector<8x1024xf32>
    %164 = vector.shape_cast %161 : vector<8x1024xf32> to vector<1x8x1024xf32>
    tpu.vector_store %arg9[%c0_126, %c0_127, %c0_128], %164 {strides = array<i32>} : memref<2x8x1024xf32, #tpu.memory_space<vmem>>, vector<1x8x1024xf32>,
    %c1_129 = arith.constant 1 : index
    %c0_130 = arith.constant 0 : index
    %c0_131 = arith.constant 0 : index
    %165 = vector.load %arg1[%c1_129, %c0_130, %c0_131] : memref<2x4x256xbf16, #tpu.memory_space<vmem>>, vector<1x4x256xbf16>
    %166 = vector.shape_cast %165 : vector<1x4x256xbf16> to vector<4x256xbf16>
    %c0_132 = arith.constant 0 : index
    %c0_133 = arith.constant 0 : index
    %167 = vector.load %arg2[%c0_132, %c0_133] : memref<256x1024xbf16, #tpu.memory_space<vmem>>, vector<256x1024xbf16>
    %cst_134 = arith.constant dense<0.000000e+00> : vector<4x1024xf32>
    %168 = tpu.matmul %166, %167, %cst_134 {dimension_numbers = #tpu.dot_dimension_numbers<[1], [0], [0], [1], [0, 0, 1, 1], [], []>} : vector<4x256xbf16>, vector<256x1024xbf16>, vector<4x1024xf32> -> vector<4x1024xf32>
    %169 = arith.truncf %168 : vector<4x1024xf32> to vector<4x1024xbf16>
    %c0_135 = arith.constant 0 : index
    %c128_136 = arith.constant 128 : index
    %170 = vector.load %arg10[%c0_135, %c128_136] : memref<4x1280xbf16, #tpu.memory_space<vmem>>, vector<4x1024xbf16>
    tpu.vector_store %arg10[%c0_135, %c128_136], %169 {strides = array<i32>} : memref<4x1280xbf16, #tpu.memory_space<vmem>>, vector<4x1024xbf16>,
    %c0_137 = arith.constant 0 : index
    %c95_138 = arith.constant 95 : index
    %171 = vector.load %arg10[%c0_137, %c95_138] : memref<4x1280xbf16, #tpu.memory_space<vmem>>, vector<4x1024xbf16>
    %172 = vector.broadcast %21 : vector<1x1024xbf16> to vector<4x1024xbf16>
    %173 = arith.mulf %171, %172 : vector<4x1024xbf16>
    %c0_139 = arith.constant 0 : index
    %c0_140 = arith.constant 0 : index
    %c0_141 = arith.constant 0 : index
    %174 = vector.load %arg3[%c0_139, %c0_140, %c0_141] : memref<9x8x4xbf16, #tpu.memory_space<vmem>>, vector<1x8x4xbf16>
    %175 = vector.shape_cast %174 : vector<1x8x4xbf16> to vector<8x4xbf16>
    %cst_142 = arith.constant dense<0.000000e+00> : vector<8x1024xf32>
    %176 = tpu.matmul %175, %173, %cst_142 {dimension_numbers = #tpu.dot_dimension_numbers<[1], [0], [0], [1], [0, 0, 1, 1], [], []>} : vector<8x4xbf16>, vector<4x1024xbf16>, vector<8x1024xf32> -> vector<8x1024xf32>
    %c0_143 = arith.constant 0 : index
    %c96_144 = arith.constant 96 : index
    %177 = vector.load %arg10[%c0_143, %c96_144] : memref<4x1280xbf16, #tpu.memory_space<vmem>>, vector<4x1024xbf16>
    %c1_145 = arith.constant 1 : index
    %c0_146 = arith.constant 0 : index
    %c0_147 = arith.constant 0 : index
    %178 = vector.load %arg3[%c1_145, %c0_146, %c0_147] : memref<9x8x4xbf16, #tpu.memory_space<vmem>>, vector<1x8x4xbf16>
    %179 = vector.shape_cast %178 : vector<1x8x4xbf16> to vector<8x4xbf16>
    %cst_148 = arith.constant dense<0.000000e+00> : vector<8x1024xf32>
    %180 = tpu.matmul %179, %177, %cst_148 {dimension_numbers = #tpu.dot_dimension_numbers<[1], [0], [0], [1], [0, 0, 1, 1], [], []>} : vector<8x4xbf16>, vector<4x1024xbf16>, vector<8x1024xf32> -> vector<8x1024xf32>
    %181 = arith.addf %176, %180 : vector<8x1024xf32>
    %c0_149 = arith.constant 0 : index
    %c97_150 = arith.constant 97 : index
    %182 = vector.load %arg10[%c0_149, %c97_150] : memref<4x1280xbf16, #tpu.memory_space<vmem>>, vector<4x1024xbf16>
    %183 = vector.broadcast %27 : vector<1x1024xbf16> to vector<4x1024xbf16>
    %184 = arith.mulf %182, %183 : vector<4x1024xbf16>
    %c2_151 = arith.constant 2 : index
    %c0_152 = arith.constant 0 : index
    %c0_153 = arith.constant 0 : index
    %185 = vector.load %arg3[%c2_151, %c0_152, %c0_153] : memref<9x8x4xbf16, #tpu.memory_space<vmem>>, vector<1x8x4xbf16>
    %186 = vector.shape_cast %185 : vector<1x8x4xbf16> to vector<8x4xbf16>
    %cst_154 = arith.constant dense<0.000000e+00> : vector<8x1024xf32>
    %187 = tpu.matmul %186, %184, %cst_154 {dimension_numbers = #tpu.dot_dimension_numbers<[1], [0], [0], [1], [0, 0, 1, 1], [], []>} : vector<8x4xbf16>, vector<4x1024xbf16>, vector<8x1024xf32> -> vector<8x1024xf32>
    %188 = arith.addf %181, %187 : vector<8x1024xf32>
    %c0_155 = arith.constant 0 : index
    %c127_156 = arith.constant 127 : index
    %189 = vector.load %arg10[%c0_155, %c127_156] : memref<4x1280xbf16, #tpu.memory_space<vmem>>, vector<4x1024xbf16>
    %190 = vector.broadcast %21 : vector<1x1024xbf16> to vector<4x1024xbf16>
    %191 = arith.mulf %189, %190 : vector<4x1024xbf16>
    %c3_157 = arith.constant 3 : index
    %c0_158 = arith.constant 0 : index
    %c0_159 = arith.constant 0 : index
    %192 = vector.load %arg3[%c3_157, %c0_158, %c0_159] : memref<9x8x4xbf16, #tpu.memory_space<vmem>>, vector<1x8x4xbf16>
    %193 = vector.shape_cast %192 : vector<1x8x4xbf16> to vector<8x4xbf16>
    %cst_160 = arith.constant dense<0.000000e+00> : vector<8x1024xf32>
    %194 = tpu.matmul %193, %191, %cst_160 {dimension_numbers = #tpu.dot_dimension_numbers<[1], [0], [0], [1], [0, 0, 1, 1], [], []>} : vector<8x4xbf16>, vector<4x1024xbf16>, vector<8x1024xf32> -> vector<8x1024xf32>
    %195 = arith.addf %188, %194 : vector<8x1024xf32>
    %c0_161 = arith.constant 0 : index
    %c128_162 = arith.constant 128 : index
    %196 = vector.load %arg10[%c0_161, %c128_162] : memref<4x1280xbf16, #tpu.memory_space<vmem>>, vector<4x1024xbf16>
    %c4_163 = arith.constant 4 : index
    %c0_164 = arith.constant 0 : index
    %c0_165 = arith.constant 0 : index
    %197 = vector.load %arg3[%c4_163, %c0_164, %c0_165] : memref<9x8x4xbf16, #tpu.memory_space<vmem>>, vector<1x8x4xbf16>
    %198 = vector.shape_cast %197 : vector<1x8x4xbf16> to vector<8x4xbf16>
    %cst_166 = arith.constant dense<0.000000e+00> : vector<8x1024xf32>
    %199 = tpu.matmul %198, %196, %cst_166 {dimension_numbers = #tpu.dot_dimension_numbers<[1], [0], [0], [1], [0, 0, 1, 1], [], []>} : vector<8x4xbf16>, vector<4x1024xbf16>, vector<8x1024xf32> -> vector<8x1024xf32>
    %200 = arith.addf %195, %199 : vector<8x1024xf32>
    %c0_167 = arith.constant 0 : index
    %c129_168 = arith.constant 129 : index
    %201 = vector.load %arg10[%c0_167, %c129_168] : memref<4x1280xbf16, #tpu.memory_space<vmem>>, vector<4x1024xbf16>
    %202 = vector.broadcast %27 : vector<1x1024xbf16> to vector<4x1024xbf16>
    %203 = arith.mulf %201, %202 : vector<4x1024xbf16>
    %c5_169 = arith.constant 5 : index
    %c0_170 = arith.constant 0 : index
    %c0_171 = arith.constant 0 : index
    %204 = vector.load %arg3[%c5_169, %c0_170, %c0_171] : memref<9x8x4xbf16, #tpu.memory_space<vmem>>, vector<1x8x4xbf16>
    %205 = vector.shape_cast %204 : vector<1x8x4xbf16> to vector<8x4xbf16>
    %cst_172 = arith.constant dense<0.000000e+00> : vector<8x1024xf32>
    %206 = tpu.matmul %205, %203, %cst_172 {dimension_numbers = #tpu.dot_dimension_numbers<[1], [0], [0], [1], [0, 0, 1, 1], [], []>} : vector<8x4xbf16>, vector<4x1024xbf16>, vector<8x1024xf32> -> vector<8x1024xf32>
    %207 = arith.addf %200, %206 : vector<8x1024xf32>
    %c0_173 = arith.constant 0 : index
    %c159_174 = arith.constant 159 : index
    %208 = vector.load %arg10[%c0_173, %c159_174] : memref<4x1280xbf16, #tpu.memory_space<vmem>>, vector<4x1024xbf16>
    %209 = vector.broadcast %21 : vector<1x1024xbf16> to vector<4x1024xbf16>
    %210 = arith.mulf %208, %209 : vector<4x1024xbf16>
    %c6_175 = arith.constant 6 : index
    %c0_176 = arith.constant 0 : index
    %c0_177 = arith.constant 0 : index
    %211 = vector.load %arg3[%c6_175, %c0_176, %c0_177] : memref<9x8x4xbf16, #tpu.memory_space<vmem>>, vector<1x8x4xbf16>
    %212 = vector.shape_cast %211 : vector<1x8x4xbf16> to vector<8x4xbf16>
    %cst_178 = arith.constant dense<0.000000e+00> : vector<8x1024xf32>
    %213 = tpu.matmul %212, %210, %cst_178 {dimension_numbers = #tpu.dot_dimension_numbers<[1], [0], [0], [1], [0, 0, 1, 1], [], []>} : vector<8x4xbf16>, vector<4x1024xbf16>, vector<8x1024xf32> -> vector<8x1024xf32>
    %214 = arith.addf %207, %213 : vector<8x1024xf32>
    %c0_179 = arith.constant 0 : index
    %c160_180 = arith.constant 160 : index
    %215 = vector.load %arg10[%c0_179, %c160_180] : memref<4x1280xbf16, #tpu.memory_space<vmem>>, vector<4x1024xbf16>
    %c7_181 = arith.constant 7 : index
    %c0_182 = arith.constant 0 : index
    %c0_183 = arith.constant 0 : index
    %216 = vector.load %arg3[%c7_181, %c0_182, %c0_183] : memref<9x8x4xbf16, #tpu.memory_space<vmem>>, vector<1x8x4xbf16>
    %217 = vector.shape_cast %216 : vector<1x8x4xbf16> to vector<8x4xbf16>
    %cst_184 = arith.constant dense<0.000000e+00> : vector<8x1024xf32>
    %218 = tpu.matmul %217, %215, %cst_184 {dimension_numbers = #tpu.dot_dimension_numbers<[1], [0], [0], [1], [0, 0, 1, 1], [], []>} : vector<8x4xbf16>, vector<4x1024xbf16>, vector<8x1024xf32> -> vector<8x1024xf32>
    %219 = arith.addf %214, %218 : vector<8x1024xf32>
    %c0_185 = arith.constant 0 : index
    %c161_186 = arith.constant 161 : index
    %220 = vector.load %arg10[%c0_185, %c161_186] : memref<4x1280xbf16, #tpu.memory_space<vmem>>, vector<4x1024xbf16>
    %221 = vector.broadcast %27 : vector<1x1024xbf16> to vector<4x1024xbf16>
    %222 = arith.mulf %220, %221 : vector<4x1024xbf16>
    %c8_187 = arith.constant 8 : index
    %c0_188 = arith.constant 0 : index
    %c0_189 = arith.constant 0 : index
    %223 = vector.load %arg3[%c8_187, %c0_188, %c0_189] : memref<9x8x4xbf16, #tpu.memory_space<vmem>>, vector<1x8x4xbf16>
    %224 = vector.shape_cast %223 : vector<1x8x4xbf16> to vector<8x4xbf16>
    %cst_190 = arith.constant dense<0.000000e+00> : vector<8x1024xf32>
    %225 = tpu.matmul %224, %222, %cst_190 {dimension_numbers = #tpu.dot_dimension_numbers<[1], [0], [0], [1], [0, 0, 1, 1], [], []>} : vector<8x4xbf16>, vector<4x1024xbf16>, vector<8x1024xf32> -> vector<8x1024xf32>
    %226 = arith.addf %219, %225 : vector<8x1024xf32>
    %c0_191 = arith.constant 0 : index
    %c0_192 = arith.constant 0 : index
    %227 = vector.load %arg4[%c0_191, %c0_192] : memref<8x1xf32, #tpu.memory_space<vmem>>, vector<8x1xf32>
    %228 = vector.broadcast %227 : vector<8x1xf32> to vector<8x1024xf32>
    %229 = arith.mulf %226, %228 : vector<8x1024xf32>
    %c0_193 = arith.constant 0 : index
    %c0_194 = arith.constant 0 : index
    %230 = vector.load %arg5[%c0_193, %c0_194] : memref<8x1xf32, #tpu.memory_space<vmem>>, vector<8x1xf32>
    %231 = vector.broadcast %230 : vector<8x1xf32> to vector<8x1024xf32>
    %232 = arith.addf %229, %231 : vector<8x1024xf32>
    %cst_195 = arith.constant 0.000000e+00 : f32
    %233 = vector.broadcast %cst_195 : f32 to vector<8x1024xf32>
    %234 = arith.maximumf %232, %233 : vector<8x1024xf32>
    %235 = arith.truncf %234 : vector<8x1024xf32> to vector<8x1024xbf16>
    %c0_196 = arith.constant 0 : index
    %c128_197 = arith.constant 128 : index
    %236 = vector.load %arg11[%c0_196, %c128_197] : memref<8x1280xbf16, #tpu.memory_space<vmem>>, vector<8x1024xbf16>
    tpu.vector_store %arg11[%c0_196, %c128_197], %235 {strides = array<i32>} : memref<8x1280xbf16, #tpu.memory_space<vmem>>, vector<8x1024xbf16>,
    %c0_198 = arith.constant 0 : index
    %c95_199 = arith.constant 95 : index
    %237 = vector.load %arg11[%c0_198, %c95_199] : memref<8x1280xbf16, #tpu.memory_space<vmem>>, vector<8x1024xbf16>
    %238 = vector.broadcast %21 : vector<1x1024xbf16> to vector<8x1024xbf16>
    %239 = arith.mulf %237, %238 : vector<8x1024xbf16>
    %c0_200 = arith.constant 0 : index
    %c0_201 = arith.constant 0 : index
    %c0_202 = arith.constant 0 : index
    %240 = vector.load %arg6[%c0_200, %c0_201, %c0_202] : memref<9x8x8xbf16, #tpu.memory_space<vmem>>, vector<1x8x8xbf16>
    %241 = vector.shape_cast %240 : vector<1x8x8xbf16> to vector<8x8xbf16>
    %cst_203 = arith.constant dense<0.000000e+00> : vector<8x1024xf32>
    %242 = tpu.matmul %241, %239, %cst_203 {dimension_numbers = #tpu.dot_dimension_numbers<[1], [0], [0], [1], [0, 0, 1, 1], [], []>} : vector<8x8xbf16>, vector<8x1024xbf16>, vector<8x1024xf32> -> vector<8x1024xf32>
    %c0_204 = arith.constant 0 : index
    %c96_205 = arith.constant 96 : index
    %243 = vector.load %arg11[%c0_204, %c96_205] : memref<8x1280xbf16, #tpu.memory_space<vmem>>, vector<8x1024xbf16>
    %c1_206 = arith.constant 1 : index
    %c0_207 = arith.constant 0 : index
    %c0_208 = arith.constant 0 : index
    %244 = vector.load %arg6[%c1_206, %c0_207, %c0_208] : memref<9x8x8xbf16, #tpu.memory_space<vmem>>, vector<1x8x8xbf16>
    %245 = vector.shape_cast %244 : vector<1x8x8xbf16> to vector<8x8xbf16>
    %cst_209 = arith.constant dense<0.000000e+00> : vector<8x1024xf32>
    %246 = tpu.matmul %245, %243, %cst_209 {dimension_numbers = #tpu.dot_dimension_numbers<[1], [0], [0], [1], [0, 0, 1, 1], [], []>} : vector<8x8xbf16>, vector<8x1024xbf16>, vector<8x1024xf32> -> vector<8x1024xf32>
    %247 = arith.addf %242, %246 : vector<8x1024xf32>
    %c0_210 = arith.constant 0 : index
    %c97_211 = arith.constant 97 : index
    %248 = vector.load %arg11[%c0_210, %c97_211] : memref<8x1280xbf16, #tpu.memory_space<vmem>>, vector<8x1024xbf16>
    %249 = vector.broadcast %27 : vector<1x1024xbf16> to vector<8x1024xbf16>
    %250 = arith.mulf %248, %249 : vector<8x1024xbf16>
    %c2_212 = arith.constant 2 : index
    %c0_213 = arith.constant 0 : index
    %c0_214 = arith.constant 0 : index
    %251 = vector.load %arg6[%c2_212, %c0_213, %c0_214] : memref<9x8x8xbf16, #tpu.memory_space<vmem>>, vector<1x8x8xbf16>
    %252 = vector.shape_cast %251 : vector<1x8x8xbf16> to vector<8x8xbf16>
    %cst_215 = arith.constant dense<0.000000e+00> : vector<8x1024xf32>
    %253 = tpu.matmul %252, %250, %cst_215 {dimension_numbers = #tpu.dot_dimension_numbers<[1], [0], [0], [1], [0, 0, 1, 1], [], []>} : vector<8x8xbf16>, vector<8x1024xbf16>, vector<8x1024xf32> -> vector<8x1024xf32>
    %254 = arith.addf %247, %253 : vector<8x1024xf32>
    %c0_216 = arith.constant 0 : index
    %c127_217 = arith.constant 127 : index
    %255 = vector.load %arg11[%c0_216, %c127_217] : memref<8x1280xbf16, #tpu.memory_space<vmem>>, vector<8x1024xbf16>
    %256 = vector.broadcast %21 : vector<1x1024xbf16> to vector<8x1024xbf16>
    %257 = arith.mulf %255, %256 : vector<8x1024xbf16>
    %c3_218 = arith.constant 3 : index
    %c0_219 = arith.constant 0 : index
    %c0_220 = arith.constant 0 : index
    %258 = vector.load %arg6[%c3_218, %c0_219, %c0_220] : memref<9x8x8xbf16, #tpu.memory_space<vmem>>, vector<1x8x8xbf16>
    %259 = vector.shape_cast %258 : vector<1x8x8xbf16> to vector<8x8xbf16>
    %cst_221 = arith.constant dense<0.000000e+00> : vector<8x1024xf32>
    %260 = tpu.matmul %259, %257, %cst_221 {dimension_numbers = #tpu.dot_dimension_numbers<[1], [0], [0], [1], [0, 0, 1, 1], [], []>} : vector<8x8xbf16>, vector<8x1024xbf16>, vector<8x1024xf32> -> vector<8x1024xf32>
    %261 = arith.addf %254, %260 : vector<8x1024xf32>
    %c0_222 = arith.constant 0 : index
    %c128_223 = arith.constant 128 : index
    %262 = vector.load %arg11[%c0_222, %c128_223] : memref<8x1280xbf16, #tpu.memory_space<vmem>>, vector<8x1024xbf16>
    %c4_224 = arith.constant 4 : index
    %c0_225 = arith.constant 0 : index
    %c0_226 = arith.constant 0 : index
    %263 = vector.load %arg6[%c4_224, %c0_225, %c0_226] : memref<9x8x8xbf16, #tpu.memory_space<vmem>>, vector<1x8x8xbf16>
    %264 = vector.shape_cast %263 : vector<1x8x8xbf16> to vector<8x8xbf16>
    %cst_227 = arith.constant dense<0.000000e+00> : vector<8x1024xf32>
    %265 = tpu.matmul %264, %262, %cst_227 {dimension_numbers = #tpu.dot_dimension_numbers<[1], [0], [0], [1], [0, 0, 1, 1], [], []>} : vector<8x8xbf16>, vector<8x1024xbf16>, vector<8x1024xf32> -> vector<8x1024xf32>
    %266 = arith.addf %261, %265 : vector<8x1024xf32>
    %c0_228 = arith.constant 0 : index
    %c129_229 = arith.constant 129 : index
    %267 = vector.load %arg11[%c0_228, %c129_229] : memref<8x1280xbf16, #tpu.memory_space<vmem>>, vector<8x1024xbf16>
    %268 = vector.broadcast %27 : vector<1x1024xbf16> to vector<8x1024xbf16>
    %269 = arith.mulf %267, %268 : vector<8x1024xbf16>
    %c5_230 = arith.constant 5 : index
    %c0_231 = arith.constant 0 : index
    %c0_232 = arith.constant 0 : index
    %270 = vector.load %arg6[%c5_230, %c0_231, %c0_232] : memref<9x8x8xbf16, #tpu.memory_space<vmem>>, vector<1x8x8xbf16>
    %271 = vector.shape_cast %270 : vector<1x8x8xbf16> to vector<8x8xbf16>
    %cst_233 = arith.constant dense<0.000000e+00> : vector<8x1024xf32>
    %272 = tpu.matmul %271, %269, %cst_233 {dimension_numbers = #tpu.dot_dimension_numbers<[1], [0], [0], [1], [0, 0, 1, 1], [], []>} : vector<8x8xbf16>, vector<8x1024xbf16>, vector<8x1024xf32> -> vector<8x1024xf32>
    %273 = arith.addf %266, %272 : vector<8x1024xf32>
    %c0_234 = arith.constant 0 : index
    %c159_235 = arith.constant 159 : index
    %274 = vector.load %arg11[%c0_234, %c159_235] : memref<8x1280xbf16, #tpu.memory_space<vmem>>, vector<8x1024xbf16>
    %275 = vector.broadcast %21 : vector<1x1024xbf16> to vector<8x1024xbf16>
    %276 = arith.mulf %274, %275 : vector<8x1024xbf16>
    %c6_236 = arith.constant 6 : index
    %c0_237 = arith.constant 0 : index
    %c0_238 = arith.constant 0 : index
    %277 = vector.load %arg6[%c6_236, %c0_237, %c0_238] : memref<9x8x8xbf16, #tpu.memory_space<vmem>>, vector<1x8x8xbf16>
    %278 = vector.shape_cast %277 : vector<1x8x8xbf16> to vector<8x8xbf16>
    %cst_239 = arith.constant dense<0.000000e+00> : vector<8x1024xf32>
    %279 = tpu.matmul %278, %276, %cst_239 {dimension_numbers = #tpu.dot_dimension_numbers<[1], [0], [0], [1], [0, 0, 1, 1], [], []>} : vector<8x8xbf16>, vector<8x1024xbf16>, vector<8x1024xf32> -> vector<8x1024xf32>
    %280 = arith.addf %273, %279 : vector<8x1024xf32>
    %c0_240 = arith.constant 0 : index
    %c160_241 = arith.constant 160 : index
    %281 = vector.load %arg11[%c0_240, %c160_241] : memref<8x1280xbf16, #tpu.memory_space<vmem>>, vector<8x1024xbf16>
    %c7_242 = arith.constant 7 : index
    %c0_243 = arith.constant 0 : index
    %c0_244 = arith.constant 0 : index
    %282 = vector.load %arg6[%c7_242, %c0_243, %c0_244] : memref<9x8x8xbf16, #tpu.memory_space<vmem>>, vector<1x8x8xbf16>
    %283 = vector.shape_cast %282 : vector<1x8x8xbf16> to vector<8x8xbf16>
    %cst_245 = arith.constant dense<0.000000e+00> : vector<8x1024xf32>
    %284 = tpu.matmul %283, %281, %cst_245 {dimension_numbers = #tpu.dot_dimension_numbers<[1], [0], [0], [1], [0, 0, 1, 1], [], []>} : vector<8x8xbf16>, vector<8x1024xbf16>, vector<8x1024xf32> -> vector<8x1024xf32>
    %285 = arith.addf %280, %284 : vector<8x1024xf32>
    %c0_246 = arith.constant 0 : index
    %c161_247 = arith.constant 161 : index
    %286 = vector.load %arg11[%c0_246, %c161_247] : memref<8x1280xbf16, #tpu.memory_space<vmem>>, vector<8x1024xbf16>
    %287 = vector.broadcast %27 : vector<1x1024xbf16> to vector<8x1024xbf16>
    %288 = arith.mulf %286, %287 : vector<8x1024xbf16>
    %c8_248 = arith.constant 8 : index
    %c0_249 = arith.constant 0 : index
    %c0_250 = arith.constant 0 : index
    %289 = vector.load %arg6[%c8_248, %c0_249, %c0_250] : memref<9x8x8xbf16, #tpu.memory_space<vmem>>, vector<1x8x8xbf16>
    %290 = vector.shape_cast %289 : vector<1x8x8xbf16> to vector<8x8xbf16>
    %cst_251 = arith.constant dense<0.000000e+00> : vector<8x1024xf32>
    %291 = tpu.matmul %290, %288, %cst_251 {dimension_numbers = #tpu.dot_dimension_numbers<[1], [0], [0], [1], [0, 0, 1, 1], [], []>} : vector<8x8xbf16>, vector<8x1024xbf16>, vector<8x1024xf32> -> vector<8x1024xf32>
    %292 = arith.addf %285, %291 : vector<8x1024xf32>
    %c0_252 = arith.constant 0 : index
    %c0_253 = arith.constant 0 : index
    %293 = vector.load %arg7[%c0_252, %c0_253] : memref<8x1xf32, #tpu.memory_space<vmem>>, vector<8x1xf32>
    %294 = vector.broadcast %293 : vector<8x1xf32> to vector<8x1024xf32>
    %295 = arith.mulf %292, %294 : vector<8x1024xf32>
    %c0_254 = arith.constant 0 : index
    %c0_255 = arith.constant 0 : index
    %296 = vector.load %arg8[%c0_254, %c0_255] : memref<8x1xf32, #tpu.memory_space<vmem>>, vector<8x1xf32>
    %297 = vector.broadcast %296 : vector<8x1xf32> to vector<8x1024xf32>
    %298 = arith.addf %295, %297 : vector<8x1024xf32>
    %c1_256 = arith.constant 1 : index
    %c0_257 = arith.constant 0 : index
    %c0_258 = arith.constant 0 : index
    %299 = vector.load %arg9[%c1_256, %c0_257, %c0_258] : memref<2x8x1024xf32, #tpu.memory_space<vmem>>, vector<1x8x1024xf32>
    %300 = vector.shape_cast %299 : vector<1x8x1024xf32> to vector<8x1024xf32>
    %301 = vector.shape_cast %298 : vector<8x1024xf32> to vector<1x8x1024xf32>
    tpu.vector_store %arg9[%c1_256, %c0_257, %c0_258], %301 {strides = array<i32>} : memref<2x8x1024xf32, #tpu.memory_space<vmem>>, vector<1x8x1024xf32>,
    return
  }
  func.func @transform_0(%arg0: i32) -> (i32, i32, i32) {
    %c0_i32 = arith.constant 0 : i32
    %c0_i32_0 = arith.constant 0 : i32
    %c0_i32_1 = arith.constant 0 : i32
    return %arg0, %c0_i32, %c0_i32_0 : i32, i32, i32
  }
  func.func @transform_1(%arg0: i32) -> (i32, i32) {
    %c0_i32 = arith.constant 0 : i32
    %c0_i32_0 = arith.constant 0 : i32
    %c0_i32_1 = arith.constant 0 : i32
    return %c0_i32, %c0_i32_0 : i32, i32
  }
  func.func @transform_2(%arg0: i32) -> (i32, i32, i32) {
    %c0_i32 = arith.constant 0 : i32
    %c0_i32_0 = arith.constant 0 : i32
    %c0_i32_1 = arith.constant 0 : i32
    %c0_i32_2 = arith.constant 0 : i32
    return %c0_i32, %c0_i32_0, %c0_i32_1 : i32, i32, i32
  }
  func.func @transform_3(%arg0: i32) -> (i32, i32) {
    %c0_i32 = arith.constant 0 : i32
    %c0_i32_0 = arith.constant 0 : i32
    %c0_i32_1 = arith.constant 0 : i32
    return %c0_i32, %c0_i32_0 : i32, i32
  }
  func.func @transform_4(%arg0: i32) -> (i32, i32) {
    %c0_i32 = arith.constant 0 : i32
    %c0_i32_0 = arith.constant 0 : i32
    %c0_i32_1 = arith.constant 0 : i32
    return %c0_i32, %c0_i32_0 : i32, i32
  }
  func.func @transform_5(%arg0: i32) -> (i32, i32, i32) {
    %c0_i32 = arith.constant 0 : i32
    %c0_i32_0 = arith.constant 0 : i32
    %c0_i32_1 = arith.constant 0 : i32
    %c0_i32_2 = arith.constant 0 : i32
    return %c0_i32, %c0_i32_0, %c0_i32_1 : i32, i32, i32
  }
  func.func @transform_6(%arg0: i32) -> (i32, i32) {
    %c0_i32 = arith.constant 0 : i32
    %c0_i32_0 = arith.constant 0 : i32
    %c0_i32_1 = arith.constant 0 : i32
    return %c0_i32, %c0_i32_0 : i32, i32
  }
  func.func @transform_7(%arg0: i32) -> (i32, i32) {
    %c0_i32 = arith.constant 0 : i32
    %c0_i32_0 = arith.constant 0 : i32
    %c0_i32_1 = arith.constant 0 : i32
    return %c0_i32, %c0_i32_0 : i32, i32
  }
  func.func @transform_8(%arg0: i32) -> (i32, i32, i32) {
    %c0_i32 = arith.constant 0 : i32
    %c0_i32_0 = arith.constant 0 : i32
    %c0_i32_1 = arith.constant 0 : i32
    return %arg0, %c0_i32, %c0_i32_0 : i32, i32, i32
  }
}

</mosaic_0001>

<bundles_post_ra>
// kernel: up_forward.1
= control target key start
LH: loop header
LB: loop body
LE: loop exit
PB: predicated region body
PF: predicated region fallthrough
CT: control target
= control target key end

     0   :  { %13 = vsyncpa [#allocation5], 0  ;;  %s12931_s27 = smov [#allocation4]   ;;  %s15770_s0 = inlined_call_operand.vmem [shape: bf16[2,4,256], index: 0, kind: input, shape index: {}]   ;;  %s15771_s1 = inlined_call_operand.hbm [shape: bf16[256,1024], index: 1, kind: input, shape index: {}]   ;;  %s15772_s2 = inlined_call_operand.vmem [shape: bf16[9,8,4], index: 2, kind: input, shape index: {}]   ;;  %s15773_s3 = inlined_call_operand.vmem [shape: f32[8,1], index: 3, kind: input, shape index: {}]   ;;  %s15774_s4 = inlined_call_operand.vmem [shape: f32[8,1], index: 4, kind: input, shape index: {}]   ;;  %s15775_s5 = inlined_call_operand.vmem [shape: bf16[9,8,8], index: 5, kind: input, shape index: {}]   ;;  %s15776_s6 = inlined_call_operand.vmem [shape: f32[8,1], index: 6, kind: input, shape index: {}]   ;;  %s15777_s7 = inlined_call_operand.vmem [shape: f32[8,1], index: 7, kind: input, shape index: {}]   ;;  %s15778_s8 = inlined_call_operand.vmem [shape: f32[2,8,1024], index: 8, kind: output, shape index: {}]  }
   0x1   :  { %s21_s28 = sshll.u32 %s12931_s27, 4  ;;  %s22_s28 = int_to_ptr.vmem [resolvable:$true] %s21_s28 }
   0x2   :  { %s12917_s29 = scalar_lea.vmem %s22_s28, 16384  ;;  %p12922_p1 = scmp.lt.s32.totalorder %s22_s28, %s22_s28 }
   0x3   :  { %p12918_p0 = scmp.ne.s32.totalorder %s22_s28, %s12917_s29  ;;  %p12923_p2 = scmp.lt.s32.totalorder %s12917_s29, %s12917_s29 }
   0x5   :  { %p12924_p3 = por %p12923_p2, %p12922_p1 }
   0x7   :  { %p12925_p4 = pnand %p12924_p3, %p12918_p0 }
   0x9   :  { %12928 = shalt.err (!%p12925_p4)
}
   0xa   :  { %s12932_s30 = smov 512   ;;  %s12933_s9 = smov 32  }
   0xb   :  { %27 = dma.hbm_to_vmem [thread:$0]  %s15771_s1, 16384, %s22_s28, [#allocation5], %s12932_s30, %s12932_s30, %s12933_s9  }
   0xc   :  { %12929 = dma.done.wait [#allocation5], 16384  }
   0xd   :  { %12930 = vsyncadd [#allocation5], 4294950912  ;;  %v52_v0 = vlaneseq  ;;  %v214_v3 = vld [vmem:[#allocation4 + $0x1c0] sm:$0xff]  ;;  %v215_v5 = vld [vmem:[#allocation4 + $0x1c8] sm:$0xff]  ;;  %s12936_s13 = smov 97   ;;  %s12937_s14 = smov 95  }
   0xe   :  { %v218_v4 = vld [vmem:[#allocation4 + $0x1e0] sm:$0xff]  ;;  %v219_v8 = vld [vmem:[#allocation4 + $0x1e8] sm:$0xff]  ;;  %s12938_s15 = smov 127   ;;  %s12939_s16 = smov 1  }
   0xf   :  { %v12994_v1 = vand.u32 127, %v52_v0  ;;  %v12110_v7 = vcombine.high %v214_v3, %v218_v4  ;;  %v12109_v9 = vcombine.low %v214_v3, %v218_v4  ;;  %v206_v10 = vld [vmem:[#allocation4 + $0x180] sm:$0xff]  ;;  %v12112_v14 = vcombine.high %v215_v5, %v219_v8  ;;  %v207_v17 = vld [vmem:[#allocation4 + $0x188] sm:$0xff]  ;;  %s12941_s17 = smov 33   ;;  %s12942_s18 = smov 31  }
  0x10   :  { %v210_v11 = vld [vmem:[#allocation4 + $0x1a0] sm:$0xff]  ;;  %v12111_v15 = vcombine.low %v215_v5, %v219_v8  ;;  %v211_v18 = vld [vmem:[#allocation4 + $0x1a8] sm:$0xff]  ;;  %s12943_s25 = smov 96  }
  0x11   :  { %v12997_v2 = vadd.s32 128, %v12994_v1  ;;  %v13000_v6 = vadd.s32 256, %v12994_v1  ;;  %v13003_v12 = vadd.s32 384, %v12994_v1  ;;  %v61_v13 = vcvt.s32.f32 %v12994_v1  ;;  %v198_v19 = vld [vmem:[#allocation4 + $0x140] sm:$0xff]  ;;  %937 = vmatprep.subr.bf16.mxu0 %v12110_v7  ;;  %v199_v23 = vld [vmem:[#allocation4 + $0x148] sm:$0xff]  ;;  %978 = vmatprep.subr.bf16.mxu1 %v12112_v14 }
  0x12   :  { %v12102_v16 = vcombine.high %v206_v10, %v210_v11  ;;  %v12104_v21 = vcombine.high %v207_v17, %v211_v18  ;;  %v202_v22 = vld [vmem:[#allocation4 + $0x160] sm:$0xff]  ;;  %v203_v24 = vld [vmem:[#allocation4 + $0x168] sm:$0xff]  ;;  %938 = vmatpush1.bf16.msra.mxu0 %v12109_v9  ;;  %v12101_v25 = vcombine.low %v206_v10, %v210_v11  ;;  %979 = vmatpush1.bf16.msra.mxu1 %v12111_v15 }
  0x13   :  { %v62_v20 = vcvt.s32.f32 %v12997_v2  ;;  %v12103_v26 = vcombine.low %v207_v17, %v211_v18  ;;  %v12094_v27 = vcombine.high %v198_v19, %v202_v22  ;;  %v63_v28 = vcvt.s32.f32 %v13000_v6  ;;  %v190_v30 = vld [vmem:[#allocation4 + $0x100] sm:$0xff]  ;;  %v191_v35 = vld [vmem:[#allocation4 + $0x108] sm:$0xff] }
  0x14   :  { %939 = vmatprep.subr.bf16.mxu0 %v12102_v16  ;;  %980 = vmatprep.subr.bf16.mxu1 %v12104_v21  ;;  %v12096_v29 = vcombine.high %v199_v23, %v203_v24  ;;  %v194_v31 = vld [vmem:[#allocation4 + $0x120] sm:$0xff]  ;;  %v64_v32 = vcvt.s32.f32 %v13003_v12  ;;  %v69_v33 = vadd.f32 0.5, %v61_v13  ;;  %v195_v36 = vld [vmem:[#allocation4 + $0x128] sm:$0xff]  ;;  %v12093_v37 = vcombine.low %v198_v19, %v202_v22 }
  0x15   :  { %v70_v34 = vadd.f32 0.5, %v62_v20  ;;  %v12095_v38 = vcombine.low %v199_v23, %v203_v24  ;;  %v12086_v39 = vcombine.high %v190_v30, %v194_v31  ;;  %v71_v40 = vadd.f32 0.5, %v63_v28  ;;  %v182_v42 = vld [vmem:[#allocation4 + $0xc0] sm:$0xff]  ;;  %v183_v47 = vld [vmem:[#allocation4 + $0xc8] sm:$0xff] }
  0x16   :  { %940 = vmatpush1.bf16.msra.mxu0 %v12101_v25  ;;  %981 = vmatpush1.bf16.msra.mxu1 %v12103_v26  ;;  %v12088_v41 = vcombine.high %v191_v35, %v195_v36  ;;  %v186_v43 = vld [vmem:[#allocation4 + $0xe0] sm:$0xff]  ;;  %v72_v44 = vadd.f32 0.5, %v64_v32  ;;  %v77_v45 = vmul.f32 0.03125, %v69_v33  ;;  %v187_v48 = vld [vmem:[#allocation4 + $0xe8] sm:$0xff]  ;;  %v12085_v49 = vcombine.low %v190_v30, %v194_v31 }
  0x17   :  { %941 = vmatprep.subr.bf16.mxu0 %v12094_v27  ;;  %982 = vmatprep.subr.bf16.mxu1 %v12096_v29  ;;  %v78_v46 = vmul.f32 0.03125, %v70_v34  ;;  %v12087_v50 = vcombine.low %v191_v35, %v195_v36  ;;  %v12078_v51 = vcombine.high %v182_v42, %v186_v43  ;;  %v79_v52 = vmul.f32 0.03125, %v71_v40  ;;  %v174_v54 = vld [vmem:[#allocation4 + $0x80] sm:$0xff]  ;;  %v175_v59 = vld [vmem:[#allocation4 + $0x88] sm:$0xff] }
  0x18   :  { %v12080_v53 = vcombine.high %v183_v47, %v187_v48  ;;  %v178_v55 = vld [vmem:[#allocation4 + $0xa0] sm:$0xff]  ;;  %v80_v56 = vmul.f32 0.03125, %v72_v44  ;;  %v85_v57 = vfloor.f32 %v77_v45  ;;  %v179_v60 = vld [vmem:[#allocation4 + $0xa8] sm:$0xff]  ;;  %v12077_v61 = vcombine.low %v182_v42, %v186_v43 }
  0x19   :  { %v86_v58 = vfloor.f32 %v78_v46  ;;  %v12079_v62 = vcombine.low %v183_v47, %v187_v48  ;;  %v12070_v63 = vcombine.high %v174_v54, %v178_v55  ;;  %v166_v3 = vld [vmem:[#allocation4 + $0x40] sm:$0xff]  ;;  %v87_v4 = vfloor.f32 %v79_v52  ;;  %v167_v8 = vld [vmem:[#allocation4 + $0x48] sm:$0xff] }
  0x1a   :  { %942 = vmatpush1.bf16.msra.mxu0 %v12093_v37  ;;  %983 = vmatpush1.bf16.msra.mxu1 %v12095_v38  ;;  %v12072_v5 = vcombine.high %v175_v59, %v179_v60  ;;  %v170_v7 = vld [vmem:[#allocation4 + $0x60] sm:$0xff]  ;;  %v171_v9 = vld [vmem:[#allocation4 + $0x68] sm:$0xff]  ;;  %v88_v10 = vfloor.f32 %v80_v56  ;;  %v93_v11 = vmul.f32 32.0, %v85_v57  ;;  %v12069_v15 = vcombine.low %v174_v54, %v178_v55 }
  0x1b   :  { %943 = vmatprep.subr.bf16.mxu0 %v12086_v39  ;;  %984 = vmatprep.subr.bf16.mxu1 %v12088_v41  ;;  %v94_v14 = vmul.f32 32.0, %v86_v58  ;;  %v12071_v16 = vcombine.low %v175_v59, %v179_v60  ;;  %v12062_v17 = vcombine.high %v166_v3, %v170_v7  ;;  %v12064_v18 = vcombine.high %v167_v8, %v171_v9  ;;  %v158_v19 = vld [vmem:[#allocation4] sm:$0xff]  ;;  %v159_v24 = vld [vmem:[#allocation4 + $0x8] sm:$0xff] }
  0x1c   :  { %v13020_v21 = vld.sshfl [vmem:[%s15770_s0] sm:$0x33 pattern:$0x76325410]  ;;  %v95_v22 = vmul.f32 32.0, %v87_v4  ;;  %v163_v25 = vld [vmem:[#allocation4 + $0x28] sm:$0xff]  ;;  %v13028_v29 = vsub.f32 %v61_v13, %v93_v11  ;;  %v12061_v31 = vcombine.low %v166_v3, %v170_v7  ;;  %v12063_v33 = vcombine.low %v167_v8, %v171_v9 }
  0x1d   :  { %v162_v23 = vld [vmem:[#allocation4 + $0x20] sm:$0xff]  ;;  %v13024_v26 = vcombine.high %v13020_v21, %v13020_v21  ;;  %v96_v27 = vmul.f32 32.0, %v88_v10  ;;  %v13032_v30 = vsub.f32 %v62_v20, %v94_v14  ;;  %v12056_v35 = vcombine.high %v159_v24, %v163_v25  ;;  %v279_v39 = vld [vmem:[#allocation4 + $0x3c8] sm:$0xff] }
  0x1e   :  { %944 = vmatpush1.bf16.msra.mxu0 %v12085_v49  ;;  %985 = vmatpush1.bf16.msra.mxu1 %v12087_v50  ;;  %v12054_v34 = vcombine.high %v158_v19, %v162_v23  ;;  %v13037_v36 = vsub.f32 %v63_v28, %v95_v22  ;;  %v278_v13 = vld [vmem:[#allocation4 + $0x3c0] sm:$0xff]  ;;  %vm133_vm0 = vcmp.le.f32.partialorder %v13028_v29, 30.5  ;;  %v12934_v20 = vmov 1983009808   ;;  %v283_v40 = vld [vmem:[#allocation4 + $0x3e8] sm:$0xff] }
  0x1f   :  { %945 = vmatprep.subr.bf16.mxu0 %v12078_v51  ;;  %986 = vmatprep.subr.bf16.mxu1 %v12080_v53  ;;  %v282_v37 = vld [vmem:[#allocation4 + $0x3e0] sm:$0xff]  ;;  %v13042_v2 = vsub.f32 %v64_v32, %v96_v27  ;;  %vm134_vm1 = vcmp.le.f32.partialorder %v13032_v30, 30.5  ;;  %v1120_v38 = vunpack.c.l.s4 %v12934_v20  ;;  %v12053_v6 = vcombine.low %v158_v19, %v162_v23  ;;  %v13053_v48 = vld [vmem:[#allocation4 + $0x388] sm:$0xff] }
  0x20   :  { %969 = vmatprep.mubr.bf16.mxu0 %v13024_v26  ;;  %1010 = vmatprep.mubr.bf16.mxu1 %v13024_v26  ;;  %v13047_v28 = vadd.s32 512, %v12994_v1  ;;  %v12055_v41 = vcombine.low %v159_v24, %v163_v25  ;;  %v12174_v42 = vcombine.high %v278_v13, %v282_v37  ;;  %v12935_v12 = vmov 0.0   ;;  %v270_v45 = vld [vmem:[#allocation4 + $0x380] sm:$0xff]  ;;  %v13055_v49 = vld [vmem:[#allocation4 + $0x3a8] sm:$0xff] }
  0x21   :  { %v141_v32 = vsel %vm133_vm0, 1.0, %v12935_v12  ;;  %v142_v43 = vsel %vm134_vm1, 1.0, %v12935_v12  ;;  %v12176_v44 = vcombine.high %v279_v39, %v283_v40  ;;  %v274_v46 = vld [vmem:[#allocation4 + $0x3a0] sm:$0xff]  ;;  %vm135_vm2 = vcmp.le.f32.partialorder %v13037_v36, 30.5  ;;  %v13086_v3 = vld [vmem:[#allocation4 + $0x368] sm:$0xff] }
  0x22   :  { %946 = vmatpush1.bf16.msra.mxu0 %v12077_v61  ;;  %987 = vmatpush1.bf16.msra.mxu1 %v12079_v62  ;;  %vm136_vm3 = vcmp.le.f32.partialorder %v13042_v2, 30.5  ;;  %v1121_v47 = vunpack.c.0.s8 %v1120_v38  ;;  %v13058_v50 = vadd.s32 640, %v12994_v1  ;;  %v13061_v51 = vadd.s32 768, %v12994_v1  ;;  %v13077_v60 = vld [vmem:[#allocation4 + $0x340] sm:$0xff]  ;;  %v13093_v9 = vld [vmem:[#allocation4 + $0x308] sm:$0xff] }
  0x23   :  { %947 = vmatprep.subr.bf16.mxu0 %v12070_v63  ;;  %988 = vmatprep.subr.bf16.mxu1 %v12072_v5  ;;  %v12173_v52 = vcombine.low %v278_v13, %v282_v37  ;;  %v1123_v53 = vshrl.u32 %v52_v0, 7  ;;  %v13064_v54 = vpack.c.bf16 %v142_v43, %v141_v32  ;;  %v13067_v55 = vadd.s32 896, %v12994_v1  ;;  %v13079_v1 = vld [vmem:[#allocation4 + $0x360] sm:$0xff]  ;;  %v13084_v63 = vld [vmem:[#allocation4 + $0x348] sm:$0xff] }
  0x24   :  { %v12175_v56 = vcombine.low %v279_v39, %v283_v40  ;;  %v12166_v57 = vcombine.high %v270_v45, %v274_v46  ;;  %v143_v58 = vsel %vm135_vm2, 1.0, %v12935_v12  ;;  %v144_v59 = vsel %vm136_vm3, 1.0, %v12935_v12  ;;  %v13088_v4 = vld [vmem:[#allocation4 + $0x300] sm:$0xff]  ;;  %v13095_v10 = vld [vmem:[#allocation4 + $0x328] sm:$0xff] }
  0x25   :  { %v12168_v0 = vcombine.high %v13053_v48, %v13055_v49  ;;  %v13081_v61 = vsub.s32 %v1121_v47, %v1123_v53  ;;  %v65_v62 = vcvt.s32.f32 %v13047_v28  ;;  %v66_v5 = vcvt.s32.f32 %v13058_v50  ;;  %v13091_v8 = vld [vmem:[#allocation4 + $0x320] sm:$0xff]  ;;  %v13110_v22 = vld [vmem:[#allocation4 + $0x2c8] sm:$0xff] }
  0x26   :  { %948 = vmatpush1.bf16.msra.mxu0 %v12069_v15  ;;  %989 = vmatpush1.bf16.msra.mxu1 %v12071_v16  ;;  %v12165_v7 = vcombine.low %v270_v45, %v274_v46  ;;  %v13097_v11 = vpack.c.bf16 %v144_v59, %v143_v58  ;;  %v67_v15 = vcvt.s32.f32 %v13061_v51  ;;  %v12167_v16 = vcombine.low %v13053_v48, %v13055_v49  ;;  %v13108_v19 = vld [vmem:[#allocation4 + $0x2e0] sm:$0xff]  ;;  %v13117_v27 = vld [vmem:[#allocation4 + $0x2e8] sm:$0xff] }
  0x27   :  { %949 = vmatprep.subr.bf16.mxu0 %v12062_v17  ;;  %990 = vmatprep.subr.bf16.mxu1 %v12064_v18  ;;  %v1765_v14 = vrot.slane %v13064_v54, %v13081_v61  ;;  %v12158_v17 = vcombine.high %v13077_v60, %v13079_v1  ;;  %v13106_v18 = vld [vmem:[#allocation4 + $0x2c0] sm:$0xff]  ;;  %v68_v23 = vcvt.s32.f32 %v13067_v55  ;;  %v12160_v24 = vcombine.high %v13084_v63, %v13086_v3  ;;  %v13135_v39 = vld [vmem:[#allocation4 + $0x288] sm:$0xff] }
  0x28   :  { %v12157_v25 = vcombine.low %v13077_v60, %v13079_v1  ;;  %v12159_v13 = vcombine.low %v13084_v63, %v13086_v3  ;;  %v12150_v37 = vcombine.high %v13088_v4, %v13091_v8  ;;  %v12152_v20 = vcombine.high %v13093_v9, %v13095_v10  ;;  %v13137_v40 = vld [vmem:[#allocation4 + $0x2a8] sm:$0xff] }
  0x29   :  { %v12149_v38 = vcombine.low %v13088_v4, %v13091_v8  ;;  %v13145_v32 = vld [vmem:[#allocation4 + $0x248] sm:$0xff]  ;;  %v74_v45 = vadd.f32 0.5, %v66_v5  ;;  %v75_v46 = vadd.f32 0.5, %v67_v15  ;;  %v12142_v47 = vcombine.high %v13106_v18, %v13108_v19 }
  0x2a   :  { %950 = vmatpush1.bf16.msra.mxu0 %v12061_v31  ;;  %991 = vmatpush1.bf16.msra.mxu1 %v12063_v33  ;;  %v13119_v31 = vld [vmem:[#allocation4 + $0x280] sm:$0xff]  ;;  %v13147_v43 = vld [vmem:[#allocation4 + $0x268] sm:$0xff]  ;;  %v12144_v48 = vcombine.high %v13110_v22, %v13117_v27  ;;  %v12141_v49 = vcombine.low %v13106_v18, %v13108_v19  ;;  %v12143_v53 = vcombine.low %v13110_v22, %v13117_v27  ;;  %vm109_vm4 = vcmp.ge.f32.partialorder %v13028_v29, 0.5 }
  0x2b   :  { %951 = vmatprep.subr.bf16.mxu0 %v12054_v34  ;;  %992 = vmatprep.subr.bf16.mxu1 %v12056_v35  ;;  %v13121_v33 = vld [vmem:[#allocation4 + $0x2a0] sm:$0xff]  ;;  %v1772_v34 = vrot.slane %v13097_v11, %v13081_v61  ;;  %v73_v35 = vadd.f32 0.5, %v65_v62  ;;  %v12136_v59 = vcombine.high %v13135_v39, %v13137_v40  ;;  %v12128_v1 = vcombine.high %v13145_v32, %v13147_v43 }
  0x2c   :  { %v82_v63 = vmul.f32 0.03125, %v74_v45  ;;  %v83_v3 = vmul.f32 0.03125, %v75_v46  ;;  %vm110_vm5 = vcmp.ge.f32.partialorder %v13032_v30, 0.5  ;;  %vm111_vm6 = vcmp.ge.f32.partialorder %v13037_v36, 0.5 }
  0x2d   :  { %v81_v58 = vmul.f32 0.03125, %v73_v35  ;;  %vm112_vm7 = vcmp.ge.f32.partialorder %v13042_v2, 0.5  ;;  %v119_v18 = vsel %vm111_vm6, 1.0, %v12935_v12  ;;  %vm44_vm0 = vcmask 1042168  }
  0x2e   :  { %952 = vmatpush1.bf16.msra.mxu0 %v12053_v6  ;;  %993 = vmatpush1.bf16.msra.mxu1 %v12055_v41  ;;  %v13139_v6 = vld [vmem:[#allocation4 + $0x240] sm:$0xff]  ;;  %v12151_v41 = vcombine.low %v13093_v9, %v13095_v10  ;;  %v90_v8 = vfloor.f32 %v82_v63  ;;  %v91_v9 = vfloor.f32 %v83_v3  ;;  %v120_v19 = vsel %vm112_vm7, 1.0, %v12935_v12  ;;  %v208_v63 = vld [vmem:[#allocation4 + $0x190] sm:$0xff] }
  0x2f   :  { %953 = vmatprep.subr.bf16.mxu0 %v12174_v42  ;;  %994 = vmatprep.subr.bf16.mxu1 %v12176_v44  ;;  %v13143_v42 = vld [vmem:[#allocation4 + $0x260] sm:$0xff]  ;;  %v13149_v44 = vcombine.low %v1765_v14, %v1772_v34  ;;  %v212_v3 = vld [vmem:[#allocation4 + $0x1b0] sm:$0xff]  ;;  %vm46_vm1 = vcmask 263168   ;;  %vm1206_vm2 = vcmask 777216   ;;  %vm1208_vm3 = vcmask 1041408  }
  0x30   :  { %v12126_v60 = vcombine.high %v13139_v6, %v13143_v42  ;;  %v98_v29 = vmul.f32 32.0, %v90_v8  ;;  %v99_v30 = vmul.f32 32.0, %v91_v9  ;;  %v12125_v2 = vcombine.low %v13139_v6, %v13143_v42  ;;  %v217_v6 = vld [vmem:[#allocation4 + $0x1d8] sm:$0xff] }
  0x31   :  { %1791 = vrot.lane.b32.xlu1 %v13149_v44, %s12936_s13  ;;  %v221_v42 = vld [vmem:[#allocation4 + $0x1f8] sm:$0xff]  ;;  %vm2162_vm6 = vcmask 7168   ;;  %vm1282_vm7 = vcmask 261120  }
  0x32   :  { %954 = vmatpush2.bf16.msra.mxu0 %v12173_v52  ;;  %995 = vmatpush2.bf16.msra.mxu1 %v12175_v56  ;;  %v76_v52 = vadd.f32 0.5, %v68_v23  ;;  %v12134_v56 = vcombine.high %v13119_v31, %v13121_v33  ;;  %v106_v27 = vsub.f32 %v66_v5, %v98_v29  ;;  %v107_v34 = vsub.f32 %v67_v15, %v99_v30  ;;  %v222_v15 = vld [vmem:[#allocation4 + $0x200] sm:$0xff] }
  0x33   :  { %955 = vmatprep.subr.bf16.mxu0 %v12166_v57  ;;  %996 = vmatprep.subr.bf16.mxu1 %v12168_v0  ;;  %v12133_v57 = vcombine.low %v13119_v31, %v13121_v33  ;;  %v12135_v0 = vcombine.low %v13135_v39, %v13137_v40  ;;  %v12115_v9 = vcombine.low %v217_v6, %v221_v42 }
  0x34   :  { %v84_v4 = vmul.f32 0.03125, %v76_v52  ;;  %vm138_vm10 = vcmp.le.f32.partialorder %v106_v27, 30.5  ;;  %vm139_vm11 = vcmp.le.f32.partialorder %v107_v34, 30.5  ;;  %vm114_vm13 = vcmp.ge.f32.partialorder %v106_v27, 0.5  ;;  %v196_v27 = vld [vmem:[#allocation4 + $0x130] sm:$0xff] }
  0x35   :  { %v146_v50 = vsel %vm138_vm10, 1.0, %v12935_v12  ;;  %v147_v51 = vsel %vm139_vm11, 1.0, %v12935_v12  ;;  %vm115_vm14 = vcmp.ge.f32.partialorder %v107_v34, 0.5  ;;  %v122_v46 = vsel %vm114_vm13, 1.0, %v12935_v12  ;;  %v193_v34 = vld [vmem:[#allocation4 + $0x118] sm:$0xff] }
  0x36   :  { %956 = vmatpush2.bf16.msra.mxu0 %v12165_v7  ;;  %997 = vmatpush2.bf16.msra.mxu1 %v12167_v16  ;;  %v89_v7 = vfloor.f32 %v81_v58  ;;  %v92_v10 = vfloor.f32 %v84_v4  ;;  %v117_v16 = vsel %vm109_vm4, 1.0, %v12935_v12  ;;  %v220_v58 = vld [vmem:[#allocation4 + $0x1f0] sm:$0xff]  ;;  %v209_v4 = vld [vmem:[#allocation4 + $0x198] sm:$0xff]  ;;  %v12105_v29 = vcombine.low %v208_v63, %v212_v3 }
  0x37   :  { %957 = vmatprep.subr.bf16.mxu0 %v12158_v17  ;;  %998 = vmatprep.subr.bf16.mxu1 %v12160_v24  ;;  %v118_v17 = vsel %vm110_vm5, 1.0, %v12935_v12  ;;  %vm1797_vm4 = vcmask 793600   ;;  %vm2088_vm5 = vcmask 1039360   ;;  %vm1871_vm10 = vcmask 252928  }
  0x38   :  { %v97_v14 = vmul.f32 32.0, %v89_v7  ;;  %v100_v22 = vmul.f32 32.0, %v92_v10  ;;  %v13191_v24 = vpack.c.bf16 %v118_v17, %v117_v16  ;;  %v213_v7 = vld [vmem:[#allocation4 + $0x1b8] sm:$0xff]  ;;  %v12106_v10 = vcombine.high %v208_v63, %v212_v3  ;;  %v200_v16 = vld [vmem:[#allocation4 + $0x150] sm:$0xff] }
  0x39   :  { %v204_v17 = vld [vmem:[#allocation4 + $0x170] sm:$0xff]  ;;  %v12107_v30 = vcombine.low %v209_v4, %v213_v7  ;;  %v161_v63 = vld [vmem:[#allocation4 + $0x18] sm:$0xff]  ;;  %vm3254_vm11 = vcmask 785408   ;;  %vm50_vm13 = vcmask 265216  }
  0x3a   :  { %958 = vmatpush2.bf16.msra.mxu0 %v12157_v25  ;;  %999 = vmatpush2.bf16.msra.mxu1 %v12159_v13  ;;  %v105_v36 = vsub.f32 %v65_v62, %v97_v14  ;;  %v13193_v25 = vpack.c.bf16 %v120_v19, %v119_v18  ;;  %v108_v28 = vsub.f32 %v68_v23, %v100_v22  ;;  %v226_v23 = vld [vmem:[#allocation4 + $0x220] sm:$0xff]  ;;  %v201_v18 = vld [vmem:[#allocation4 + $0x158] sm:$0xff] }
  0x3b   :  { %959 = vmatprep.subr.bf16.mxu0 %v12150_v37  ;;  %1000 = vmatprep.subr.bf16.mxu1 %v12152_v20  ;;  %v1174_v35 = vrot.slane %v13191_v24, %v13081_v61  ;;  %v12118_v31 = vcombine.high %v222_v15, %v226_v23  ;;  %v12108_v14 = vcombine.high %v209_v4, %v213_v7  ;;  %v205_v19 = vld [vmem:[#allocation4 + $0x178] sm:$0xff] }
  0x3c   :  { %vm137_vm8 = vcmp.le.f32.partialorder %v105_v36, 30.5  ;;  %v1181_v13 = vrot.slane %v13193_v25, %v13081_v61  ;;  %vm113_vm9 = vcmp.ge.f32.partialorder %v105_v36, 0.5  ;;  %vm140_vm12 = vcmp.le.f32.partialorder %v108_v28, 30.5  ;;  %v165_v3 = vld [vmem:[#allocation4 + $0x38] sm:$0xff] }
  0x3d   :  { %v145_v62 = vsel %vm137_vm8, 1.0, %v12935_v12  ;;  %v148_v55 = vsel %vm140_vm12, 1.0, %v12935_v12  ;;  %vm116_vm15 = vcmp.ge.f32.partialorder %v108_v28, 0.5  ;;  %v121_v45 = vsel %vm113_vm9, 1.0, %v12935_v12  ;;  %v197_v28 = vld [vmem:[#allocation4 + $0x138] sm:$0xff] }
  0x3e   :  { %960 = vmatpush2.bf16.msra.mxu0 %v12149_v38  ;;  %1001 = vmatpush2.bf16.msra.mxu1 %v12151_v41  ;;  %v13209_v5 = vcombine.low %v1174_v35, %v1181_v13  ;;  %v13211_v37 = vpack.c.bf16 %v146_v50, %v145_v62  ;;  %v13213_v20 = vpack.c.bf16 %v148_v55, %v147_v51  ;;  %v223_v38 = vld [vmem:[#allocation4 + $0x208] sm:$0xff]  ;;  %v184_v51 = vld [vmem:[#allocation4 + $0xd0] sm:$0xff]  ;;  %vm1291_vm8 = vcmask 31744  }
  0x3f   :  { %961 = vmatprep.subr.bf16.mxu0 %v12142_v47  ;;  %1002 = vmatprep.subr.bf16.mxu1 %v12144_v48  ;;  %v227_v41 = vld [vmem:[#allocation4 + $0x228] sm:$0xff]  ;;  %v123_v47 = vsel %vm115_vm14, 1.0, %v12935_v12  ;;  %v124_v48 = vsel %vm116_vm15, 1.0, %v12935_v12  ;;  %v12127_v12 = vcombine.low %v13145_v32, %v13147_v43  ;;  %v12098_v22 = vcombine.high %v200_v16, %v204_v17  ;;  %v188_v55 = vld [vmem:[#allocation4 + $0xf0] sm:$0xff] }
  0x40   :  { %1200 = vrot.lane.b32.xlu0 %v13209_v5, %s12937_s14  ;;  %v1789_v52 = vrot.slane %v13213_v20, %v13081_v61  ;;  %v12120_v33 = vcombine.high %v223_v38, %v227_v41  ;;  %v12119_v43 = vcombine.low %v223_v38, %v227_v41  ;;  %v12100_v36 = vcombine.high %v201_v18, %v205_v19 }
  0x41   :  { %v12097_v62 = vcombine.low %v200_v16, %v204_v17  ;;  %v12099_v35 = vcombine.low %v201_v18, %v205_v19  ;;  %v12092_v50 = vcombine.high %v193_v34, %v197_v28  ;;  %v12091_v38 = vcombine.low %v193_v34, %v197_v28  ;;  %v281_v16 = vld [vmem:[#allocation4 + $0x3d8] sm:$0xff] }
  0x42   :  { %962 = vmatpush2.bf16.msra.mxu0 %v12141_v49  ;;  %1003 = vmatpush2.bf16.msra.mxu1 %v12143_v53  ;;  %v1782_v49 = vrot.slane %v13211_v37, %v13081_v61  ;;  %v13230_v53 = vpack.c.bf16 %v122_v46, %v121_v45  ;;  %v12082_v41 = vcombine.high %v184_v51, %v188_v55  ;;  %v176_v46 = vld [vmem:[#allocation4 + $0x90] sm:$0xff]  ;;  %v285_v17 = vld [vmem:[#allocation4 + $0x3f8] sm:$0xff]  ;;  %vm1546_vm9 = vcmask 269312  }
  0x43   :  { %963 = vmatprep.subr.bf16.mxu0 %v12134_v56  ;;  %1004 = vmatprep.subr.bf16.mxu1 %v12136_v59  ;;  %v13232_v56 = vpack.c.bf16 %v124_v48, %v123_v47  ;;  %v180_v47 = vld [vmem:[#allocation4 + $0xb0] sm:$0xff]  ;;  %v177_v48 = vld [vmem:[#allocation4 + $0x98] sm:$0xff]  ;;  %v12059_v19 = vcombine.low %v161_v63, %v165_v3  ;;  %v12179_v28 = vcombine.low %v281_v16, %v285_v17  ;;  %vm48_vm12 = vcmask 1044216  }
  0x44   :  { %v13245_v59 = vcombine.low %v1782_v49, %v1789_v52  ;;  %v1191_v39 = vrot.slane %v13230_v53, %v13081_v61  ;;  %v181_v49 = vld [vmem:[#allocation4 + $0xb8] sm:$0xff]  ;;  %v12081_v52 = vcombine.low %v184_v51, %v188_v55  ;;  %vm3853_vm14 = vcmask 1043456  }
  0x45   :  { %v1198_v40 = vrot.slane %v13232_v56, %v13081_v61  ;;  %v265_v51 = vld [vmem:[#allocation4 + $0x358] sm:$0xff]  ;;  %vm3922_vm15 = vcmask 64512  }
  0x46   :  { %964 = vmatpush2.bf16.msra.mxu0 %v12133_v57  ;;  %1005 = vmatpush2.bf16.msra.mxu1 %v12135_v0  ;;  %v216_v57 = vld [vmem:[#allocation4 + $0x1d0] sm:$0xff]  ;;  %v12117_v0 = vcombine.low %v222_v15, %v226_v23  ;;  %v185_v15 = vld [vmem:[#allocation4 + $0xd8] sm:$0xff] }
  0x47   :  { %965 = vmatprep.subr.bf16.mxu0 %v12126_v60  ;;  %1006 = vmatprep.subr.bf16.mxu1 %v12128_v1  ;;  %v13253_v32 = vcombine.low %v1191_v39, %v1198_v40  ;;  %v12114_v60 = vcombine.high %v216_v57, %v220_v58  ;;  %v12116_v1 = vcombine.high %v217_v6, %v221_v42  ;;  %v189_v23 = vld [vmem:[#allocation4 + $0xf8] sm:$0xff] }
  0x48   :  { %1793 = vrot.lane.b32.xlu1 %v13245_v59, %s12936_s13  ;;  %v12113_v8 = vcombine.low %v216_v57, %v220_v58  ;;  %v12084_v45 = vcombine.high %v185_v15, %v189_v23  ;;  %v168_v57 = vld [vmem:[#allocation4 + $0x50] sm:$0xff]  ;;  %v169_v39 = vld [vmem:[#allocation4 + $0x58] sm:$0xff]  ;;  %v12073_v6 = vcombine.low %v176_v46, %v180_v47  ;;  %v12075_v42 = vcombine.low %v177_v48, %v181_v49 }
  0x49   :  { %1202 = vrot.lane.b32.xlu0 %v13253_v32, %s12937_s14  ;;  %v172_v58 = vld [vmem:[#allocation4 + $0x70] sm:$0xff]  ;;  %v173_v40 = vld [vmem:[#allocation4 + $0x78] sm:$0xff] }
  0x4a   :  { %966 = vmatpush2.bf16.msra.mxu0 %v12125_v2  ;;  %1007 = vmatpush2.bf16.msra.mxu1 %v12127_v12  ;;  %v192_v2 = vld [vmem:[#allocation4 + $0x110] sm:$0xff]  ;;  %v12083_v12 = vcombine.low %v185_v15, %v189_v23  ;;  %v12065_v4 = vcombine.low %v168_v57, %v172_v58  ;;  %v12067_v7 = vcombine.low %v169_v39, %v173_v40  ;;  %v269_v55 = vld [vmem:[#allocation4 + $0x378] sm:$0xff] }
  0x4b   :  { %967 = vmatprep.subr.bf16.mxu0 %v12118_v31  ;;  %1008 = vmatprep.subr.bf16.mxu1 %v12120_v33  ;;  %v12090_v13 = vcombine.high %v192_v2, %v196_v27  ;;  %v12074_v31 = vcombine.high %v176_v46, %v180_v47  ;;  %v12076_v33 = vcombine.high %v177_v48, %v181_v49  ;;  %v257_v46 = vld [vmem:[#allocation4 + $0x318] sm:$0xff] }
  0x4c   :  { %2084 = vrot.lane.b32.xlu1 %v13253_v32, %s12938_s15  ;;  %v261_v47 = vld [vmem:[#allocation4 + $0x338] sm:$0xff]  ;;  %v12163_v49 = vcombine.low %v265_v51, %v269_v55 }
  0x4d   :  { %2082 = vrot.lane.b32.xlu0 %v13209_v5, %s12938_s15 }
  0x4e   :  { %968 = vmatpush2.bf16.msra.mxu0 %v12117_v0  ;;  %1009 = vmatpush2.bf16.msra.mxu1 %v12119_v43  ;;  %v12066_v0 = vcombine.high %v168_v57, %v172_v58  ;;  %v12068_v43 = vcombine.high %v169_v39, %v173_v40  ;;  %v249_v57 = vld [vmem:[#allocation4 + $0x2d8] sm:$0xff]  ;;  %v12155_v40 = vcombine.low %v257_v46, %v261_v47 }
  0x4f   :  { %1019 = vmatprep.subr.bf16.mxu0 %v12114_v60  ;;  %1060 = vmatprep.subr.bf16.mxu1 %v12116_v1  ;;  %v160_v60 = vld [vmem:[#allocation4 + $0x10] sm:$0xff]  ;;  %v253_v58 = vld [vmem:[#allocation4 + $0x2f8] sm:$0xff] }
  0x50   :  { %2612 = vrot.lane.b32.xlu1 %v13149_v44, %s12939_s16  ;;  %v164_v1 = vld [vmem:[#allocation4 + $0x30] sm:$0xff] }
  0x51   :  { %970 = vmatmul.mubr.bf16.vlgmr.msra.gmra.mxu0 %v13020_v21  ;;  %1011 = vmatmul.mubr.bf16.vlgmr.msra.gmra.mxu1 %v13020_v21  ;;  %v12057_v18 = vcombine.low %v160_v60, %v164_v1 }
  0x52   :  { %1020 = vmatpush1.bf16.msra.mxu0 %v12113_v8  ;;  %1061 = vmatpush1.bf16.msra.mxu1 %v12115_v9  ;;  %v12058_v8 = vcombine.high %v160_v60, %v164_v1  ;;  %v12060_v9 = vcombine.high %v161_v63, %v165_v3  ;;  %v241_v60 = vld [vmem:[#allocation4 + $0x298] sm:$0xff]  ;;  %v12147_v3 = vcombine.low %v249_v57, %v253_v58 }
  0x53   :  { %1021 = vmatprep.subr.bf16.mxu0 %v12106_v10  ;;  %1062 = vmatprep.subr.bf16.mxu1 %v12108_v14  ;;  %v280_v10 = vld [vmem:[#allocation4 + $0x3d0] sm:$0xff]  ;;  %v245_v1 = vld [vmem:[#allocation4 + $0x2b8] sm:$0xff] }
  0x54   :  { %1051 = vmatprep.mubr.bf16.mxu0 %v13024_v26  ;;  %1092 = vmatprep.mubr.bf16.mxu1 %v13024_v26  ;;  %v12089_v26 = vcombine.low %v192_v2, %v196_v27  ;;  %v284_v14 = vld [vmem:[#allocation4 + $0x3f0] sm:$0xff]  ;;  %v273_v2 = vld [vmem:[#allocation4 + $0x398] sm:$0xff] }
  0x55   :  { %2614 = vrot.lane.b32.xlu1 %v13245_v59, %s12939_s16  ;;  %v277_v27 = vld [vmem:[#allocation4 + $0x3b8] sm:$0xff]  ;;  %v12177_v34 = vcombine.low %v280_v10, %v284_v14 }
  0x56   :  { %1022 = vmatpush1.bf16.msra.mxu0 %v12105_v29  ;;  %1063 = vmatpush1.bf16.msra.mxu1 %v12107_v30  ;;  %v12178_v29 = vcombine.high %v280_v10, %v284_v14  ;;  %v12180_v30 = vcombine.high %v281_v16, %v285_v17  ;;  %v12171_v23 = vcombine.low %v273_v2, %v277_v27  ;;  %v233_v10 = vld [vmem:[#allocation4 + $0x258] sm:$0xff] }
  0x57   :  { %1023 = vmatprep.subr.bf16.mxu0 %v12098_v22  ;;  %1064 = vmatprep.subr.bf16.mxu1 %v12100_v36  ;;  %v272_v22 = vld [vmem:[#allocation4 + $0x390] sm:$0xff]  ;;  %v237_v14 = vld [vmem:[#allocation4 + $0x278] sm:$0xff]  ;;  %v12139_v17 = vcombine.low %v241_v60, %v245_v1 }
  0x58   :  { %v276_v36 = vld [vmem:[#allocation4 + $0x3b0] sm:$0xff] }
  0x59   :  { %v12169_v15 = vcombine.low %v272_v22, %v276_v36 }
  0x5a   :  { %1024 = vmatpush1.bf16.msra.mxu0 %v12097_v62  ;;  %1065 = vmatpush1.bf16.msra.mxu1 %v12099_v35  ;;  %v12170_v62 = vcombine.high %v272_v22, %v276_v36  ;;  %v12172_v35 = vcombine.high %v273_v2, %v277_v27  ;;  %v225_v22 = vld [vmem:[#allocation4 + $0x218] sm:$0xff]  ;;  %v12131_v27 = vcombine.low %v233_v10, %v237_v14 }
  0x5b   :  { %1025 = vmatprep.subr.bf16.mxu0 %v12090_v13  ;;  %1066 = vmatprep.subr.bf16.mxu1 %v12092_v50  ;;  %v264_v13 = vld [vmem:[#allocation4 + $0x350] sm:$0xff]  ;;  %v229_v36 = vld [vmem:[#allocation4 + $0x238] sm:$0xff] }
  0x5c   :  { %v268_v50 = vld [vmem:[#allocation4 + $0x370] sm:$0xff] }
  0x5d   :  { %v12161_v48 = vcombine.low %v264_v13, %v268_v50 }
  0x5e   :  { %1026 = vmatpush1.bf16.msra.mxu0 %v12089_v26  ;;  %1067 = vmatpush1.bf16.msra.mxu1 %v12091_v38  ;;  %v12162_v26 = vcombine.high %v264_v13, %v268_v50  ;;  %v12164_v38 = vcombine.high %v265_v51, %v269_v55  ;;  %v15779_v13 = vmov 0  }
  0x5f   :  { %1027 = vmatprep.subr.bf16.mxu0 %v12082_v41  ;;  %1068 = vmatprep.subr.bf16.mxu1 %v12084_v45  ;;  %v256_v41 = vld [vmem:[#allocation4 + $0x310] sm:$0xff]  ;;  %45 = vst.msk [vmem:[#allocation2] sm:$0x3] %vm44_vm0, %v15779_v13 }
  0x60   :  { %v260_v45 = vld [vmem:[#allocation4 + $0x330] sm:$0xff]  ;;  %12862 = vset.pattern.permute.xlu0 %v15779_v13  ;;  %12863 = vset.pattern.permute.xlu1 %v15779_v13  ;;  %47 = vst.msk [vmem:[#allocation2 + $0x12] sm:$0x3] %vm46_vm1, %v15779_v13 }
  0x61   :  { %v12153_v39 = vcombine.low %v256_v41, %v260_v45  ;;  %49 = vst.msk [vmem:[#allocation3] sm:$0xf] %vm48_vm12, %v15779_v13 }
  0x62   :  { %1028 = vmatpush1.bf16.msra.mxu0 %v12081_v52  ;;  %1069 = vmatpush1.bf16.msra.mxu1 %v12083_v12  ;;  %v12154_v52 = vcombine.high %v256_v41, %v260_v45  ;;  %v12156_v12 = vcombine.high %v257_v46, %v261_v47 }
  0x63   :  { %1029 = vmatprep.subr.bf16.mxu0 %v12074_v31  ;;  %1070 = vmatprep.subr.bf16.mxu1 %v12076_v33  ;;  %v248_v31 = vld [vmem:[#allocation4 + $0x2d0] sm:$0xff] }
  0x64   :  { %v252_v33 = vld [vmem:[#allocation4 + $0x2f0] sm:$0xff] }
  0x65   :  { %v12145_v63 = vcombine.low %v248_v31, %v252_v33 }
  0x66   :  { %1030 = vmatpush1.bf16.msra.mxu0 %v12073_v6  ;;  %1071 = vmatpush1.bf16.msra.mxu1 %v12075_v42  ;;  %v12146_v6 = vcombine.high %v248_v31, %v252_v33  ;;  %v12148_v42 = vcombine.high %v249_v57, %v253_v58 }
  0x67   :  { %1031 = vmatprep.subr.bf16.mxu0 %v12066_v0  ;;  %1072 = vmatprep.subr.bf16.mxu1 %v12068_v43  ;;  %v240_v0 = vld [vmem:[#allocation4 + $0x290] sm:$0xff] }
  0x68   :  { %v244_v43 = vld [vmem:[#allocation4 + $0x2b0] sm:$0xff] }
  0x69   :  { %v12137_v16 = vcombine.low %v240_v0, %v244_v43 }
  0x6a   :  { %1032 = vmatpush1.bf16.msra.mxu0 %v12065_v4  ;;  %1073 = vmatpush1.bf16.msra.mxu1 %v12067_v7  ;;  %v12138_v4 = vcombine.high %v240_v0, %v244_v43  ;;  %v12140_v7 = vcombine.high %v241_v60, %v245_v1 }
  0x6b   :  { %1033 = vmatprep.subr.bf16.mxu0 %v12058_v8  ;;  %1074 = vmatprep.subr.bf16.mxu1 %v12060_v9  ;;  %v232_v8 = vld [vmem:[#allocation4 + $0x250] sm:$0xff] }
  0x6c   :  { %v236_v9 = vld [vmem:[#allocation4 + $0x270] sm:$0xff] }
  0x6d   :  { %v12129_v2 = vcombine.low %v232_v8, %v236_v9 }
  0x6e   :  { %1034 = vmatpush1.bf16.msra.mxu0 %v12057_v18  ;;  %1075 = vmatpush1.bf16.msra.mxu1 %v12059_v19  ;;  %v12130_v18 = vcombine.high %v232_v8, %v236_v9  ;;  %v12132_v19 = vcombine.high %v233_v10, %v237_v14 }
  0x6f   :  { %1035 = vmatprep.subr.bf16.mxu0 %v12178_v29  ;;  %1076 = vmatprep.subr.bf16.mxu1 %v12180_v30  ;;  %v224_v29 = vld [vmem:[#allocation4 + $0x210] sm:$0xff] }
  0x70   :  { %v228_v30 = vld [vmem:[#allocation4 + $0x230] sm:$0xff] }
  0x72   :  { %1036 = vmatpush2.bf16.msra.mxu0 %v12177_v34  ;;  %1077 = vmatpush2.bf16.msra.mxu1 %v12179_v28  ;;  %v12122_v34 = vcombine.high %v224_v29, %v228_v30  ;;  %v12124_v28 = vcombine.high %v225_v22, %v229_v36 }
  0x73   :  { %1037 = vmatprep.subr.bf16.mxu0 %v12170_v62  ;;  %1078 = vmatprep.subr.bf16.mxu1 %v12172_v35  ;;  %v12121_v62 = vcombine.low %v224_v29, %v228_v30  ;;  %v12123_v35 = vcombine.low %v225_v22, %v229_v36 }
  0x76   :  { %1038 = vmatpush2.bf16.msra.mxu0 %v12169_v15  ;;  %1079 = vmatpush2.bf16.msra.mxu1 %v12171_v23 }
  0x77   :  { %1039 = vmatprep.subr.bf16.mxu0 %v12162_v26  ;;  %1080 = vmatprep.subr.bf16.mxu1 %v12164_v38 }
  0x7a   :  { %1040 = vmatpush2.bf16.msra.mxu0 %v12161_v48  ;;  %1081 = vmatpush2.bf16.msra.mxu1 %v12163_v49 }
  0x7b   :  { %1041 = vmatprep.subr.bf16.mxu0 %v12154_v52  ;;  %1082 = vmatprep.subr.bf16.mxu1 %v12156_v12 }
  0x7e   :  { %1042 = vmatpush2.bf16.msra.mxu0 %v12153_v39  ;;  %1083 = vmatpush2.bf16.msra.mxu1 %v12155_v40 }
  0x7f   :  { %1043 = vmatprep.subr.bf16.mxu0 %v12146_v6  ;;  %1084 = vmatprep.subr.bf16.mxu1 %v12148_v42 }
  0x82   :  { %1044 = vmatpush2.bf16.msra.mxu0 %v12145_v63  ;;  %1085 = vmatpush2.bf16.msra.mxu1 %v12147_v3 }
  0x83   :  { %1045 = vmatprep.subr.bf16.mxu0 %v12138_v4  ;;  %1086 = vmatprep.subr.bf16.mxu1 %v12140_v7 }
  0x86   :  { %1046 = vmatpush2.bf16.msra.mxu0 %v12137_v16  ;;  %1087 = vmatpush2.bf16.msra.mxu1 %v12139_v17 }
  0x87   :  { %1047 = vmatprep.subr.bf16.mxu0 %v12130_v18  ;;  %1088 = vmatprep.subr.bf16.mxu1 %v12132_v19 }
  0x8a   :  { %1048 = vmatpush2.bf16.msra.mxu0 %v12129_v2  ;;  %1089 = vmatpush2.bf16.msra.mxu1 %v12131_v27 }
  0x8b   :  { %1049 = vmatprep.subr.bf16.mxu0 %v12122_v34  ;;  %1090 = vmatprep.subr.bf16.mxu1 %v12124_v28 }
  0x8e   :  { %1050 = vmatpush2.bf16.msra.mxu0 %v12121_v62  ;;  %1091 = vmatpush2.bf16.msra.mxu1 %v12123_v35 }
  0x91   :  { %1052 = vmatmul.mubr.bf16.vlgmr.msra.gmra.mxu0 %v13020_v21  ;;  %1093 = vmatmul.mubr.bf16.vlgmr.msra.gmra.mxu1 %v13020_v21 }
  0x92   :  { %1352 = vmatprep.mubr.bf16.mxu0 %v15779_v13  ;;  %1393 = vmatprep.mubr.bf16.mxu1 %v15779_v13 }
  0xa3   :  { %v1792_v27 = vpop.permute.xlu1 %1791 }
  0xb2   :  { %v1201_v49 = vpop.permute.xlu0 %1200 }
  0xb3   :  { %v1204_v52 = vrot.slane %v1201_v49, 6 }
  0xb5   :  { %v13288_v31 = vsel %vm1206_vm2, %v1204_v52, %v1201_v49 }
  0xbb   :  { %v1203_v30 = vpop.permute.xlu0 %1202 }
  0xbc   :  { %v13315_v22 = vrot.slane %v1203_v30, 6 }
  0xbe   :  { %v1209_v34 = vsel %vm1208_vm3, %v1204_v52, %v13315_v22  ;;  %v1794_v52 = vpop.permute.xlu1 %1793 }
 0x111   :  { %v971_v50 = vpop.f32.mrf.mxu0  ;;  %v1012_v51 = vpop.f32.mrf.mxu1 }
 0x113   :  { %v973_v55 = vpop.f32.mrf.mxu0  ;;  %v1014_v21 = vpop.f32.mrf.mxu1 }
 0x114   :  { %v12181_v15 = vpack.c.bf16 %v973_v55, %v971_v50  ;;  %v12182_v23 = vpack.c.bf16 %v1014_v21, %v1012_v51  ;;  %v1795_v50 = vrot.slane %v1792_v27, 6  ;;  %v13329_v51 = vsel %vm1206_vm2, %v1209_v34, %v1203_v30 }
 0x115   :  { %v975_v26 = vpop.f32.mrf.mxu0  ;;  %v1016_v41 = vpop.f32.mrf.mxu1 }
 0x116   :  { %v1125_v38 = vrot.slane %v12181_v15, %v13081_v61  ;;  %v13279_v45 = vrot.slane %v12182_v23, %v13081_v61  ;;  %v13335_v23 = vsel %vm1797_vm4, %v1795_v50, %v1792_v27 }
 0x117   :  { %v976_v46 = vpop.f32.mrf.mxu0  ;;  %v1017_v47 = vpop.f32.mrf.mxu1 }
 0x118   :  { %v13282_v48 = vcombine.low %v1125_v38, %v13279_v45 }
 0x11a   :  { %1153 = vst [vmem:[#allocation2 + $0x2] sm:$0xff] %v13282_v48 }
 0x121   :  { %v13285_v12 = vld [vmem:[#allocation2] sm:$0xff] }
 0x122   :  { %v1230_v33 = vrot.slane %v13285_v12, %v13081_v61  ;;  %v1223_v57 = vcombine.high %v13285_v12, %v13285_v12  ;;  %v1214_v58 = vmul.bf16 %v13288_v31, %v13285_v12  ;;  %v1804_v38 = vmul.bf16 %v13335_v23, %v13285_v12 }
 0x124   :  { %1264 = vrot.lane.b32.xlu0 %v1230_v33, %s12933_s9  ;;  %v1238_v39 = vcombine.high %v1230_v33, %v1230_v33  ;;  %v1237_v40 = vrot.slane %v1223_v57, %v13081_v61  ;;  %v1494_v42 = vrot.slane %v1214_v58, %v13081_v61  ;;  %v1487_v0 = vcombine.high %v1214_v58, %v1214_v58 }
 0x125   :  { %v1819_v41 = vrot.slane %v1804_v38, %v13081_v61  ;;  %v1812_v47 = vcombine.high %v1804_v38, %v1804_v38  ;;  %v13347_v33 = vrot.slane %v1794_v52, 6 }
 0x126   :  { %1266 = vrot.lane.b32.xlu1 %v1238_v39, %s12933_s9  ;;  %v1239_v6 = vcombine.high %v1237_v40, %v1237_v40  ;;  %v1502_v43 = vcombine.high %v1494_v42, %v1494_v42  ;;  %v1501_v60 = vrot.slane %v1487_v0, %v13081_v61  ;;  %v2083_v0 = vpop.permute.xlu0 %2082 }
 0x127   :  { %v1826_v57 = vrot.slane %v1812_v47, %v13081_v61 }
 0x128   :  { %1268 = vrot.lane.b32.xlu0 %v1237_v40, %s12933_s9  ;;  %v1503_v1 = vcombine.high %v1501_v60, %v1501_v60 }
 0x12a   :  { %1270 = vrot.lane.b32.xlu1 %v1239_v6, %s12933_s9 }
 0x12c   :  { %1528 = vrot.lane.b32.xlu0 %v1494_v42, %s12941_s17 }
 0x12e   :  { %1530 = vrot.lane.b32.xlu1 %v1502_v43, %s12941_s17  ;;  %v1828_v43 = vcombine.high %v1826_v57, %v1826_v57 }
 0x130   :  { %1532 = vrot.lane.b32.xlu0 %v1501_v60, %s12941_s17  ;;  %v1827_v60 = vcombine.high %v1819_v41, %v1819_v41 }
 0x134   :  { %1534 = vrot.lane.b32.xlu0 %v1503_v1, %s12941_s17 }
 0x151   :  { %v1053_v63 = vpop.f32.mrf.mxu0  ;;  %v1094_v3 = vpop.f32.mrf.mxu1 }
 0x153   :  { %v1055_v4 = vpop.f32.mrf.mxu0  ;;  %v1096_v8 = vpop.f32.mrf.mxu1 }
 0x154   :  { %v12183_v7 = vpack.c.bf16 %v1055_v4, %v1053_v63  ;;  %v12184_v9 = vpack.c.bf16 %v1096_v8, %v1094_v3  ;;  %v2086_v63 = vrot.slane %v2083_v0, 6 }
 0x155   :  { %v1057_v10 = vpop.f32.mrf.mxu0  ;;  %v1098_v16 = vpop.f32.mrf.mxu1 }
 0x156   :  { %v1142_v14 = vrot.slane %v12183_v7, %v13081_v61  ;;  %v13309_v17 = vrot.slane %v12184_v9, %v13081_v61  ;;  %v13369_v7 = vsel %vm2088_vm5, %v2086_v63, %v2083_v0 }
 0x157   :  { %v1058_v18 = vpop.f32.mrf.mxu0  ;;  %v1099_v19 = vpop.f32.mrf.mxu1  ;;  %v2095_v8 = vmul.bf16 %v13369_v7, %v13285_v12 }
 0x158   :  { %v13312_v29 = vcombine.low %v1142_v14, %v13309_v17  ;;  %v2085_v14 = vpop.permute.xlu1 %2084 }
 0x159   :  { %v13376_v18 = vrot.slane %v2085_v14, 6  ;;  %v2110_v19 = vrot.slane %v2095_v8, %v13081_v61 }
 0x15a   :  { %1154 = vst [vmem:[#allocation2 + $0xa] sm:$0xff] %v13312_v29 }
 0x15b   :  { %v2090_v12 = vsel %vm1208_vm3, %v2086_v63, %v13376_v18  ;;  %v13424_v63 = vld [vmem:[%s15772_s2 + $0x4] sm:$0xf] }
 0x161   :  { %v1157_v36 = vld [vmem:[#allocation2 + $0x10] sm:$0x3]  ;;  %v13317_v2 = vld [vmem:[#allocation2 + $0x8] sm:$0xff] }
 0x162   :  { %v1263_v28 = vrot.slane %v1157_v36, %v13081_v61  ;;  %v1247_v62 = vrot.slane %v13317_v2, %v13081_v61  ;;  %v1240_v35 = vcombine.high %v13317_v2, %v13317_v2  ;;  %v1215_v21 = vmul.bf16 %v13329_v51, %v13317_v2  ;;  %v1748_v16 = vld [vmem:[#allocation2 + $0x10] sm:$0x3] }
 0x163   :  { %v1216_v49 = vmul.bf16 %v13315_v22, %v1157_v36  ;;  %v2103_v36 = vcombine.high %v2095_v8, %v2095_v8 }
 0x164   :  { %1280 = vrot.lane.b32.xlu1 %v1263_v28, %s12933_s9  ;;  %1272 = vrot.lane.b32.xlu0 %v1247_v62, %s12933_s9  ;;  %v1255_v55 = vcombine.high %v1247_v62, %v1247_v62  ;;  %v1254_v15 = vrot.slane %v1240_v35, %v13081_v61  ;;  %v1511_v26 = vrot.slane %v1215_v21, %v13081_v61 }
 0x165   :  { %v1527_v58 = vrot.slane %v1216_v49, %v13081_v61  ;;  %v1504_v39 = vcombine.high %v1215_v21, %v1215_v21  ;;  %v2117_v27 = vrot.slane %v2103_v36, %v13081_v61  ;;  %v13390_v28 = vsel %vm2088_vm5, %v2090_v12, %v2085_v14 }
 0x166   :  { %v1256_v46 = vcombine.high %v1254_v15, %v1254_v15  ;;  %v1519_v6 = vcombine.high %v1511_v26, %v1511_v26  ;;  %v2118_v35 = vcombine.high %v2110_v19, %v2110_v19 }
 0x167   :  { %v1518_v40 = vrot.slane %v1504_v39, %v13081_v61  ;;  %v2119_v21 = vcombine.high %v2117_v27, %v2117_v27 }
 0x168   :  { %1274 = vrot.lane.b32.xlu1 %v1255_v55, %s12933_s9  ;;  %1276 = vrot.lane.b32.xlu0 %v1254_v15, %s12933_s9  ;;  %v2613_v55 = vpop.permute.xlu1 %2612 }
 0x169   :  { %v1520_v3 = vcombine.high %v1518_v40, %v1518_v40  ;;  %v2616_v38 = vrot.slane %v2613_v55, 6 }
 0x16b   :  { %v13403_v49 = vsel %vm2162_vm6, %v2616_v38, %v2613_v55 }
 0x16c   :  { %1536 = vrot.lane.b32.xlu1 %v1511_v26, %s12941_s17  ;;  %2901 = vrot.lane.b32.xlu0 %v13209_v5, %s12942_s18  ;;  %v1799_v5 = vsel %vm1208_vm3, %v1795_v50, %v13347_v33  ;;  %v2096_v50 = vmul.bf16 %v13390_v28, %v13317_v2 }
 0x16d   :  { %v13359_v42 = vsel %vm1797_vm4, %v1799_v5, %v1794_v52  ;;  %v2624_v5 = vmul.bf16 %v13403_v49, %v13282_v48 }
 0x16e   :  { %v1805_v1 = vmul.bf16 %v13359_v42, %v13317_v2  ;;  %v2127_v15 = vrot.slane %v2096_v50, %v13081_v61  ;;  %v2120_v26 = vcombine.high %v2096_v50, %v2096_v50 }
 0x170   :  { %1853 = vrot.lane.b32.xlu1 %v1819_v41, %s12942_s18  ;;  %1278 = vrot.lane.b32.xlu0 %v1256_v46, %s12933_s9  ;;  %v1836_v4 = vrot.slane %v1805_v1, %v13081_v61  ;;  %v1829_v10 = vcombine.high %v1805_v1, %v1805_v1  ;;  %v2615_v41 = vpop.permute.xlu1 %2614  ;;  %v2134_v2 = vrot.slane %v2120_v26, %v13081_v61 }
 0x171   :  { %v2135_v47 = vcombine.high %v2127_v15, %v2127_v15  ;;  %v13405_v52 = vrot.slane %v2615_v41, 6 }
 0x172   :  { %v1844_v9 = vcombine.high %v1836_v4, %v1836_v4  ;;  %v1843_v30 = vrot.slane %v1829_v10, %v13081_v61 }
 0x174   :  { %1857 = vrot.lane.b32.xlu1 %v1826_v57, %s12942_s18  ;;  %1544 = vrot.lane.b32.xlu0 %v1527_v58, %s12941_s17  ;;  %v1845_v62 = vcombine.high %v1843_v30, %v1843_v30  ;;  %v2081_v58 = vld [vmem:[#allocation2 + $0x10] sm:$0x3] }
 0x178   :  { %1540 = vrot.lane.b32.xlu1 %v1518_v40, %s12941_s17  ;;  %1538 = vrot.lane.b32.xlu0 %v1519_v6, %s12941_s17  ;;  %v2136_v6 = vcombine.high %v2134_v2, %v2134_v2 }
 0x17c   :  { %1859 = vrot.lane.b32.xlu1 %v1828_v43, %s12942_s18  ;;  %1855 = vrot.lane.b32.xlu0 %v1827_v60, %s12942_s18  ;;  %v2097_v43 = vmul.bf16 %v13376_v18, %v2081_v58  ;;  %v2619_v60 = vsel %vm1208_vm3, %v2616_v38, %v13405_v52 }
 0x17d   :  { %v13428_v8 = vsel %vm2162_vm6, %v2619_v60, %v2615_v41 }
 0x180   :  { %1542 = vrot.lane.b32.xlu1 %v1520_v3, %s12941_s17  ;;  %2903 = vrot.lane.b32.xlu0 %v13253_v32, %s12942_s18  ;;  %v1806_v32 = vmul.bf16 %v13347_v33, %v1748_v16  ;;  %v2632_v3 = vcombine.high %v2624_v5, %v2624_v5 }
 0x182   :  { %v1852_v34 = vrot.slane %v1806_v32, %v13081_v61  ;;  %v2646_v14 = vrot.slane %v2632_v3, %v13081_v61 }
 0x184   :  { %1863 = vrot.lane.b32.xlu1 %v1844_v9, %s12942_s18  ;;  %1861 = vrot.lane.b32.xlu0 %v1836_v4, %s12942_s18  ;;  %v2639_v4 = vrot.slane %v2624_v5, %v13081_v61  ;;  %v2143_v9 = vrot.slane %v2097_v43, %v13081_v61  ;;  %v2648_v16 = vcombine.high %v2646_v14, %v2646_v14 }
 0x186   :  { %v2647_v10 = vcombine.high %v2639_v4, %v2639_v4 }
 0x188   :  { %2144 = vrot.lane.b32.xlu1 %v2110_v19, %s12939_s16  ;;  %1865 = vrot.lane.b32.xlu0 %v1843_v30, %s12942_s18  ;;  %v2611_v30 = vld [vmem:[#allocation2 + $0x12] sm:$0x3] }
 0x189   :  { %v2626_v32 = vmul.bf16 %v13405_v52, %v2611_v30 }
 0x18c   :  { %2148 = vrot.lane.b32.xlu1 %v2117_v27, %s12939_s16  ;;  %1869 = vrot.lane.b32.xlu0 %v1852_v34, %s12942_s18  ;;  %v2672_v27 = vrot.slane %v2626_v32, %v13081_v61 }
 0x190   :  { %1867 = vrot.lane.b32.xlu1 %v1845_v62, %s12942_s18  ;;  %2146 = vrot.lane.b32.xlu0 %v2118_v35, %s12939_s16 }
 0x194   :  { %2152 = vrot.lane.b32.xlu1 %v2127_v15, %s12939_s16  ;;  %2150 = vrot.lane.b32.xlu0 %v2119_v21, %s12939_s16 }
 0x196   :  { %v1265_v46 = vpop.permute.xlu0 %1264 }
 0x198   :  { %v1267_v57 = vpop.permute.xlu1 %1266  ;;  %2156 = vrot.lane.b32.xlu1 %v2134_v2, %s12939_s16  ;;  %2154 = vrot.lane.b32.xlu0 %v2135_v47, %s12939_s16 }
 0x199   :  { %v1283_v39 = vsel %vm1282_vm7, %v1265_v46, %v1267_v57 }
 0x19a   :  { %v1269_v40 = vpop.permute.xlu0 %1268  ;;  %v1297_v1 = vsel %vm1208_vm3, %v1283_v39, 0 }
 0x19b   :  { %v1284_v0 = vsel %vm1282_vm7, %v1267_v57, %v1269_v40 }
 0x19c   :  { %12190 = vmatprep.subr.msk.bf16.mxu0 %vm1208_vm3, %v1284_v0  ;;  %2158 = vrot.lane.b32.xlu1 %v2136_v6, %s12939_s16  ;;  %v1271_v62 = vpop.permute.xlu1 %1270 }
 0x19d   :  { %3465 = vrot.lane.b32.xlu0 %v13149_v44, %s12941_s17  ;;  %1335 = vmatpush1.bf16.msra.mxu0 %v1297_v1  ;;  %v2625_v44 = vmul.bf16 %v13428_v8, %v13312_v29  ;;  %v1285_v15 = vsel %vm1282_vm7, %v1269_v40, %v1271_v62 }
 0x19e   :  { %v1529_v34 = vpop.permute.xlu0 %1528  ;;  %v1303_v41 = vsel %vm1208_vm3, %v1285_v15, 0 }
 0x19f   :  { %v2649_v36 = vcombine.high %v2625_v44, %v2625_v44 }
 0x1a0   :  { %3467 = vrot.lane.b32.xlu1 %v13245_v59, %s12941_s17  ;;  %12191 = vmatmul.mubr.msk.bf16.vlgmr.msra.gmra.mxu0 %vm1291_vm8, %v13424_v63  ;;  %v2656_v59 = vrot.slane %v2625_v44, %v13081_v61  ;;  %v1531_v50 = vpop.permute.xlu1 %1530 }
 0x1a1   :  { %2160 = vrot.lane.b32.xlu0 %v2143_v9, %s12939_s16  ;;  %1434 = vmatprep.mubr.bf16.mxu0 %v15779_v13  ;;  %v13449_v12 = vrot.slane %v2649_v36, %v13081_v61  ;;  %v1547_v39 = vsel %vm1546_vm9, %v1529_v34, %v1531_v50 }
 0x1a2   :  { %v2664_v19 = vcombine.high %v2656_v59, %v2656_v59  ;;  %v1533_v35 = vpop.permute.xlu0 %1532  ;;  %v1559_v43 = vsel %vm1208_vm3, %v1547_v39, 0 }
 0x1a3   :  { %v1548_v5 = vsel %vm1546_vm9, %v1531_v50, %v1533_v35 }
 0x1a4   :  { %2675 = vrot.lane.b32.xlu1 %v2647_v10, %s12938_s15 }
 0x1a5   :  { %2673 = vrot.lane.b32.xlu0 %v2639_v4, %s12938_s15 }
 0x1a6   :  { %v1535_v55 = vpop.permute.xlu0 %1534 }
 0x1a7   :  { %v1549_v30 = vsel %vm1546_vm9, %v1533_v35, %v1535_v55 }
 0x1a8   :  { %2679 = vrot.lane.b32.xlu1 %v2648_v16, %s12938_s15 }
 0x1a9   :  { %2677 = vrot.lane.b32.xlu0 %v2646_v14, %s12938_s15 }
 0x1ac   :  { %2683 = vrot.lane.b32.xlu1 %v2664_v19, %s12938_s15  ;;  %v1217_v19 = vld [vmem:[%s15772_s2] sm:$0xf] }
 0x1ad   :  { %2681 = vrot.lane.b32.xlu0 %v2656_v59, %s12938_s15 }
 0x1b1   :  { %2685 = vrot.lane.b32.xlu0 %v13449_v12, %s12938_s15 }
 0x1b5   :  { %2689 = vrot.lane.b32.xlu0 %v2672_v27, %s12938_s15 }
 0x1d6   :  { %v1281_v21 = vpop.permute.xlu1 %1280  ;;  %v1273_v26 = vpop.permute.xlu0 %1272 }
 0x1d7   :  { %v1286_v38 = vsel %vm1282_vm7, %v1271_v62, %v1273_v26  ;;  %v1565_v62 = vsel %vm1208_vm3, %v1549_v30, 0 }
 0x1d8   :  { %12192 = vmatprep.subr.msk.bf16.mxu1 %vm1208_vm3, %v1286_v38 }
 0x1d9   :  { %1376 = vmatpush1.bf16.msra.mxu1 %v1303_v41 }
 0x1da   :  { %v1275_v46 = vpop.permute.xlu1 %1274  ;;  %v1277_v2 = vpop.permute.xlu0 %1276 }
 0x1db   :  { %v1287_v47 = vsel %vm1282_vm7, %v1273_v26, %v1275_v46  ;;  %v1288_v57 = vsel %vm1282_vm7, %v1275_v46, %v1277_v2 }
 0x1dc   :  { %12194 = vmatprep.subr.msk.bf16.mxu0 %vm1208_vm3, %v1288_v57  ;;  %v1309_v58 = vsel %vm1208_vm3, %v1287_v47, 0  ;;  %12193 = vmatmul.mubr.msk.bf16.vlgmr.msra.gmra.mxu1 %vm1291_vm8, %v13424_v63 }
 0x1dd   :  { %1417 = vmatpush1.bf16.msra.mxu0 %v1309_v58  ;;  %1475 = vmatprep.mubr.bf16.mxu1 %v15779_v13 }
 0x1de   :  { %v1537_v40 = vpop.permute.xlu1 %1536  ;;  %12198 = vmatprep.subr.msk.bf16.mxu0 %vm1208_vm3, %v1548_v5  ;;  %v13469_v6 = vpop.permute.xlu0 %2901 }
 0x1df   :  { %v2905_v0 = vrot.slane %v13469_v6, 6  ;;  %v1550_v59 = vsel %vm1546_vm9, %v1535_v55, %v1537_v40 }
 0x1e0   :  { %12195 = vmatmul.mubr.msk.bf16.vlgmr.msra.gmra.mxu0 %vm1291_vm8, %v13424_v63 }
 0x1e1   :  { %v13477_v60 = vsel %vm1871_vm10, %v2905_v0, %v13469_v6  ;;  %1597 = vmatpush1.bf16.msra.mxu0 %v1559_v43  ;;  %1614 = vmatprep.mubr.bf16.mxu0 %v15779_v13  ;;  %v13527_v43 = vld [vmem:[%s15772_s2 + $0x8] sm:$0xf] }
 0x1e2   :  { %v2913_v1 = vmul.bf16 %v13477_v60, %v13282_v48  ;;  %v1854_v3 = vpop.permute.xlu1 %1853  ;;  %v1279_v4 = vpop.permute.xlu0 %1278 }
 0x1e3   :  { %v1289_v9 = vsel %vm1282_vm7, %v1277_v2, %v1279_v4  ;;  %v1290_v44 = vsel %vm1282_vm7, %v1279_v4, %v1281_v21 }
 0x1e4   :  { %12196 = vmatprep.subr.msk.bf16.mxu1 %vm1208_vm3, %v1290_v44  ;;  %v1315_v10 = vsel %vm1208_vm3, %v1289_v9, 0  ;;  %v2928_v14 = vrot.slane %v2913_v1, %v13081_v61  ;;  %v2921_v16 = vcombine.high %v2913_v1, %v2913_v1 }
 0x1e5   :  { %1458 = vmatpush1.bf16.msra.mxu1 %v1315_v10 }
 0x1e6   :  { %v1858_v36 = vpop.permute.xlu1 %1857  ;;  %2962 = vrot.lane.b32.xlu1 %v2928_v14, %s12936_s13  ;;  %12200 = vmatprep.subr.msk.bf16.mxu1 %vm1208_vm3, %v1550_v59  ;;  %v1545_v32 = vpop.permute.xlu0 %1544  ;;  %v2936_v27 = vcombine.high %v2928_v14, %v2928_v14  ;;  %v2935_v34 = vrot.slane %v2921_v16, %v13081_v61 }
 0x1e8   :  { %12199 = vmatmul.mubr.msk.bf16.vlgmr.msra.gmra.mxu0 %vm1291_vm8, %v1217_v19  ;;  %2964 = vrot.lane.b32.xlu0 %v2936_v27, %s12936_s13  ;;  %v2937_v55 = vcombine.high %v2935_v34, %v2935_v34  ;;  %v2665_v27 = vcombine.high %v13449_v12, %v13449_v12 }
 0x1e9   :  { %12197 = vmatmul.mubr.msk.bf16.vlgmr.msra.gmra.mxu1 %vm1291_vm8, %v13424_v63  ;;  %1696 = vmatprep.mubr.bf16.mxu0 %v15779_v13 }
 0x1ea   :  { %1638 = vmatpush1.bf16.msra.mxu1 %v1565_v62  ;;  %v1541_v35 = vpop.permute.xlu1 %1540  ;;  %2966 = vrot.lane.b32.xlu1 %v2935_v34, %s12936_s13  ;;  %v1539_v50 = vpop.permute.xlu0 %1538 }
 0x1eb   :  { %v1551_v15 = vsel %vm1546_vm9, %v1537_v40, %v1539_v50  ;;  %v1552_v21 = vsel %vm1546_vm9, %v1539_v50, %v1541_v35  ;;  %1655 = vmatprep.mubr.bf16.mxu1 %v15779_v13  ;;  %v12889_v50 = vcombine.low %v13279_v45, %v13279_v45 }
 0x1ec   :  { %2968 = vrot.lane.b32.xlu0 %v2937_v55, %s12936_s13  ;;  %12202 = vmatprep.subr.msk.bf16.mxu0 %vm1208_vm3, %v1552_v21  ;;  %v1571_v63 = vsel %vm1208_vm3, %v1551_v15, 0  ;;  %v2900_v55 = vld [vmem:[#allocation2 + $0x12] sm:$0x3]  ;;  %v3202_v15 = vrot.slane %v13282_v48, %v13081_v61 }
 0x1ed   :  { %1679 = vmatpush1.bf16.msra.mxu0 %v1571_v63 }
 0x1ee   :  { %v1860_v26 = vpop.permute.xlu1 %1859  ;;  %v1856_v38 = vpop.permute.xlu0 %1855 }
 0x1ef   :  { %v1872_v41 = vsel %vm1871_vm10, %v1854_v3, %v1856_v38  ;;  %v1873_v46 = vsel %vm1871_vm10, %v1856_v38, %v1858_v36  ;;  %v1874_v1 = vsel %vm1871_vm10, %v1858_v36, %v1860_v26 }
 0x1f0   :  { %12203 = vmatmul.mubr.msk.bf16.vlgmr.msra.gmra.mxu0 %vm1291_vm8, %v1217_v19  ;;  %12211 = vmatprep.subr.msk.bf16.mxu0 %vm1208_vm3, %v1873_v46  ;;  %v1884_v2 = vsel %vm1208_vm3, %v1872_v41, 0  ;;  %v1890_v14 = vsel %vm1208_vm3, %v1874_v1, 0 }
 0x1f1   :  { %12201 = vmatmul.mubr.msk.bf16.vlgmr.msra.gmra.mxu1 %vm1291_vm8, %v1217_v19  ;;  %1922 = vmatpush1.bf16.msra.mxu0 %v1884_v2 }
 0x1f2   :  { %v1543_v47 = vpop.permute.xlu1 %1542  ;;  %v2904_v57 = vpop.permute.xlu0 %2903  ;;  %1737 = vmatprep.mubr.bf16.mxu1 %v15779_v13  ;;  %1939 = vmatprep.mubr.bf16.mxu0 %v15779_v13 }
 0x1f3   :  { %v1553_v58 = vsel %vm1546_vm9, %v1541_v35, %v1543_v47  ;;  %v13517_v39 = vrot.slane %v2904_v57, 6  ;;  %v1554_v5 = vsel %vm1546_vm9, %v1543_v47, %v1545_v32 }
 0x1f4   :  { %12204 = vmatprep.subr.msk.bf16.mxu1 %vm1208_vm3, %v1554_v5  ;;  %v1577_v40 = vsel %vm1208_vm3, %v1553_v58, 0 }
 0x1f5   :  { %15806 = vst [vmem:[#allocation7_spill] sm:$0xff] %v13517_v39  ;;  %v2908_v6 = vsel %vm1208_vm3, %v2905_v0, %v13517_v39  ;;  %1720 = vmatpush1.bf16.msra.mxu1 %v1577_v40  ;;  %v2915_v21 = vmul.bf16 %v13517_v39, %v2900_v55 }
 0x1f6   :  { %v13531_v3 = vsel %vm1871_vm10, %v2908_v6, %v2904_v57  ;;  %v1864_v4 = vpop.permute.xlu1 %1863  ;;  %v1862_v9 = vpop.permute.xlu0 %1861  ;;  %v13584_v6 = vld [vmem:[%s15772_s2 + $0xc] sm:$0xf] }
 0x1f7   :  { %15807 = vst [vmem:[#allocation8_spill] sm:$0xff] %v13531_v3  ;;  %v2914_v44 = vmul.bf16 %v13531_v3, %v13312_v29  ;;  %v1875_v10 = vsel %vm1871_vm10, %v1860_v26, %v1862_v9  ;;  %v1876_v0 = vsel %vm1871_vm10, %v1862_v9, %v1864_v4  ;;  %v13565_v26 = vrot.slane %v12889_v50, %v13081_v61 }
 0x1f8   :  { %12212 = vmatmul.mubr.msk.bf16.vlgmr.msra.gmra.mxu0 %vm1291_vm8, %v13527_v43  ;;  %12213 = vmatprep.subr.msk.bf16.mxu1 %vm1208_vm3, %v1875_v10  ;;  %v2961_v58 = vrot.slane %v2915_v21, %v13081_v61  ;;  %v3210_v10 = vcombine.high %v3202_v15, %v3202_v15 }
 0x1f9   :  { %12205 = vmatmul.mubr.msk.bf16.vlgmr.msra.gmra.mxu1 %vm1291_vm8, %v1217_v19  ;;  %v2945_v16 = vrot.slane %v2914_v44, %v13081_v61  ;;  %2021 = vmatprep.mubr.bf16.mxu0 %v15779_v13  ;;  %v1896_v19 = vsel %vm1208_vm3, %v1876_v0, 0  ;;  %v2938_v34 = vcombine.high %v2914_v44, %v2914_v44 }
 0x1fa   :  { %1963 = vmatpush1.bf16.msra.mxu1 %v1890_v14  ;;  %v2145_v59 = vpop.permute.xlu1 %2144  ;;  %v1866_v30 = vpop.permute.xlu0 %1865  ;;  %1980 = vmatprep.mubr.bf16.mxu1 %v15779_v13 }
 0x1fb   :  { %2970 = vrot.lane.b32.xlu1 %v2945_v16, %s12936_s13  ;;  %v1877_v36 = vsel %vm1871_vm10, %v1864_v4, %v1866_v30  ;;  %v2953_v32 = vcombine.high %v2945_v16, %v2945_v16  ;;  %v2952_v12 = vrot.slane %v2938_v34, %v13081_v61 }
 0x1fc   :  { %12215 = vmatprep.subr.msk.bf16.mxu0 %vm1208_vm3, %v1877_v36  ;;  %v12890_v36 = vcombine.low %v13309_v17, %v13309_v17  ;;  %v2414_v17 = vsel %vm1208_vm3, %v3202_v15, 0 }
 0x1fd   :  { %2972 = vrot.lane.b32.xlu0 %v2953_v32, %s12936_s13  ;;  %2004 = vmatpush1.bf16.msra.mxu0 %v1896_v19  ;;  %v2954_v9 = vcombine.high %v2952_v12, %v2952_v12  ;;  %v3211_v32 = vcombine.high %v13565_v26, %v13565_v26 }
 0x1fe   :  { %v2149_v62 = vpop.permute.xlu1 %2148  ;;  %v1870_v35 = vpop.permute.xlu0 %1869 }
 0x1ff   :  { %2687 = vrot.lane.b32.xlu1 %v2665_v27, %s12938_s15 }
 0x200   :  { %12216 = vmatmul.mubr.msk.bf16.vlgmr.msra.gmra.mxu0 %vm1291_vm8, %v13527_v43 }
 0x201   :  { %12214 = vmatmul.mubr.msk.bf16.vlgmr.msra.gmra.mxu1 %vm1291_vm8, %v13527_v43  ;;  %3236 = vrot.lane.b32.xlu0 %v3202_v15, %s12943_s25  ;;  %v12256_v15 = vld.sshfl [vmem:[#allocation2 + $0x12] sm:$0x3 pattern:$0x76325410] }
 0x202   :  { %v1868_v45 = vpop.permute.xlu1 %1867  ;;  %v2147_v63 = vpop.permute.xlu0 %2146  ;;  %2062 = vmatprep.mubr.bf16.mxu1 %v15779_v13  ;;  %2230 = vmatprep.mubr.bf16.mxu0 %v15779_v13 }
 0x203   :  { %v1878_v38 = vsel %vm1871_vm10, %v1866_v30, %v1868_v45  ;;  %v2163_v41 = vsel %vm2162_vm6, %v2145_v59, %v2147_v63  ;;  %2974 = vrot.lane.b32.xlu1 %v2952_v12, %s12936_s13  ;;  %v1879_v46 = vsel %vm1871_vm10, %v1868_v45, %v1870_v35  ;;  %v2164_v2 = vsel %vm2162_vm6, %v2147_v63, %v2149_v62 }
 0x204   :  { %12217 = vmatprep.subr.msk.bf16.mxu1 %vm1208_vm3, %v1879_v46  ;;  %12220 = vmatprep.subr.msk.bf16.mxu0 %vm1208_vm3, %v2164_v2  ;;  %v1902_v47 = vsel %vm1208_vm3, %v1878_v38, 0  ;;  %v2175_v57 = vsel %vm1208_vm3, %v2163_v41, 0 }
 0x205   :  { %3240 = vrot.lane.b32.xlu0 %v13565_v26, %s12943_s25  ;;  %2045 = vmatpush1.bf16.msra.mxu1 %v1902_v47 }
 0x206   :  { %2213 = vmatpush1.bf16.msra.mxu0 %v2175_v57  ;;  %v2153_v5 = vpop.permute.xlu1 %2152  ;;  %v2151_v40 = vpop.permute.xlu0 %2150 }
 0x207   :  { %v2165_v1 = vsel %vm2162_vm6, %v2149_v62, %v2151_v40  ;;  %2978 = vrot.lane.b32.xlu1 %v2961_v58, %s12936_s13  ;;  %v2166_v4 = vsel %vm2162_vm6, %v2151_v40, %v2153_v5  ;;  %v3226_v62 = vrot.slane %v12890_v36, %v13081_v61  ;;  %v12228_v58 = vld [vmem:[%s15772_s2 + $0x10] sm:$0xf] }
 0x208   :  { %12222 = vmatprep.subr.msk.bf16.mxu1 %vm1208_vm3, %v2166_v4  ;;  %v2181_v44 = vsel %vm1208_vm3, %v2165_v1, 0 }
 0x209   :  { %12218 = vmatmul.mubr.msk.bf16.vlgmr.msra.gmra.mxu1 %vm1291_vm8, %v13527_v43  ;;  %12221 = vmatmul.mubr.msk.bf16.vlgmr.msra.gmra.mxu0 %vm1291_vm8, %v13584_v6  ;;  %v3219_v43 = vrot.slane %v13312_v29, %v13081_v61  ;;  %v3228_v41 = vcombine.high %v3226_v62, %v3226_v62 }
 0x20a   :  { %2976 = vrot.lane.b32.xlu0 %v2954_v9, %s12936_s13  ;;  %2254 = vmatpush1.bf16.msra.mxu1 %v2181_v44  ;;  %v2157_v0 = vpop.permute.xlu1 %2156  ;;  %v2155_v14 = vpop.permute.xlu0 %2154 }
 0x20b   :  { %v2167_v16 = vsel %vm2162_vm6, %v2153_v5, %v2155_v14  ;;  %3238 = vrot.lane.b32.xlu1 %v3210_v10, %s12943_s25  ;;  %v2168_v59 = vsel %vm2162_vm6, %v2155_v14, %v2157_v0  ;;  %2271 = vmatprep.mubr.bf16.mxu1 %v15779_v13  ;;  %v2408_v35 = vcombine.high %v3219_v43, %v3219_v43  ;;  %v2426_v44 = vsel %vm1208_vm3, %v3219_v43, 0 }
 0x20c   :  { %12224 = vmatprep.subr.msk.bf16.mxu0 %vm1208_vm3, %v2168_v59  ;;  %v2187_v30 = vsel %vm1208_vm3, %v2167_v16, 0  ;;  %2312 = vmatprep.mubr.bf16.mxu0 %v15779_v13 }
 0x20d   :  { %2295 = vmatpush1.bf16.msra.mxu0 %v2187_v30 }
 0x20e   :  { %3244 = vrot.lane.b32.xlu0 %v3219_v43, %s12943_s25  ;;  %v2159_v19 = vpop.permute.xlu1 %2158  ;;  %12229 = vmatprep.subr.msk.bf16.mxu0 %vm1208_vm3, %v3210_v10  ;;  %v2420_v10 = vsel %vm1208_vm3, %v13565_v26, 0 }
 0x20f   :  { %v3466_v27 = vpop.permute.xlu0 %3465  ;;  %3242 = vrot.lane.b32.xlu1 %v3211_v32, %s12943_s25  ;;  %v2169_v50 = vsel %vm2162_vm6, %v2157_v0, %v2159_v19 }
 0x210   :  { %v3469_v34 = vrot.slane %v3466_v27, 6 }
 0x211   :  { %12223 = vmatmul.mubr.msk.bf16.vlgmr.msra.gmra.mxu1 %vm1291_vm8, %v13584_v6  ;;  %12225 = vmatmul.mubr.msk.bf16.vlgmr.msra.gmra.mxu0 %vm1291_vm8, %v13584_v6 }
 0x212   :  { %v13620_v55 = vsel %vm1546_vm9, %v3469_v34, %v3466_v27  ;;  %3248 = vrot.lane.b32.xlu0 %v3226_v62, %s12943_s25  ;;  %2452 = vmatpush1.bf16.msra.mxu0 %v2414_v17  ;;  %v3468_v12 = vpop.permute.xlu1 %3467 }
 0x213   :  { %15808 = vst [vmem:[#allocation9_spill] sm:$0xff] %v13620_v55  ;;  %v3477_v21 = vmul.bf16 %v13620_v55, %v13282_v48  ;;  %v13625_v45 = vrot.slane %v3468_v12, 6  ;;  %12233 = vmatprep.subr.msk.bf16.mxu0 %vm1208_vm3, %v2408_v35  ;;  %v2161_v63 = vpop.permute.xlu0 %2160  ;;  %3246 = vrot.lane.b32.xlu1 %v2408_v35, %s12943_s25  ;;  %v2193_v48 = vsel %vm1208_vm3, %v2169_v50, 0  ;;  %v3464_v35 = vld [vmem:[#allocation2 + $0x12] sm:$0x3] }
 0x214   :  { %v2170_v38 = vsel %vm2162_vm6, %v2159_v19, %v2161_v63  ;;  %2353 = vmatprep.mubr.bf16.mxu1 %v15779_v13  ;;  %2469 = vmatprep.mubr.bf16.mxu0 %v15779_v13  ;;  %v13687_v63 = vld [vmem:[%s15772_s2 + $0x14] sm:$0xf] }
 0x215   :  { %15809 = vst [vmem:[#allocation10_spill] sm:$0xff] %v13625_v45  ;;  %v3485_v46 = vcombine.high %v3477_v21, %v3477_v21  ;;  %v3472_v2 = vsel %vm1208_vm3, %v3469_v34, %v13625_v45  ;;  %12226 = vmatprep.subr.msk.bf16.mxu1 %vm1208_vm3, %v2170_v38  ;;  %v3492_v47 = vrot.slane %v3477_v21, %v13081_v61 }
 0x216   :  { %v13638_v57 = vsel %vm1546_vm9, %v3472_v2, %v3468_v12  ;;  %3252 = vrot.lane.b32.xlu0 %v12256_v15, %s12943_s25  ;;  %2336 = vmatpush1.bf16.msra.mxu1 %v2193_v48  ;;  %v2676_v5 = vpop.permute.xlu1 %2675  ;;  %v3479_v15 = vmul.bf16 %v13625_v45, %v3464_v35  ;;  %v3751_v2 = vld [vmem:[%s15773_s3] sm:$0xff] }
 0x217   :  { %15810 = vst [vmem:[#allocation11_spill] sm:$0xff] %v13638_v57  ;;  %12231 = vmatprep.subr.msk.bf16.mxu1 %vm1208_vm3, %v3211_v32  ;;  %v2674_v40 = vpop.permute.xlu0 %2673  ;;  %3250 = vrot.lane.b32.xlu1 %v3228_v41, %s12943_s25  ;;  %v3500_v1 = vcombine.high %v3492_v47, %v3492_v47  ;;  %v3499_v4 = vrot.slane %v3485_v46, %v13081_v61  ;;  %v2432_v32 = vsel %vm1208_vm3, %v3226_v62, 0  ;;  %v3765_v48 = vld [vmem:[%s15774_s4] sm:$0xff] }
 0x218   :  { %v3478_v9 = vmul.bf16 %v13638_v57, %v13312_v29  ;;  %v2691_v26 = vsel %vm2088_vm5, %v2674_v40, %v2676_v5  ;;  %v3525_v46 = vrot.slane %v3479_v15, %v13081_v61 }
 0x219   :  { %12227 = vmatmul.mubr.msk.bf16.vlgmr.msra.gmra.mxu1 %vm1291_vm8, %v13584_v6  ;;  %12230 = vmatmul.mubr.msk.bf16.vlgmr.msra.gmra.mxu0 %vm1291_vm8, %v12228_v58  ;;  %v3501_v14 = vcombine.high %v3499_v4, %v3499_v4  ;;  %v2703_v36 = vsel %vm1208_vm3, %v2691_v26, 0 }
 0x21a   :  { %2534 = vmatpush1.bf16.msra.mxu0 %v2426_v44  ;;  %3528 = vrot.lane.b32.xlu0 %v3500_v1, %s12937_s14  ;;  %v3502_v6 = vcombine.high %v3478_v9, %v3478_v9  ;;  %v2680_v16 = vpop.permute.xlu1 %2679  ;;  %v3509_v59 = vrot.slane %v3478_v9, %v13081_v61  ;;  %v13730_v44 = vld [vmem:[%s15772_s2 + $0x18] sm:$0xf] }
 0x21b   :  { %2493 = vmatpush1.bf16.msra.mxu1 %v2420_v10  ;;  %v2678_v0 = vpop.permute.xlu0 %2677  ;;  %3526 = vrot.lane.b32.xlu1 %v3492_v47, %s12937_s14 }
 0x21c   :  { %12235 = vmatprep.subr.msk.bf16.mxu1 %vm1208_vm3, %v3228_v41  ;;  %v2692_v29 = vsel %vm2088_vm5, %v2676_v5, %v2678_v0  ;;  %2551 = vmatprep.mubr.bf16.mxu0 %v15779_v13  ;;  %v3517_v19 = vcombine.high %v3509_v59, %v3509_v59  ;;  %v3516_v27 = vrot.slane %v3502_v6, %v13081_v61 }
 0x21d   :  { %12238 = vmatprep.subr.msk.bf16.mxu0 %vm1208_vm3, %v2692_v29  ;;  %2510 = vmatprep.mubr.bf16.mxu1 %v15779_v13  ;;  %v2693_v12 = vsel %vm2088_vm5, %v2678_v0, %v2680_v16 }
 0x21e   :  { %3532 = vrot.lane.b32.xlu0 %v3501_v14, %s12937_s14  ;;  %v2684_v34 = vpop.permute.xlu1 %2683  ;;  %v3518_v62 = vcombine.high %v3516_v27, %v3516_v27  ;;  %v2709_v38 = vsel %vm1208_vm3, %v2693_v12, 0 }
 0x21f   :  { %v2682_v43 = vpop.permute.xlu0 %2681  ;;  %3530 = vrot.lane.b32.xlu1 %v3499_v4, %s12937_s14 }
 0x220   :  { %v2694_v30 = vsel %vm2088_vm5, %v2680_v16, %v2682_v43  ;;  %v2695_v21 = vsel %vm2088_vm5, %v2682_v43, %v2684_v34 }
 0x221   :  { %12232 = vmatmul.mubr.msk.bf16.vlgmr.msra.gmra.mxu1 %vm1291_vm8, %v12228_v58  ;;  %12234 = vmatmul.mubr.msk.bf16.vlgmr.msra.gmra.mxu0 %vm1291_vm8, %v12228_v58  ;;  %v2715_v41 = vsel %vm1208_vm3, %v2695_v21, 0 }
 0x222   :  { %2575 = vmatpush1.bf16.msra.mxu1 %v2432_v32  ;;  %2741 = vmatpush1.bf16.msra.mxu0 %v2703_v36 }
 0x223   :  { %3536 = vrot.lane.b32.xlu0 %v3517_v19, %s12937_s14  ;;  %12240 = vmatprep.subr.msk.bf16.mxu1 %vm1208_vm3, %v2694_v30  ;;  %v13674_v17 = vpop.permute.xlu0 %2685 }
 0x224   :  { %3534 = vrot.lane.b32.xlu1 %v3509_v59, %s12937_s14  ;;  %v2696_v50 = vsel %vm2088_vm5, %v2684_v34, %v13674_v17  ;;  %2758 = vmatprep.mubr.bf16.mxu0 %v15779_v13 }
 0x225   :  { %12242 = vmatprep.subr.msk.bf16.mxu0 %vm1208_vm3, %v2696_v50  ;;  %2592 = vmatprep.mubr.bf16.mxu1 %v15779_v13 }
 0x227   :  { %3540 = vrot.lane.b32.xlu0 %v3518_v62, %s12937_s14  ;;  %v2690_v47 = vpop.permute.xlu0 %2689 }
 0x228   :  { %3538 = vrot.lane.b32.xlu1 %v3516_v27, %s12937_s14 }
 0x229   :  { %12236 = vmatmul.mubr.msk.bf16.vlgmr.msra.gmra.mxu1 %vm1291_vm8, %v12228_v58  ;;  %12239 = vmatmul.mubr.msk.bf16.vlgmr.msra.gmra.mxu0 %vm1291_vm8, %v13687_v63 }
 0x22a   :  { %2782 = vmatpush1.bf16.msra.mxu1 %v2709_v38  ;;  %2823 = vmatpush1.bf16.msra.mxu0 %v2715_v41 }
 0x22b   :  { %2799 = vmatprep.mubr.bf16.mxu1 %v15779_v13  ;;  %2840 = vmatprep.mubr.bf16.mxu0 %v15779_v13 }
 0x22c   :  { %3542 = vrot.lane.b32.xlu1 %v3525_v46, %s12937_s14  ;;  %3754 = vperm.xlu0 %12862, %v3751_v2  }
 0x230   :  { %3842 = vrot.lane.b32.xlu0 %v13193_v25, %s12937_s14  ;;  %3768 = vperm.xlu1 %12863, %v3765_v48  }
 0x231   :  { %12241 = vmatmul.mubr.msk.bf16.vlgmr.msra.gmra.mxu1 %vm1291_vm8, %v13687_v63  ;;  %12243 = vmatmul.mubr.msk.bf16.vlgmr.msra.gmra.mxu0 %vm1291_vm8, %v13687_v63 }
 0x232   :  { %3047 = vmatprep.mubr.bf16.mxu0 %v15779_v13  ;;  %2881 = vmatprep.mubr.bf16.mxu1 %v15779_v13 }
 0x234   :  { %3846 = vrot.lane.b32.xlu0 %v13232_v56, %s12937_s14  ;;  %3840 = vrot.lane.b32.xlu1 %v13191_v24, %s12937_s14 }
 0x238   :  { %4369 = vrot.lane.b32.xlu0 %v13097_v11, %s12936_s13  ;;  %3844 = vrot.lane.b32.xlu1 %v13230_v53, %s12937_s14 }
 0x23c   :  { %4373 = vrot.lane.b32.xlu0 %v13213_v20, %s12936_s13  ;;  %4367 = vrot.lane.b32.xlu1 %v13064_v54, %s12936_s13 }
 0x240   :  { %4648 = vrot.lane.b32.xlu0 %v13193_v25, %s12938_s15  ;;  %4371 = vrot.lane.b32.xlu1 %v13211_v37, %s12936_s13 }
 0x244   :  { %4652 = vrot.lane.b32.xlu0 %v13232_v56, %s12938_s15  ;;  %4646 = vrot.lane.b32.xlu1 %v13191_v24, %s12938_s15 }
 0x248   :  { %5155 = vrot.lane.b32.xlu0 %v13064_v54, %s12939_s16  ;;  %4650 = vrot.lane.b32.xlu1 %v13230_v53, %s12938_s15 }
 0x24c   :  { %5159 = vrot.lane.b32.xlu0 %v13211_v37, %s12939_s16  ;;  %5157 = vrot.lane.b32.xlu1 %v13097_v11, %s12939_s16 }
 0x250   :  { %5161 = vrot.lane.b32.xlu0 %v13213_v20, %s12939_s16 }
 0x258   :  { %v2963_v58 = vpop.permute.xlu1 %2962 }
 0x25a   :  { %v2965_v5 = vpop.permute.xlu0 %2964 }
 0x25b   :  { %v2980_v40 = vsel %vm1797_vm4, %v2963_v58, %v2965_v5 }
 0x25c   :  { %v2967_v1 = vpop.permute.xlu1 %2966  ;;  %v2992_v9 = vsel %vm1208_vm3, %v2980_v40, 0 }
 0x25d   :  { %v2981_v4 = vsel %vm1797_vm4, %v2965_v5, %v2967_v1  ;;  %v12255_v5 = vld [vmem:[%s15772_s2 + $0x1c] sm:$0xf] }
 0x25e   :  { %12247 = vmatprep.subr.msk.bf16.mxu0 %vm1208_vm3, %v2981_v4  ;;  %v2969_v6 = vpop.permute.xlu0 %2968 }
 0x25f   :  { %3030 = vmatpush1.bf16.msra.mxu0 %v2992_v9  ;;  %v2982_v19 = vsel %vm1797_vm4, %v2967_v1, %v2969_v6 }
 0x260   :  { %v13734_v10 = vpop.f32.mrf.mxu0  ;;  %v2998_v62 = vsel %vm1208_vm3, %v2982_v19, 0 }
 0x262   :  { %12248 = vmatmul.mubr.msk.bf16.vlgmr.msra.gmra.mxu0 %vm1291_vm8, %v13730_v44  ;;  %v13738_v0 = vpop.f32.mrf.mxu0 }
 0x263   :  { %3129 = vmatprep.mubr.bf16.mxu0 %v15779_v13 }
 0x264   :  { %v1358_v29 = vpop.f32.mrf.mxu0 }
 0x266   :  { %v1359_v14 = vpop.f32.mrf.mxu0 }
 0x26d   :  { %v2971_v16 = vpop.permute.xlu1 %2970 }
 0x26e   :  { %v2983_v34 = vsel %vm1797_vm4, %v2969_v6, %v2971_v16 }
 0x26f   :  { %v2973_v59 = vpop.permute.xlu0 %2972 }
 0x270   :  { %v2984_v27 = vsel %vm1797_vm4, %v2971_v16, %v2973_v59 }
 0x271   :  { %v2688_v26 = vpop.permute.xlu1 %2687  ;;  %v3004_v12 = vsel %vm1208_vm3, %v2984_v27, 0 }
 0x272   :  { %v2697_v43 = vsel %vm2088_vm5, %v13674_v17, %v2688_v26  ;;  %v2698_v30 = vsel %vm2088_vm5, %v2688_v26, %v2690_v47 }
 0x273   :  { %12244 = vmatprep.subr.msk.bf16.mxu1 %vm1208_vm3, %v2698_v30  ;;  %v3237_v36 = vpop.permute.xlu0 %3236  ;;  %v2721_v32 = vsel %vm1208_vm3, %v2697_v43, 0 }
 0x274   :  { %2864 = vmatpush1.bf16.msra.mxu1 %v2721_v32 }
 0x275   :  { %v2975_v17 = vpop.permute.xlu1 %2974  ;;  %12249 = vmatprep.subr.msk.bf16.mxu1 %vm1208_vm3, %v2983_v34 }
 0x276   :  { %v2985_v35 = vsel %vm1797_vm4, %v2973_v59, %v2975_v17 }
 0x277   :  { %12245 = vmatmul.mubr.msk.bf16.vlgmr.msra.gmra.mxu1 %vm1291_vm8, %v13687_v63  ;;  %12251 = vmatprep.subr.msk.bf16.mxu0 %vm1208_vm3, %v2985_v35  ;;  %v3241_v50 = vpop.permute.xlu0 %3240 }
 0x278   :  { %3071 = vmatpush1.bf16.msra.mxu1 %v2998_v62  ;;  %3112 = vmatpush1.bf16.msra.mxu0 %v3004_v12  ;;  %v12265_v62 = vld [vmem:[%s15772_s2 + $0x20] sm:$0xf] }
 0x279   :  { %v2979_v21 = vpop.permute.xlu1 %2978  ;;  %3088 = vmatprep.mubr.bf16.mxu1 %v15779_v13 }
 0x27b   :  { %12252 = vmatmul.mubr.msk.bf16.vlgmr.msra.gmra.mxu0 %vm1291_vm8, %v13730_v44 }
 0x27c   :  { %v2977_v15 = vpop.permute.xlu0 %2976  ;;  %3322 = vmatprep.mubr.bf16.mxu0 %v15779_v13 }
 0x27d   :  { %v2986_v63 = vsel %vm1797_vm4, %v2975_v17, %v2977_v15  ;;  %v3239_v38 = vpop.permute.xlu1 %3238  ;;  %v2987_v41 = vsel %vm1797_vm4, %v2977_v15, %v2979_v21 }
 0x27e   :  { %v3255_v46 = vsel %vm3254_vm11, %v3237_v36, %v3239_v38  ;;  %12253 = vmatprep.subr.msk.bf16.mxu1 %vm1208_vm3, %v2987_v41  ;;  %v3010_v2 = vsel %vm1208_vm3, %v2986_v63, 0  ;;  %v3256_v48 = vsel %vm3254_vm11, %v3239_v38, %v3241_v50 }
 0x27f   :  { %12250 = vmatmul.mubr.msk.bf16.vlgmr.msra.gmra.mxu1 %vm1291_vm8, %v13730_v44  ;;  %12257 = vmatprep.subr.msk.bf16.mxu0 %vm1208_vm3, %v3256_v48  ;;  %v3267_v47 = vsel %vm1208_vm3, %v3255_v46, 0 }
 0x280   :  { %3153 = vmatpush1.bf16.msra.mxu1 %v3010_v2  ;;  %v3245_v58 = vpop.permute.xlu0 %3244  ;;  %3305 = vmatpush1.bf16.msra.mxu0 %v3267_v47 }
 0x281   :  { %v3243_v40 = vpop.permute.xlu1 %3242  ;;  %3170 = vmatprep.mubr.bf16.mxu1 %v15779_v13 }
 0x282   :  { %v3258_v1 = vsel %vm3254_vm11, %v3243_v40, %v3245_v58  ;;  %v3257_v4 = vsel %vm3254_vm11, %v3241_v50, %v3243_v40 }
 0x283   :  { %12258 = vmatmul.mubr.msk.bf16.vlgmr.msra.gmra.mxu0 %vm1291_vm8, %v12255_v5  ;;  %12259 = vmatprep.subr.msk.bf16.mxu1 %vm1208_vm3, %v3258_v1  ;;  %v3273_v16 = vsel %vm1208_vm3, %v3257_v4, 0 }
 0x284   :  { %v3249_v9 = vpop.permute.xlu0 %3248  ;;  %3404 = vmatprep.mubr.bf16.mxu0 %v15779_v13 }
 0x285   :  { %v3247_v29 = vpop.permute.xlu1 %3246 }
 0x286   :  { %v3259_v14 = vsel %vm3254_vm11, %v3245_v58, %v3247_v29  ;;  %v3260_v6 = vsel %vm3254_vm11, %v3247_v29, %v3249_v9 }
 0x287   :  { %12254 = vmatmul.mubr.msk.bf16.vlgmr.msra.gmra.mxu1 %vm1291_vm8, %v13730_v44  ;;  %12261 = vmatprep.subr.msk.bf16.mxu0 %vm1208_vm3, %v3260_v6  ;;  %v3279_v59 = vsel %vm1208_vm3, %v3259_v14, 0 }
 0x288   :  { %3346 = vmatpush1.bf16.msra.mxu1 %v3273_v16  ;;  %v3253_v26 = vpop.permute.xlu0 %3252  ;;  %3387 = vmatpush1.bf16.msra.mxu0 %v3279_v59 }
 0x289   :  { %v3251_v43 = vpop.permute.xlu1 %3250  ;;  %3363 = vmatprep.mubr.bf16.mxu1 %v15779_v13 }
 0x28a   :  { %v3262_v30 = vsel %vm3254_vm11, %v3251_v43, %v3253_v26  ;;  %v3261_v44 = vsel %vm3254_vm11, %v3249_v9, %v3251_v43 }
 0x28b   :  { %12262 = vmatmul.mubr.msk.bf16.vlgmr.msra.gmra.mxu0 %vm1291_vm8, %v12255_v5  ;;  %12263 = vmatprep.subr.msk.bf16.mxu1 %vm1208_vm3, %v3262_v30  ;;  %v3285_v19 = vsel %vm1208_vm3, %v3261_v44, 0 }
 0x28c   :  { %v3529_v36 = vpop.permute.xlu0 %3528  ;;  %3611 = vmatprep.mubr.bf16.mxu0 %v15779_v13 }
 0x28d   :  { %v3527_v32 = vpop.permute.xlu1 %3526 }
 0x28e   :  { %v3544_v27 = vsel %vm1206_vm2, %v3527_v32, %v3529_v36 }
 0x28f   :  { %12260 = vmatmul.mubr.msk.bf16.vlgmr.msra.gmra.mxu1 %vm1291_vm8, %v12255_v5  ;;  %v3556_v50 = vsel %vm1208_vm3, %v3544_v27, 0 }
 0x290   :  { %3428 = vmatpush1.bf16.msra.mxu1 %v3285_v19  ;;  %v3533_v34 = vpop.permute.xlu0 %3532  ;;  %3445 = vmatprep.mubr.bf16.mxu1 %v15779_v13 }
 0x291   :  { %v3531_v17 = vpop.permute.xlu1 %3530 }
 0x292   :  { %v3545_v35 = vsel %vm1206_vm2, %v3529_v36, %v3531_v17  ;;  %v3546_v12 = vsel %vm1206_vm2, %v3531_v17, %v3533_v34 }
 0x293   :  { %12266 = vmatprep.subr.msk.bf16.mxu0 %vm1208_vm3, %v3545_v35  ;;  %v3562_v38 = vsel %vm1208_vm3, %v3546_v12, 0 }
 0x294   :  { %3594 = vmatpush1.bf16.msra.mxu0 %v3556_v50 }
 0x295   :  { %v3537_v21 = vpop.permute.xlu0 %3536 }
 0x296   :  { %v3535_v15 = vpop.permute.xlu1 %3534 }
 0x297   :  { %12264 = vmatmul.mubr.msk.bf16.vlgmr.msra.gmra.mxu1 %vm1291_vm8, %v12255_v5  ;;  %12267 = vmatmul.mubr.msk.bf16.vlgmr.msra.gmra.mxu0 %vm1291_vm8, %v12265_v62  ;;  %v3547_v63 = vsel %vm1206_vm2, %v3533_v34, %v3535_v15  ;;  %v3548_v41 = vsel %vm1206_vm2, %v3535_v15, %v3537_v21 }
 0x298   :  { %12268 = vmatprep.subr.msk.bf16.mxu1 %vm1208_vm3, %v3547_v63  ;;  %3652 = vmatprep.mubr.bf16.mxu1 %v15779_v13  ;;  %v3568_v47 = vsel %vm1208_vm3, %v3548_v41, 0 }
 0x299   :  { %3635 = vmatpush1.bf16.msra.mxu1 %v3562_v38  ;;  %3693 = vmatprep.mubr.bf16.mxu0 %v15779_v13  ;;  %v3541_v48 = vpop.permute.xlu0 %3540 }
 0x29a   :  { %v3539_v46 = vpop.permute.xlu1 %3538 }
 0x29b   :  { %v3549_v2 = vsel %vm1206_vm2, %v3537_v21, %v3539_v46  ;;  %v3550_v5 = vsel %vm1206_vm2, %v3539_v46, %v3541_v48 }
 0x29c   :  { %12270 = vmatprep.subr.msk.bf16.mxu0 %vm1208_vm3, %v3549_v2  ;;  %v1395_v58 = vpop.f32.mrf.mxu1  ;;  %v3574_v29 = vsel %vm1208_vm3, %v3550_v5, 0 }
 0x29d   :  { %3676 = vmatpush1.bf16.msra.mxu0 %v3568_v47 }
 0x29e   :  { %v3543_v40 = vpop.permute.xlu1 %3542  ;;  %v1397_v1 = vpop.f32.mrf.mxu1 }
 0x29f   :  { %v3551_v4 = vsel %vm1206_vm2, %v3541_v48, %v3543_v40  ;;  %12269 = vmatmul.mubr.msk.bf16.vlgmr.msra.gmra.mxu1 %vm1291_vm8, %v12265_v62 }
 0x2a0   :  { %12271 = vmatmul.mubr.msk.bf16.vlgmr.msra.gmra.mxu0 %vm1291_vm8, %v12265_v62  ;;  %12272 = vmatprep.subr.msk.bf16.mxu1 %vm1208_vm3, %v3551_v4  ;;  %v1436_v9 = vpop.f32.mrf.mxu0  ;;  %v1399_v14 = vpop.f32.mrf.mxu1 }
 0x2a1   :  { %3717 = vmatpush1.bf16.msra.mxu1 %v3574_v29  ;;  %3734 = vmatprep.mubr.bf16.mxu1 %v15779_v13 }
 0x2a2   :  { %v1438_v6 = vpop.f32.mrf.mxu0  ;;  %v1400_v16 = vpop.f32.mrf.mxu1  ;;  %3983 = vmatprep.mubr.bf16.mxu0 %v15779_v13 }
 0x2a4   :  { %v1440_v59 = vpop.f32.mrf.mxu0 }
 0x2a6   :  { %v1441_v26 = vpop.f32.mrf.mxu0 }
 0x2a7   :  { %12273 = vmatmul.mubr.msk.bf16.vlgmr.msra.gmra.mxu1 %vm1291_vm8, %v12265_v62 }
 0x2a8   :  { %v1616_v43 = vpop.f32.mrf.mxu0  ;;  %4024 = vmatprep.mubr.bf16.mxu1 %v15779_v13 }
 0x2a9   :  { %v1477_v30 = vpop.f32.mrf.mxu1  ;;  %v1617_v62 = vadd.f32 %v1616_v43, %v13734_v10 }
 0x2aa   :  { %v1618_v44 = vpop.f32.mrf.mxu0 }
 0x2ab   :  { %v1479_v36 = vpop.f32.mrf.mxu1  ;;  %v1619_v48 = vadd.f32 %v1618_v44, %v13738_v0  ;;  %v13859_v55 = vpop.permute.xlu1 %3768 }
 0x2ac   :  { %v1620_v32 = vpop.f32.mrf.mxu0 }
 0x2ad   :  { %v1481_v19 = vpop.f32.mrf.mxu1 }
 0x2ae   :  { %v1621_v27 = vpop.f32.mrf.mxu0 }
 0x2af   :  { %v1482_v34 = vpop.f32.mrf.mxu1 }
 0x2b0   :  { %v1698_v17 = vpop.f32.mrf.mxu0 }
 0x2b1   :  { %v1657_v35 = vpop.f32.mrf.mxu1  ;;  %v1699_v50 = vadd.f32 %v1698_v17, %v1436_v9 }
 0x2b2   :  { %v1658_v12 = vadd.f32 %v1657_v35, %v1395_v58  ;;  %v1700_v21 = vpop.f32.mrf.mxu0 }
 0x2b3   :  { %v1659_v15 = vpop.f32.mrf.mxu1  ;;  %v1701_v63 = vadd.f32 %v1700_v21, %v1438_v6 }
 0x2b4   :  { %v1660_v38 = vadd.f32 %v1659_v15, %v1397_v1  ;;  %v1702_v41 = vpop.f32.mrf.mxu0 }
 0x2b5   :  { %v1661_v46 = vpop.f32.mrf.mxu1 }
 0x2b6   :  { %v1703_v2 = vpop.f32.mrf.mxu0 }
 0x2b7   :  { %v1662_v47 = vpop.f32.mrf.mxu1 }
 0x2b8   :  { %v1941_v5 = vpop.f32.mrf.mxu0 }
 0x2b9   :  { %v1739_v40 = vpop.f32.mrf.mxu1  ;;  %v2071_v4 = vadd.f32 %v1941_v5, %v1617_v62 }
 0x2ba   :  { %v1740_v29 = vadd.f32 %v1739_v40, %v1477_v30  ;;  %v1943_v14 = vpop.f32.mrf.mxu0 }
 0x2bb   :  { %v1741_v16 = vpop.f32.mrf.mxu1  ;;  %v2072_v9 = vadd.f32 %v1943_v14, %v1619_v48 }
 0x2bc   :  { %v1742_v58 = vadd.f32 %v1741_v16, %v1479_v36  ;;  %v1945_v59 = vpop.f32.mrf.mxu0 }
 0x2bd   :  { %v1743_v26 = vpop.f32.mrf.mxu1 }
 0x2be   :  { %v1946_v6 = vpop.f32.mrf.mxu0 }
 0x2bf   :  { %v1744_v1 = vpop.f32.mrf.mxu1 }
 0x2c0   :  { %v2023_v32 = vpop.f32.mrf.mxu0 }
 0x2c1   :  { %v1982_v19 = vpop.f32.mrf.mxu1  ;;  %v2075_v10 = vadd.f32 %v2023_v32, %v1699_v50 }
 0x2c2   :  { %v2073_v43 = vadd.f32 %v1982_v19, %v1658_v12  ;;  %v2025_v27 = vpop.f32.mrf.mxu0 }
 0x2c3   :  { %v1984_v34 = vpop.f32.mrf.mxu1  ;;  %v2076_v0 = vadd.f32 %v2025_v27, %v1701_v63 }
 0x2c4   :  { %v2074_v44 = vadd.f32 %v1984_v34, %v1660_v38  ;;  %v2027_v17 = vpop.f32.mrf.mxu0 }
 0x2c5   :  { %v1986_v35 = vpop.f32.mrf.mxu1 }
 0x2c6   :  { %v2028_v21 = vpop.f32.mrf.mxu0 }
 0x2c7   :  { %v1987_v30 = vpop.f32.mrf.mxu1 }
 0x2c9   :  { %v2064_v15 = vpop.f32.mrf.mxu1  ;;  %v2232_v41 = vpop.f32.mrf.mxu0 }
 0x2ca   :  { %v2077_v62 = vadd.f32 %v2064_v15, %v1740_v29  ;;  %v2362_v36 = vadd.f32 %v2232_v41, %v2071_v4 }
 0x2cb   :  { %v2066_v46 = vpop.f32.mrf.mxu1  ;;  %v2234_v2 = vpop.f32.mrf.mxu0 }
 0x2cc   :  { %v2078_v48 = vadd.f32 %v2066_v46, %v1742_v58  ;;  %v2363_v47 = vadd.f32 %v2234_v2, %v2072_v9 }
 0x2cd   :  { %v2068_v5 = vpop.f32.mrf.mxu1  ;;  %v2236_v40 = vpop.f32.mrf.mxu0 }
 0x2cf   :  { %v2069_v50 = vpop.f32.mrf.mxu1  ;;  %v2237_v12 = vpop.f32.mrf.mxu0 }
 0x2d1   :  { %v2273_v14 = vpop.f32.mrf.mxu1  ;;  %v2314_v16 = vpop.f32.mrf.mxu0 }
 0x2d2   :  { %v2364_v63 = vadd.f32 %v2273_v14, %v2073_v43  ;;  %v2366_v38 = vadd.f32 %v2314_v16, %v2075_v10 }
 0x2d3   :  { %v2275_v59 = vpop.f32.mrf.mxu1  ;;  %v2316_v26 = vpop.f32.mrf.mxu0 }
 0x2d4   :  { %v2365_v6 = vadd.f32 %v2275_v59, %v2074_v44  ;;  %v2367_v1 = vadd.f32 %v2316_v26, %v2076_v0 }
 0x2d5   :  { %v2277_v32 = vpop.f32.mrf.mxu1  ;;  %v2318_v19 = vpop.f32.mrf.mxu0 }
 0x2d7   :  { %v2278_v29 = vpop.f32.mrf.mxu1  ;;  %v2319_v4 = vpop.f32.mrf.mxu0 }
 0x2d9   :  { %v2471_v27 = vpop.f32.mrf.mxu0  ;;  %v2355_v34 = vpop.f32.mrf.mxu1 }
 0x2da   :  { %v2601_v58 = vadd.f32 %v2471_v27, %v2362_v36  ;;  %v2368_v9 = vadd.f32 %v2355_v34, %v2077_v62 }
 0x2db   :  { %v2357_v17 = vpop.f32.mrf.mxu1  ;;  %v2473_v35 = vpop.f32.mrf.mxu0 }
 0x2dc   :  { %v2369_v21 = vadd.f32 %v2357_v17, %v2078_v48  ;;  %v2602_v30 = vadd.f32 %v2473_v35, %v2363_v47 }
 0x2dd   :  { %v2359_v15 = vpop.f32.mrf.mxu1  ;;  %v2475_v41 = vpop.f32.mrf.mxu0 }
 0x2df   :  { %v2476_v43 = vpop.f32.mrf.mxu0  ;;  %v2360_v10 = vpop.f32.mrf.mxu1 }
 0x2e1   :  { %v2512_v46 = vpop.f32.mrf.mxu1  ;;  %v2553_v2 = vpop.f32.mrf.mxu0 }
 0x2e2   :  { %v2603_v44 = vadd.f32 %v2512_v46, %v2364_v63  ;;  %v2605_v0 = vadd.f32 %v2553_v2, %v2366_v38 }
 0x2e3   :  { %v2555_v5 = vpop.f32.mrf.mxu0  ;;  %v2514_v40 = vpop.f32.mrf.mxu1 }
 0x2e4   :  { %v2606_v50 = vadd.f32 %v2555_v5, %v2367_v1  ;;  %v2604_v12 = vadd.f32 %v2514_v40, %v2365_v6 }
 0x2e5   :  { %v2516_v14 = vpop.f32.mrf.mxu1  ;;  %v2557_v16 = vpop.f32.mrf.mxu0 }
 0x2e7   :  { %v2558_v62 = vpop.f32.mrf.mxu0  ;;  %v2517_v36 = vpop.f32.mrf.mxu1 }
 0x2e9   :  { %v2594_v48 = vpop.f32.mrf.mxu1  ;;  %v2760_v47 = vpop.f32.mrf.mxu0 }
 0x2ea   :  { %v13847_v59 = vadd.f32 %v2594_v48, %v2368_v9  ;;  %v2890_v26 = vadd.f32 %v2760_v47, %v2601_v58 }
 0x2eb   :  { %v2596_v32 = vpop.f32.mrf.mxu1  ;;  %v2762_v19 = vpop.f32.mrf.mxu0 }
 0x2ec   :  { %v13849_v63 = vadd.f32 %v2596_v32, %v2369_v21  ;;  %v2891_v38 = vadd.f32 %v2762_v19, %v2602_v30 }
 0x2ed   :  { %v2598_v29 = vpop.f32.mrf.mxu1  ;;  %v2764_v1 = vpop.f32.mrf.mxu0 }
 0x2ef   :  { %v2599_v6 = vpop.f32.mrf.mxu1  ;;  %v2765_v4 = vpop.f32.mrf.mxu0 }
 0x2f1   :  { %v2801_v27 = vpop.f32.mrf.mxu1  ;;  %v2842_v34 = vpop.f32.mrf.mxu0 }
 0x2f2   :  { %v2892_v17 = vadd.f32 %v2801_v27, %v2603_v44  ;;  %v2894_v35 = vadd.f32 %v2842_v34, %v2605_v0 }
 0x2f3   :  { %v2803_v15 = vpop.f32.mrf.mxu1  ;;  %v2844_v41 = vpop.f32.mrf.mxu0 }
 0x2f4   :  { %v2893_v43 = vadd.f32 %v2803_v15, %v2604_v12  ;;  %v2895_v10 = vadd.f32 %v2844_v41, %v2606_v50 }
 0x2f5   :  { %v2846_v9 = vpop.f32.mrf.mxu0  ;;  %v2805_v46 = vpop.f32.mrf.mxu1 }
 0x2f7   :  { %v2847_v58 = vpop.f32.mrf.mxu0  ;;  %v2806_v2 = vpop.f32.mrf.mxu1 }
 0x322   :  { %v3049_v5 = vpop.f32.mrf.mxu0 }
 0x324   :  { %v3051_v21 = vpop.f32.mrf.mxu0 }
 0x326   :  { %v3053_v40 = vpop.f32.mrf.mxu0 }
 0x328   :  { %v3054_v30 = vpop.f32.mrf.mxu0 }
 0x337   :  { %v13851_v14 = vpop.f32.mrf.mxu1 }
 0x339   :  { %v13853_v16 = vpop.f32.mrf.mxu1 }
 0x33b   :  { %v2887_v62 = vpop.f32.mrf.mxu1  ;;  %v3131_v36 = vpop.f32.mrf.mxu0 }
 0x33d   :  { %v2888_v44 = vpop.f32.mrf.mxu1  ;;  %v3133_v0 = vpop.f32.mrf.mxu0 }
 0x33e   :  { %v3179_v44 = vadd.f32 %v3049_v5, %v2890_v26  ;;  %v3183_v5 = vadd.f32 %v3131_v36, %v2894_v35  ;;  %v2896_v35 = vadd.f32 %v13851_v14, %v13847_v59 }
 0x33f   :  { %v3090_v48 = vpop.f32.mrf.mxu1  ;;  %v3135_v47 = vpop.f32.mrf.mxu0 }
 0x341   :  { %v3092_v12 = vpop.f32.mrf.mxu1  ;;  %v3136_v50 = vpop.f32.mrf.mxu0 }
 0x342   :  { %v3180_v50 = vadd.f32 %v3051_v21, %v2891_v38 }
 0x343   :  { %v3094_v32 = vpop.f32.mrf.mxu1  ;;  %v3324_v19 = vpop.f32.mrf.mxu0 }
 0x344   :  { %v3454_v32 = vadd.f32 %v3324_v19, %v3179_v44 }
 0x345   :  { %v3095_v29 = vpop.f32.mrf.mxu1  ;;  %v3326_v1 = vpop.f32.mrf.mxu0 }
 0x346   :  { %v3455_v45 = vadd.f32 %v3326_v1, %v3180_v50  ;;  %v3182_v1 = vadd.f32 %v3092_v12, %v2893_v43 }
 0x347   :  { %v3172_v6 = vpop.f32.mrf.mxu1  ;;  %v3328_v4 = vpop.f32.mrf.mxu0 }
 0x348   :  { %v13857_v4 = vpop.permute.xlu0 %3754 }
 0x349   :  { %v13855_v27 = vpop.f32.mrf.mxu1  ;;  %v3329_v34 = vpop.f32.mrf.mxu0 }
 0x34b   :  { %v3176_v15 = vpop.f32.mrf.mxu1  ;;  %v3406_v41 = vpop.f32.mrf.mxu0 }
 0x34c   :  { %v3458_v50 = vadd.f32 %v3406_v41, %v3183_v5 }
 0x34d   :  { %v3177_v9 = vpop.f32.mrf.mxu1  ;;  %v3408_v46 = vpop.f32.mrf.mxu0 }
 0x34f   :  { %v3365_v58 = vpop.f32.mrf.mxu1  ;;  %v3410_v2 = vpop.f32.mrf.mxu0 }
 0x351   :  { %v3367_v40 = vpop.f32.mrf.mxu1  ;;  %v3411_v30 = vpop.f32.mrf.mxu0 }
 0x352   :  { %v3457_v3 = vadd.f32 %v3367_v40, %v3182_v1  ;;  %v3185_v40 = vadd.f32 %v3172_v6, %v2896_v35  ;;  %v3841_v6 = vpop.permute.xlu1 %3840 }
 0x353   :  { %v3369_v62 = vpop.f32.mrf.mxu1 }
 0x354   :  { %v3181_v62 = vadd.f32 %v3090_v48, %v2892_v17 }
 0x355   :  { %v3370_v47 = vpop.f32.mrf.mxu1 }
 0x356   :  { %v3456_v44 = vadd.f32 %v3365_v58, %v3181_v62  ;;  %v3184_v47 = vadd.f32 %v3133_v0, %v2895_v10 }
 0x357   :  { %v3447_v29 = vpop.f32.mrf.mxu1  ;;  %v3613_v13 = vpop.f32.mrf.mxu0 }
 0x358   :  { %v3743_v57 = vadd.f32 %v3613_v13, %v3454_v32  ;;  %v3459_v48 = vadd.f32 %v3408_v46, %v3184_v47  ;;  %v2897_v46 = vadd.f32 %v13853_v16, %v13849_v63  ;;  %v15811_v47 = vmov 0  }
 0x359   :  { %v3449_v34 = vpop.f32.mrf.mxu1  ;;  %v3615_v15 = vpop.f32.mrf.mxu0  ;;  %51 = vst.msk [vmem:[#allocation3 + $0x24] sm:$0xf] %vm50_vm13, %v15811_v47 }
 0x35a   :  { %v3757_v9 = vmul.f32 %v13857_v4, %v3743_v57  ;;  %v3744_v2 = vadd.f32 %v3615_v15, %v3455_v45 }
 0x35b   :  { %v3451_v39 = vpop.f32.mrf.mxu1  ;;  %v3617_v30 = vpop.f32.mrf.mxu0 }
 0x35c   :  { %v3771_v26 = vadd.f32 %v13859_v55, %v3757_v9  ;;  %v3758_v38 = vmul.f32 %v13857_v4, %v3744_v2 }
 0x35d   :  { %v3452_v21 = vpop.f32.mrf.mxu1  ;;  %v3618_v19 = vpop.f32.mrf.mxu0 }
 0x35e   :  { %v3772_v13 = vadd.f32 %v13859_v55, %v3758_v38  ;;  %v13865_v57 = vmax.f32 %v3771_v26, 0.0  ;;  %v3186_v26 = vadd.f32 %v13855_v27, %v2897_v46  ;;  %v3460_v38 = vadd.f32 %v3447_v29, %v3185_v40  ;;  %v3843_v46 = vpop.permute.xlu0 %3842 }
 0x35f   :  { %v3654_v32 = vpop.f32.mrf.mxu1 }
 0x360   :  { %v13867_v39 = vmax.f32 %v3772_v13, 0.0  ;;  %v3745_v45 = vadd.f32 %v3654_v32, %v3456_v44  ;;  %v3695_v17 = vpop.f32.mrf.mxu0  ;;  %v3461_v19 = vadd.f32 %v3449_v34, %v3186_v26 }
 0x361   :  { %v3747_v15 = vadd.f32 %v3695_v17, %v3458_v50  ;;  %v3656_v9 = vpop.f32.mrf.mxu1  ;;  %v3848_v50 = vrot.slane %v3841_v6, 4 }
 0x362   :  { %v13873_v43 = vpack.c.bf16 %v13867_v39, %v13865_v57  ;;  %v3759_v10 = vmul.f32 %v13857_v4, %v3745_v45  ;;  %v3746_v36 = vadd.f32 %v3656_v9, %v3457_v3  ;;  %v3697_v0 = vpop.f32.mrf.mxu0 }
 0x363   :  { %v3761_v12 = vmul.f32 %v13857_v4, %v3747_v15  ;;  %v3748_v41 = vadd.f32 %v3697_v0, %v3459_v48  ;;  %v3658_v58 = vpop.f32.mrf.mxu1 }
 0x364   :  { %3819 = vst [vmem:[#allocation3 + $0x4] sm:$0xff] %v13873_v43  ;;  %v3773_v59 = vadd.f32 %v13859_v55, %v3759_v10  ;;  %v3760_v14 = vmul.f32 %v13857_v4, %v3746_v36  ;;  %v3699_v2 = vpop.f32.mrf.mxu0  ;;  %v13910_v10 = vsel %vm1206_vm2, %v3848_v50, %v3841_v6  ;;  %v3847_v6 = vpop.permute.xlu0 %3846 }
 0x365   :  { %v3775_v30 = vadd.f32 %v13859_v55, %v3761_v12  ;;  %v3762_v3 = vmul.f32 %v13857_v4, %v3748_v41  ;;  %v3659_v62 = vpop.f32.mrf.mxu1 }
 0x366   :  { %v3774_v5 = vadd.f32 %v13859_v55, %v3760_v14  ;;  %v3700_v21 = vpop.f32.mrf.mxu0  ;;  %v13887_v1 = vmax.f32 %v3773_v59, 0.0  ;;  %v3849_v14 = vrot.slane %v3843_v46, 4 }
 0x367   :  { %v3776_v63 = vadd.f32 %v13859_v55, %v3762_v3  ;;  %v3736_v16 = vpop.f32.mrf.mxu1  ;;  %v13892_v32 = vmax.f32 %v3775_v30, 0.0  ;;  %v3845_v3 = vpop.permute.xlu1 %3844 }
 0x368   :  { %v13889_v44 = vmax.f32 %v3774_v5, 0.0  ;;  %v3749_v13 = vadd.f32 %v3736_v16, %v3460_v38  ;;  %v3850_v26 = vrot.slane %v3845_v3, 4  ;;  %v3854_v21 = vsel %vm3853_vm14, %v3848_v50, %v3849_v14 }
 0x369   :  { %v13894_v27 = vmax.f32 %v3776_v63, 0.0  ;;  %v3738_v29 = vpop.f32.mrf.mxu1 }
 0x36a   :  { %v13898_v45 = vpack.c.bf16 %v13889_v44, %v13887_v1  ;;  %v3763_v17 = vmul.f32 %v13857_v4, %v3749_v13  ;;  %v3750_v34 = vadd.f32 %v3738_v29, %v3461_v19  ;;  %v3856_v16 = vsel %vm3853_vm14, %v3849_v14, %v3850_v26 }
 0x36b   :  { %v13901_v48 = vld [vmem:[#allocation3] sm:$0xff]  ;;  %v13905_v15 = vpack.c.bf16 %v13894_v27, %v13892_v32  ;;  %v3740_v9 = vpop.f32.mrf.mxu1  ;;  %v13947_v19 = vsel %vm1206_vm2, %v3854_v21, %v3843_v46 }
 0x36c   :  { %3820 = vst [vmem:[#allocation3 + $0xc] sm:$0xff] %v13898_v45  ;;  %v3764_v35 = vmul.f32 %v13857_v4, %v3750_v34  ;;  %v3777_v36 = vadd.f32 %v13859_v55, %v3763_v17  ;;  %v12284_v0 = vcombine.high %v13901_v48, %v13901_v48  ;;  %v12283_v12 = vcombine.low %v13901_v48, %v13901_v48  ;;  %v4368_v34 = vpop.permute.xlu1 %4367 }
 0x36d   :  { %3821 = vst [vmem:[#allocation3 + $0x14] sm:$0xff] %v13905_v15  ;;  %v3741_v41 = vpop.f32.mrf.mxu1  ;;  %v3865_v4 = vmul.bf16 %v13910_v10, %v13901_v48  ;;  %v13956_v17 = vsel %vm1206_vm2, %v3856_v16, %v3845_v3 }
 0x36e   :  { %v3778_v58 = vadd.f32 %v13859_v55, %v3764_v35  ;;  %3898 = vrot.lane.b32.xlu0 %v12284_v0, %s12933_s9  ;;  %3896 = vrot.lane.b32.xlu1 %v12283_v12, %s12933_s9  ;;  %v13923_v40 = vmax.f32 %v3777_v36, 0.0  ;;  %v4370_v0 = vpop.permute.xlu0 %4369  ;;  %v4375_v12 = vrot.slane %v4368_v34, 4 }
 0x36f   :  { %v12301_v2 = vcombine.high %v3865_v4, %v3865_v4  ;;  %v12300_v30 = vcombine.low %v3865_v4, %v3865_v4 }
 0x370   :  { %v13925_v59 = vmax.f32 %v3778_v58, 0.0  ;;  %v4376_v58 = vrot.slane %v4370_v0, 4  ;;  %v13969_v14 = vsel %vm1797_vm4, %v4375_v12, %v4368_v34  ;;  %v4372_v34 = vpop.permute.xlu1 %4371 }
 0x371   :  { %v4391_v3 = vmul.bf16 %v13969_v14, %v13901_v48 }
 0x372   :  { %v13929_v62 = vpack.c.bf16 %v13925_v59, %v13923_v40  ;;  %4140 = vrot.lane.b32.xlu0 %v12301_v2, %s12941_s17  ;;  %4138 = vrot.lane.b32.xlu1 %v12300_v30, %s12941_s17  ;;  %v13971_v2 = vrot.slane %v3847_v6, 4  ;;  %v4380_v30 = vsel %vm3853_vm14, %v4375_v12, %v4376_v58 }
 0x373   :  { %v13931_v55 = vld [vmem:[#allocation3 + $0x8] sm:$0xff]  ;;  %v12322_v16 = vcombine.low %v4391_v3, %v4391_v3 }
 0x374   :  { %v12286_v38 = vcombine.high %v13931_v55, %v13931_v55  ;;  %v12285_v5 = vcombine.low %v13931_v55, %v13931_v55  ;;  %3822 = vst [vmem:[#allocation3 + $0x1c] sm:$0xff] %v13929_v62  ;;  %v13941_v63 = vld [vmem:[#allocation3 + $0x10] sm:$0xff]  ;;  %v3866_v50 = vmul.bf16 %v13947_v19, %v13931_v55  ;;  %v3858_v21 = vsel %vm3853_vm14, %v3850_v26, %v13971_v2 }
 0x375   :  { %v12288_v13 = vcombine.high %v13941_v63, %v13941_v63  ;;  %v12287_v29 = vcombine.low %v13941_v63, %v13941_v63  ;;  %v3867_v36 = vmul.bf16 %v13956_v17, %v13941_v63 }
 0x376   :  { %3902 = vrot.lane.b32.xlu0 %v12286_v38, %s12933_s9  ;;  %3900 = vrot.lane.b32.xlu1 %v12285_v5, %s12933_s9  ;;  %v12303_v9 = vcombine.high %v3866_v50, %v3866_v50  ;;  %v12302_v35 = vcombine.low %v3866_v50, %v3866_v50  ;;  %v13979_v5 = vsel %vm1797_vm4, %v4380_v30, %v4370_v0  ;;  %v4647_v30 = vpop.permute.xlu1 %4646 }
 0x377   :  { %v12304_v46 = vcombine.low %v3867_v36, %v3867_v36  ;;  %v12305_v38 = vcombine.high %v3867_v36, %v3867_v36  ;;  %v13991_v50 = vsel %vm1206_vm2, %v3858_v21, %v3847_v6  ;;  %v4654_v21 = vrot.slane %v4647_v30, 4 }
 0x37a   :  { %3906 = vrot.lane.b32.xlu0 %v12288_v13, %s12933_s9  ;;  %3904 = vrot.lane.b32.xlu1 %v12287_v29, %s12933_s9  ;;  %v4392_v29 = vmul.bf16 %v13979_v5, %v13931_v55 }
 0x37b   :  { %v13962_v41 = vld [vmem:[#allocation3 + $0x18] sm:$0xff] }
 0x37c   :  { %v12290_v4 = vcombine.high %v13962_v41, %v13962_v41  ;;  %v12289_v13 = vcombine.low %v13962_v41, %v13962_v41  ;;  %v12324_v26 = vcombine.low %v4392_v29, %v4392_v29  ;;  %v3868_v36 = vmul.bf16 %v13991_v50, %v13962_v41 }
 0x37e   :  { %4144 = vrot.lane.b32.xlu0 %v12303_v9, %s12941_s17  ;;  %4142 = vrot.lane.b32.xlu1 %v12302_v35, %s12941_s17  ;;  %v13993_v9 = vld [vmem:[#allocation3 + $0x20] sm:$0xf]  ;;  %v4377_v35 = vrot.slane %v4372_v34, 4  ;;  %v12306_v6 = vcombine.low %v3868_v36, %v3868_v36 }
 0x37f   :  { %v3869_v12 = vmul.bf16 %v13971_v2, %v13993_v9 }
 0x380   :  { %v4382_v0 = vsel %vm3853_vm14, %v4376_v58, %v4377_v35 }
 0x382   :  { %3910 = vrot.lane.b32.xlu0 %v12290_v4, %s12933_s9  ;;  %4146 = vrot.lane.b32.xlu1 %v12304_v46, %s12941_s17  ;;  %v14007_v4 = vsel %vm1797_vm4, %v4382_v0, %v4372_v34  ;;  %v4374_v46 = vpop.permute.xlu0 %4373 }
 0x383   :  { %15812 = vst [vmem:[#allocation12_spill] sm:$0xff] %v14007_v4  ;;  %v4393_v58 = vmul.bf16 %v14007_v4, %v13941_v63 }
 0x385   :  { %v12326_v34 = vcombine.low %v4393_v58, %v4393_v58 }
 0x386   :  { %5436 = vrot.lane.b32.xlu0 %v13193_v25, %s12942_s18  ;;  %4148 = vrot.lane.b32.xlu1 %v12305_v38, %s12941_s17  ;;  %v12291_v25 = vcombine.low %v13993_v9, %v13993_v9  ;;  %v12308_v38 = vcombine.low %v3869_v12, %v3869_v12  ;;  %v12307_v12 = vcombine.high %v3868_v36, %v3868_v36 }
 0x38a   :  { %4421 = vrot.lane.b32.xlu0 %v12322_v16, %s12942_s18  ;;  %3908 = vrot.lane.b32.xlu1 %v12289_v13, %s12933_s9  ;;  %v14014_v16 = vrot.slane %v4374_v46, 4  ;;  %v12323_v13 = vcombine.high %v4391_v3, %v4391_v3 }
 0x38c   :  { %v4384_v0 = vsel %vm3853_vm14, %v4377_v35, %v14014_v16 }
 0x38d   :  { %v14029_v3 = vsel %vm1797_vm4, %v4384_v0, %v4374_v46 }
 0x38e   :  { %3912 = vrot.lane.b32.xlu1 %v12291_v25, %s12933_s9  ;;  %4425 = vrot.lane.b32.xlu0 %v12324_v26, %s12942_s18  ;;  %v4649_v25 = vpop.permute.xlu0 %4648 }
 0x38f   :  { %v4655_v26 = vrot.slane %v4649_v25, 4 }
 0x392   :  { %5434 = vrot.lane.b32.xlu1 %v13191_v24, %s12942_s18  ;;  %4150 = vrot.lane.b32.xlu0 %v12306_v6, %s12941_s17  ;;  %v14020_v24 = vsel %vm2088_vm5, %v4654_v21, %v4647_v30  ;;  %v12327_v6 = vcombine.high %v4393_v58, %v4393_v58  ;;  %v4659_v30 = vsel %vm3853_vm14, %v4654_v21, %v4655_v26 }
 0x393   :  { %v4394_v58 = vmul.bf16 %v14029_v3, %v13962_v41 }
 0x395   :  { %v12329_v21 = vcombine.high %v4394_v58, %v4394_v58 }
 0x396   :  { %5438 = vrot.lane.b32.xlu1 %v13230_v53, %s12942_s18  ;;  %4154 = vrot.lane.b32.xlu0 %v12308_v38, %s12941_s17  ;;  %v4670_v53 = vmul.bf16 %v14020_v24, %v13901_v48  ;;  %v4651_v38 = vpop.permute.xlu1 %4650  ;;  %v14037_v48 = vsel %vm2088_vm5, %v4659_v30, %v4649_v25  ;;  %v4395_v30 = vmul.bf16 %v14014_v16, %v13993_v9 }
 0x397   :  { %v4656_v4 = vrot.slane %v4651_v38, 4  ;;  %v4671_v0 = vmul.bf16 %v14037_v48, %v13931_v55 }
 0x398   :  { %v12340_v35 = vcombine.low %v4670_v53, %v4670_v53 }
 0x399   :  { %v4661_v46 = vsel %vm3853_vm14, %v4655_v26, %v4656_v4  ;;  %v12328_v26 = vcombine.low %v4394_v58, %v4394_v58 }
 0x39a   :  { %4423 = vrot.lane.b32.xlu1 %v12323_v13, %s12942_s18  ;;  %4429 = vrot.lane.b32.xlu0 %v12326_v34, %s12942_s18  ;;  %v12325_v13 = vcombine.high %v4392_v29, %v4392_v29  ;;  %v4653_v34 = vpop.permute.xlu0 %4652  ;;  %v14047_v29 = vsel %vm2088_vm5, %v4661_v46, %v4651_v38  ;;  %v12330_v38 = vcombine.low %v4395_v30, %v4395_v30 }
 0x39b   :  { %v14039_v36 = vrot.slane %v4653_v34, 4  ;;  %v4672_v25 = vmul.bf16 %v14047_v29, %v13941_v63  ;;  %v12341_v63 = vcombine.high %v4670_v53, %v4670_v53  ;;  %v12343_v46 = vcombine.high %v4671_v0, %v4671_v0 }
 0x39d   :  { %15813 = vst [vmem:[#allocation13_spill] sm:$0xff] %v14039_v36  ;;  %v12345_v53 = vcombine.high %v4672_v25, %v4672_v25 }
 0x39e   :  { %4152 = vrot.lane.b32.xlu1 %v12307_v12, %s12941_s17  ;;  %4431 = vrot.lane.b32.xlu0 %v12327_v6, %s12942_s18  ;;  %v4663_v6 = vsel %vm3853_vm14, %v4656_v4, %v14039_v36  ;;  %v12342_v12 = vcombine.low %v4671_v0, %v4671_v0  ;;  %v12344_v4 = vcombine.low %v4672_v25, %v4672_v25  ;;  %v5156_v58 = vpop.permute.xlu0 %5155 }
 0x39f   :  { %v14059_v55 = vsel %vm2088_vm5, %v4663_v6, %v4653_v34  ;;  %v5158_v34 = vpop.permute.xlu1 %5157  ;;  %v5163_v6 = vrot.slane %v5156_v58, 4 }
 0x3a0   :  { %15814 = vst [vmem:[#allocation14_spill] sm:$0xff] %v14059_v55 }
 0x3a2   :  { %4427 = vrot.lane.b32.xlu1 %v12325_v13, %s12942_s18  ;;  %4700 = vrot.lane.b32.xlu0 %v12340_v35, %s12939_s16  ;;  %v4674_v13 = vmul.bf16 %v14039_v36, %v13993_v9 }
 0x3a6   :  { %5440 = vrot.lane.b32.xlu1 %v13232_v56, %s12942_s18  ;;  %4435 = vrot.lane.b32.xlu0 %v12329_v21, %s12942_s18  ;;  %v4673_v56 = vmul.bf16 %v14059_v55, %v13962_v41  ;;  %v12348_v21 = vcombine.low %v4674_v13, %v4674_v13  ;;  %v14073_v41 = vpop.permute.xlu0 %5159 }
 0x3a7   :  { %v15787_v30 = vrot.slane %v14073_v41, 4 }
 0x3a8   :  { %v12346_v35 = vcombine.low %v4673_v56, %v4673_v56 }
 0x3aa   :  { %4433 = vrot.lane.b32.xlu1 %v12328_v26, %s12942_s18  ;;  %4704 = vrot.lane.b32.xlu0 %v12342_v12, %s12939_s16  ;;  %v5164_v26 = vrot.slane %v5158_v34, 4  ;;  %v14076_v12 = vsel %vm2162_vm6, %v5163_v6, %v5156_v58 }
 0x3ab   :  { %15815 = vst [vmem:[#allocation15_spill] sm:$0xff] %v14076_v12  ;;  %v5179_v0 = vmul.bf16 %v13873_v43, %v14076_v12 }
 0x3ac   :  { %v5168_v9 = vsel %vm3853_vm14, %v5163_v6, %v5164_v26  ;;  %v5170_v25 = vsel %vm3853_vm14, %v5164_v26, %v15787_v30 }
 0x3ae   :  { %4437 = vrot.lane.b32.xlu1 %v12330_v38, %s12942_s18  ;;  %4708 = vrot.lane.b32.xlu0 %v12344_v4, %s12939_s16  ;;  %v12347_v4 = vcombine.high %v4673_v56, %v4673_v56  ;;  %v14086_v38 = vsel %vm2162_vm6, %v5168_v9, %v5158_v34  ;;  %v14108_v34 = vpop.permute.xlu0 %5161 }
 0x3af   :  { %15816 = vst [vmem:[#allocation16_spill] sm:$0xff] %v14086_v38 }
 0x3b2   :  { %4702 = vrot.lane.b32.xlu1 %v12341_v63, %s12939_s16  ;;  %4712 = vrot.lane.b32.xlu0 %v12346_v35, %s12939_s16  ;;  %v12376_v63 = vcombine.high %v5179_v0, %v5179_v0  ;;  %v14098_v35 = vsel %vm2162_vm6, %v5170_v25, %v14073_v41 }
 0x3b3   :  { %15817 = vst [vmem:[#allocation17_spill] sm:$0xff] %v14098_v35  ;;  %v5181_v13 = vmul.bf16 %v13905_v15, %v14098_v35 }
 0x3b5   :  { %v12380_v58 = vcombine.high %v5181_v13, %v5181_v13  ;;  %v12379_v6 = vcombine.low %v5181_v13, %v5181_v13 }
 0x3b6   :  { %4706 = vrot.lane.b32.xlu1 %v12343_v46, %s12939_s16  ;;  %4716 = vrot.lane.b32.xlu0 %v12348_v21, %s12939_s16  ;;  %v14115_v21 = vrot.slane %v14108_v34, 4 }
 0x3b8   :  { %15818 = vst [vmem:[#allocation18_spill] sm:$0xff] %v14115_v21 }
 0x3ba   :  { %4710 = vrot.lane.b32.xlu1 %v12345_v53, %s12939_s16  ;;  %5965 = vrot.lane.b32.xlu0 %v13097_v11, %s12941_s17  ;;  %v5180_v11 = vmul.bf16 %v13898_v45, %v14086_v38 }
 0x3bc   :  { %v12378_v56 = vcombine.high %v5180_v11, %v5180_v11  ;;  %v12377_v46 = vcombine.low %v5180_v11, %v5180_v11 }
 0x3be   :  { %4714 = vrot.lane.b32.xlu1 %v12347_v4, %s12939_s16  ;;  %5969 = vrot.lane.b32.xlu0 %v13213_v20, %s12941_s17  ;;  %v12375_v20 = vcombine.low %v5179_v0, %v5179_v0 }
 0x3c2   :  { %5963 = vrot.lane.b32.xlu1 %v13064_v54, %s12941_s17  ;;  %5211 = vrot.lane.b32.xlu0 %v12376_v63, %s12938_s15  ;;  %v14112_v54 = vld [vmem:[#allocation3 + $0x24] sm:$0xf] }
 0x3c6   :  { %5967 = vrot.lane.b32.xlu1 %v13211_v37, %s12941_s17  ;;  %5215 = vrot.lane.b32.xlu0 %v12378_v56, %s12938_s15  ;;  %v5183_v37 = vmul.bf16 %v14115_v21, %v14112_v54 }
 0x3c8   :  { %v12383_v26 = vcombine.low %v5183_v37, %v5183_v37 }
 0x3ca   :  { %5209 = vrot.lane.b32.xlu1 %v12375_v20, %s12938_s15  ;;  %5219 = vrot.lane.b32.xlu0 %v12380_v58, %s12938_s15  ;;  %v12282_v58 = vld [vmem:[%s15775_s5 + $0x4] sm:$0xf] }
 0x3ce   :  { %5213 = vrot.lane.b32.xlu1 %v12377_v46, %s12938_s15 }
 0x3d2   :  { %5217 = vrot.lane.b32.xlu1 %v12379_v6, %s12938_s15 }
 0x3d6   :  { %5225 = vrot.lane.b32.xlu1 %v12383_v26, %s12938_s15 }
 0x3e0   :  { %v3897_v53 = vpop.permute.xlu1 %3896  ;;  %v3899_v9 = vpop.permute.xlu0 %3898 }
 0x3e1   :  { %v3914_v25 = vsel %vm1282_vm7, %v3897_v53, %v3899_v9 }
 0x3e2   :  { %v3928_v20 = vsel %vm3853_vm14, %v3914_v25, 0 }
 0x3e4   :  { %v4139_v0 = vpop.permute.xlu1 %4138  ;;  %v4141_v4 = vpop.permute.xlu0 %4140 }
 0x3e5   :  { %v4156_v35 = vsel %vm1546_vm9, %v4139_v0, %v4141_v4 }
 0x3e6   :  { %v4168_v0 = vsel %vm3853_vm14, %v4156_v35, 0 }
 0x3e8   :  { %v3901_v63 = vpop.permute.xlu1 %3900  ;;  %v3903_v11 = vpop.permute.xlu0 %3902 }
 0x3e9   :  { %v3915_v56 = vsel %vm1282_vm7, %v3899_v9, %v3901_v63  ;;  %v3916_v13 = vsel %vm1282_vm7, %v3901_v63, %v3903_v11 }
 0x3ea   :  { %12292 = vmatprep.subr.msk.bf16.mxu0 %vm3853_vm14, %v3915_v56  ;;  %v3934_v26 = vsel %vm3853_vm14, %v3916_v13, 0 }
 0x3eb   :  { %3966 = vmatpush1.bf16.msra.mxu0 %v3928_v20 }
 0x3ec   :  { %v3905_v46 = vpop.permute.xlu1 %3904  ;;  %v3907_v37 = vpop.permute.xlu0 %3906 }
 0x3ed   :  { %v3917_v6 = vsel %vm1282_vm7, %v3903_v11, %v3905_v46  ;;  %v3918_v11 = vsel %vm1282_vm7, %v3905_v46, %v3907_v37 }
 0x3ee   :  { %12294 = vmatprep.subr.msk.bf16.mxu1 %vm3853_vm14, %v3917_v6  ;;  %12293 = vmatmul.mubr.msk.bf16.vlgmr.msra.gmra.mxu0 %vm3922_vm15, %v12282_v58 }
 0x3ef   :  { %4007 = vmatpush1.bf16.msra.mxu1 %v3934_v26  ;;  %4065 = vmatprep.mubr.bf16.mxu0 %v15811_v47  ;;  %v3940_v26 = vsel %vm3853_vm14, %v3918_v11, 0  ;;  %v15819_v11 = vrot.slane %v14073_v41, 4 }
 0x3f0   :  { %v4143_v53 = vpop.permute.xlu1 %4142  ;;  %v4145_v9 = vpop.permute.xlu0 %4144 }
 0x3f1   :  { %v4157_v12 = vsel %vm1546_vm9, %v4141_v4, %v4143_v53  ;;  %v5172_v4 = vsel %vm3853_vm14, %v15819_v11, %v14115_v21 }
 0x3f2   :  { %12295 = vmatmul.mubr.msk.bf16.vlgmr.msra.gmra.mxu1 %vm3922_vm15, %v12282_v58  ;;  %v14165_v41 = vsel %vm2162_vm6, %v5172_v4, %v14108_v34 }
 0x3f3   :  { %4106 = vmatprep.mubr.bf16.mxu1 %v15811_v47  ;;  %15820 = vst [vmem:[#allocation19_spill] sm:$0xff] %v14165_v41 }
 0x3f4   :  { %v4147_v25 = vpop.permute.xlu1 %4146  ;;  %v3911_v63 = vpop.permute.xlu0 %3910 }
 0x3f8   :  { %v4149_v56 = vpop.permute.xlu1 %4148  ;;  %v5437_v20 = vpop.permute.xlu0 %5436 }
 0x3fc   :  { %v3909_v6 = vpop.permute.xlu1 %3908  ;;  %v14138_v30 = vpop.permute.xlu0 %4421 }
 0x3fd   :  { %v3919_v13 = vsel %vm1282_vm7, %v3907_v37, %v3909_v6  ;;  %v3920_v38 = vsel %vm1282_vm7, %v3909_v6, %v3911_v63  ;;  %v4158_v6 = vsel %vm1546_vm9, %v4143_v53, %v4145_v9 }
 0x3fe   :  { %12296 = vmatprep.subr.msk.bf16.mxu0 %vm3853_vm14, %v3919_v13  ;;  %v3946_v37 = vsel %vm3853_vm14, %v3920_v38, 0  ;;  %v4174_v53 = vsel %vm3853_vm14, %v4158_v6, 0 }
 0x3ff   :  { %4048 = vmatpush1.bf16.msra.mxu0 %v3940_v26 }
 0x400   :  { %v3913_v36 = vpop.permute.xlu1 %3912  ;;  %12309 = vmatprep.subr.msk.bf16.mxu0 %vm3853_vm14, %v4157_v12  ;;  %v14147_v46 = vpop.permute.xlu0 %4425  ;;  %v5443_v12 = vrot.slane %v5437_v20, 4 }
 0x401   :  { %v3921_v55 = vsel %vm1282_vm7, %v3911_v63, %v3913_v36  ;;  %v4159_v36 = vsel %vm1546_vm9, %v4145_v9, %v4147_v25  ;;  %v4160_v9 = vsel %vm1546_vm9, %v4147_v25, %v4149_v56 }
 0x402   :  { %12297 = vmatmul.mubr.msk.bf16.vlgmr.msra.gmra.mxu0 %vm3922_vm15, %v12282_v58  ;;  %12298 = vmatprep.subr.msk.bf16.mxu1 %vm3853_vm14, %v3921_v55 }
 0x403   :  { %4089 = vmatpush1.bf16.msra.mxu1 %v3946_v37  ;;  %4206 = vmatpush1.bf16.msra.mxu0 %v4168_v0  ;;  %v3870_v37 = vld [vmem:[%s15775_s5] sm:$0xf] }
 0x404   :  { %v5435_v63 = vpop.permute.xlu1 %5434  ;;  %12311 = vmatprep.subr.msk.bf16.mxu1 %vm3853_vm14, %v4159_v36  ;;  %v4151_v55 = vpop.permute.xlu0 %4150  ;;  %4223 = vmatprep.mubr.bf16.mxu0 %v15811_v47  ;;  %v4180_v36 = vsel %vm3853_vm14, %v4160_v9, 0 }
 0x405   :  { %v5442_v38 = vrot.slane %v5435_v63, 4  ;;  %v4161_v35 = vsel %vm1546_vm9, %v4149_v56, %v4151_v55  ;;  %v5182_v56 = vmul.bf16 %v13929_v62, %v14165_v41 }
 0x406   :  { %12299 = vmatmul.mubr.msk.bf16.vlgmr.msra.gmra.mxu1 %vm3922_vm15, %v12282_v58  ;;  %12313 = vmatprep.subr.msk.bf16.mxu0 %vm3853_vm14, %v4161_v35 }
 0x407   :  { %v14172_v13 = vsel %vm1871_vm10, %v5442_v38, %v5435_v63  ;;  %v5447_v26 = vsel %vm3853_vm14, %v5442_v38, %v5443_v12  ;;  %4247 = vmatpush1.bf16.msra.mxu1 %v4174_v53  ;;  %4264 = vmatprep.mubr.bf16.mxu1 %v15811_v47 }
 0x408   :  { %15821 = vst [vmem:[#allocation20_spill] sm:$0xff] %v14172_v13  ;;  %v14180_v34 = vsel %vm1871_vm10, %v5447_v26, %v5437_v20  ;;  %v5458_v58 = vmul.bf16 %v13873_v43, %v14172_v13  ;;  %v14184_v0 = vpop.permute.xlu1 %5438  ;;  %v4155_v25 = vpop.permute.xlu0 %4154  ;;  %v12381_v26 = vcombine.low %v5182_v56, %v5182_v56 }
 0x409   :  { %15822 = vst [vmem:[#allocation21_spill] sm:$0xff] %v14180_v34  ;;  %v5444_v11 = vrot.slane %v14184_v0, 4  ;;  %v5459_v20 = vmul.bf16 %v13898_v45, %v14180_v34 }
 0x40a   :  { %v12393_v4 = vcombine.low %v5458_v58, %v5458_v58  ;;  %v12394_v6 = vcombine.high %v5458_v58, %v5458_v58  ;;  %12310 = vmatmul.mubr.msk.bf16.vlgmr.msra.gmra.mxu0 %vm3922_vm15, %v3870_v37 }
 0x40b   :  { %4288 = vmatpush1.bf16.msra.mxu0 %v4180_v36  ;;  %4305 = vmatprep.mubr.bf16.mxu0 %v15811_v47  ;;  %v5449_v63 = vsel %vm3853_vm14, %v5443_v12, %v5444_v11  ;;  %v12395_v9 = vcombine.low %v5459_v20, %v5459_v20  ;;  %v12382_v36 = vcombine.high %v5182_v56, %v5182_v56 }
 0x40c   :  { %v4424_v38 = vpop.permute.xlu1 %4423  ;;  %5488 = vrot.lane.b32.xlu0 %v12393_v4, %s12936_s13  ;;  %5490 = vrot.lane.b32.xlu1 %v12394_v6, %s12936_s13  ;;  %v4430_v35 = vpop.permute.xlu0 %4429  ;;  %v14203_v58 = vsel %vm1871_vm10, %v5449_v63, %v14184_v0 }
 0x40d   :  { %v4440_v53 = vsel %vm1871_vm10, %v4424_v38, %v14147_v46  ;;  %15823 = vst [vmem:[#allocation22_spill] sm:$0xff] %v14203_v58  ;;  %v4439_v12 = vsel %vm1871_vm10, %v14138_v30, %v4424_v38  ;;  %v5460_v0 = vmul.bf16 %v13905_v15, %v14203_v58  ;;  %v12396_v38 = vcombine.high %v5459_v20, %v5459_v20  ;;  %v12321_v20 = vld [vmem:[%s15775_s5 + $0x8] sm:$0xf] }
 0x40e   :  { %12312 = vmatmul.mubr.msk.bf16.vlgmr.msra.gmra.mxu1 %vm3922_vm15, %v3870_v37  ;;  %12331 = vmatprep.subr.msk.bf16.mxu0 %vm3853_vm14, %v4440_v53  ;;  %v4451_v30 = vsel %vm3853_vm14, %v4439_v12, 0  ;;  %v6309_v58 = vld [vmem:[#allocation4 + $0xe8] sm:$0xff] }
 0x40f   :  { %4346 = vmatprep.mubr.bf16.mxu1 %v15811_v47  ;;  %v12398_v12 = vcombine.high %v5460_v0, %v5460_v0 }
 0x410   :  { %v4153_v4 = vpop.permute.xlu1 %4152  ;;  %5221 = vrot.lane.b32.xlu1 %v12381_v26, %s12938_s15  ;;  %5492 = vrot.lane.b32.xlu0 %v12395_v9, %s12936_s13  ;;  %v4432_v6 = vpop.permute.xlu0 %4431  ;;  %v12397_v9 = vcombine.low %v5460_v0, %v5460_v0 }
 0x411   :  { %v4162_v41 = vsel %vm1546_vm9, %v4151_v55, %v4153_v4  ;;  %v4163_v53 = vsel %vm1546_vm9, %v4153_v4, %v4155_v25 }
 0x412   :  { %12314 = vmatmul.mubr.msk.bf16.vlgmr.msra.gmra.mxu0 %vm3922_vm15, %v3870_v37  ;;  %12315 = vmatprep.subr.msk.bf16.mxu1 %vm3853_vm14, %v4163_v53  ;;  %v4186_v63 = vsel %vm3853_vm14, %v4162_v41, 0  ;;  %v4443_v53 = vsel %vm1871_vm10, %v4430_v35, %v4432_v6 }
 0x413   :  { %4489 = vmatpush1.bf16.msra.mxu0 %v4451_v30  ;;  %4329 = vmatpush1.bf16.msra.mxu1 %v4186_v63 }
 0x414   :  { %v4428_v26 = vpop.permute.xlu1 %4427  ;;  %5494 = vrot.lane.b32.xlu1 %v12396_v38, %s12936_s13  ;;  %5223 = vrot.lane.b32.xlu0 %v12382_v36, %s12938_s15  ;;  %v4701_v55 = vpop.permute.xlu0 %4700 }
 0x415   :  { %v4441_v25 = vsel %vm1871_vm10, %v14147_v46, %v4428_v26  ;;  %v4442_v56 = vsel %vm1871_vm10, %v4428_v26, %v4430_v35  ;;  %4506 = vmatprep.mubr.bf16.mxu0 %v15811_v47 }
 0x416   :  { %12316 = vmatmul.mubr.msk.bf16.vlgmr.msra.gmra.mxu1 %vm3922_vm15, %v3870_v37  ;;  %12333 = vmatprep.subr.msk.bf16.mxu1 %vm3853_vm14, %v4442_v56  ;;  %v4457_v41 = vsel %vm3853_vm14, %v4441_v25, 0  ;;  %v14238_v37 = vpack.c.bf16 %v13865_v57, %v13865_v57 }
 0x417   :  { %4530 = vmatpush1.bf16.msra.mxu1 %v4457_v41  ;;  %4547 = vmatprep.mubr.bf16.mxu1 %v15811_v47 }
 0x418   :  { %v5441_v46 = vpop.permute.xlu1 %5440  ;;  %5498 = vrot.lane.b32.xlu1 %v12398_v12, %s12936_s13  ;;  %5496 = vrot.lane.b32.xlu0 %v12397_v9, %s12936_s13  ;;  %v4436_v4 = vpop.permute.xlu0 %4435 }
 0x419   :  { %v14233_v36 = vrot.slane %v5441_v46, 4 }
 0x41a   :  { %12332 = vmatmul.mubr.msk.bf16.vlgmr.msra.gmra.mxu0 %vm3922_vm15, %v12321_v20 }
 0x41b   :  { %15824 = vst [vmem:[#allocation23_spill] sm:$0xff] %v14233_v36  ;;  %v5451_v0 = vsel %vm3853_vm14, %v5444_v11, %v14233_v36  ;;  %v5462_v30 = vmul.bf16 %v14233_v36, %v14112_v54  ;;  %4588 = vmatprep.mubr.bf16.mxu0 %v15811_v47  ;;  %v4463_v11 = vsel %vm3853_vm14, %v4443_v53, 0 }
 0x41c   :  { %v14247_v63 = vsel %vm1871_vm10, %v5451_v0, %v5441_v46  ;;  %v4434_v38 = vpop.permute.xlu1 %4433  ;;  %5738 = vrot.lane.b32.xlu1 %v14238_v37, %s12943_s25  ;;  %v4705_v26 = vpop.permute.xlu0 %4704  ;;  %v14270_v0 = vpack.c.bf16 %v13887_v1, %v13887_v1  ;;  %v14283_v1 = vpack.c.bf16 %v13892_v32, %v13892_v32 }
 0x41d   :  { %15825 = vst [vmem:[#allocation24_spill] sm:$0xff] %v14247_v63  ;;  %v5461_v57 = vmul.bf16 %v13929_v62, %v14247_v63  ;;  %v4444_v35 = vsel %vm1871_vm10, %v4432_v6, %v4434_v38  ;;  %v12401_v25 = vcombine.low %v5462_v30, %v5462_v30  ;;  %v4445_v9 = vsel %vm1871_vm10, %v4434_v38, %v4436_v4 }
 0x41e   :  { %12334 = vmatmul.mubr.msk.bf16.vlgmr.msra.gmra.mxu1 %vm3922_vm15, %v12321_v20  ;;  %12335 = vmatprep.subr.msk.bf16.mxu0 %vm3853_vm14, %v4444_v35  ;;  %v12892_v6 = vpack.c.bf16 %v13867_v39, %v13867_v39  ;;  %v4469_v53 = vsel %vm3853_vm14, %v4445_v9, 0 }
 0x41f   :  { %v12400_v56 = vcombine.high %v5461_v57, %v5461_v57  ;;  %5504 = vrot.lane.b32.xlu0 %v12401_v25, %s12936_s13  ;;  %4571 = vmatpush1.bf16.msra.mxu0 %v4463_v11  ;;  %v12399_v38 = vcombine.low %v5461_v57, %v5461_v57 }
 0x420   :  { %v4438_v12 = vpop.permute.xlu1 %4437  ;;  %v4709_v41 = vpop.permute.xlu0 %4708  ;;  %4629 = vmatprep.mubr.bf16.mxu1 %v15811_v47 }
 0x421   :  { %v4446_v46 = vsel %vm1871_vm10, %v4436_v4, %v4438_v12  ;;  %5502 = vrot.lane.b32.xlu1 %v12400_v56, %s12936_s13  ;;  %v12895_v56 = vpack.c.bf16 %v13889_v44, %v13889_v44 }
 0x422   :  { %12336 = vmatmul.mubr.msk.bf16.vlgmr.msra.gmra.mxu0 %vm3922_vm15, %v12321_v20  ;;  %12337 = vmatprep.subr.msk.bf16.mxu1 %vm3853_vm14, %v4446_v46 }
 0x423   :  { %5740 = vrot.lane.b32.xlu0 %v12892_v6, %s12943_s25  ;;  %4612 = vmatpush1.bf16.msra.mxu1 %v4469_v53  ;;  %v12897_v53 = vpack.c.bf16 %v13894_v27, %v13894_v27 }
 0x424   :  { %v4703_v30 = vpop.permute.xlu1 %4702  ;;  %v4713_v4 = vpop.permute.xlu0 %4712  ;;  %4785 = vmatprep.mubr.bf16.mxu0 %v15811_v47 }
 0x425   :  { %v4718_v39 = vsel %vm2162_vm6, %v4701_v55, %v4703_v30  ;;  %5742 = vrot.lane.b32.xlu1 %v14270_v0, %s12943_s25  ;;  %v4719_v35 = vsel %vm2162_vm6, %v4703_v30, %v4705_v26  ;;  %v12339_v55 = vld [vmem:[%s15775_s5 + $0xc] sm:$0xf]  ;;  %v12419_v30 = vcombine.low %v14112_v54, %v14112_v54 }
 0x426   :  { %12338 = vmatmul.mubr.msk.bf16.vlgmr.msra.gmra.mxu1 %vm3922_vm15, %v12321_v20  ;;  %12349 = vmatprep.subr.msk.bf16.mxu0 %vm3853_vm14, %v4719_v35  ;;  %v4730_v25 = vsel %vm3853_vm14, %v4718_v39, 0  ;;  %v12898_v35 = vpack.c.bf16 %v13925_v59, %v13925_v59 }
 0x427   :  { %5500 = vrot.lane.b32.xlu0 %v12399_v38, %s12936_s13  ;;  %4768 = vmatpush1.bf16.msra.mxu0 %v4730_v25 }
 0x428   :  { %v4707_v57 = vpop.permute.xlu1 %4706  ;;  %4826 = vmatprep.mubr.bf16.mxu1 %v15811_v47  ;;  %v4717_v9 = vpop.permute.xlu0 %4716 }
 0x429   :  { %v4720_v20 = vsel %vm2162_vm6, %v4705_v26, %v4707_v57  ;;  %5746 = vrot.lane.b32.xlu1 %v14283_v1, %s12943_s25  ;;  %v4721_v11 = vsel %vm2162_vm6, %v4707_v57, %v4709_v41  ;;  %v14301_v26 = vpack.c.bf16 %v13923_v40, %v13923_v40 }
 0x42a   :  { %12350 = vmatmul.mubr.msk.bf16.vlgmr.msra.gmra.mxu0 %vm3922_vm15, %v12339_v55  ;;  %12351 = vmatprep.subr.msk.bf16.mxu1 %vm3853_vm14, %v4721_v11  ;;  %v4736_v32 = vsel %vm3853_vm14, %v4720_v20, 0  ;;  %v4961_v11 = vsel %vm3853_vm14, %v14270_v0, 0 }
 0x42b   :  { %5744 = vrot.lane.b32.xlu0 %v12895_v56, %s12943_s25  ;;  %4809 = vmatpush1.bf16.msra.mxu1 %v4736_v32 }
 0x42c   :  { %v4711_v12 = vpop.permute.xlu1 %4710  ;;  %4867 = vmatprep.mubr.bf16.mxu0 %v15811_v47 }
 0x42d   :  { %v4722_v46 = vsel %vm2162_vm6, %v4709_v41, %v4711_v12  ;;  %5750 = vrot.lane.b32.xlu1 %v14301_v26, %s12943_s25  ;;  %v4723_v44 = vsel %vm2162_vm6, %v4711_v12, %v4713_v4  ;;  %v5966_v41 = vpop.permute.xlu0 %5965 }
 0x42e   :  { %12352 = vmatmul.mubr.msk.bf16.vlgmr.msra.gmra.mxu1 %vm3922_vm15, %v12339_v55  ;;  %12353 = vmatprep.subr.msk.bf16.mxu0 %vm3853_vm14, %v4723_v44  ;;  %v4742_v40 = vsel %vm3853_vm14, %v4722_v46, 0  ;;  %v5972_v57 = vrot.slane %v5966_v41, 4 }
 0x42f   :  { %5748 = vrot.lane.b32.xlu0 %v12897_v53, %s12943_s25  ;;  %4850 = vmatpush1.bf16.msra.mxu0 %v4742_v40 }
 0x430   :  { %v4715_v38 = vpop.permute.xlu1 %4714  ;;  %12366 = vmatprep.subr.msk.bf16.mxu0 %vm3853_vm14, %v12892_v6  ;;  %4908 = vmatprep.mubr.bf16.mxu1 %v15811_v47  ;;  %v4955_v6 = vsel %vm3853_vm14, %v14238_v37, 0 }
 0x431   :  { %v4724_v27 = vsel %vm2162_vm6, %v4713_v4, %v4715_v38  ;;  %v4725_v39 = vsel %vm2162_vm6, %v4715_v38, %v4717_v9  ;;  %5754 = vrot.lane.b32.xlu1 %v12419_v30, %s12943_s25  ;;  %v5970_v59 = vpop.permute.xlu0 %5969  ;;  %v4967_v30 = vsel %vm3853_vm14, %v14283_v1, 0  ;;  %v4973_v1 = vsel %vm3853_vm14, %v14301_v26, 0 }
 0x432   :  { %12354 = vmatmul.mubr.msk.bf16.vlgmr.msra.gmra.mxu0 %vm3922_vm15, %v12339_v55  ;;  %12355 = vmatprep.subr.msk.bf16.mxu1 %vm3853_vm14, %v4725_v39  ;;  %v4748_v25 = vsel %vm3853_vm14, %v4724_v27, 0  ;;  %v14343_v32 = vrot.slane %v5970_v59, 4 }
 0x433   :  { %5752 = vrot.lane.b32.xlu0 %v12898_v35, %s12943_s25  ;;  %4891 = vmatpush1.bf16.msra.mxu1 %v4748_v25 }
 0x434   :  { %4993 = vmatpush1.bf16.msra.mxu0 %v4955_v6  ;;  %v5964_v4 = vpop.permute.xlu1 %5963  ;;  %12368 = vmatprep.subr.msk.bf16.mxu1 %vm3853_vm14, %v12895_v56  ;;  %v12357_v56 = vld [vmem:[%s15775_s5 + $0x10] sm:$0xf]  ;;  %15827 = vst [vmem:[#allocation26_spill] sm:$0xff] %v14343_v32 }
 0x435   :  { %v5971_v20 = vrot.slane %v5964_v4, 4  ;;  %12370 = vmatprep.subr.msk.bf16.mxu0 %vm3853_vm14, %v12897_v53  ;;  %5010 = vmatprep.mubr.bf16.mxu0 %v15811_v47  ;;  %v5212_v38 = vpop.permute.xlu0 %5211 }
 0x436   :  { %12356 = vmatmul.mubr.msk.bf16.vlgmr.msra.gmra.mxu1 %vm3922_vm15, %v12339_v55 }
 0x437   :  { %v14336_v9 = vsel %vm1546_vm9, %v5971_v20, %v5964_v4  ;;  %v5976_v37 = vsel %vm3853_vm14, %v5971_v20, %v5972_v57  ;;  %5034 = vmatpush1.bf16.msra.mxu1 %v4961_v11  ;;  %5051 = vmatprep.mubr.bf16.mxu1 %v15811_v47 }
 0x438   :  { %15826 = vst [vmem:[#allocation25_spill] sm:$0xff] %v14336_v9  ;;  %v14346_v12 = vsel %vm1546_vm9, %v5976_v37, %v5966_v41  ;;  %v5987_v0 = vmul.bf16 %v13873_v43, %v14336_v9  ;;  %v5968_v55 = vpop.permute.xlu1 %5967  ;;  %12372 = vmatprep.subr.msk.bf16.mxu1 %vm3853_vm14, %v12898_v35 }
 0x439   :  { %15828 = vst [vmem:[#allocation27_spill] sm:$0xff] %v14346_v12  ;;  %v5973_v46 = vrot.slane %v5968_v55, 4  ;;  %v5988_v40 = vmul.bf16 %v13898_v45, %v14346_v12  ;;  %v5216_v26 = vpop.permute.xlu0 %5215  ;;  %v6325_v12 = vld [vmem:[#allocation4 + $0x168] sm:$0xff] }
 0x43a   :  { %v12429_v44 = vcombine.low %v5987_v0, %v5987_v0  ;;  %v12430_v53 = vcombine.high %v5987_v0, %v5987_v0  ;;  %12367 = vmatmul.mubr.msk.bf16.vlgmr.msra.gmra.mxu0 %vm3922_vm15, %v12357_v56 }
 0x43b   :  { %v5978_v41 = vsel %vm3853_vm14, %v5972_v57, %v5973_v46  ;;  %5075 = vmatpush1.bf16.msra.mxu0 %v4967_v30  ;;  %v5980_v27 = vsel %vm3853_vm14, %v5973_v46, %v14343_v32  ;;  %5092 = vmatprep.mubr.bf16.mxu0 %v15811_v47  ;;  %v12432_v35 = vcombine.high %v5988_v40, %v5988_v40 }
 0x43c   :  { %v14358_v43 = vsel %vm1546_vm9, %v5978_v41, %v5968_v55  ;;  %v5210_v39 = vpop.permute.xlu1 %5209  ;;  %6019 = vrot.lane.b32.xlu1 %v12430_v53, %s12937_s14  ;;  %6017 = vrot.lane.b32.xlu0 %v12429_v44, %s12937_s14  ;;  %v12431_v25 = vcombine.low %v5988_v40, %v5988_v40  ;;  %v14371_v57 = vsel %vm1546_vm9, %v5980_v27, %v5970_v59  ;;  %v12374_v40 = vld [vmem:[%s15775_s5 + $0x14] sm:$0xf] }
 0x43d   :  { %15829 = vst [vmem:[#allocation28_spill] sm:$0xff] %v14358_v43  ;;  %v5989_v45 = vmul.bf16 %v13905_v15, %v14358_v43  ;;  %15830 = vst [vmem:[#allocation29_spill] sm:$0xff] %v14371_v57  ;;  %v5227_v6 = vsel %vm2088_vm5, %v5210_v39, %v5212_v38  ;;  %v5990_v59 = vmul.bf16 %v13929_v62, %v14371_v57  ;;  %v6316_v57 = vld [vmem:[#allocation4 + $0x120] sm:$0xff]  ;;  %v6321_v43 = vld [vmem:[#allocation4 + $0x148] sm:$0xff] }
 0x43e   :  { %12369 = vmatmul.mubr.msk.bf16.vlgmr.msra.gmra.mxu1 %vm3922_vm15, %v12357_v56  ;;  %v5239_v37 = vsel %vm3853_vm14, %v5227_v6, 0  ;;  %v5991_v30 = vmul.bf16 %v14343_v32, %v14112_v54  ;;  %v5220_v54 = vpop.permute.xlu0 %5219 }
 0x43f   :  { %5116 = vmatpush1.bf16.msra.mxu1 %v4973_v1  ;;  %5133 = vmatprep.mubr.bf16.mxu1 %v15811_v47  ;;  %v12433_v20 = vcombine.low %v5989_v45, %v5989_v45  ;;  %v12434_v11 = vcombine.high %v5989_v45, %v5989_v45  ;;  %v12436_v53 = vcombine.high %v5990_v59, %v5990_v59 }
 0x440   :  { %v5214_v4 = vpop.permute.xlu1 %5213  ;;  %6023 = vrot.lane.b32.xlu1 %v12432_v35, %s12937_s14  ;;  %6021 = vrot.lane.b32.xlu0 %v12431_v25, %s12937_s14  ;;  %v12435_v62 = vcombine.low %v5990_v59, %v5990_v59 }
 0x441   :  { %v5228_v15 = vsel %vm2088_vm5, %v5212_v38, %v5214_v4  ;;  %v5229_v0 = vsel %vm2088_vm5, %v5214_v4, %v5216_v26 }
 0x442   :  { %12371 = vmatmul.mubr.msk.bf16.vlgmr.msra.gmra.mxu0 %vm3922_vm15, %v12357_v56  ;;  %12384 = vmatprep.subr.msk.bf16.mxu0 %vm3853_vm14, %v5228_v15  ;;  %v5245_v44 = vsel %vm3853_vm14, %v5229_v0, 0 }
 0x443   :  { %5277 = vmatpush1.bf16.msra.mxu0 %v5239_v37  ;;  %5294 = vmatprep.mubr.bf16.mxu0 %v15811_v47 }
 0x444   :  { %v5218_v55 = vpop.permute.xlu1 %5217  ;;  %6027 = vrot.lane.b32.xlu1 %v12434_v11, %s12937_s14  ;;  %6025 = vrot.lane.b32.xlu0 %v12433_v20, %s12937_s14 }
 0x445   :  { %v5230_v46 = vsel %vm2088_vm5, %v5216_v26, %v5218_v55  ;;  %v5231_v39 = vsel %vm2088_vm5, %v5218_v55, %v5220_v54 }
 0x446   :  { %12373 = vmatmul.mubr.msk.bf16.vlgmr.msra.gmra.mxu1 %vm3922_vm15, %v12357_v56  ;;  %12386 = vmatprep.subr.msk.bf16.mxu1 %vm3853_vm14, %v5230_v46  ;;  %v12437_v56 = vcombine.low %v5991_v30, %v5991_v30  ;;  %v5251_v25 = vsel %vm3853_vm14, %v5231_v39, 0 }
 0x447   :  { %5318 = vmatpush1.bf16.msra.mxu1 %v5245_v44  ;;  %5335 = vmatprep.mubr.bf16.mxu1 %v15811_v47 }
 0x448   :  { %6031 = vrot.lane.b32.xlu1 %v12436_v53, %s12937_s14  ;;  %6029 = vrot.lane.b32.xlu0 %v12435_v62, %s12937_s14  ;;  %v5226_v41 = vpop.permute.xlu1 %5225  ;;  %v12392_v62 = vld [vmem:[%s15775_s5 + $0x18] sm:$0xf] }
 0x44a   :  { %12385 = vmatmul.mubr.msk.bf16.vlgmr.msra.gmra.mxu0 %vm3922_vm15, %v12374_v40 }
 0x44b   :  { %5376 = vmatprep.mubr.bf16.mxu0 %v15811_v47 }
 0x44c   :  { %6033 = vrot.lane.b32.xlu0 %v12437_v56, %s12937_s14 }
 0x44e   :  { %12387 = vmatmul.mubr.msk.bf16.vlgmr.msra.gmra.mxu1 %vm3922_vm15, %v12374_v40 }
 0x44f   :  { %5417 = vmatprep.mubr.bf16.mxu1 %v15811_v47 }
 0x47e   :  { %v5491_v38 = vpop.permute.xlu1 %5490  ;;  %v5489_v27 = vpop.permute.xlu0 %5488 }
 0x47f   :  { %v5506_v6 = vsel %vm1797_vm4, %v5489_v27, %v5491_v38 }
 0x480   :  { %v5518_v37 = vsel %vm3853_vm14, %v5506_v6, 0 }
 0x482   :  { %v5222_v45 = vpop.permute.xlu1 %5221  ;;  %v5493_v1 = vpop.permute.xlu0 %5492 }
 0x483   :  { %v5232_v35 = vsel %vm2088_vm5, %v5220_v54, %v5222_v45  ;;  %v5507_v4 = vsel %vm1797_vm4, %v5491_v38, %v5493_v1 }
 0x484   :  { %12388 = vmatprep.subr.msk.bf16.mxu0 %vm3853_vm14, %v5232_v35 }
 0x485   :  { %5359 = vmatpush1.bf16.msra.mxu0 %v5251_v25 }
 0x486   :  { %v5495_v15 = vpop.permute.xlu1 %5494  ;;  %12402 = vmatprep.subr.msk.bf16.mxu0 %vm3853_vm14, %v5507_v4  ;;  %v5224_v20 = vpop.permute.xlu0 %5223 }
 0x487   :  { %v5233_v11 = vsel %vm2088_vm5, %v5222_v45, %v5224_v20  ;;  %v5234_v26 = vsel %vm2088_vm5, %v5224_v20, %v5226_v41  ;;  %v5508_v0 = vsel %vm1797_vm4, %v5493_v1, %v5495_v15 }
 0x488   :  { %12389 = vmatmul.mubr.msk.bf16.vlgmr.msra.gmra.mxu0 %vm3922_vm15, %v12374_v40  ;;  %12390 = vmatprep.subr.msk.bf16.mxu1 %vm3853_vm14, %v5234_v26  ;;  %v5257_v59 = vsel %vm3853_vm14, %v5233_v11, 0  ;;  %v5524_v53 = vsel %vm3853_vm14, %v5508_v0, 0 }
 0x489   :  { %5400 = vmatpush1.bf16.msra.mxu1 %v5257_v59  ;;  %5556 = vmatpush1.bf16.msra.mxu0 %v5518_v37 }
 0x48a   :  { %v5499_v55 = vpop.permute.xlu1 %5498  ;;  %v5497_v46 = vpop.permute.xlu0 %5496  ;;  %5573 = vmatprep.mubr.bf16.mxu0 %v15811_v47 }
 0x48b   :  { %v5509_v44 = vsel %vm1797_vm4, %v5495_v15, %v5497_v46  ;;  %v5510_v27 = vsel %vm1797_vm4, %v5497_v46, %v5499_v55 }
 0x48c   :  { %12391 = vmatmul.mubr.msk.bf16.vlgmr.msra.gmra.mxu1 %vm3922_vm15, %v12374_v40  ;;  %12404 = vmatprep.subr.msk.bf16.mxu1 %vm3853_vm14, %v5509_v44  ;;  %v5530_v25 = vsel %vm3853_vm14, %v5510_v27, 0 }
 0x48d   :  { %5597 = vmatpush1.bf16.msra.mxu1 %v5524_v53  ;;  %5614 = vmatprep.mubr.bf16.mxu1 %v15811_v47 }
 0x48e   :  { %v5739_v30 = vpop.permute.xlu1 %5738 }
 0x490   :  { %12403 = vmatmul.mubr.msk.bf16.vlgmr.msra.gmra.mxu0 %vm3922_vm15, %v12392_v62 }
 0x491   :  { %v5505_v56 = vpop.permute.xlu0 %5504  ;;  %5655 = vmatprep.mubr.bf16.mxu0 %v15811_v47 }
 0x493   :  { %v5503_v54 = vpop.permute.xlu1 %5502 }
 0x494   :  { %12405 = vmatmul.mubr.msk.bf16.vlgmr.msra.gmra.mxu1 %vm3922_vm15, %v12392_v62  ;;  %v5513_v40 = vsel %vm1797_vm4, %v5503_v54, %v5505_v56 }
 0x495   :  { %12408 = vmatprep.subr.msk.bf16.mxu1 %vm3853_vm14, %v5513_v40  ;;  %v5741_v41 = vpop.permute.xlu0 %5740  ;;  %5696 = vmatprep.mubr.bf16.mxu1 %v15811_v47 }
 0x496   :  { %v5756_v4 = vsel %vm3254_vm11, %v5739_v30, %v5741_v41 }
 0x497   :  { %v5743_v38 = vpop.permute.xlu1 %5742  ;;  %v5768_v59 = vsel %vm3853_vm14, %v5756_v4, 0 }
 0x498   :  { %v5757_v15 = vsel %vm3254_vm11, %v5741_v41, %v5743_v38 }
 0x499   :  { %v5501_v39 = vpop.permute.xlu0 %5500 }
 0x49a   :  { %v5512_v45 = vsel %vm1797_vm4, %v5501_v39, %v5503_v54  ;;  %v5511_v1 = vsel %vm1797_vm4, %v5499_v55, %v5501_v39 }
 0x49b   :  { %v5747_v35 = vpop.permute.xlu1 %5746  ;;  %12406 = vmatprep.subr.msk.bf16.mxu0 %vm3853_vm14, %v5511_v1  ;;  %v5536_v6 = vsel %vm3853_vm14, %v5512_v45, 0 }
 0x49c   :  { %5638 = vmatpush1.bf16.msra.mxu0 %v5530_v25  ;;  %5679 = vmatpush1.bf16.msra.mxu1 %v5536_v6 }
 0x49d   :  { %12420 = vmatprep.subr.msk.bf16.mxu0 %vm3853_vm14, %v5757_v15  ;;  %v5745_v20 = vpop.permute.xlu0 %5744 }
 0x49e   :  { %v5758_v11 = vsel %vm3254_vm11, %v5743_v38, %v5745_v20  ;;  %v5759_v26 = vsel %vm3254_vm11, %v5745_v20, %v5747_v35 }
 0x49f   :  { %v5751_v37 = vpop.permute.xlu1 %5750  ;;  %12407 = vmatmul.mubr.msk.bf16.vlgmr.msra.gmra.mxu0 %vm3922_vm15, %v12392_v62  ;;  %12409 = vmatmul.mubr.msk.bf16.vlgmr.msra.gmra.mxu1 %vm3922_vm15, %v12392_v62  ;;  %v5774_v0 = vsel %vm3853_vm14, %v5758_v11, 0  ;;  %v12410_v62 = vld [vmem:[%s15775_s5 + $0x1c] sm:$0xf] }
 0x4a0   :  { %12422 = vmatprep.subr.msk.bf16.mxu1 %vm3853_vm14, %v5759_v26  ;;  %5806 = vmatpush1.bf16.msra.mxu0 %v5768_v59  ;;  %v12428_v26 = vld [vmem:[%s15775_s5 + $0x20] sm:$0xf] }
 0x4a1   :  { %5847 = vmatpush1.bf16.msra.mxu1 %v5774_v0  ;;  %v5749_v55 = vpop.permute.xlu0 %5748  ;;  %5823 = vmatprep.mubr.bf16.mxu0 %v15811_v47 }
 0x4a2   :  { %v5761_v46 = vsel %vm3254_vm11, %v5749_v55, %v5751_v37  ;;  %5864 = vmatprep.mubr.bf16.mxu1 %v15811_v47  ;;  %v5760_v53 = vsel %vm3254_vm11, %v5747_v35, %v5749_v55 }
 0x4a3   :  { %12424 = vmatprep.subr.msk.bf16.mxu0 %vm3853_vm14, %v5761_v46  ;;  %v5755_v44 = vpop.permute.xlu1 %5754  ;;  %v5780_v40 = vsel %vm3853_vm14, %v5760_v53, 0  ;;  %v6340_v53 = vld [vmem:[#allocation4 + $0x1e0] sm:$0xff] }
 0x4a5   :  { %v5753_v30 = vpop.permute.xlu0 %5752 }
 0x4a6   :  { %v5762_v56 = vsel %vm3254_vm11, %v5751_v37, %v5753_v30  ;;  %v5763_v54 = vsel %vm3254_vm11, %v5753_v30, %v5755_v44  ;;  %v6336_v44 = vld [vmem:[#allocation4 + $0x1c0] sm:$0xff] }
 0x4a7   :  { %12421 = vmatmul.mubr.msk.bf16.vlgmr.msra.gmra.mxu0 %vm3922_vm15, %v12410_v62  ;;  %12423 = vmatmul.mubr.msk.bf16.vlgmr.msra.gmra.mxu1 %vm3922_vm15, %v12410_v62  ;;  %v5786_v41 = vsel %vm3853_vm14, %v5762_v56, 0 }
 0x4a8   :  { %5888 = vmatpush1.bf16.msra.mxu0 %v5780_v40  ;;  %12426 = vmatprep.subr.msk.bf16.mxu1 %vm3853_vm14, %v5763_v54 }
 0x4a9   :  { %5929 = vmatpush1.bf16.msra.mxu1 %v5786_v41  ;;  %5905 = vmatprep.mubr.bf16.mxu0 %v15811_v47 }
 0x4aa   :  { %5946 = vmatprep.mubr.bf16.mxu1 %v15811_v47 }
 0x4ae   :  { %v6020_v38 = vpop.permute.xlu1 %6019  ;;  %v6018_v27 = vpop.permute.xlu0 %6017 }
 0x4af   :  { %12425 = vmatmul.mubr.msk.bf16.vlgmr.msra.gmra.mxu0 %vm3922_vm15, %v12410_v62  ;;  %12427 = vmatmul.mubr.msk.bf16.vlgmr.msra.gmra.mxu1 %vm3922_vm15, %v12410_v62  ;;  %v14468_v39 = vpop.f32.mrf.mxu0  ;;  %v6035_v45 = vsel %vm1206_vm2, %v6018_v27, %v6020_v38  ;;  %v6328_v27 = vld [vmem:[#allocation4 + $0x180] sm:$0xff] }
 0x4b0   :  { %6102 = vmatprep.mubr.bf16.mxu0 %v15811_v47  ;;  %6143 = vmatprep.mubr.bf16.mxu1 %v15811_v47  ;;  %v6047_v20 = vsel %vm3853_vm14, %v6035_v45, 0 }
 0x4b1   :  { %v14473_v1 = vpop.f32.mrf.mxu0 }
 0x4b2   :  { %v6024_v35 = vpop.permute.xlu1 %6023  ;;  %v6022_v25 = vpop.permute.xlu0 %6021 }
 0x4b3   :  { %v6036_v6 = vsel %vm1206_vm2, %v6020_v38, %v6022_v25  ;;  %v3989_v4 = vpop.f32.mrf.mxu0  ;;  %v14476_v15 = vpop.f32.mrf.mxu1  ;;  %v6037_v11 = vsel %vm1206_vm2, %v6022_v25, %v6024_v35  ;;  %v12505_v38 = vcombine.high %v6336_v44, %v6340_v53  ;;  %v6337_v25 = vld [vmem:[#allocation4 + $0x1c8] sm:$0xff] }
 0x4b4   :  { %12438 = vmatprep.subr.msk.bf16.mxu0 %vm3853_vm14, %v6036_v6  ;;  %v6053_v30 = vsel %vm3853_vm14, %v6037_v11, 0  ;;  %v6341_v6 = vld [vmem:[#allocation4 + $0x1e8] sm:$0xff] }
 0x4b5   :  { %6085 = vmatpush1.bf16.msra.mxu0 %v6047_v20  ;;  %v3990_v37 = vpop.f32.mrf.mxu0  ;;  %v14484_v59 = vpop.f32.mrf.mxu1  ;;  %v14499_v20 = vld.sshfl [vmem:[%s15770_s0 + $0x4] sm:$0x33 pattern:$0x76325410] }
 0x4b6   :  { %v6028_v0 = vpop.permute.xlu1 %6027  ;;  %v6026_v55 = vpop.permute.xlu0 %6025  ;;  %v12504_v37 = vcombine.low %v6336_v44, %v6340_v53  ;;  %v14506_v32 = vcombine.high %v14499_v20, %v14499_v20 }
 0x4b7   :  { %v6038_v46 = vsel %vm1206_vm2, %v6024_v35, %v6026_v55  ;;  %v4030_v62 = vpop.f32.mrf.mxu1  ;;  %v6039_v56 = vsel %vm1206_vm2, %v6026_v55, %v6028_v0  ;;  %v6332_v35 = vld [vmem:[#allocation4 + $0x1a0] sm:$0xff] }
 0x4b8   :  { %12439 = vmatmul.mubr.msk.bf16.vlgmr.msra.gmra.mxu0 %vm3922_vm15, %v12428_v26  ;;  %12440 = vmatprep.subr.msk.bf16.mxu1 %vm3853_vm14, %v6038_v46  ;;  %v6059_v4 = vsel %vm3853_vm14, %v6039_v56, 0  ;;  %v12497_v55 = vcombine.high %v6328_v27, %v6332_v35  ;;  %v12507_v46 = vcombine.high %v6337_v25, %v6341_v6  ;;  %v6320_v62 = vld [vmem:[#allocation4 + $0x140] sm:$0xff]  ;;  %v6329_v56 = vld [vmem:[#allocation4 + $0x188] sm:$0xff]  ;;  %v12496_v53 = vcombine.low %v6328_v27, %v6332_v35 }
 0x4b9   :  { %6126 = vmatpush1.bf16.msra.mxu1 %v6053_v30  ;;  %6184 = vmatprep.mubr.bf16.mxu0 %v15811_v47  ;;  %v4031_v54 = vpop.f32.mrf.mxu1 }
 0x4ba   :  { %v6032_v40 = vpop.permute.xlu1 %6031  ;;  %v6030_v41 = vpop.permute.xlu0 %6029  ;;  %v6324_v54 = vld [vmem:[#allocation4 + $0x160] sm:$0xff] }
 0x4bb   :  { %v6040_v45 = vsel %vm1206_vm2, %v6028_v0, %v6030_v41  ;;  %v6041_v11 = vsel %vm1206_vm2, %v6030_v41, %v6032_v40  ;;  %v12506_v41 = vcombine.low %v6337_v25, %v6341_v6  ;;  %v12488_v27 = vcombine.low %v6320_v62, %v6324_v54 }
 0x4bc   :  { %12441 = vmatmul.mubr.msk.bf16.vlgmr.msra.gmra.mxu1 %vm3922_vm15, %v12428_v26  ;;  %12442 = vmatprep.subr.msk.bf16.mxu0 %vm3853_vm14, %v6040_v45  ;;  %v6333_v45 = vld [vmem:[#allocation4 + $0x1a8] sm:$0xff]  ;;  %v6065_v44 = vsel %vm3853_vm14, %v6041_v11, 0 }
 0x4bd   :  { %6167 = vmatpush1.bf16.msra.mxu0 %v6059_v4  ;;  %6225 = vmatprep.mubr.bf16.mxu1 %v15811_v47  ;;  %v12499_v4 = vcombine.high %v6329_v56, %v6333_v45  ;;  %v12498_v35 = vcombine.low %v6329_v56, %v6333_v45 }
 0x4be   :  { %v6034_v0 = vpop.permute.xlu0 %6033  ;;  %7059 = vmatprep.subr.bf16.mxu0 %v12505_v38 }
 0x4bf   :  { %v6042_v30 = vsel %vm1206_vm2, %v6032_v40, %v6034_v0  ;;  %v12489_v40 = vcombine.high %v6320_v62, %v6324_v54  ;;  %v6312_v0 = vld [vmem:[#allocation4 + $0x100] sm:$0xff]  ;;  %v12490_v62 = vcombine.low %v6321_v43, %v6325_v12 }
 0x4c0   :  { %12443 = vmatmul.mubr.msk.bf16.vlgmr.msra.gmra.mxu0 %vm3922_vm15, %v12428_v26  ;;  %12444 = vmatprep.subr.msk.bf16.mxu1 %vm3853_vm14, %v6042_v30  ;;  %v12481_v11 = vcombine.high %v6312_v0, %v6316_v57  ;;  %v6313_v30 = vld [vmem:[#allocation4 + $0x108] sm:$0xff] }
 0x4c1   :  { %6208 = vmatpush1.bf16.msra.mxu1 %v6065_v44  ;;  %7060 = vmatpush1.bf16.msra.mxu0 %v12504_v37  ;;  %v12491_v37 = vcombine.high %v6321_v43, %v6325_v12  ;;  %v6317_v44 = vld [vmem:[#allocation4 + $0x128] sm:$0xff] }
 0x4c2   :  { %v14511_v38 = vpop.f32.mrf.mxu0  ;;  %7061 = vmatprep.subr.bf16.mxu0 %v12497_v55  ;;  %7100 = vmatprep.subr.bf16.mxu1 %v12507_v46  ;;  %v6304_v55 = vld [vmem:[#allocation4 + $0xc0] sm:$0xff]  ;;  %v12482_v43 = vcombine.low %v6313_v30, %v6317_v44 }
 0x4c3   :  { %7091 = vmatprep.mubr.bf16.mxu0 %v14506_v32  ;;  %v6308_v46 = vld [vmem:[#allocation4 + $0xe0] sm:$0xff] }
 0x4c4   :  { %v14514_v9 = vpop.f32.mrf.mxu0  ;;  %12445 = vmatmul.mubr.msk.bf16.vlgmr.msra.gmra.mxu1 %vm3922_vm15, %v12428_v26  ;;  %v12480_v26 = vcombine.low %v6312_v0, %v6316_v57  ;;  %v12473_v45 = vcombine.high %v6304_v55, %v6308_v46  ;;  %v12472_v12 = vcombine.low %v6304_v55, %v6308_v46 }
 0x4c5   :  { %7062 = vmatpush1.bf16.msra.mxu0 %v12496_v53  ;;  %7101 = vmatpush1.bf16.msra.mxu1 %v12506_v41  ;;  %v12483_v53 = vcombine.high %v6313_v30, %v6317_v44  ;;  %v6296_v41 = vld [vmem:[#allocation4 + $0x80] sm:$0xff] }
 0x4c6   :  { %v4071_v25 = vpop.f32.mrf.mxu0  ;;  %v14517_v6 = vpop.f32.mrf.mxu1  ;;  %7063 = vmatprep.subr.bf16.mxu0 %v12489_v40  ;;  %7102 = vmatprep.subr.bf16.mxu1 %v12499_v4  ;;  %v6300_v4 = vld [vmem:[#allocation4 + $0xa0] sm:$0xff] }
 0x4c7   :  { %7132 = vmatprep.mubr.bf16.mxu1 %v14506_v32  ;;  %v6305_v25 = vld [vmem:[#allocation4 + $0xc8] sm:$0xff]  ;;  %v12464_v55 = vcombine.low %v6296_v41, %v6300_v4 }
 0x4c8   :  { %v4072_v63 = vpop.f32.mrf.mxu0  ;;  %v14520_v36 = vpop.f32.mrf.mxu1  ;;  %v12474_v46 = vcombine.low %v6305_v25, %v6309_v58 }
 0x4c9   :  { %7064 = vmatpush1.bf16.msra.mxu0 %v12488_v27  ;;  %7103 = vmatpush1.bf16.msra.mxu1 %v12498_v35  ;;  %v12465_v35 = vcombine.high %v6296_v41, %v6300_v4 }
 0x4ca   :  { %v4112_v54 = vpop.f32.mrf.mxu1  ;;  %v4225_v56 = vpop.f32.mrf.mxu0  ;;  %7065 = vmatprep.subr.bf16.mxu0 %v12481_v11  ;;  %7104 = vmatprep.subr.bf16.mxu1 %v12491_v37  ;;  %v12475_v11 = vcombine.high %v6305_v25, %v6309_v58 }
 0x4cb   :  { %v14523_v40 = vadd.f32 %v4225_v56, %v14468_v39  ;;  %v6288_v39 = vld [vmem:[#allocation4 + $0x40] sm:$0xff]  ;;  %v6297_v56 = vld [vmem:[#allocation4 + $0x88] sm:$0xff] }
 0x4cc   :  { %v4113_v63 = vpop.f32.mrf.mxu1  ;;  %v4227_v34 = vpop.f32.mrf.mxu0  ;;  %v6292_v54 = vld [vmem:[#allocation4 + $0x60] sm:$0xff] }
 0x4cd   :  { %v14526_v27 = vadd.f32 %v4227_v34, %v14473_v1  ;;  %7066 = vmatpush1.bf16.msra.mxu0 %v12480_v26  ;;  %7105 = vmatpush1.bf16.msra.mxu1 %v12490_v62  ;;  %v6301_v63 = vld [vmem:[#allocation4 + $0xa8] sm:$0xff]  ;;  %v12457_v26 = vcombine.high %v6288_v39, %v6292_v54  ;;  %v12456_v58 = vcombine.low %v6288_v39, %v6292_v54 }
 0x4ce   :  { %v4229_v57 = vpop.f32.mrf.mxu0  ;;  %v4266_v0 = vpop.f32.mrf.mxu1  ;;  %7067 = vmatprep.subr.bf16.mxu0 %v12473_v45  ;;  %7106 = vmatprep.subr.bf16.mxu1 %v12483_v53  ;;  %v12467_v62 = vcombine.high %v6297_v56, %v6301_v63  ;;  %v6284_v53 = vld [vmem:[#allocation4 + $0x20] sm:$0xff]  ;;  %v12466_v41 = vcombine.low %v6297_v56, %v6301_v63 }
 0x4cf   :  { %v14529_v37 = vadd.f32 %v4266_v0, %v14476_v15  ;;  %v6280_v15 = vld [vmem:[#allocation4] sm:$0xff]  ;;  %v6293_v57 = vld [vmem:[#allocation4 + $0x68] sm:$0xff] }
 0x4d0   :  { %v4230_v13 = vpop.f32.mrf.mxu0  ;;  %v4268_v34 = vpop.f32.mrf.mxu1  ;;  %v12448_v39 = vcombine.low %v6280_v15, %v6284_v53 }
 0x4d1   :  { %v14532_v1 = vadd.f32 %v4268_v34, %v14484_v59  ;;  %7068 = vmatpush1.bf16.msra.mxu0 %v12472_v12  ;;  %7107 = vmatpush1.bf16.msra.mxu1 %v12482_v43  ;;  %v6289_v13 = vld [vmem:[#allocation4 + $0x48] sm:$0xff]  ;;  %v12449_v43 = vcombine.high %v6280_v15, %v6284_v53  ;;  %v6404_v34 = vld [vmem:[#allocation4 + $0x3e0] sm:$0xff] }
 0x4d2   :  { %v4270_v30 = vpop.f32.mrf.mxu1  ;;  %v4307_v44 = vpop.f32.mrf.mxu0  ;;  %7069 = vmatprep.subr.bf16.mxu0 %v12465_v35  ;;  %7108 = vmatprep.subr.bf16.mxu1 %v12475_v11  ;;  %v12459_v35 = vcombine.high %v6289_v13, %v6293_v57  ;;  %v12458_v54 = vcombine.low %v6289_v13, %v6293_v57 }
 0x4d3   :  { %v14535_v45 = vadd.f32 %v4307_v44, %v14511_v38  ;;  %v6400_v38 = vld [vmem:[#allocation4 + $0x3c0] sm:$0xff]  ;;  %v6281_v30 = vld [vmem:[#allocation4 + $0x8] sm:$0xff] }
 0x4d4   :  { %v4271_v0 = vpop.f32.mrf.mxu1  ;;  %v4309_v59 = vpop.f32.mrf.mxu0  ;;  %v6285_v44 = vld [vmem:[#allocation4 + $0x28] sm:$0xff]  ;;  %v12568_v15 = vcombine.low %v6400_v38, %v6404_v34 }
 0x4d5   :  { %v14538_v12 = vadd.f32 %v4309_v59, %v14514_v9  ;;  %7070 = vmatpush1.bf16.msra.mxu0 %v12464_v55  ;;  %7109 = vmatpush1.bf16.msra.mxu1 %v12474_v46  ;;  %v12569_v46 = vcombine.high %v6400_v38, %v6404_v34  ;;  %v6396_v59 = vld [vmem:[#allocation4 + $0x3a0] sm:$0xff]  ;;  %v12450_v53 = vcombine.low %v6281_v30, %v6285_v44 }
 0x4d6   :  { %v4311_v4 = vpop.f32.mrf.mxu0  ;;  %v4348_v25 = vpop.f32.mrf.mxu1  ;;  %7071 = vmatprep.subr.bf16.mxu0 %v12457_v26  ;;  %7110 = vmatprep.subr.bf16.mxu1 %v12467_v62  ;;  %v12451_v26 = vcombine.high %v6281_v30, %v6285_v44 }
 0x4d7   :  { %v14541_v11 = vadd.f32 %v4348_v25, %v14517_v6  ;;  %v6392_v6 = vld [vmem:[#allocation4 + $0x380] sm:$0xff]  ;;  %v6401_v4 = vld [vmem:[#allocation4 + $0x3c8] sm:$0xff] }
 0x4d8   :  { %v4312_v0 = vpop.f32.mrf.mxu0  ;;  %v4350_v9 = vpop.f32.mrf.mxu1  ;;  %v6405_v25 = vld [vmem:[#allocation4 + $0x3e8] sm:$0xff]  ;;  %v12560_v38 = vcombine.low %v6392_v6, %v6396_v59 }
 0x4d9   :  { %v14544_v55 = vadd.f32 %v4350_v9, %v14520_v36  ;;  %7072 = vmatpush1.bf16.msra.mxu0 %v12456_v58  ;;  %7111 = vmatpush1.bf16.msra.mxu1 %v12466_v41  ;;  %v12561_v41 = vcombine.high %v6392_v6, %v6396_v59  ;;  %v6388_v9 = vld [vmem:[#allocation4 + $0x360] sm:$0xff]  ;;  %v12570_v34 = vcombine.low %v6401_v4, %v6405_v25 }
 0x4da   :  { %v4352_v56 = vpop.f32.mrf.mxu1  ;;  %v4508_v63 = vpop.f32.mrf.mxu0  ;;  %7073 = vmatprep.subr.bf16.mxu0 %v12449_v43  ;;  %7112 = vmatprep.subr.bf16.mxu1 %v12459_v35  ;;  %v12571_v43 = vcombine.high %v6401_v4, %v6405_v25 }
 0x4db   :  { %v14547_v62 = vadd.f32 %v4508_v63, %v14523_v40  ;;  %v6384_v40 = vld [vmem:[#allocation4 + $0x340] sm:$0xff]  ;;  %v6393_v56 = vld [vmem:[#allocation4 + $0x388] sm:$0xff] }
 0x4dc   :  { %v4353_v0 = vpop.f32.mrf.mxu1  ;;  %v4510_v36 = vpop.f32.mrf.mxu0  ;;  %v6397_v63 = vld [vmem:[#allocation4 + $0x3a8] sm:$0xff]  ;;  %v12552_v6 = vcombine.low %v6384_v40, %v6388_v9 }
 0x4dd   :  { %v14550_v58 = vadd.f32 %v4510_v36, %v14526_v27  ;;  %7074 = vmatpush1.bf16.msra.mxu0 %v12448_v39  ;;  %7113 = vmatpush1.bf16.msra.mxu1 %v12458_v54  ;;  %v12553_v54 = vcombine.high %v6384_v40, %v6388_v9  ;;  %v6380_v36 = vld [vmem:[#allocation4 + $0x320] sm:$0xff]  ;;  %v12562_v59 = vcombine.low %v6393_v56, %v6397_v63 }
 0x4de   :  { %v4512_v13 = vpop.f32.mrf.mxu0  ;;  %v4549_v57 = vpop.f32.mrf.mxu1  ;;  %7075 = vmatprep.subr.bf16.mxu0 %v12569_v46  ;;  %7114 = vmatprep.subr.bf16.mxu1 %v12451_v26  ;;  %v12563_v46 = vcombine.high %v6393_v56, %v6397_v63 }
 0x4df   :  { %v14553_v35 = vadd.f32 %v4549_v57, %v14529_v37  ;;  %v6376_v37 = vld [vmem:[#allocation4 + $0x300] sm:$0xff]  ;;  %v6385_v13 = vld [vmem:[#allocation4 + $0x348] sm:$0xff] }
 0x4e0   :  { %v4513_v0 = vpop.f32.mrf.mxu0  ;;  %v4551_v27 = vpop.f32.mrf.mxu1  ;;  %v6389_v57 = vld [vmem:[#allocation4 + $0x368] sm:$0xff]  ;;  %v12544_v40 = vcombine.low %v6376_v37, %v6380_v36 }
 0x4e1   :  { %v14556_v39 = vadd.f32 %v4551_v27, %v14532_v1  ;;  %7076 = vmatpush2.bf16.msra.mxu0 %v12568_v15  ;;  %7115 = vmatpush1.bf16.msra.mxu1 %v12450_v53  ;;  %v12545_v53 = vcombine.high %v6376_v37, %v6380_v36  ;;  %v6372_v27 = vld [vmem:[#allocation4 + $0x2e0] sm:$0xff]  ;;  %v12554_v9 = vcombine.low %v6385_v13, %v6389_v57 }
 0x4e2   :  { %v4553_v30 = vpop.f32.mrf.mxu1  ;;  %v4590_v44 = vpop.f32.mrf.mxu0  ;;  %7077 = vmatprep.subr.bf16.mxu0 %v12561_v41  ;;  %7116 = vmatprep.subr.bf16.mxu1 %v12571_v43  ;;  %v12555_v41 = vcombine.high %v6385_v13, %v6389_v57 }
 0x4e3   :  { %v14559_v26 = vadd.f32 %v4590_v44, %v14535_v45  ;;  %v6368_v45 = vld [vmem:[#allocation4 + $0x2c0] sm:$0xff]  ;;  %v6377_v30 = vld [vmem:[#allocation4 + $0x308] sm:$0xff] }
 0x4e4   :  { %v4554_v0 = vpop.f32.mrf.mxu1  ;;  %v4592_v1 = vpop.f32.mrf.mxu0  ;;  %v6381_v44 = vld [vmem:[#allocation4 + $0x328] sm:$0xff]  ;;  %v12536_v37 = vcombine.low %v6368_v45, %v6372_v27 }
 0x4e5   :  { %v14562_v15 = vadd.f32 %v4592_v1, %v14538_v12  ;;  %7078 = vmatpush2.bf16.msra.mxu0 %v12560_v38  ;;  %7117 = vmatpush2.bf16.msra.mxu1 %v12570_v34  ;;  %v12537_v34 = vcombine.high %v6368_v45, %v6372_v27  ;;  %v6364_v1 = vld [vmem:[#allocation4 + $0x2a0] sm:$0xff]  ;;  %v12546_v36 = vcombine.low %v6377_v30, %v6381_v44 }
 0x4e6   :  { %v4594_v4 = vpop.f32.mrf.mxu0  ;;  %v4631_v25 = vpop.f32.mrf.mxu1  ;;  %7079 = vmatprep.subr.bf16.mxu0 %v12553_v54  ;;  %7118 = vmatprep.subr.bf16.mxu1 %v12563_v46  ;;  %v12547_v54 = vcombine.high %v6377_v30, %v6381_v44 }
 0x4e7   :  { %v14565_v43 = vadd.f32 %v4631_v25, %v14541_v11  ;;  %v6360_v11 = vld [vmem:[#allocation4 + $0x280] sm:$0xff]  ;;  %v6369_v4 = vld [vmem:[#allocation4 + $0x2c8] sm:$0xff] }
 0x4e8   :  { %v4595_v0 = vpop.f32.mrf.mxu0  ;;  %v4633_v12 = vpop.f32.mrf.mxu1  ;;  %v6373_v25 = vld [vmem:[#allocation4 + $0x2e8] sm:$0xff]  ;;  %v12528_v45 = vcombine.low %v6360_v11, %v6364_v1 }
 0x4e9   :  { %v14568_v38 = vadd.f32 %v4633_v12, %v14544_v55  ;;  %7080 = vmatpush2.bf16.msra.mxu0 %v12552_v6  ;;  %7119 = vmatpush2.bf16.msra.mxu1 %v12562_v59  ;;  %v12529_v59 = vcombine.high %v6360_v11, %v6364_v1  ;;  %v6356_v12 = vld [vmem:[#allocation4 + $0x260] sm:$0xff]  ;;  %v12538_v27 = vcombine.low %v6369_v4, %v6373_v25 }
 0x4ea   :  { %v4635_v56 = vpop.f32.mrf.mxu1  ;;  %v4787_v63 = vpop.f32.mrf.mxu0  ;;  %7081 = vmatprep.subr.bf16.mxu0 %v12545_v53  ;;  %7120 = vmatprep.subr.bf16.mxu1 %v12555_v41  ;;  %v12539_v53 = vcombine.high %v6369_v4, %v6373_v25 }
 0x4eb   :  { %v14571_v46 = vadd.f32 %v4787_v63, %v14547_v62  ;;  %v6352_v62 = vld [vmem:[#allocation4 + $0x240] sm:$0xff]  ;;  %v6361_v56 = vld [vmem:[#allocation4 + $0x288] sm:$0xff] }
 0x4ec   :  { %v4636_v0 = vpop.f32.mrf.mxu1  ;;  %v4789_v55 = vpop.f32.mrf.mxu0  ;;  %v6365_v63 = vld [vmem:[#allocation4 + $0x2a8] sm:$0xff]  ;;  %v12520_v11 = vcombine.low %v6352_v62, %v6356_v12 }
 0x4ed   :  { %v14574_v6 = vadd.f32 %v4789_v55, %v14550_v58  ;;  %7082 = vmatpush2.bf16.msra.mxu0 %v12544_v40  ;;  %7121 = vmatpush2.bf16.msra.mxu1 %v12554_v9  ;;  %v12521_v9 = vcombine.high %v6352_v62, %v6356_v12  ;;  %v6348_v55 = vld [vmem:[#allocation4 + $0x220] sm:$0xff]  ;;  %v12530_v1 = vcombine.low %v6361_v56, %v6365_v63 }
 0x4ee   :  { %v4791_v13 = vpop.f32.mrf.mxu0  ;;  %v4828_v57 = vpop.f32.mrf.mxu1  ;;  %7083 = vmatprep.subr.bf16.mxu0 %v12537_v34  ;;  %7122 = vmatprep.subr.bf16.mxu1 %v12547_v54  ;;  %v12531_v34 = vcombine.high %v6361_v56, %v6365_v63 }
 0x4ef   :  { %v14577_v41 = vadd.f32 %v4828_v57, %v14553_v35  ;;  %v6344_v35 = vld [vmem:[#allocation4 + $0x200] sm:$0xff]  ;;  %v6353_v13 = vld [vmem:[#allocation4 + $0x248] sm:$0xff] }
 0x4f0   :  { %v4792_v0 = vpop.f32.mrf.mxu0  ;;  %v4830_v58 = vpop.f32.mrf.mxu1  ;;  %v6357_v57 = vld [vmem:[#allocation4 + $0x268] sm:$0xff]  ;;  %v12512_v62 = vcombine.low %v6344_v35, %v6348_v55 }
 0x4f1   :  { %v14580_v40 = vadd.f32 %v4830_v58, %v14556_v39  ;;  %7084 = vmatpush2.bf16.msra.mxu0 %v12536_v37  ;;  %7123 = vmatpush2.bf16.msra.mxu1 %v12546_v36  ;;  %v12513_v36 = vcombine.high %v6344_v35, %v6348_v55  ;;  %v6349_v58 = vld [vmem:[#allocation4 + $0x228] sm:$0xff]  ;;  %v12522_v12 = vcombine.low %v6353_v13, %v6357_v57 }
 0x4f2   :  { %v4832_v30 = vpop.f32.mrf.mxu1  ;;  %v4869_v44 = vpop.f32.mrf.mxu0  ;;  %7085 = vmatprep.subr.bf16.mxu0 %v12529_v59  ;;  %7124 = vmatprep.subr.bf16.mxu1 %v12539_v53  ;;  %v12523_v59 = vcombine.high %v6353_v13, %v6357_v57 }
 0x4f3   :  { %v14583_v54 = vadd.f32 %v4869_v44, %v14559_v26  ;;  %v6345_v26 = vld [vmem:[#allocation4 + $0x208] sm:$0xff]  ;;  %v6338_v30 = vld [vmem:[#allocation4 + $0x1d0] sm:$0xff] }
 0x4f4   :  { %v4833_v0 = vpop.f32.mrf.mxu1  ;;  %v4871_v39 = vpop.f32.mrf.mxu0  ;;  %v6342_v44 = vld [vmem:[#allocation4 + $0x1f0] sm:$0xff]  ;;  %v12514_v35 = vcombine.low %v6345_v26, %v6349_v58 }
 0x4f5   :  { %v14586_v37 = vadd.f32 %v4871_v39, %v14562_v15  ;;  %7086 = vmatpush2.bf16.msra.mxu0 %v12528_v45  ;;  %7125 = vmatpush2.bf16.msra.mxu1 %v12538_v27  ;;  %v12515_v27 = vcombine.high %v6345_v26, %v6349_v58  ;;  %v6334_v39 = vld [vmem:[#allocation4 + $0x1b0] sm:$0xff]  ;;  %v12508_v55 = vcombine.low %v6338_v30, %v6342_v44 }
 0x4f6   :  { %v4873_v4 = vpop.f32.mrf.mxu0  ;;  %v4910_v25 = vpop.f32.mrf.mxu1  ;;  %7087 = vmatprep.subr.bf16.mxu0 %v12521_v9  ;;  %7126 = vmatprep.subr.bf16.mxu1 %v12531_v34  ;;  %v12509_v9 = vcombine.high %v6338_v30, %v6342_v44 }
 0x4f7   :  { %v14589_v53 = vadd.f32 %v4910_v25, %v14565_v43  ;;  %v6330_v43 = vld [vmem:[#allocation4 + $0x190] sm:$0xff]  ;;  %v6339_v4 = vld [vmem:[#allocation4 + $0x1d8] sm:$0xff] }
 0x4f8   :  { %v4874_v0 = vpop.f32.mrf.mxu0  ;;  %v4912_v15 = vpop.f32.mrf.mxu1  ;;  %v6343_v25 = vld [vmem:[#allocation4 + $0x1f8] sm:$0xff]  ;;  %v12500_v58 = vcombine.low %v6330_v43, %v6334_v39 }
 0x4f9   :  { %v14592_v45 = vadd.f32 %v4912_v15, %v14568_v38  ;;  %7088 = vmatpush2.bf16.msra.mxu0 %v12520_v11  ;;  %7127 = vmatpush2.bf16.msra.mxu1 %v12530_v1  ;;  %v12501_v1 = vcombine.high %v6330_v43, %v6334_v39  ;;  %v6326_v15 = vld [vmem:[#allocation4 + $0x170] sm:$0xff]  ;;  %v12510_v30 = vcombine.low %v6339_v4, %v6343_v25 }
 0x4fa   :  { %v4914_v56 = vpop.f32.mrf.mxu1  ;;  %v5012_v63 = vpop.f32.mrf.mxu0  ;;  %7089 = vmatprep.subr.bf16.mxu0 %v12513_v36  ;;  %7128 = vmatprep.subr.bf16.mxu1 %v12523_v59  ;;  %v12511_v36 = vcombine.high %v6339_v4, %v6343_v25 }
 0x4fb   :  { %v14595_v34 = vadd.f32 %v5012_v63, %v14571_v46  ;;  %v6322_v46 = vld [vmem:[#allocation4 + $0x150] sm:$0xff]  ;;  %v6331_v56 = vld [vmem:[#allocation4 + $0x198] sm:$0xff] }
 0x4fc   :  { %v4915_v0 = vpop.f32.mrf.mxu1  ;;  %v5014_v38 = vpop.f32.mrf.mxu0  ;;  %v6335_v63 = vld [vmem:[#allocation4 + $0x1b8] sm:$0xff]  ;;  %v12492_v39 = vcombine.low %v6322_v46, %v6326_v15 }
 0x4fd   :  { %v14598_v11 = vadd.f32 %v5014_v38, %v14574_v6  ;;  %7090 = vmatpush2.bf16.msra.mxu0 %v12512_v62  ;;  %7129 = vmatpush2.bf16.msra.mxu1 %v12522_v12  ;;  %v12503_v12 = vcombine.high %v6331_v56, %v6335_v63  ;;  %v6318_v38 = vld [vmem:[#allocation4 + $0x130] sm:$0xff]  ;;  %v12502_v4 = vcombine.low %v6331_v56, %v6335_v63 }
 0x4fe   :  { %v5016_v13 = vpop.f32.mrf.mxu0  ;;  %v5053_v57 = vpop.f32.mrf.mxu1  ;;  %7130 = vmatprep.subr.bf16.mxu1 %v12515_v27  ;;  %7141 = vmatprep.subr.bf16.mxu0 %v12509_v9  ;;  %v6314_v27 = vld [vmem:[#allocation4 + $0x110] sm:$0xff] }
 0x4ff   :  { %v14601_v59 = vadd.f32 %v5053_v57, %v14577_v41  ;;  %v12493_v41 = vcombine.high %v6322_v46, %v6326_v15  ;;  %v6323_v13 = vld [vmem:[#allocation4 + $0x158] sm:$0xff]  ;;  %v12484_v15 = vcombine.low %v6314_v27, %v6318_v38 }
 0x500   :  { %v5017_v0 = vpop.f32.mrf.mxu0  ;;  %v5055_v6 = vpop.f32.mrf.mxu1  ;;  %7092 = vmatmul.mubr.bf16.vlgmr.msra.gmra.mxu0 %v14499_v20  ;;  %v6327_v57 = vld [vmem:[#allocation4 + $0x178] sm:$0xff] }
 0x501   :  { %v14605_v26 = vadd.f32 %v5055_v6, %v14580_v40  ;;  %7131 = vmatpush2.bf16.msra.mxu1 %v12514_v35  ;;  %7142 = vmatpush1.bf16.msra.mxu0 %v12508_v55  ;;  %v6310_v6 = vld [vmem:[#allocation4 + $0xf0] sm:$0xff]  ;;  %v12494_v56 = vcombine.low %v6323_v13, %v6327_v57 }
 0x502   :  { %v5057_v44 = vpop.f32.mrf.mxu1  ;;  %v5094_v62 = vpop.f32.mrf.mxu0  ;;  %7143 = vmatprep.subr.bf16.mxu0 %v12501_v1  ;;  %7182 = vmatprep.subr.bf16.mxu1 %v12511_v36  ;;  %v12495_v1 = vcombine.high %v6323_v13, %v6327_v57  ;;  %v6306_v36 = vld [vmem:[#allocation4 + $0xd0] sm:$0xff] }
 0x503   :  { %v14608_v9 = vadd.f32 %v5094_v62, %v14583_v54  ;;  %7173 = vmatprep.mubr.bf16.mxu0 %v14506_v32  ;;  %v12485_v54 = vcombine.high %v6314_v27, %v6318_v38  ;;  %v6315_v44 = vld [vmem:[#allocation4 + $0x118] sm:$0xff]  ;;  %v12476_v27 = vcombine.low %v6306_v36, %v6310_v6 }
 0x504   :  { %v5058_v40 = vpop.f32.mrf.mxu1  ;;  %v5096_v35 = vpop.f32.mrf.mxu0  ;;  %7133 = vmatmul.mubr.bf16.vlgmr.msra.gmra.mxu1 %v14499_v20  ;;  %v6319_v62 = vld [vmem:[#allocation4 + $0x138] sm:$0xff] }
 0x505   :  { %v14613_v43 = vadd.f32 %v5096_v35, %v14586_v37  ;;  %7144 = vmatpush1.bf16.msra.mxu0 %v12500_v58  ;;  %7183 = vmatpush1.bf16.msra.mxu1 %v12510_v30  ;;  %v6307_v35 = vld [vmem:[#allocation4 + $0xd8] sm:$0xff]  ;;  %v12486_v38 = vcombine.low %v6315_v44, %v6319_v62 }
 0x506   :  { %v5098_v25 = vpop.f32.mrf.mxu0  ;;  %v5135_v55 = vpop.f32.mrf.mxu1  ;;  %7145 = vmatprep.subr.bf16.mxu0 %v12493_v41  ;;  %7184 = vmatprep.subr.bf16.mxu1 %v12503_v12  ;;  %v12487_v41 = vcombine.high %v6315_v44, %v6319_v62  ;;  %v6298_v12 = vld [vmem:[#allocation4 + $0x90] sm:$0xff] }
 0x507   :  { %v14616_v0 = vadd.f32 %v5135_v55, %v14589_v53  ;;  %7214 = vmatprep.mubr.bf16.mxu1 %v14506_v32  ;;  %v12477_v53 = vcombine.high %v6306_v36, %v6310_v6  ;;  %v6302_v32 = vld [vmem:[#allocation4 + $0xb0] sm:$0xff]  ;;  %v6311_v25 = vld [vmem:[#allocation4 + $0xf8] sm:$0xff] }
 0x508   :  { %v5099_v37 = vpop.f32.mrf.mxu0  ;;  %v5137_v58 = vpop.f32.mrf.mxu1  ;;  %v12469_v57 = vcombine.high %v6298_v12, %v6302_v32  ;;  %v12468_v36 = vcombine.low %v6298_v12, %v6302_v32  ;;  %v12478_v6 = vcombine.low %v6307_v35, %v6311_v25  ;;  %v6402_v12 = vld [vmem:[#allocation4 + $0x3d0] sm:$0xff] }
 0x509   :  { %v14620_v46 = vadd.f32 %v5137_v58, %v14592_v45  ;;  %7146 = vmatpush1.bf16.msra.mxu0 %v12492_v39  ;;  %7185 = vmatpush1.bf16.msra.mxu1 %v12502_v4  ;;  %v12479_v4 = vcombine.high %v6307_v35, %v6311_v25  ;;  %v6294_v37 = vld [vmem:[#allocation4 + $0x70] sm:$0xff]  ;;  %v6299_v58 = vld [vmem:[#allocation4 + $0x98] sm:$0xff] }
 0x50a   :  { %v5139_v63 = vpop.f32.mrf.mxu1  ;;  %v5296_v30 = vpop.f32.mrf.mxu0  ;;  %7147 = vmatprep.subr.bf16.mxu0 %v12485_v54  ;;  %7186 = vmatprep.subr.bf16.mxu1 %v12495_v1  ;;  %v6290_v54 = vld [vmem:[#allocation4 + $0x50] sm:$0xff]  ;;  %v6283_v35 = vld [vmem:[#allocation4 + $0x18] sm:$0xff] }
 0x50b   :  { %v14623_v40 = vadd.f32 %v5296_v30, %v14595_v34  ;;  %v6303_v63 = vld [vmem:[#allocation4 + $0xb8] sm:$0xff]  ;;  %v12461_v44 = vcombine.high %v6290_v54, %v6294_v37  ;;  %v6406_v32 = vld [vmem:[#allocation4 + $0x3f0] sm:$0xff] }
 0x50c   :  { %v5140_v55 = vpop.f32.mrf.mxu1  ;;  %v5298_v45 = vpop.f32.mrf.mxu0  ;;  %v12471_v62 = vcombine.high %v6299_v58, %v6303_v63  ;;  %v6287_v25 = vld [vmem:[#allocation4 + $0x38] sm:$0xff] }
 0x50d   :  { %v14626_v39 = vadd.f32 %v5298_v45, %v14598_v11  ;;  %7148 = vmatpush1.bf16.msra.mxu0 %v12484_v15  ;;  %7187 = vmatpush1.bf16.msra.mxu1 %v12494_v56  ;;  %v6282_v56 = vld [vmem:[#allocation4 + $0x10] sm:$0xff]  ;;  %v6295_v55 = vld [vmem:[#allocation4 + $0x78] sm:$0xff] }
 0x50e   :  { %v5337_v13 = vpop.f32.mrf.mxu1  ;;  %7149 = vmatprep.subr.bf16.mxu0 %v12477_v53  ;;  %7188 = vmatprep.subr.bf16.mxu1 %v12487_v41  ;;  %v5300_v34 = vpop.f32.mrf.mxu0  ;;  %v6291_v41 = vld [vmem:[#allocation4 + $0x58] sm:$0xff] }
 0x50f   :  { %v14629_v1 = vadd.f32 %v5337_v13, %v14601_v59  ;;  %v6286_v59 = vld [vmem:[#allocation4 + $0x30] sm:$0xff]  ;;  %v12460_v13 = vcombine.low %v6290_v54, %v6294_v37  ;;  %v12470_v34 = vcombine.low %v6299_v58, %v6303_v63  ;;  %v6403_v54 = vld [vmem:[#allocation4 + $0x3d8] sm:$0xff]  ;;  %v12572_v58 = vcombine.low %v6402_v12, %v6406_v32 }
 0x510   :  { %v5339_v30 = vpop.f32.mrf.mxu1  ;;  %v5301_v11 = vpop.f32.mrf.mxu0  ;;  %v6407_v37 = vld [vmem:[#allocation4 + $0x3f8] sm:$0xff]  ;;  %v12454_v63 = vcombine.low %v6283_v35, %v6287_v25 }
 0x511   :  { %v14632_v15 = vadd.f32 %v5339_v30, %v14605_v26  ;;  %7150 = vmatpush1.bf16.msra.mxu0 %v12476_v27  ;;  %7189 = vmatpush1.bf16.msra.mxu1 %v12486_v38  ;;  %v12453_v26 = vcombine.high %v6282_v56, %v6286_v59  ;;  %v12463_v27 = vcombine.high %v6291_v41, %v6295_v55  ;;  %v6394_v11 = vld [vmem:[#allocation4 + $0x390] sm:$0xff] }
 0x512   :  { %7151 = vmatprep.subr.bf16.mxu0 %v12469_v57  ;;  %7190 = vmatprep.subr.bf16.mxu1 %v12479_v4  ;;  %v5341_v53 = vpop.f32.mrf.mxu1  ;;  %v12452_v38 = vcombine.low %v6282_v56, %v6286_v59  ;;  %v12462_v57 = vcombine.low %v6291_v41, %v6295_v55  ;;  %v12573_v4 = vcombine.high %v6402_v12, %v6406_v32  ;;  %v6395_v56 = vld [vmem:[#allocation4 + $0x398] sm:$0xff] }
 0x513   :  { %v12455_v30 = vcombine.high %v6283_v35, %v6287_v25  ;;  %v6390_v53 = vld [vmem:[#allocation4 + $0x370] sm:$0xff]  ;;  %v6399_v59 = vld [vmem:[#allocation4 + $0x3b8] sm:$0xff]  ;;  %v12574_v55 = vcombine.low %v6403_v54, %v6407_v37 }
 0x514   :  { %v5342_v45 = vpop.f32.mrf.mxu1  ;;  %v6391_v12 = vld [vmem:[#allocation4 + $0x378] sm:$0xff]  ;;  %v12566_v35 = vcombine.low %v6395_v56, %v6399_v59 }
 0x515   :  { %7152 = vmatpush1.bf16.msra.mxu0 %v12468_v36  ;;  %7191 = vmatpush1.bf16.msra.mxu1 %v12478_v6  ;;  %v6398_v36 = vld [vmem:[#allocation4 + $0x3b0] sm:$0xff] }
 0x516   :  { %7153 = vmatprep.subr.bf16.mxu0 %v12461_v44  ;;  %7192 = vmatprep.subr.bf16.mxu1 %v12471_v62  ;;  %v12565_v6 = vcombine.high %v6394_v11, %v6398_v36  ;;  %v12575_v44 = vcombine.high %v6403_v54, %v6407_v37  ;;  %v6386_v62 = vld [vmem:[#allocation4 + $0x350] sm:$0xff]  ;;  %v12564_v41 = vcombine.low %v6394_v11, %v6398_v36  ;;  %v6383_v11 = vld [vmem:[#allocation4 + $0x338] sm:$0xff] }
 0x517   :  { %v12557_v45 = vcombine.high %v6386_v62, %v6390_v53  ;;  %v12556_v32 = vcombine.low %v6386_v62, %v6390_v53  ;;  %v6375_v62 = vld [vmem:[#allocation4 + $0x2f8] sm:$0xff] }
 0x519   :  { %7154 = vmatpush1.bf16.msra.mxu0 %v12460_v13  ;;  %7193 = vmatpush1.bf16.msra.mxu1 %v12470_v34  ;;  %v12567_v13 = vcombine.high %v6395_v56, %v6399_v59  ;;  %v6378_v34 = vld [vmem:[#allocation4 + $0x310] sm:$0xff] }
 0x51a   :  { %7155 = vmatprep.subr.bf16.mxu0 %v12453_v26  ;;  %7194 = vmatprep.subr.bf16.mxu1 %v12463_v27  ;;  %v6382_v26 = vld [vmem:[#allocation4 + $0x330] sm:$0xff]  ;;  %v6387_v27 = vld [vmem:[#allocation4 + $0x358] sm:$0xff] }
 0x51b   :  { %v12549_v25 = vcombine.high %v6378_v34, %v6382_v26  ;;  %v12548_v36 = vcombine.low %v6378_v34, %v6382_v26  ;;  %v12558_v54 = vcombine.low %v6387_v27, %v6391_v12  ;;  %v6367_v34 = vld [vmem:[#allocation4 + $0x2b8] sm:$0xff] }
 0x51d   :  { %7156 = vmatpush1.bf16.msra.mxu0 %v12452_v38  ;;  %7195 = vmatpush1.bf16.msra.mxu1 %v12462_v57  ;;  %v12559_v38 = vcombine.high %v6387_v27, %v6391_v12  ;;  %v6370_v57 = vld [vmem:[#allocation4 + $0x2d0] sm:$0xff] }
 0x51e   :  { %7157 = vmatprep.subr.bf16.mxu0 %v12573_v4  ;;  %7196 = vmatprep.subr.bf16.mxu1 %v12455_v30  ;;  %v6374_v4 = vld [vmem:[#allocation4 + $0x2f0] sm:$0xff]  ;;  %v6379_v30 = vld [vmem:[#allocation4 + $0x318] sm:$0xff] }
 0x51f   :  { %v12541_v37 = vcombine.high %v6370_v57, %v6374_v4  ;;  %v12540_v53 = vcombine.low %v6370_v57, %v6374_v4  ;;  %v12550_v56 = vcombine.low %v6379_v30, %v6383_v11  ;;  %v6359_v57 = vld [vmem:[#allocation4 + $0x278] sm:$0xff] }
 0x521   :  { %7158 = vmatpush2.bf16.msra.mxu0 %v12572_v58  ;;  %7197 = vmatpush1.bf16.msra.mxu1 %v12454_v63  ;;  %v12551_v58 = vcombine.high %v6379_v30, %v6383_v11  ;;  %v6362_v63 = vld [vmem:[#allocation4 + $0x290] sm:$0xff] }
 0x522   :  { %7159 = vmatprep.subr.bf16.mxu0 %v12565_v6  ;;  %7198 = vmatprep.subr.bf16.mxu1 %v12575_v44  ;;  %v6366_v6 = vld [vmem:[#allocation4 + $0x2b0] sm:$0xff]  ;;  %v6371_v44 = vld [vmem:[#allocation4 + $0x2d8] sm:$0xff] }
 0x523   :  { %v12533_v59 = vcombine.high %v6362_v63, %v6366_v6  ;;  %v12532_v26 = vcombine.low %v6362_v63, %v6366_v6  ;;  %v12542_v27 = vcombine.low %v6371_v44, %v6375_v62 }
 0x525   :  { %7160 = vmatpush2.bf16.msra.mxu0 %v12564_v41  ;;  %7199 = vmatpush2.bf16.msra.mxu1 %v12574_v55  ;;  %v12543_v41 = vcombine.high %v6371_v44, %v6375_v62  ;;  %v6354_v55 = vld [vmem:[#allocation4 + $0x250] sm:$0xff]  ;;  %v12888_v62 = vld.sshfl [vmem:[%s15770_s0 + $0x4] sm:$0x33 pattern:$0x76325410] }
 0x526   :  { %7161 = vmatprep.subr.bf16.mxu0 %v12557_v45  ;;  %7200 = vmatprep.subr.bf16.mxu1 %v12567_v13  ;;  %v6358_v45 = vld [vmem:[#allocation4 + $0x270] sm:$0xff]  ;;  %v6363_v13 = vld [vmem:[#allocation4 + $0x298] sm:$0xff] }
 0x527   :  { %v12525_v12 = vcombine.high %v6354_v55, %v6358_v45  ;;  %v12524_v4 = vcombine.low %v6354_v55, %v6358_v45  ;;  %v12534_v30 = vcombine.low %v6363_v13, %v6367_v34 }
 0x529   :  { %7162 = vmatpush2.bf16.msra.mxu0 %v12556_v32  ;;  %7201 = vmatpush2.bf16.msra.mxu1 %v12566_v35  ;;  %v12535_v32 = vcombine.high %v6363_v13, %v6367_v34  ;;  %v6346_v35 = vld [vmem:[#allocation4 + $0x210] sm:$0xff] }
 0x52a   :  { %7163 = vmatprep.subr.bf16.mxu0 %v12549_v25  ;;  %7202 = vmatprep.subr.bf16.mxu1 %v12559_v38  ;;  %v6350_v25 = vld [vmem:[#allocation4 + $0x230] sm:$0xff]  ;;  %v6355_v38 = vld [vmem:[#allocation4 + $0x258] sm:$0xff] }
 0x52b   :  { %v12517_v11 = vcombine.high %v6346_v35, %v6350_v25  ;;  %v12526_v63 = vcombine.low %v6355_v38, %v6359_v57 }
 0x52d   :  { %7164 = vmatpush2.bf16.msra.mxu0 %v12548_v36  ;;  %7203 = vmatpush2.bf16.msra.mxu1 %v12558_v54  ;;  %v12527_v36 = vcombine.high %v6355_v38, %v6359_v57  ;;  %v6347_v54 = vld [vmem:[#allocation4 + $0x218] sm:$0xff] }
 0x52e   :  { %7165 = vmatprep.subr.bf16.mxu0 %v12541_v37  ;;  %7204 = vmatprep.subr.bf16.mxu1 %v12551_v58  ;;  %v6351_v37 = vld [vmem:[#allocation4 + $0x238] sm:$0xff]  ;;  %v12516_v58 = vcombine.low %v6346_v35, %v6350_v25 }
 0x52f   :  { %v12519_v6 = vcombine.high %v6347_v54, %v6351_v37  ;;  %v12518_v44 = vcombine.low %v6347_v54, %v6351_v37 }
 0x531   :  { %7166 = vmatpush2.bf16.msra.mxu0 %v12540_v53  ;;  %7205 = vmatpush2.bf16.msra.mxu1 %v12550_v56 }
 0x532   :  { %7167 = vmatprep.subr.bf16.mxu0 %v12533_v59  ;;  %7206 = vmatprep.subr.bf16.mxu1 %v12543_v41 }
 0x535   :  { %7168 = vmatpush2.bf16.msra.mxu0 %v12532_v26  ;;  %7207 = vmatpush2.bf16.msra.mxu1 %v12542_v27 }
 0x536   :  { %7169 = vmatprep.subr.bf16.mxu0 %v12525_v12  ;;  %7208 = vmatprep.subr.bf16.mxu1 %v12535_v32 }
 0x539   :  { %7170 = vmatpush2.bf16.msra.mxu0 %v12524_v4  ;;  %7209 = vmatpush2.bf16.msra.mxu1 %v12534_v30 }
 0x53a   :  { %7171 = vmatprep.subr.bf16.mxu0 %v12517_v11  ;;  %7210 = vmatprep.subr.bf16.mxu1 %v12527_v36 }
 0x53d   :  { %7172 = vmatpush2.bf16.msra.mxu0 %v12516_v58  ;;  %7211 = vmatpush2.bf16.msra.mxu1 %v12526_v63 }
 0x53e   :  { %7212 = vmatprep.subr.bf16.mxu1 %v12519_v6 }
 0x540   :  { %7174 = vmatmul.mubr.bf16.vlgmr.msra.gmra.mxu0 %v14499_v20 }
 0x541   :  { %7213 = vmatpush2.bf16.msra.mxu1 %v12518_v44  ;;  %7414 = vmatprep.mubr.bf16.mxu0 %v15811_v47 }
 0x544   :  { %7215 = vmatmul.mubr.bf16.vlgmr.msra.gmra.mxu1 %v12888_v62 }
 0x545   :  { %7455 = vmatprep.mubr.bf16.mxu1 %v15811_v47 }
 0x548   :  { %v5378_v53 = vpop.f32.mrf.mxu0 }
 0x549   :  { %v5430_v56 = vadd.f32 %v5378_v53, %v14608_v9 }
 0x54a   :  { %v5380_v59 = vpop.f32.mrf.mxu0 }
 0x54b   :  { %v5431_v41 = vadd.f32 %v5380_v59, %v14613_v43 }
 0x54c   :  { %v5382_v55 = vpop.f32.mrf.mxu0  ;;  %v5419_v45 = vpop.f32.mrf.mxu1 }
 0x54d   :  { %v5432_v20 = vadd.f32 %v5419_v45, %v14616_v0 }
 0x54e   :  { %v5383_v13 = vpop.f32.mrf.mxu0  ;;  %v5421_v34 = vpop.f32.mrf.mxu1 }
 0x54f   :  { %v5433_v26 = vadd.f32 %v5421_v34, %v14620_v46 }
 0x550   :  { %v5423_v27 = vpop.f32.mrf.mxu1  ;;  %v5575_v12 = vpop.f32.mrf.mxu0 }
 0x551   :  { %v5705_v32 = vadd.f32 %v5575_v12, %v14623_v40 }
 0x552   :  { %v5424_v35 = vpop.f32.mrf.mxu1  ;;  %v5577_v25 = vpop.f32.mrf.mxu0 }
 0x553   :  { %v5706_v38 = vadd.f32 %v5577_v25, %v14626_v39 }
 0x554   :  { %v5616_v9 = vpop.f32.mrf.mxu1  ;;  %v5579_v57 = vpop.f32.mrf.mxu0 }
 0x555   :  { %v5707_v43 = vadd.f32 %v5616_v9, %v14629_v1 }
 0x556   :  { %v5618_v4 = vpop.f32.mrf.mxu1  ;;  %v5580_v30 = vpop.f32.mrf.mxu0 }
 0x557   :  { %v5708_v0 = vadd.f32 %v5618_v4, %v14632_v15 }
 0x558   :  { %v5620_v11 = vpop.f32.mrf.mxu1 }
 0x55a   :  { %v5621_v36 = vpop.f32.mrf.mxu1 }
 0x55f   :  { %v5657_v54 = vpop.f32.mrf.mxu0  ;;  %v5698_v46 = vpop.f32.mrf.mxu1 }
 0x560   :  { %v5709_v37 = vadd.f32 %v5657_v54, %v5430_v56  ;;  %v5711_v58 = vadd.f32 %v5698_v46, %v5432_v20 }
 0x561   :  { %v5659_v63 = vpop.f32.mrf.mxu0  ;;  %v5700_v40 = vpop.f32.mrf.mxu1 }
 0x562   :  { %v5710_v6 = vadd.f32 %v5659_v63, %v5431_v41  ;;  %v5712_v44 = vadd.f32 %v5700_v40, %v5433_v26 }
 0x563   :  { %v5661_v62 = vpop.f32.mrf.mxu0  ;;  %v5702_v39 = vpop.f32.mrf.mxu1 }
 0x565   :  { %v5662_v53 = vpop.f32.mrf.mxu0  ;;  %v5703_v59 = vpop.f32.mrf.mxu1 }
 0x567   :  { %v5825_v55 = vpop.f32.mrf.mxu0  ;;  %v5866_v1 = vpop.f32.mrf.mxu1 }
 0x568   :  { %v5955_v45 = vadd.f32 %v5825_v55, %v5705_v32  ;;  %v5957_v13 = vadd.f32 %v5866_v1, %v5707_v43 }
 0x569   :  { %v5827_v34 = vpop.f32.mrf.mxu0  ;;  %v5868_v15 = vpop.f32.mrf.mxu1 }
 0x56a   :  { %v5956_v27 = vadd.f32 %v5827_v34, %v5706_v38  ;;  %v5958_v12 = vadd.f32 %v5868_v15, %v5708_v0 }
 0x56b   :  { %v5829_v35 = vpop.f32.mrf.mxu0  ;;  %v5870_v25 = vpop.f32.mrf.mxu1 }
 0x56d   :  { %v5830_v56 = vpop.f32.mrf.mxu0  ;;  %v5871_v20 = vpop.f32.mrf.mxu1 }
 0x56f   :  { %v5907_v9 = vpop.f32.mrf.mxu0  ;;  %v5948_v57 = vpop.f32.mrf.mxu1 }
 0x570   :  { %v5959_v41 = vadd.f32 %v5907_v9, %v5709_v37  ;;  %v5961_v26 = vadd.f32 %v5948_v57, %v5711_v58 }
 0x571   :  { %v5909_v4 = vpop.f32.mrf.mxu0  ;;  %v5950_v30 = vpop.f32.mrf.mxu1 }
 0x572   :  { %v5960_v11 = vadd.f32 %v5909_v4, %v5710_v6  ;;  %v5962_v36 = vadd.f32 %v5950_v30, %v5712_v44 }
 0x573   :  { %v5911_v54 = vpop.f32.mrf.mxu0  ;;  %v5952_v46 = vpop.f32.mrf.mxu1 }
 0x575   :  { %v5912_v32 = vpop.f32.mrf.mxu0  ;;  %v5953_v43 = vpop.f32.mrf.mxu1 }
 0x578   :  { %v6104_v63 = vpop.f32.mrf.mxu0 }
 0x579   :  { %v14648_v40 = vadd.f32 %v6104_v63, %v5955_v45 }
 0x57a   :  { %v6106_v38 = vpop.f32.mrf.mxu0 }
 0x57b   :  { %15831 = vst [vmem:[#allocation30_spill] sm:$0xff] %v14648_v40  ;;  %v14650_v0 = vadd.f32 %v6106_v38, %v5956_v27 }
 0x57c   :  { %v6108_v62 = vpop.f32.mrf.mxu0  ;;  %v6145_v39 = vpop.f32.mrf.mxu1 }
 0x57d   :  { %15832 = vst [vmem:[#allocation31_spill] sm:$0xff] %v14650_v0  ;;  %v14652_v53 = vadd.f32 %v6145_v39, %v5957_v13 }
 0x57e   :  { %v6109_v37 = vpop.f32.mrf.mxu0  ;;  %v6147_v58 = vpop.f32.mrf.mxu1 }
 0x57f   :  { %15833 = vst [vmem:[#allocation32_spill] sm:$0xff] %v14652_v53  ;;  %v14654_v59 = vadd.f32 %v6147_v58, %v5958_v12 }
 0x580   :  { %v6149_v6 = vpop.f32.mrf.mxu1  ;;  %v6186_v44 = vpop.f32.mrf.mxu0 }
 0x581   :  { %15834 = vst [vmem:[#allocation33_spill] sm:$0xff] %v14654_v59  ;;  %v14656_v55 = vadd.f32 %v6186_v44, %v5959_v41 }
 0x582   :  { %v6150_v1 = vpop.f32.mrf.mxu1  ;;  %v6188_v34 = vpop.f32.mrf.mxu0 }
 0x583   :  { %15835 = vst [vmem:[#allocation34_spill] sm:$0xff] %v14656_v55  ;;  %v14658_v15 = vadd.f32 %v6188_v34, %v5960_v11 }
 0x584   :  { %v6190_v45 = vpop.f32.mrf.mxu0  ;;  %v6227_v35 = vpop.f32.mrf.mxu1 }
 0x585   :  { %15836 = vst [vmem:[#allocation35_spill] sm:$0xff] %v14658_v15  ;;  %v14660_v27 = vadd.f32 %v6227_v35, %v5961_v26 }
 0x586   :  { %v6191_v25 = vpop.f32.mrf.mxu0  ;;  %v6229_v56 = vpop.f32.mrf.mxu1 }
 0x587   :  { %15837 = vst [vmem:[#allocation36_spill] sm:$0xff] %v14660_v27  ;;  %v14662_v13 = vadd.f32 %v6229_v56, %v5962_v36 }
 0x588   :  { %v6231_v20 = vpop.f32.mrf.mxu1 }
 0x589   :  { %15838 = vst [vmem:[#allocation37_spill] sm:$0xff] %v14662_v13 }
 0x58a   :  { %v6232_v9 = vpop.f32.mrf.mxu1 }
 0x5c0   :  { %v7093_v12 = vpop.f32.mrf.mxu0 }
 0x5c2   :  { %v7095_v57 = vpop.f32.mrf.mxu0 }
 0x5c3   :  { %v12576_v4 = vpack.c.bf16 %v7095_v57, %v7093_v12 }
 0x5c4   :  { %v7097_v30 = vpop.f32.mrf.mxu0  ;;  %v7134_v41 = vpop.f32.mrf.mxu1 }
 0x5c5   :  { %v7247_v11 = vrot.slane %v12576_v4, %v13081_v61 }
 0x5c6   :  { %v7098_v54 = vpop.f32.mrf.mxu0  ;;  %v7136_v46 = vpop.f32.mrf.mxu1 }
 0x5c7   :  { %v12577_v32 = vpack.c.bf16 %v7136_v46, %v7134_v41 }
 0x5c8   :  { %v7138_v43 = vpop.f32.mrf.mxu1 }
 0x5c9   :  { %v14666_v26 = vrot.slane %v12577_v32, %v13081_v61 }
 0x5ca   :  { %v7139_v63 = vpop.f32.mrf.mxu1 }
 0x5cb   :  { %v14669_v36 = vcombine.low %v7247_v11, %v14666_v26 }
 0x5cd   :  { %7275 = vst [vmem:[#allocation2 + $0x2] sm:$0xff] %v14669_v36 }
 0x5d4   :  { %v14672_v38 = vld [vmem:[#allocation2] sm:$0xff] }
 0x5d5   :  { %v7295_v62 = vrot.slane %v14672_v38, %v13081_v61  ;;  %v7288_v39 = vcombine.high %v14672_v38, %v14672_v38  ;;  %v7280_v37 = vmul.bf16 %v14672_v38, %v13288_v31 }
 0x5d7   :  { %7329 = vrot.lane.b32.xlu1 %v7295_v62, %s12933_s9  ;;  %v7303_v58 = vcombine.high %v7295_v62, %v7295_v62  ;;  %v7302_v6 = vrot.slane %v7288_v39, %v13081_v61  ;;  %v7556_v44 = vrot.slane %v7280_v37, %v13081_v61  ;;  %v7549_v43 = vcombine.high %v7280_v37, %v7280_v37 }
 0x5d9   :  { %7331 = vrot.lane.b32.xlu0 %v7303_v58, %s12933_s9  ;;  %v7304_v1 = vcombine.high %v7302_v6, %v7302_v6  ;;  %v7563_v58 = vrot.slane %v7549_v43, %v13081_v61  ;;  %v7564_v37 = vcombine.high %v7556_v44, %v7556_v44 }
 0x5db   :  { %7333 = vrot.lane.b32.xlu1 %v7302_v6, %s12933_s9 }
 0x5dd   :  { %7590 = vrot.lane.b32.xlu0 %v7556_v44, %s12941_s17 }
 0x5e1   :  { %7335 = vrot.lane.b32.xlu0 %v7304_v1, %s12933_s9 }
 0x600   :  { %v7175_v34 = vpop.f32.mrf.mxu0 }
 0x602   :  { %v7177_v45 = vpop.f32.mrf.mxu0 }
 0x603   :  { %v12578_v56 = vpack.c.bf16 %v7177_v45, %v7175_v34  ;;  %v7565_v45 = vcombine.high %v7563_v58, %v7563_v58 }
 0x604   :  { %v7179_v35 = vpop.f32.mrf.mxu0  ;;  %v7216_v25 = vpop.f32.mrf.mxu1 }
 0x605   :  { %v7264_v57 = vrot.slane %v12578_v56, %v13081_v61  ;;  %v7810_v35 = vmul.bf16 %v14672_v38, %v13335_v23 }
 0x606   :  { %v7180_v31 = vpop.f32.mrf.mxu0  ;;  %v7218_v20 = vpop.f32.mrf.mxu1 }
 0x607   :  { %v12579_v9 = vpack.c.bf16 %v7218_v20, %v7216_v25  ;;  %v7824_v44 = vrot.slane %v7810_v35, %v13081_v61  ;;  %v7817_v31 = vcombine.high %v7810_v35, %v7810_v35 }
 0x608   :  { %v7220_v12 = vpop.f32.mrf.mxu1 }
 0x609   :  { %v14689_v4 = vrot.slane %v12579_v9, %v13081_v61  ;;  %v7832_v23 = vcombine.high %v7824_v44, %v7824_v44  ;;  %v7831_v9 = vrot.slane %v7817_v31, %v13081_v61 }
 0x60a   :  { %v7221_v30 = vpop.f32.mrf.mxu1 }
 0x60b   :  { %v14692_v41 = vcombine.low %v7264_v57, %v14689_v4  ;;  %v7833_v57 = vcombine.high %v7831_v9, %v7831_v9 }
 0x60d   :  { %7276 = vst [vmem:[#allocation2 + $0xa] sm:$0xff] %v14692_v41 }
 0x614   :  { %v7278_v54 = vld [vmem:[#allocation2 + $0x8] sm:$0xff]  ;;  %v7279_v11 = vld [vmem:[#allocation2 + $0x10] sm:$0x3] }
 0x615   :  { %v7312_v46 = vrot.slane %v7278_v54, %v13081_v61  ;;  %v7328_v63 = vrot.slane %v7279_v11, %v13081_v61  ;;  %v7305_v62 = vcombine.high %v7278_v54, %v7278_v54  ;;  %v7281_v39 = vmul.bf16 %v7278_v54, %v13329_v51 }
 0x616   :  { %v7282_v34 = vmul.bf16 %v7279_v11, %v13315_v22  ;;  %v7811_v12 = vmul.bf16 %v7278_v54, %v13359_v42  ;;  %v7809_v42 = vld [vmem:[#allocation2 + $0x10] sm:$0x3] }
 0x617   :  { %7337 = vrot.lane.b32.xlu1 %v7312_v46, %s12933_s9  ;;  %v7320_v32 = vcombine.high %v7312_v46, %v7312_v46  ;;  %v7319_v6 = vrot.slane %v7305_v62, %v13081_v61  ;;  %v7573_v1 = vrot.slane %v7281_v39, %v13081_v61  ;;  %v7566_v56 = vcombine.high %v7281_v39, %v7281_v39 }
 0x618   :  { %v7589_v25 = vrot.slane %v7282_v34, %v13081_v61  ;;  %v7841_v30 = vrot.slane %v7811_v12, %v13081_v61  ;;  %v7834_v43 = vcombine.high %v7811_v12, %v7811_v12  ;;  %v14764_v12 = vld [vmem:[%s15772_s2 + $0x4] sm:$0xf] }
 0x619   :  { %7339 = vrot.lane.b32.xlu0 %v7320_v32, %s12933_s9  ;;  %v7321_v51 = vcombine.high %v7319_v6, %v7319_v6  ;;  %v7580_v22 = vrot.slane %v7566_v56, %v13081_v61  ;;  %v7581_v20 = vcombine.high %v7573_v1, %v7573_v1  ;;  %v8086_v32 = vmul.bf16 %v14672_v38, %v13369_v7 }
 0x61a   :  { %v7849_v11 = vcombine.high %v7841_v30, %v7841_v30  ;;  %v7848_v39 = vrot.slane %v7834_v43, %v13081_v61 }
 0x61b   :  { %7345 = vrot.lane.b32.xlu1 %v7328_v63, %s12933_s9  ;;  %v7582_v46 = vcombine.high %v7580_v22, %v7580_v22  ;;  %v8100_v63 = vrot.slane %v8086_v32, %v13081_v61  ;;  %v8093_v62 = vcombine.high %v8086_v32, %v8086_v32 }
 0x61c   :  { %v7850_v38 = vcombine.high %v7848_v39, %v7848_v39 }
 0x61d   :  { %7594 = vrot.lane.b32.xlu0 %v7563_v58, %s12941_s17  ;;  %v7812_v58 = vmul.bf16 %v7809_v42, %v13347_v33 }
 0x61f   :  { %7341 = vrot.lane.b32.xlu1 %v7319_v6, %s12933_s9  ;;  %v8107_v6 = vrot.slane %v8093_v62, %v13081_v61  ;;  %v7857_v7 = vrot.slane %v7812_v58, %v13081_v61  ;;  %v8599_v62 = vld [vmem:[#allocation2 + $0x12] sm:$0x3] }
 0x621   :  { %7598 = vrot.lane.b32.xlu0 %v7573_v1, %s12941_s17  ;;  %v8087_v1 = vmul.bf16 %v7278_v54, %v13390_v28  ;;  %v8109_v35 = vcombine.high %v8107_v6, %v8107_v6  ;;  %v8600_v54 = vmul.bf16 %v14669_v36, %v13403_v49 }
 0x623   :  { %7592 = vrot.lane.b32.xlu1 %v7564_v37, %s12941_s17  ;;  %v8108_v37 = vcombine.high %v8100_v63, %v8100_v63  ;;  %v8117_v33 = vrot.slane %v8087_v1, %v13081_v61  ;;  %v8110_v34 = vcombine.high %v8087_v1, %v8087_v1  ;;  %v8614_v49 = vrot.slane %v8600_v54, %v13081_v61 }
 0x625   :  { %7343 = vrot.lane.b32.xlu0 %v7321_v51, %s12933_s9  ;;  %v8085_v51 = vld [vmem:[#allocation2 + $0x10] sm:$0x3]  ;;  %v8124_v56 = vrot.slane %v8110_v34, %v13081_v61  ;;  %v8125_v31 = vcombine.high %v8117_v33, %v8117_v33 }
 0x626   :  { %v8088_v28 = vmul.bf16 %v8085_v51, %v13376_v18 }
 0x627   :  { %7596 = vrot.lane.b32.xlu1 %v7565_v45, %s12941_s17 }
 0x628   :  { %v8133_v18 = vrot.slane %v8088_v28, %v13081_v61 }
 0x629   :  { %7606 = vrot.lane.b32.xlu0 %v7589_v25, %s12941_s17 }
 0x62b   :  { %7858 = vrot.lane.b32.xlu1 %v7824_v44, %s12942_s18 }
 0x62d   :  { %7602 = vrot.lane.b32.xlu0 %v7580_v22, %s12941_s17 }
 0x62f   :  { %7600 = vrot.lane.b32.xlu1 %v7581_v20, %s12941_s17 }
 0x631   :  { %7860 = vrot.lane.b32.xlu0 %v7832_v23, %s12942_s18 }
 0x633   :  { %7862 = vrot.lane.b32.xlu1 %v7831_v9, %s12942_s18  ;;  %v8607_v9 = vcombine.high %v8600_v54, %v8600_v54 }
 0x635   :  { %7864 = vrot.lane.b32.xlu0 %v7833_v57, %s12942_s18  ;;  %v8126_v57 = vcombine.high %v8124_v56, %v8124_v56 }
 0x637   :  { %7604 = vrot.lane.b32.xlu1 %v7582_v46, %s12941_s17  ;;  %v8621_v46 = vrot.slane %v8607_v9, %v13081_v61  ;;  %v12900_v9 = vcombine.low %v14689_v4, %v14689_v4 }
 0x639   :  { %7868 = vrot.lane.b32.xlu0 %v7849_v11, %s12942_s18  ;;  %v8601_v11 = vmul.bf16 %v14692_v41, %v13428_v8  ;;  %v8623_v32 = vcombine.high %v8621_v46, %v8621_v46  ;;  %v8876_v8 = vmul.bf16 %v14669_v36, %v13477_v60  ;;  %v15839_v60 = vld [vmem:[#allocation8_spill] sm:$0xff] }
 0x63a   :  { %v8877_v1 = vmul.bf16 %v14692_v41, %v15839_v60  ;;  %v15842_v60 = vld [vmem:[#allocation11_spill] sm:$0xff] }
 0x63b   :  { %7866 = vrot.lane.b32.xlu1 %v7841_v30, %s12942_s18  ;;  %v8622_v30 = vcombine.high %v8614_v49, %v8614_v49  ;;  %v8631_v43 = vrot.slane %v8601_v11, %v13081_v61  ;;  %v8883_v58 = vcombine.high %v8876_v8, %v8876_v8 }
 0x63c   :  { %v8900_v51 = vcombine.high %v8877_v1, %v8877_v1 }
 0x63d   :  { %8134 = vrot.lane.b32.xlu0 %v8100_v63, %s12939_s16  ;;  %v8639_v42 = vcombine.high %v8631_v43, %v8631_v43  ;;  %v8624_v63 = vcombine.high %v8601_v11, %v8601_v11  ;;  %v14842_v11 = vrot.slane %v12900_v9, %v13081_v61 }
 0x63e   :  { %v8914_v28 = vrot.slane %v8900_v51, %v13081_v61  ;;  %v9424_v51 = vld [vmem:[#allocation2 + $0x12] sm:$0x3] }
 0x63f   :  { %7870 = vrot.lane.b32.xlu1 %v7848_v39, %s12942_s18  ;;  %v8890_v39 = vrot.slane %v8876_v8, %v13081_v61  ;;  %v14850_v4 = vcombine.high %v14842_v11, %v14842_v11 }
 0x641   :  { %8138 = vrot.lane.b32.xlu0 %v8107_v6, %s12939_s16  ;;  %v8602_v6 = vmul.bf16 %v8599_v62, %v13405_v52  ;;  %v8898_v52 = vcombine.high %v8890_v39, %v8890_v39 }
 0x643   :  { %7874 = vrot.lane.b32.xlu1 %v7857_v7, %s12942_s18  ;;  %v8638_v7 = vrot.slane %v8624_v63, %v13081_v61 }
 0x645   :  { %7872 = vrot.lane.b32.xlu0 %v7850_v38, %s12942_s18  ;;  %v8897_v38 = vrot.slane %v8883_v58, %v13081_v61  ;;  %v8640_v34 = vcombine.high %v8638_v7, %v8638_v7 }
 0x647   :  { %8136 = vrot.lane.b32.xlu1 %v8108_v37, %s12939_s16  ;;  %v8647_v37 = vrot.slane %v8602_v6, %v13081_v61 }
 0x649   :  { %v7330_v45 = vpop.permute.xlu1 %7329  ;;  %8142 = vrot.lane.b32.xlu0 %v8117_v33, %s12939_s16  ;;  %v8907_v33 = vrot.slane %v8877_v1, %v13081_v61  ;;  %v9426_v1 = vmul.bf16 %v14692_v41, %v15842_v60  ;;  %v7283_v60 = vld [vmem:[%s15772_s2] sm:$0xf] }
 0x64b   :  { %v7332_v25 = vpop.permute.xlu0 %7331  ;;  %8140 = vrot.lane.b32.xlu1 %v8109_v35, %s12939_s16  ;;  %v8899_v35 = vcombine.high %v8897_v38, %v8897_v38  ;;  %v8915_v54 = vcombine.high %v8907_v33, %v8907_v33 }
 0x64c   :  { %v7347_v44 = vsel %vm1282_vm7, %v7330_v45, %v7332_v25  ;;  %v8875_v45 = vld [vmem:[#allocation2 + $0x12] sm:$0x3] }
 0x64d   :  { %v14751_v22 = vpop.permute.xlu1 %7333  ;;  %8146 = vrot.lane.b32.xlu0 %v8124_v56, %s12939_s16  ;;  %v7359_v23 = vsel %vm1208_vm3, %v7347_v44, 0 }
 0x64e   :  { %v7348_v20 = vsel %vm1282_vm7, %v7332_v25, %v14751_v22  ;;  %v15840_v25 = vld [vmem:[#allocation7_spill] sm:$0xff] }
 0x64f   :  { %12581 = vmatprep.subr.msk.bf16.mxu0 %vm1208_vm3, %v7348_v20  ;;  %8144 = vrot.lane.b32.xlu1 %v8125_v31, %s12939_s16  ;;  %v8878_v56 = vmul.bf16 %v8875_v45, %v15840_v25  ;;  %v14806_v31 = vrot.slane %v14669_v36, %v13081_v61  ;;  %v12899_v20 = vcombine.low %v14666_v26, %v14666_v26 }
 0x650   :  { %7397 = vmatpush1.bf16.msra.mxu0 %v7359_v23 }
 0x651   :  { %8150 = vrot.lane.b32.xlu0 %v8133_v18, %s12939_s16  ;;  %v8923_v44 = vrot.slane %v8878_v56, %v13081_v61  ;;  %v14815_v23 = vcombine.high %v14806_v31, %v14806_v31  ;;  %v14818_v18 = vrot.slane %v12899_v20, %v13081_v61  ;;  %v15843_v56 = vld [vmem:[#allocation10_spill] sm:$0xff] }
 0x653   :  { %8148 = vrot.lane.b32.xlu1 %v8126_v57, %s12939_s16  ;;  %12582 = vmatmul.mubr.msk.bf16.vlgmr.msra.gmra.mxu0 %vm1291_vm8, %v14764_v12  ;;  %v14826_v26 = vcombine.high %v14818_v18, %v14818_v18  ;;  %v8916_v57 = vcombine.high %v8914_v28, %v8914_v28 }
 0x654   :  { %7496 = vmatprep.mubr.bf16.mxu0 %v15811_v47 }
 0x655   :  { %8650 = vrot.lane.b32.xlu0 %v8622_v30, %s12938_s15  ;;  %v7591_v30 = vpop.permute.xlu0 %7590 }
 0x657   :  { %8648 = vrot.lane.b32.xlu1 %v8614_v49, %s12938_s15  ;;  %v14830_v49 = vrot.slane %v14692_v41, %v13081_v61 }
 0x659   :  { %8654 = vrot.lane.b32.xlu0 %v8623_v32, %s12938_s15  ;;  %v15841_v32 = vld [vmem:[#allocation9_spill] sm:$0xff] }
 0x65b   :  { %8652 = vrot.lane.b32.xlu1 %v8621_v46, %s12938_s15  ;;  %v14839_v46 = vcombine.high %v14830_v49, %v14830_v49 }
 0x65d   :  { %8658 = vrot.lane.b32.xlu0 %v8639_v42, %s12938_s15  ;;  %v7336_v42 = vpop.permute.xlu0 %7335 }
 0x65e   :  { %v7349_v62 = vsel %vm1282_vm7, %v14751_v22, %v7336_v42 }
 0x65f   :  { %8656 = vrot.lane.b32.xlu1 %v8631_v43, %s12938_s15  ;;  %v9425_v43 = vmul.bf16 %v14669_v36, %v15841_v32 }
 0x661   :  { %8924 = vrot.lane.b32.xlu0 %v8890_v39, %s12936_s13  ;;  %v9439_v8 = vrot.slane %v9425_v43, %v13081_v61  ;;  %v9432_v63 = vcombine.high %v9425_v43, %v9425_v43  ;;  %v12643_v39 = vld.sshfl [vmem:[#allocation2 + $0x12] sm:$0x3 pattern:$0x76325410] }
 0x663   :  { %8660 = vrot.lane.b32.xlu1 %v8638_v7, %s12938_s15  ;;  %v7365_v7 = vsel %vm1208_vm3, %v7349_v62, 0 }
 0x665   :  { %8928 = vrot.lane.b32.xlu0 %v8897_v38, %s12936_s13  ;;  %v9446_v38 = vrot.slane %v9432_v63, %v13081_v61 }
 0x667   :  { %8664 = vrot.lane.b32.xlu1 %v8647_v37, %s12938_s15  ;;  %v9447_v37 = vcombine.high %v9439_v8, %v9439_v8 }
 0x669   :  { %8932 = vrot.lane.b32.xlu0 %v8907_v33, %s12936_s13 }
 0x66b   :  { %8926 = vrot.lane.b32.xlu1 %v8898_v52, %s12936_s13  ;;  %v9456_v52 = vrot.slane %v9426_v1, %v13081_v61 }
 0x66d   :  { %8662 = vrot.lane.b32.xlu0 %v8640_v34, %s12938_s15  ;;  %v9449_v34 = vcombine.high %v9426_v1, %v9426_v1  ;;  %v9464_v43 = vcombine.high %v9456_v52, %v9456_v52 }
 0x66f   :  { %8930 = vrot.lane.b32.xlu1 %v8899_v35, %s12936_s13  ;;  %v9448_v35 = vcombine.high %v9446_v38, %v9446_v38  ;;  %v9463_v20 = vrot.slane %v9449_v34, %v13081_v61 }
 0x671   :  { %8936 = vrot.lane.b32.xlu0 %v8914_v28, %s12936_s13  ;;  %v9427_v28 = vmul.bf16 %v9424_v51, %v15843_v56 }
 0x673   :  { %8934 = vrot.lane.b32.xlu1 %v8915_v54, %s12936_s13  ;;  %v9472_v63 = vrot.slane %v9427_v28, %v13081_v61  ;;  %v9465_v61 = vcombine.high %v9463_v20, %v9463_v20 }
 0x675   :  { %8940 = vrot.lane.b32.xlu0 %v8923_v44, %s12936_s13 }
 0x677   :  { %9197 = vrot.lane.b32.xlu1 %v14806_v31, %s12943_s25 }
 0x679   :  { %9199 = vrot.lane.b32.xlu0 %v14815_v23, %s12943_s25 }
 0x67b   :  { %9201 = vrot.lane.b32.xlu1 %v14818_v18, %s12943_s25 }
 0x67d   :  { %9203 = vrot.lane.b32.xlu0 %v14826_v26, %s12943_s25 }
 0x67f   :  { %8938 = vrot.lane.b32.xlu1 %v8916_v57, %s12936_s13 }
 0x681   :  { %9207 = vrot.lane.b32.xlu0 %v14839_v46, %s12943_s25 }
 0x683   :  { %9205 = vrot.lane.b32.xlu1 %v14830_v49, %s12943_s25 }
 0x685   :  { %9211 = vrot.lane.b32.xlu0 %v14850_v4, %s12943_s25 }
 0x687   :  { %9209 = vrot.lane.b32.xlu1 %v14842_v11, %s12943_s25 }
 0x689   :  { %v7338_v58 = vpop.permute.xlu1 %7337  ;;  %9473 = vrot.lane.b32.xlu0 %v9439_v8, %s12937_s14 }
 0x68a   :  { %v7350_v6 = vsel %vm1282_vm7, %v7336_v42, %v7338_v58 }
 0x68b   :  { %12583 = vmatprep.subr.msk.bf16.mxu1 %vm1208_vm3, %v7350_v6  ;;  %v7340_v36 = vpop.permute.xlu0 %7339  ;;  %9213 = vrot.lane.b32.xlu1 %v12643_v39, %s12943_s25 }
 0x68c   :  { %7438 = vmatpush1.bf16.msra.mxu1 %v7365_v7  ;;  %v7351_v45 = vsel %vm1282_vm7, %v7338_v58, %v7340_v36  ;;  %v9712_v7 = vld [vmem:[%s15774_s4] sm:$0xff] }
 0x68d   :  { %v7346_v22 = vpop.permute.xlu1 %7345  ;;  %9477 = vrot.lane.b32.xlu0 %v9446_v38, %s12937_s14  ;;  %v7371_v44 = vsel %vm1208_vm3, %v7351_v45, 0 }
 0x68f   :  { %v7595_v33 = vpop.permute.xlu0 %7594  ;;  %9475 = vrot.lane.b32.xlu1 %v9447_v37, %s12937_s14  ;;  %12584 = vmatmul.mubr.msk.bf16.vlgmr.msra.gmra.mxu1 %vm1291_vm8, %v14764_v12  ;;  %v9698_v37 = vld [vmem:[%s15773_s3] sm:$0xff] }
 0x690   :  { %7537 = vmatprep.mubr.bf16.mxu1 %v15811_v47 }
 0x691   :  { %v7342_v41 = vpop.permute.xlu1 %7341  ;;  %9481 = vrot.lane.b32.xlu0 %v9456_v52, %s12937_s14 }
 0x692   :  { %v7352_v25 = vsel %vm1282_vm7, %v7340_v36, %v7342_v41 }
 0x693   :  { %12585 = vmatprep.subr.msk.bf16.mxu0 %vm1208_vm3, %v7352_v25  ;;  %v7599_v54 = vpop.permute.xlu0 %7598  ;;  %9479 = vrot.lane.b32.xlu1 %v9448_v35, %s12937_s14 }
 0x694   :  { %7479 = vmatpush1.bf16.msra.mxu0 %v7371_v44 }
 0x695   :  { %v7593_v9 = vpop.permute.xlu1 %7592  ;;  %9485 = vrot.lane.b32.xlu0 %v9463_v20, %s12937_s14 }
 0x696   :  { %v7608_v57 = vsel %vm1546_vm9, %v7591_v30, %v7593_v9  ;;  %v7609_v32 = vsel %vm1546_vm9, %v7593_v9, %v7595_v33 }
 0x697   :  { %12586 = vmatmul.mubr.msk.bf16.vlgmr.msra.gmra.mxu0 %vm1291_vm8, %v14764_v12  ;;  %12589 = vmatprep.subr.msk.bf16.mxu0 %vm1208_vm3, %v7609_v32  ;;  %v7344_v42 = vpop.permute.xlu0 %7343  ;;  %v7620_v8 = vsel %vm1208_vm3, %v7608_v57, 0  ;;  %v12597_v32 = vld [vmem:[%s15772_s2 + $0x8] sm:$0xf] }
 0x698   :  { %v7353_v62 = vsel %vm1282_vm7, %v7342_v41, %v7344_v42  ;;  %9483 = vrot.lane.b32.xlu1 %v9464_v43, %s12937_s14  ;;  %7658 = vmatpush1.bf16.msra.mxu0 %v7620_v8  ;;  %v7354_v30 = vsel %vm1282_vm7, %v7344_v42, %v7346_v22 }
 0x699   :  { %v7597_v39 = vpop.permute.xlu1 %7596  ;;  %12587 = vmatprep.subr.msk.bf16.mxu1 %vm1208_vm3, %v7354_v30  ;;  %9489 = vrot.lane.b32.xlu0 %v9472_v63, %s12937_s14  ;;  %v7377_v58 = vsel %vm1208_vm3, %v7353_v62, 0 }
 0x69a   :  { %v7610_v6 = vsel %vm1546_vm9, %v7595_v33, %v7597_v39  ;;  %7520 = vmatpush1.bf16.msra.mxu1 %v7377_v58  ;;  %v7611_v36 = vsel %vm1546_vm9, %v7597_v39, %v7599_v54  ;;  %7675 = vmatprep.mubr.bf16.mxu0 %v15811_v47 }
 0x69b   :  { %12591 = vmatprep.subr.msk.bf16.mxu1 %vm1208_vm3, %v7611_v36  ;;  %v7607_v38 = vpop.permute.xlu0 %7606  ;;  %v7626_v22 = vsel %vm1208_vm3, %v7610_v6, 0 }
 0x69c   :  { %9487 = vrot.lane.b32.xlu1 %v9465_v61, %s12937_s14 }
 0x69d   :  { %v7859_v1 = vpop.permute.xlu1 %7858  ;;  %12588 = vmatmul.mubr.msk.bf16.vlgmr.msra.gmra.mxu1 %vm1291_vm8, %v14764_v12  ;;  %9715 = vperm.xlu0 %12862, %v9712_v7  }
 0x69e   :  { %7699 = vmatpush1.bf16.msra.mxu1 %v7626_v22  ;;  %7716 = vmatprep.mubr.bf16.mxu1 %v15811_v47 }
 0x69f   :  { %12590 = vmatmul.mubr.msk.bf16.vlgmr.msra.gmra.mxu0 %vm1291_vm8, %v7283_v60  ;;  %v7603_v33 = vpop.permute.xlu0 %7602 }
 0x6a0   :  { %9701 = vperm.xlu1 %12863, %v9698_v37   ;;  %7757 = vmatprep.mubr.bf16.mxu0 %v15811_v47 }
 0x6a1   :  { %v7601_v52 = vpop.permute.xlu1 %7600 }
 0x6a2   :  { %v7612_v34 = vsel %vm1546_vm9, %v7599_v54, %v7601_v52  ;;  %v7613_v12 = vsel %vm1546_vm9, %v7601_v52, %v7603_v33 }
 0x6a3   :  { %12593 = vmatprep.subr.msk.bf16.mxu0 %vm1208_vm3, %v7613_v12  ;;  %v7861_v51 = vpop.permute.xlu0 %7860  ;;  %v7632_v45 = vsel %vm1208_vm3, %v7612_v34, 0  ;;  %v12606_v12 = vld [vmem:[%s15772_s2 + $0xc] sm:$0xf] }
 0x6a4   :  { %v7876_v41 = vsel %vm1871_vm10, %v7859_v1, %v7861_v51  ;;  %7740 = vmatpush1.bf16.msra.mxu0 %v7632_v45 }
 0x6a5   :  { %12592 = vmatmul.mubr.msk.bf16.vlgmr.msra.gmra.mxu1 %vm1291_vm8, %v7283_v60  ;;  %v7863_v35 = vpop.permute.xlu1 %7862  ;;  %v7888_v28 = vsel %vm1208_vm3, %v7876_v41, 0 }
 0x6a6   :  { %v7877_v25 = vsel %vm1871_vm10, %v7861_v51, %v7863_v35  ;;  %7798 = vmatprep.mubr.bf16.mxu1 %v15811_v47 }
 0x6a7   :  { %12594 = vmatmul.mubr.msk.bf16.vlgmr.msra.gmra.mxu0 %vm1291_vm8, %v7283_v60  ;;  %12598 = vmatprep.subr.msk.bf16.mxu0 %vm1208_vm3, %v7877_v25  ;;  %v7865_v56 = vpop.permute.xlu0 %7864 }
 0x6a8   :  { %7926 = vmatpush1.bf16.msra.mxu0 %v7888_v28  ;;  %7943 = vmatprep.mubr.bf16.mxu0 %v15811_v47  ;;  %v7878_v43 = vsel %vm1871_vm10, %v7863_v35, %v7865_v56 }
 0x6a9   :  { %v7605_v54 = vpop.permute.xlu1 %7604  ;;  %v7894_v30 = vsel %vm1208_vm3, %v7878_v43, 0 }
 0x6aa   :  { %v7614_v44 = vsel %vm1546_vm9, %v7603_v33, %v7605_v54  ;;  %v7615_v20 = vsel %vm1546_vm9, %v7605_v54, %v7607_v38 }
 0x6ab   :  { %v7869_v9 = vpop.permute.xlu0 %7868  ;;  %12595 = vmatprep.subr.msk.bf16.mxu1 %vm1208_vm3, %v7615_v20  ;;  %v7638_v57 = vsel %vm1208_vm3, %v7614_v44, 0 }
 0x6ac   :  { %7781 = vmatpush1.bf16.msra.mxu1 %v7638_v57 }
 0x6ad   :  { %v7867_v42 = vpop.permute.xlu1 %7866 }
 0x6ae   :  { %v7879_v8 = vsel %vm1871_vm10, %v7865_v56, %v7867_v42  ;;  %v7880_v62 = vsel %vm1871_vm10, %v7867_v42, %v7869_v9 }
 0x6af   :  { %12599 = vmatmul.mubr.msk.bf16.vlgmr.msra.gmra.mxu0 %vm1291_vm8, %v12597_v32  ;;  %v8135_v63 = vpop.permute.xlu0 %8134  ;;  %12596 = vmatmul.mubr.msk.bf16.vlgmr.msra.gmra.mxu1 %vm1291_vm8, %v7283_v60  ;;  %v7900_v36 = vsel %vm1208_vm3, %v7880_v62, 0 }
 0x6b0   :  { %12600 = vmatprep.subr.msk.bf16.mxu1 %vm1208_vm3, %v7879_v8  ;;  %7984 = vmatprep.mubr.bf16.mxu1 %v15811_v47  ;;  %v8402_v8 = vsel %vm1208_vm3, %v14806_v31, 0  ;;  %v12615_v31 = vld [vmem:[%s15772_s2 + $0x10] sm:$0xf] }
 0x6b1   :  { %7967 = vmatpush1.bf16.msra.mxu1 %v7894_v30  ;;  %v7871_v39 = vpop.permute.xlu1 %7870  ;;  %8025 = vmatprep.mubr.bf16.mxu0 %v15811_v47 }
 0x6b2   :  { %v7881_v58 = vsel %vm1871_vm10, %v7869_v9, %v7871_v39 }
 0x6b3   :  { %v8139_v6 = vpop.permute.xlu0 %8138  ;;  %12602 = vmatprep.subr.msk.bf16.mxu0 %vm1208_vm3, %v7881_v58 }
 0x6b4   :  { %8008 = vmatpush1.bf16.msra.mxu0 %v7900_v36 }
 0x6b5   :  { %v7875_v61 = vpop.permute.xlu1 %7874 }
 0x6b7   :  { %v7873_v7 = vpop.permute.xlu0 %7872  ;;  %12601 = vmatmul.mubr.msk.bf16.vlgmr.msra.gmra.mxu1 %vm1291_vm8, %v12597_v32  ;;  %12603 = vmatmul.mubr.msk.bf16.vlgmr.msra.gmra.mxu0 %vm1291_vm8, %v12597_v32 }
 0x6b8   :  { %v7882_v38 = vsel %vm1871_vm10, %v7871_v39, %v7873_v7  ;;  %v7883_v60 = vsel %vm1871_vm10, %v7873_v7, %v7875_v61  ;;  %8066 = vmatprep.mubr.bf16.mxu1 %v15811_v47  ;;  %8219 = vmatprep.mubr.bf16.mxu0 %v15811_v47 }
 0x6b9   :  { %12604 = vmatprep.subr.msk.bf16.mxu1 %vm1208_vm3, %v7883_v60  ;;  %v8137_v1 = vpop.permute.xlu1 %8136  ;;  %v7906_v22 = vsel %vm1208_vm3, %v7882_v38, 0 }
 0x6ba   :  { %v8152_v37 = vsel %vm2162_vm6, %v8135_v63, %v8137_v1  ;;  %8049 = vmatpush1.bf16.msra.mxu1 %v7906_v22  ;;  %v8153_v33 = vsel %vm2162_vm6, %v8137_v1, %v8139_v6 }
 0x6bb   :  { %v8143_v52 = vpop.permute.xlu0 %8142  ;;  %12607 = vmatprep.subr.msk.bf16.mxu0 %vm1208_vm3, %v8153_v33  ;;  %v8164_v34 = vsel %vm1208_vm3, %v8152_v37, 0 }
 0x6bc   :  { %8202 = vmatpush1.bf16.msra.mxu0 %v8164_v34 }
 0x6bd   :  { %v8141_v51 = vpop.permute.xlu1 %8140 }
 0x6be   :  { %v8154_v45 = vsel %vm2162_vm6, %v8139_v6, %v8141_v51  ;;  %v8155_v41 = vsel %vm2162_vm6, %v8141_v51, %v8143_v52 }
 0x6bf   :  { %v8147_v35 = vpop.permute.xlu0 %8146  ;;  %12605 = vmatmul.mubr.msk.bf16.vlgmr.msra.gmra.mxu1 %vm1291_vm8, %v12597_v32  ;;  %12608 = vmatmul.mubr.msk.bf16.vlgmr.msra.gmra.mxu0 %vm1291_vm8, %v12606_v12  ;;  %v8170_v25 = vsel %vm1208_vm3, %v8154_v45, 0 }
 0x6c0   :  { %12609 = vmatprep.subr.msk.bf16.mxu1 %vm1208_vm3, %v8155_v41  ;;  %8260 = vmatprep.mubr.bf16.mxu1 %v15811_v47 }
 0x6c1   :  { %8243 = vmatpush1.bf16.msra.mxu1 %v8170_v25  ;;  %v8145_v56 = vpop.permute.xlu1 %8144  ;;  %8301 = vmatprep.mubr.bf16.mxu0 %v15811_v47 }
 0x6c2   :  { %v8156_v28 = vsel %vm2162_vm6, %v8143_v52, %v8145_v56  ;;  %v8157_v54 = vsel %vm2162_vm6, %v8145_v56, %v8147_v35 }
 0x6c3   :  { %v8151_v44 = vpop.permute.xlu0 %8150  ;;  %12611 = vmatprep.subr.msk.bf16.mxu0 %vm1208_vm3, %v8157_v54  ;;  %v8176_v20 = vsel %vm1208_vm3, %v8156_v28, 0 }
 0x6c4   :  { %8284 = vmatpush1.bf16.msra.mxu0 %v8176_v20 }
 0x6c5   :  { %12616 = vmatprep.subr.msk.bf16.mxu0 %vm1208_vm3, %v14815_v23  ;;  %v8149_v9 = vpop.permute.xlu1 %8148 }
 0x6c6   :  { %v8158_v57 = vsel %vm2162_vm6, %v8147_v35, %v8149_v9  ;;  %v8159_v32 = vsel %vm2162_vm6, %v8149_v9, %v8151_v44 }
 0x6c7   :  { %v8651_v43 = vpop.permute.xlu0 %8650  ;;  %12610 = vmatmul.mubr.msk.bf16.vlgmr.msra.gmra.mxu1 %vm1291_vm8, %v12606_v12  ;;  %12612 = vmatmul.mubr.msk.bf16.vlgmr.msra.gmra.mxu0 %vm1291_vm8, %v12606_v12  ;;  %v8182_v42 = vsel %vm1208_vm3, %v8158_v57, 0 }
 0x6c8   :  { %12613 = vmatprep.subr.msk.bf16.mxu1 %vm1208_vm3, %v8159_v32  ;;  %8440 = vmatpush1.bf16.msra.mxu0 %v8402_v8 }
 0x6c9   :  { %8325 = vmatpush1.bf16.msra.mxu1 %v8182_v42  ;;  %12620 = vmatprep.subr.msk.bf16.mxu0 %vm1208_vm3, %v14839_v46  ;;  %v8649_v23 = vpop.permute.xlu1 %8648  ;;  %v8414_v46 = vsel %vm1208_vm3, %v14830_v49, 0 }
 0x6ca   :  { %12618 = vmatprep.subr.msk.bf16.mxu1 %vm1208_vm3, %v14826_v26  ;;  %8342 = vmatprep.mubr.bf16.mxu1 %v15811_v47  ;;  %v8408_v26 = vsel %vm1208_vm3, %v14818_v18, 0  ;;  %v8666_v36 = vsel %vm2088_vm5, %v8649_v23, %v8651_v43  ;;  %v12633_v23 = vld [vmem:[%s15772_s2 + $0x18] sm:$0xf] }
 0x6cb   :  { %v8655_v63 = vpop.permute.xlu0 %8654  ;;  %8457 = vmatprep.mubr.bf16.mxu0 %v15811_v47  ;;  %v8678_v49 = vsel %vm1208_vm3, %v8666_v36, 0 }
 0x6cd   :  { %v8653_v62 = vpop.permute.xlu1 %8652 }
 0x6ce   :  { %v8667_v30 = vsel %vm2088_vm5, %v8651_v43, %v8653_v62  ;;  %v8668_v22 = vsel %vm2088_vm5, %v8653_v62, %v8655_v63 }
 0x6cf   :  { %v8659_v39 = vpop.permute.xlu0 %8658  ;;  %12614 = vmatmul.mubr.msk.bf16.vlgmr.msra.gmra.mxu1 %vm1291_vm8, %v12606_v12  ;;  %12617 = vmatmul.mubr.msk.bf16.vlgmr.msra.gmra.mxu0 %vm1291_vm8, %v12615_v31  ;;  %v8684_v12 = vsel %vm1208_vm3, %v8668_v22, 0 }
 0x6d0   :  { %8481 = vmatpush1.bf16.msra.mxu1 %v8408_v26  ;;  %8522 = vmatpush1.bf16.msra.mxu0 %v8414_v46 }
 0x6d1   :  { %12622 = vmatprep.subr.msk.bf16.mxu1 %vm1208_vm3, %v14850_v4  ;;  %12625 = vmatprep.subr.msk.bf16.mxu0 %vm1208_vm3, %v8667_v30  ;;  %v8657_v58 = vpop.permute.xlu1 %8656  ;;  %v8420_v4 = vsel %vm1208_vm3, %v14842_v11, 0  ;;  %v12624_v11 = vld [vmem:[%s15772_s2 + $0x14] sm:$0xf] }
 0x6d2   :  { %8498 = vmatprep.mubr.bf16.mxu1 %v15811_v47  ;;  %8539 = vmatprep.mubr.bf16.mxu0 %v15811_v47  ;;  %v8669_v38 = vsel %vm2088_vm5, %v8655_v63, %v8657_v58  ;;  %v8670_v37 = vsel %vm2088_vm5, %v8657_v58, %v8659_v39 }
 0x6d3   :  { %v8925_v6 = vpop.permute.xlu0 %8924  ;;  %v8690_v51 = vsel %vm1208_vm3, %v8670_v37, 0 }
 0x6d5   :  { %v8661_v61 = vpop.permute.xlu1 %8660 }
 0x6d6   :  { %v8671_v18 = vsel %vm2088_vm5, %v8659_v39, %v8661_v61 }
 0x6d7   :  { %v8929_v7 = vpop.permute.xlu0 %8928  ;;  %12619 = vmatmul.mubr.msk.bf16.vlgmr.msra.gmra.mxu1 %vm1291_vm8, %v12615_v31  ;;  %12621 = vmatmul.mubr.msk.bf16.vlgmr.msra.gmra.mxu0 %vm1291_vm8, %v12615_v31 }
 0x6d8   :  { %8563 = vmatpush1.bf16.msra.mxu1 %v8420_v4  ;;  %8716 = vmatpush1.bf16.msra.mxu0 %v8678_v49 }
 0x6d9   :  { %12627 = vmatprep.subr.msk.bf16.mxu1 %vm1208_vm3, %v8669_v38  ;;  %12629 = vmatprep.subr.msk.bf16.mxu0 %vm1208_vm3, %v8671_v18  ;;  %v8665_v60 = vpop.permute.xlu1 %8664 }
 0x6da   :  { %8580 = vmatprep.mubr.bf16.mxu1 %v15811_v47  ;;  %8733 = vmatprep.mubr.bf16.mxu0 %v15811_v47 }
 0x6db   :  { %v8933_v1 = vpop.permute.xlu0 %8932 }
 0x6dd   :  { %v8927_v33 = vpop.permute.xlu1 %8926 }
 0x6de   :  { %v8943_v52 = vsel %vm1797_vm4, %v8927_v33, %v8929_v7  ;;  %v8942_v25 = vsel %vm1797_vm4, %v8925_v6, %v8927_v33 }
 0x6df   :  { %v8663_v34 = vpop.permute.xlu0 %8662  ;;  %12623 = vmatmul.mubr.msk.bf16.vlgmr.msra.gmra.mxu1 %vm1291_vm8, %v12615_v31  ;;  %12626 = vmatmul.mubr.msk.bf16.vlgmr.msra.gmra.mxu0 %vm1291_vm8, %v12624_v11  ;;  %v8954_v9 = vsel %vm1208_vm3, %v8942_v25, 0 }
 0x6e0   :  { %8757 = vmatpush1.bf16.msra.mxu1 %v8684_v12  ;;  %8798 = vmatpush1.bf16.msra.mxu0 %v8690_v51  ;;  %v8673_v45 = vsel %vm2088_vm5, %v8663_v34, %v8665_v60  ;;  %v8672_v56 = vsel %vm2088_vm5, %v8661_v61, %v8663_v34 }
 0x6e1   :  { %12634 = vmatprep.subr.msk.bf16.mxu0 %vm1208_vm3, %v8943_v52  ;;  %12631 = vmatprep.subr.msk.bf16.mxu1 %vm1208_vm3, %v8673_v45  ;;  %v8931_v41 = vpop.permute.xlu1 %8930  ;;  %v8696_v20 = vsel %vm1208_vm3, %v8672_v56, 0 }
 0x6e2   :  { %8774 = vmatprep.mubr.bf16.mxu1 %v15811_v47  ;;  %8815 = vmatprep.mubr.bf16.mxu0 %v15811_v47  ;;  %v8945_v57 = vsel %vm1797_vm4, %v8931_v41, %v8933_v1  ;;  %v8944_v42 = vsel %vm1797_vm4, %v8929_v7, %v8931_v41 }
 0x6e3   :  { %v8937_v35 = vpop.permute.xlu0 %8936  ;;  %v8960_v30 = vsel %vm1208_vm3, %v8944_v42, 0 }
 0x6e5   :  { %v8935_v28 = vpop.permute.xlu1 %8934 }
 0x6e6   :  { %v8947_v54 = vsel %vm1797_vm4, %v8935_v28, %v8937_v35  ;;  %v8946_v8 = vsel %vm1797_vm4, %v8933_v1, %v8935_v28 }
 0x6e7   :  { %v8941_v44 = vpop.permute.xlu0 %8940  ;;  %12628 = vmatmul.mubr.msk.bf16.vlgmr.msra.gmra.mxu1 %vm1291_vm8, %v12624_v11  ;;  %12630 = vmatmul.mubr.msk.bf16.vlgmr.msra.gmra.mxu0 %vm1291_vm8, %v12624_v11  ;;  %v8966_v39 = vsel %vm1208_vm3, %v8946_v8, 0  ;;  %v12652_v8 = vld [vmem:[%s15772_s2 + $0x20] sm:$0xf] }
 0x6e8   :  { %8839 = vmatpush1.bf16.msra.mxu1 %v8696_v20  ;;  %8992 = vmatpush1.bf16.msra.mxu0 %v8954_v9 }
 0x6e9   :  { %12636 = vmatprep.subr.msk.bf16.mxu1 %vm1208_vm3, %v8945_v57  ;;  %12638 = vmatprep.subr.msk.bf16.mxu0 %vm1208_vm3, %v8947_v54  ;;  %v9198_v32 = vpop.permute.xlu1 %9197 }
 0x6ea   :  { %8856 = vmatprep.mubr.bf16.mxu1 %v15811_v47  ;;  %9009 = vmatprep.mubr.bf16.mxu0 %v15811_v47 }
 0x6eb   :  { %v9200_v43 = vpop.permute.xlu0 %9199 }
 0x6ec   :  { %v9215_v6 = vsel %vm3254_vm11, %v9198_v32, %v9200_v43 }
 0x6ed   :  { %v9202_v63 = vpop.permute.xlu1 %9201  ;;  %v9227_v49 = vsel %vm1208_vm3, %v9215_v6, 0 }
 0x6ee   :  { %v9216_v31 = vsel %vm3254_vm11, %v9200_v43, %v9202_v63 }
 0x6ef   :  { %v9204_v62 = vpop.permute.xlu0 %9203  ;;  %12632 = vmatmul.mubr.msk.bf16.vlgmr.msra.gmra.mxu1 %vm1291_vm8, %v12624_v11  ;;  %12635 = vmatmul.mubr.msk.bf16.vlgmr.msra.gmra.mxu0 %vm1291_vm8, %v12633_v23  ;;  %v12642_v11 = vld [vmem:[%s15772_s2 + $0x1c] sm:$0xf] }
 0x6f0   :  { %9033 = vmatpush1.bf16.msra.mxu1 %v8960_v30  ;;  %9074 = vmatpush1.bf16.msra.mxu0 %v8966_v39  ;;  %v9217_v22 = vsel %vm3254_vm11, %v9202_v63, %v9204_v62 }
 0x6f1   :  { %12644 = vmatprep.subr.msk.bf16.mxu0 %vm1208_vm3, %v9216_v31  ;;  %v8939_v26 = vpop.permute.xlu1 %8938  ;;  %9050 = vmatprep.mubr.bf16.mxu1 %v15811_v47  ;;  %v9233_v34 = vsel %vm1208_vm3, %v9217_v22, 0 }
 0x6f2   :  { %v8949_v46 = vsel %vm1797_vm4, %v8939_v26, %v8941_v44  ;;  %9091 = vmatprep.mubr.bf16.mxu0 %v15811_v47  ;;  %v8948_v36 = vsel %vm1797_vm4, %v8937_v35, %v8939_v26 }
 0x6f3   :  { %v9208_v58 = vpop.permute.xlu0 %9207  ;;  %12640 = vmatprep.subr.msk.bf16.mxu1 %vm1208_vm3, %v8949_v46  ;;  %v8972_v7 = vsel %vm1208_vm3, %v8948_v36, 0 }
 0x6f5   :  { %v9206_v61 = vpop.permute.xlu1 %9205 }
 0x6f6   :  { %v9218_v18 = vsel %vm3254_vm11, %v9204_v62, %v9206_v61  ;;  %v9219_v37 = vsel %vm3254_vm11, %v9206_v61, %v9208_v58 }
 0x6f7   :  { %v9212_v4 = vpop.permute.xlu0 %9211  ;;  %12637 = vmatmul.mubr.msk.bf16.vlgmr.msra.gmra.mxu1 %vm1291_vm8, %v12633_v23  ;;  %12639 = vmatmul.mubr.msk.bf16.vlgmr.msra.gmra.mxu0 %vm1291_vm8, %v12633_v23  ;;  %v9239_v12 = vsel %vm1208_vm3, %v9219_v37, 0 }
 0x6f8   :  { %9115 = vmatpush1.bf16.msra.mxu1 %v8972_v7  ;;  %9265 = vmatpush1.bf16.msra.mxu0 %v9227_v49 }
 0x6f9   :  { %12646 = vmatprep.subr.msk.bf16.mxu1 %vm1208_vm3, %v9218_v18  ;;  %v9210_v38 = vpop.permute.xlu1 %9209  ;;  %9132 = vmatprep.mubr.bf16.mxu1 %v15811_v47 }
 0x6fa   :  { %v9220_v60 = vsel %vm3254_vm11, %v9208_v58, %v9210_v38  ;;  %9282 = vmatprep.mubr.bf16.mxu0 %v15811_v47  ;;  %v9221_v25 = vsel %vm3254_vm11, %v9210_v38, %v9212_v4 }
 0x6fb   :  { %v9474_v1 = vpop.permute.xlu0 %9473  ;;  %12648 = vmatprep.subr.msk.bf16.mxu0 %vm1208_vm3, %v9220_v60  ;;  %v9245_v44 = vsel %vm1208_vm3, %v9221_v25, 0 }
 0x6fd   :  { %v9214_v33 = vpop.permute.xlu1 %9213 }
 0x6fe   :  { %v9222_v52 = vsel %vm3254_vm11, %v9212_v4, %v9214_v33 }
 0x6ff   :  { %v9478_v51 = vpop.permute.xlu0 %9477  ;;  %12641 = vmatmul.mubr.msk.bf16.vlgmr.msra.gmra.mxu1 %vm1291_vm8, %v12633_v23  ;;  %12645 = vmatmul.mubr.msk.bf16.vlgmr.msra.gmra.mxu0 %vm1291_vm8, %v12642_v11 }
 0x700   :  { %9306 = vmatpush1.bf16.msra.mxu1 %v9233_v34  ;;  %9347 = vmatpush1.bf16.msra.mxu0 %v9239_v12 }
 0x701   :  { %12650 = vmatprep.subr.msk.bf16.mxu1 %vm1208_vm3, %v9222_v52  ;;  %v9476_v45 = vpop.permute.xlu1 %9475  ;;  %9323 = vmatprep.mubr.bf16.mxu1 %v15811_v47 }
 0x702   :  { %v9492_v41 = vsel %vm1206_vm2, %v9476_v45, %v9478_v51  ;;  %9364 = vmatprep.mubr.bf16.mxu0 %v15811_v47  ;;  %v9491_v56 = vsel %vm1206_vm2, %v9474_v1, %v9476_v45 }
 0x703   :  { %v9482_v35 = vpop.permute.xlu0 %9481  ;;  %12653 = vmatprep.subr.msk.bf16.mxu0 %vm1208_vm3, %v9492_v41  ;;  %v9503_v20 = vsel %vm1208_vm3, %v9491_v56, 0 }
 0x705   :  { %v9480_v28 = vpop.permute.xlu1 %9479 }
 0x706   :  { %v9494_v54 = vsel %vm1206_vm2, %v9480_v28, %v9482_v35  ;;  %v9493_v43 = vsel %vm1206_vm2, %v9478_v51, %v9480_v28 }
 0x707   :  { %12647 = vmatmul.mubr.msk.bf16.vlgmr.msra.gmra.mxu1 %vm1291_vm8, %v12642_v11  ;;  %12649 = vmatmul.mubr.msk.bf16.vlgmr.msra.gmra.mxu0 %vm1291_vm8, %v12642_v11  ;;  %v9486_v9 = vpop.permute.xlu0 %9485  ;;  %v9509_v31 = vsel %vm1208_vm3, %v9493_v43, 0 }
 0x708   :  { %9388 = vmatpush1.bf16.msra.mxu1 %v9245_v44  ;;  %9541 = vmatpush1.bf16.msra.mxu0 %v9503_v20 }
 0x709   :  { %12655 = vmatprep.subr.msk.bf16.mxu1 %vm1208_vm3, %v9494_v54  ;;  %9405 = vmatprep.mubr.bf16.mxu1 %v15811_v47 }
 0x70a   :  { %v9484_v57 = vpop.permute.xlu1 %9483  ;;  %9558 = vmatprep.mubr.bf16.mxu0 %v15811_v47 }
 0x70b   :  { %v9496_v32 = vsel %vm1206_vm2, %v9484_v57, %v9486_v9  ;;  %v9495_v42 = vsel %vm1206_vm2, %v9482_v35, %v9484_v57  ;;  %v9490_v23 = vpop.permute.xlu0 %9489 }
 0x70c   :  { %12657 = vmatprep.subr.msk.bf16.mxu0 %vm1208_vm3, %v9496_v32  ;;  %v9515_v62 = vsel %vm1208_vm3, %v9495_v42, 0 }
 0x70e   :  { %v9488_v63 = vpop.permute.xlu1 %9487 }
 0x70f   :  { %v9498_v30 = vsel %vm1206_vm2, %v9488_v63, %v9490_v23  ;;  %12651 = vmatmul.mubr.msk.bf16.vlgmr.msra.gmra.mxu1 %vm1291_vm8, %v12642_v11  ;;  %12654 = vmatmul.mubr.msk.bf16.vlgmr.msra.gmra.mxu0 %vm1291_vm8, %v12652_v8  ;;  %v9497_v26 = vsel %vm1206_vm2, %v9486_v9, %v9488_v63 }
 0x710   :  { %9582 = vmatpush1.bf16.msra.mxu1 %v9509_v31  ;;  %9623 = vmatpush1.bf16.msra.mxu0 %v9515_v62  ;;  %v9521_v58 = vsel %vm1208_vm3, %v9497_v26, 0 }
 0x711   :  { %12659 = vmatprep.subr.msk.bf16.mxu1 %vm1208_vm3, %v9498_v30  ;;  %9599 = vmatprep.mubr.bf16.mxu1 %v15811_v47 }
 0x712   :  { %9640 = vmatprep.mubr.bf16.mxu0 %v15811_v47 }
 0x713   :  { %v7416_v39 = vpop.f32.mrf.mxu0 }
 0x715   :  { %v7418_v46 = vpop.f32.mrf.mxu0 }
 0x717   :  { %12656 = vmatmul.mubr.msk.bf16.vlgmr.msra.gmra.mxu1 %vm1291_vm8, %v12652_v8  ;;  %12658 = vmatmul.mubr.msk.bf16.vlgmr.msra.gmra.mxu0 %vm1291_vm8, %v12652_v8  ;;  %v7420_v6 = vpop.f32.mrf.mxu0 }
 0x718   :  { %9664 = vmatpush1.bf16.msra.mxu1 %v9521_v58  ;;  %9681 = vmatprep.mubr.bf16.mxu1 %v15811_v47 }
 0x719   :  { %v7421_v36 = vpop.f32.mrf.mxu0  ;;  %9890 = vmatprep.mubr.bf16.mxu0 %v15811_v47 }
 0x71f   :  { %12660 = vmatmul.mubr.msk.bf16.vlgmr.msra.gmra.mxu1 %vm1291_vm8, %v12652_v8 }
 0x720   :  { %9931 = vmatprep.mubr.bf16.mxu1 %v15811_v47 }
 0x74f   :  { %v7457_v61 = vpop.f32.mrf.mxu1 }
 0x751   :  { %v7459_v18 = vpop.f32.mrf.mxu1 }
 0x753   :  { %v7461_v49 = vpop.f32.mrf.mxu1 }
 0x755   :  { %v7462_v7 = vpop.f32.mrf.mxu1 }
 0x757   :  { %v7498_v4 = vpop.f32.mrf.mxu0 }
 0x759   :  { %v7500_v38 = vpop.f32.mrf.mxu0 }
 0x75b   :  { %v7502_v60 = vpop.f32.mrf.mxu0 }
 0x75d   :  { %v7503_v1 = vpop.f32.mrf.mxu0  ;;  %v7539_v22 = vpop.f32.mrf.mxu1 }
 0x75f   :  { %v7541_v37 = vpop.f32.mrf.mxu1  ;;  %v7677_v11 = vpop.f32.mrf.mxu0 }
 0x760   :  { %v7678_v43 = vadd.f32 %v7677_v11, %v7416_v39 }
 0x761   :  { %v7543_v33 = vpop.f32.mrf.mxu1  ;;  %v7679_v52 = vpop.f32.mrf.mxu0 }
 0x762   :  { %v7680_v23 = vadd.f32 %v7679_v52, %v7418_v46 }
 0x763   :  { %v7544_v34 = vpop.f32.mrf.mxu1  ;;  %v7681_v12 = vpop.f32.mrf.mxu0 }
 0x765   :  { %v7682_v51 = vpop.f32.mrf.mxu0  ;;  %v7718_v45 = vpop.f32.mrf.mxu1 }
 0x766   :  { %v7719_v41 = vadd.f32 %v7718_v45, %v7457_v61 }
 0x767   :  { %v7720_v35 = vpop.f32.mrf.mxu1  ;;  %v7759_v25 = vpop.f32.mrf.mxu0 }
 0x768   :  { %v7721_v56 = vadd.f32 %v7720_v35, %v7459_v18  ;;  %v7760_v28 = vadd.f32 %v7759_v25, %v7498_v4 }
 0x769   :  { %v7722_v54 = vpop.f32.mrf.mxu1  ;;  %v7761_v44 = vpop.f32.mrf.mxu0 }
 0x76a   :  { %v7762_v20 = vadd.f32 %v7761_v44, %v7500_v38 }
 0x76b   :  { %v7723_v9 = vpop.f32.mrf.mxu1  ;;  %v7763_v57 = vpop.f32.mrf.mxu0 }
 0x76d   :  { %v7764_v32 = vpop.f32.mrf.mxu0 }
 0x76f   :  { %v7800_v42 = vpop.f32.mrf.mxu1  ;;  %v7945_v8 = vpop.f32.mrf.mxu0 }
 0x770   :  { %v7801_v63 = vadd.f32 %v7800_v42, %v7539_v22  ;;  %v8075_v31 = vadd.f32 %v7945_v8, %v7678_v43 }
 0x771   :  { %v7802_v62 = vpop.f32.mrf.mxu1  ;;  %v7947_v30 = vpop.f32.mrf.mxu0 }
 0x772   :  { %v7803_v26 = vadd.f32 %v7802_v62, %v7541_v37  ;;  %v8076_v58 = vadd.f32 %v7947_v30, %v7680_v23 }
 0x773   :  { %v7804_v6 = vpop.f32.mrf.mxu1  ;;  %v7949_v36 = vpop.f32.mrf.mxu0 }
 0x775   :  { %v7805_v61 = vpop.f32.mrf.mxu1  ;;  %v7950_v18 = vpop.f32.mrf.mxu0 }
 0x777   :  { %v7986_v49 = vpop.f32.mrf.mxu1  ;;  %v8027_v7 = vpop.f32.mrf.mxu0 }
 0x778   :  { %v8077_v4 = vadd.f32 %v7986_v49, %v7719_v41  ;;  %v8079_v38 = vadd.f32 %v8027_v7, %v7760_v28 }
 0x779   :  { %v7988_v60 = vpop.f32.mrf.mxu1  ;;  %v8029_v1 = vpop.f32.mrf.mxu0 }
 0x77a   :  { %v8078_v39 = vadd.f32 %v7988_v60, %v7721_v56  ;;  %v8080_v11 = vadd.f32 %v8029_v1, %v7762_v20 }
 0x77b   :  { %v7990_v33 = vpop.f32.mrf.mxu1  ;;  %v8031_v46 = vpop.f32.mrf.mxu0 }
 0x77d   :  { %v7991_v22 = vpop.f32.mrf.mxu1  ;;  %v8032_v52 = vpop.f32.mrf.mxu0 }
 0x77f   :  { %v8068_v34 = vpop.f32.mrf.mxu1  ;;  %v8221_v12 = vpop.f32.mrf.mxu0 }
 0x780   :  { %v8081_v37 = vadd.f32 %v8068_v34, %v7801_v63  ;;  %v15120_v51 = vadd.f32 %v8221_v12, %v8075_v31 }
 0x781   :  { %v8070_v45 = vpop.f32.mrf.mxu1  ;;  %v8223_v35 = vpop.f32.mrf.mxu0 }
 0x782   :  { %v8082_v25 = vadd.f32 %v8070_v45, %v7803_v26  ;;  %v15122_v54 = vadd.f32 %v8223_v35, %v8076_v58 }
 0x783   :  { %v8072_v41 = vpop.f32.mrf.mxu1  ;;  %v8225_v28 = vpop.f32.mrf.mxu0 }
 0x785   :  { %v8073_v44 = vpop.f32.mrf.mxu1  ;;  %v8226_v9 = vpop.f32.mrf.mxu0 }
 0x787   :  { %v8262_v56 = vpop.f32.mrf.mxu1  ;;  %v8303_v20 = vpop.f32.mrf.mxu0 }
 0x788   :  { %v15124_v57 = vadd.f32 %v8262_v56, %v8077_v4  ;;  %v15126_v32 = vadd.f32 %v8303_v20, %v8079_v38 }
 0x789   :  { %v8264_v43 = vpop.f32.mrf.mxu1  ;;  %v8305_v42 = vpop.f32.mrf.mxu0 }
 0x78a   :  { %v15128_v8 = vadd.f32 %v8264_v43, %v8078_v39  ;;  %v15130_v23 = vadd.f32 %v8305_v42, %v8080_v11 }
 0x78b   :  { %v8266_v63 = vpop.f32.mrf.mxu1  ;;  %v8307_v31 = vpop.f32.mrf.mxu0 }
 0x78d   :  { %v8267_v62 = vpop.f32.mrf.mxu1  ;;  %v8308_v30 = vpop.f32.mrf.mxu0 }
 0x78f   :  { %v8344_v26 = vpop.f32.mrf.mxu1  ;;  %v8459_v58 = vpop.f32.mrf.mxu0 }
 0x790   :  { %v15132_v6 = vadd.f32 %v8344_v26, %v8081_v37  ;;  %v8589_v15 = vadd.f32 %v8459_v58, %v15120_v51 }
 0x791   :  { %v8346_v36 = vpop.f32.mrf.mxu1  ;;  %v8461_v61 = vpop.f32.mrf.mxu0 }
 0x792   :  { %v15134_v18 = vadd.f32 %v8346_v36, %v8082_v25 }
 0x793   :  { %v8348_v49 = vpop.f32.mrf.mxu1  ;;  %v8463_v7 = vpop.f32.mrf.mxu0 }
 0x795   :  { %v8349_v4 = vpop.f32.mrf.mxu1  ;;  %v8464_v38 = vpop.f32.mrf.mxu0 }
 0x797   :  { %v15136_v60 = vpop.f32.mrf.mxu1  ;;  %v15138_v1 = vpop.f32.mrf.mxu0 }
 0x798   :  { %v8591_v51 = vadd.f32 %v15136_v60, %v15124_v57  ;;  %v8593_v58 = vadd.f32 %v15138_v1, %v15126_v32 }
 0x799   :  { %v15140_v39 = vpop.f32.mrf.mxu1  ;;  %v15142_v11 = vpop.f32.mrf.mxu0 }
 0x79a   :  { %v8594_v57 = vadd.f32 %v15142_v11, %v15130_v23 }
 0x79b   :  { %v8504_v33 = vpop.f32.mrf.mxu1  ;;  %v8545_v46 = vpop.f32.mrf.mxu0 }
 0x79d   :  { %v8505_v22 = vpop.f32.mrf.mxu1  ;;  %v8546_v52 = vpop.f32.mrf.mxu0 }
 0x79f   :  { %v15144_v34 = vpop.f32.mrf.mxu1  ;;  %v8735_v12 = vpop.f32.mrf.mxu0 }
 0x7a0   :  { %v8595_v23 = vadd.f32 %v15144_v34, %v15132_v6 }
 0x7a1   :  { %v15146_v37 = vpop.f32.mrf.mxu1  ;;  %v8737_v45 = vpop.f32.mrf.mxu0 }
 0x7a3   :  { %v8586_v35 = vpop.f32.mrf.mxu1  ;;  %v8739_v25 = vpop.f32.mrf.mxu0 }
 0x7a5   :  { %v8587_v41 = vpop.f32.mrf.mxu1  ;;  %v8740_v28 = vpop.f32.mrf.mxu0 }
 0x7a7   :  { %v8776_v44 = vpop.f32.mrf.mxu1  ;;  %v8817_v9 = vpop.f32.mrf.mxu0 }
 0x7a9   :  { %v8778_v56 = vpop.f32.mrf.mxu1  ;;  %v15148_v20 = vpop.f32.mrf.mxu0 }
 0x7ab   :  { %v8780_v43 = vpop.f32.mrf.mxu1  ;;  %v8821_v42 = vpop.f32.mrf.mxu0 }
 0x7ad   :  { %v8781_v63 = vpop.f32.mrf.mxu1  ;;  %v8822_v31 = vpop.f32.mrf.mxu0 }
 0x7af   :  { %v15150_v62 = vpop.f32.mrf.mxu1  ;;  %v9011_v30 = vpop.f32.mrf.mxu0 }
 0x7b1   :  { %v15152_v26 = vpop.f32.mrf.mxu1  ;;  %v9013_v36 = vpop.f32.mrf.mxu0 }
 0x7b3   :  { %v8862_v49 = vpop.f32.mrf.mxu1  ;;  %v9015_v7 = vpop.f32.mrf.mxu0 }
 0x7b5   :  { %v8863_v4 = vpop.f32.mrf.mxu1  ;;  %v9016_v38 = vpop.f32.mrf.mxu0 }
 0x7b7   :  { %v9052_v33 = vpop.f32.mrf.mxu1  ;;  %v9093_v46 = vpop.f32.mrf.mxu0 }
 0x7b9   :  { %v9054_v22 = vpop.f32.mrf.mxu1  ;;  %v9095_v52 = vpop.f32.mrf.mxu0 }
 0x7bb   :  { %v9056_v35 = vpop.f32.mrf.mxu1  ;;  %v9097_v25 = vpop.f32.mrf.mxu0 }
 0x7bc   :  { %v8590_v35 = vadd.f32 %v8461_v61, %v15122_v54  ;;  %v8865_v25 = vadd.f32 %v8735_v12, %v8589_v15  ;;  %v8592_v61 = vadd.f32 %v15140_v39, %v15128_v8  ;;  %v8870_v39 = vadd.f32 %v15148_v20, %v8594_v57 }
 0x7bd   :  { %v9057_v41 = vpop.f32.mrf.mxu1  ;;  %v9098_v28 = vpop.f32.mrf.mxu0 }
 0x7be   :  { %v8866_v53 = vadd.f32 %v8737_v45, %v8590_v35  ;;  %v9141_v0 = vadd.f32 %v9011_v30, %v8865_v25  ;;  %v8868_v60 = vadd.f32 %v8778_v56, %v8592_v61  ;;  %v9146_v11 = vadd.f32 %v9095_v52, %v8870_v39 }
 0x7bf   :  { %v15154_v43 = vpop.f32.mrf.mxu1  ;;  %v9284_v42 = vpop.f32.mrf.mxu0 }
 0x7c0   :  { %v9142_v21 = vadd.f32 %v9013_v36, %v8866_v53  ;;  %v8869_v53 = vadd.f32 %v8817_v9, %v8593_v58 }
 0x7c1   :  { %v15156_v63 = vpop.f32.mrf.mxu1  ;;  %v9286_v31 = vpop.f32.mrf.mxu0 }
 0x7c2   :  { %v9415_v54 = vadd.f32 %v9286_v31, %v9142_v21  ;;  %v9145_v1 = vadd.f32 %v9093_v46, %v8869_v53  ;;  %v9144_v31 = vadd.f32 %v9054_v22, %v8868_v60  ;;  %v8596_v22 = vadd.f32 %v15146_v37, %v15134_v18 }
 0x7c3   :  { %v9138_v13 = vpop.f32.mrf.mxu1  ;;  %v9288_v27 = vpop.f32.mrf.mxu0 }
 0x7c4   :  { %v9414_v13 = vadd.f32 %v9284_v42, %v9141_v0  ;;  %v8867_v0 = vadd.f32 %v8776_v44, %v8591_v51 }
 0x7c5   :  { %v9139_v49 = vpop.f32.mrf.mxu1  ;;  %v9289_v7 = vpop.f32.mrf.mxu0 }
 0x7c6   :  { %v15160_v7 = vpop.permute.xlu1 %9701  ;;  %v9143_v21 = vadd.f32 %v9052_v33, %v8867_v0 }
 0x7c7   :  { %v9325_v4 = vpop.f32.mrf.mxu1  ;;  %v9366_v38 = vpop.f32.mrf.mxu0 }
 0x7c8   :  { %v9416_v35 = vadd.f32 %v9325_v4, %v9143_v21  ;;  %v9418_v25 = vadd.f32 %v9366_v38, %v9145_v1  ;;  %v8871_v4 = vadd.f32 %v15150_v62, %v8595_v23 }
 0x7c9   :  { %v9327_v55 = vpop.f32.mrf.mxu1  ;;  %v9368_v59 = vpop.f32.mrf.mxu0 }
 0x7ca   :  { %v9417_v56 = vadd.f32 %v9327_v55, %v9144_v31  ;;  %v9419_v38 = vadd.f32 %v9368_v59, %v9146_v11  ;;  %v9147_v18 = vadd.f32 %v15154_v43, %v8871_v4 }
 0x7cb   :  { %v9329_v41 = vpop.f32.mrf.mxu1  ;;  %v9370_v28 = vpop.f32.mrf.mxu0 }
 0x7cd   :  { %v9330_v40 = vpop.f32.mrf.mxu1  ;;  %v9371_v47 = vpop.f32.mrf.mxu0 }
 0x7ce   :  { %v15168_v47 = vpop.permute.xlu0 %9715 }
 0x7cf   :  { %v9407_v27 = vpop.f32.mrf.mxu1  ;;  %v9560_v49 = vpop.f32.mrf.mxu0 }
 0x7d0   :  { %v9690_v15 = vadd.f32 %v9560_v49, %v9414_v13  ;;  %v9420_v57 = vadd.f32 %v9407_v27, %v9147_v18 }
 0x7d1   :  { %v9409_v12 = vpop.f32.mrf.mxu1  ;;  %v9562_v40 = vpop.f32.mrf.mxu0 }
 0x7d2   :  { %v9704_v45 = vmul.f32 %v15160_v7, %v9690_v15  ;;  %v9691_v30 = vadd.f32 %v9562_v40, %v9415_v54  ;;  %v8872_v40 = vadd.f32 %v15152_v26, %v8596_v22 }
 0x7d3   :  { %v9411_v36 = vpop.f32.mrf.mxu1  ;;  %v9564_v32 = vpop.f32.mrf.mxu0 }
 0x7d4   :  { %v9718_v42 = vadd.f32 %v15168_v47, %v9704_v45  ;;  %v9705_v8 = vmul.f32 %v15160_v7, %v9691_v30  ;;  %v9148_v30 = vadd.f32 %v15156_v63, %v8872_v40 }
 0x7d5   :  { %v9412_v44 = vpop.f32.mrf.mxu1  ;;  %v9565_v9 = vpop.f32.mrf.mxu0 }
 0x7d6   :  { %v9719_v41 = vadd.f32 %v15168_v47, %v9705_v8  ;;  %v15179_v28 = vmax.f32 %v9718_v42, 0.0  ;;  %v9421_v36 = vadd.f32 %v9409_v12, %v9148_v30 }
 0x7d7   :  { %v9601_v33 = vpop.f32.mrf.mxu1  ;;  %v9642_v46 = vpop.f32.mrf.mxu0 }
 0x7d8   :  { %v15181_v13 = vmax.f32 %v9719_v41, 0.0  ;;  %v9692_v49 = vadd.f32 %v9601_v33, %v9416_v35  ;;  %v9694_v20 = vadd.f32 %v9642_v46, %v9418_v25 }
 0x7d9   :  { %v9603_v51 = vpop.f32.mrf.mxu1  ;;  %v9644_v58 = vpop.f32.mrf.mxu0 }
 0x7da   :  { %v15188_v6 = vpack.c.bf16 %v15181_v13, %v15179_v28  ;;  %v9706_v55 = vmul.f32 %v15160_v7, %v9692_v49  ;;  %v9708_v34 = vmul.f32 %v15160_v7, %v9694_v20  ;;  %v9693_v52 = vadd.f32 %v9603_v51, %v9417_v56 }
 0x7db   :  { %v9695_v54 = vadd.f32 %v9644_v58, %v9419_v38  ;;  %v9605_v15 = vpop.f32.mrf.mxu1  ;;  %v9646_v61 = vpop.f32.mrf.mxu0 }
 0x7dc   :  { %9766 = vst [vmem:[#allocation3 + $0x4] sm:$0xff] %v15188_v6  ;;  %v9720_v59 = vadd.f32 %v15168_v47, %v9706_v55  ;;  %v9707_v37 = vmul.f32 %v15160_v7, %v9693_v52  ;;  %v9722_v62 = vadd.f32 %v15168_v47, %v9708_v34 }
 0x7dd   :  { %v9709_v0 = vmul.f32 %v15160_v7, %v9695_v54  ;;  %v9606_v53 = vpop.f32.mrf.mxu1  ;;  %v9647_v45 = vpop.f32.mrf.mxu0 }
 0x7de   :  { %v9721_v60 = vadd.f32 %v15168_v47, %v9707_v37  ;;  %v15202_v32 = vmax.f32 %v9720_v59, 0.0  ;;  %v15206_v42 = vmax.f32 %v9722_v62, 0.0 }
 0x7df   :  { %v9723_v26 = vadd.f32 %v15168_v47, %v9709_v0  ;;  %v9683_v43 = vpop.f32.mrf.mxu1 }
 0x7e0   :  { %v15204_v21 = vmax.f32 %v9721_v60, 0.0  ;;  %v9696_v1 = vadd.f32 %v9683_v43, %v9420_v57  ;;  %v15844_v43 = vld [vmem:[#allocation12_spill] sm:$0xff] }
 0x7e1   :  { %v15208_v8 = vmax.f32 %v9723_v26, 0.0  ;;  %v9685_v39 = vpop.f32.mrf.mxu1 }
 0x7e2   :  { %v15212_v63 = vpack.c.bf16 %v15204_v21, %v15202_v32  ;;  %v9710_v27 = vmul.f32 %v15160_v7, %v9696_v1  ;;  %v9697_v31 = vadd.f32 %v9685_v39, %v9421_v36 }
 0x7e3   :  { %v15217_v12 = vpack.c.bf16 %v15208_v8, %v15206_v42  ;;  %v9687_v44 = vpop.f32.mrf.mxu1  ;;  %v15219_v9 = vld [vmem:[#allocation3] sm:$0xff] }
 0x7e4   :  { %9767 = vst [vmem:[#allocation3 + $0xc] sm:$0xff] %v15212_v63  ;;  %v9724_v35 = vadd.f32 %v15168_v47, %v9710_v27  ;;  %v9711_v25 = vmul.f32 %v15160_v7, %v9697_v31  ;;  %v12667_v41 = vcombine.high %v15219_v9, %v15219_v9  ;;  %v12666_v23 = vcombine.low %v15219_v9, %v15219_v9 }
 0x7e5   :  { %9768 = vst [vmem:[#allocation3 + $0x14] sm:$0xff] %v15217_v12  ;;  %v9688_v11 = vpop.f32.mrf.mxu1  ;;  %v9775_v56 = vmul.bf16 %v15219_v9, %v13910_v10  ;;  %v10262_v37 = vmul.bf16 %v15219_v9, %v13969_v14  ;;  %v10516_v27 = vmul.bf16 %v15219_v9, %v14020_v24 }
 0x7e6   :  { %v9725_v33 = vadd.f32 %v15168_v47, %v9711_v25  ;;  %9807 = vrot.lane.b32.xlu0 %v12667_v41, %s12933_s9  ;;  %9805 = vrot.lane.b32.xlu1 %v12666_v23, %s12933_s9  ;;  %v15234_v46 = vmax.f32 %v9724_v35, 0.0  ;;  %v15845_v11 = vld [vmem:[#allocation14_spill] sm:$0xff] }
 0x7e7   :  { %v12684_v49 = vcombine.high %v9775_v56, %v9775_v56  ;;  %v12683_v20 = vcombine.low %v9775_v56, %v9775_v56  ;;  %v12702_v0 = vcombine.high %v10262_v37, %v10262_v37  ;;  %v12719_v31 = vcombine.low %v10516_v27, %v10516_v27 }
 0x7e8   :  { %v15236_v7 = vmax.f32 %v9725_v33, 0.0  ;;  %v12720_v24 = vcombine.high %v10516_v27, %v10516_v27 }
 0x7ea   :  { %v15240_v22 = vpack.c.bf16 %v15236_v7, %v15234_v46  ;;  %10047 = vrot.lane.b32.xlu1 %v12684_v49, %s12941_s17  ;;  %10045 = vrot.lane.b32.xlu0 %v12683_v20, %s12941_s17  ;;  %v15846_v49 = vld [vmem:[#allocation13_spill] sm:$0xff] }
 0x7eb   :  { %v9771_v10 = vld [vmem:[#allocation3 + $0x8] sm:$0xff] }
 0x7ec   :  { %9769 = vst [vmem:[#allocation3 + $0x1c] sm:$0xff] %v15240_v22  ;;  %v12669_v47 = vcombine.high %v9771_v10, %v9771_v10  ;;  %v12668_v4 = vcombine.low %v9771_v10, %v9771_v10  ;;  %v9772_v38 = vld [vmem:[#allocation3 + $0x10] sm:$0xff]  ;;  %v9776_v55 = vmul.bf16 %v9771_v10, %v13947_v19  ;;  %v10263_v60 = vmul.bf16 %v9771_v10, %v13979_v5 }
 0x7ed   :  { %v12671_v51 = vcombine.high %v9772_v38, %v9772_v38  ;;  %v12670_v58 = vcombine.low %v9772_v38, %v9772_v38  ;;  %v9777_v18 = vmul.bf16 %v9772_v38, %v13956_v17  ;;  %v12701_v17 = vcombine.low %v10262_v37, %v10262_v37  ;;  %v15851_v37 = vld [vmem:[#allocation20_spill] sm:$0xff] }
 0x7ee   :  { %9811 = vrot.lane.b32.xlu0 %v12669_v47, %s12933_s9  ;;  %9809 = vrot.lane.b32.xlu1 %v12668_v4, %s12933_s9  ;;  %v12685_v54 = vcombine.low %v9776_v55, %v9776_v55  ;;  %v12686_v19 = vcombine.high %v9776_v55, %v9776_v55  ;;  %v12704_v26 = vcombine.high %v10263_v60, %v10263_v60  ;;  %v15847_v47 = vld [vmem:[#allocation15_spill] sm:$0xff] }
 0x7ef   :  { %v12687_v59 = vcombine.low %v9777_v18, %v9777_v18  ;;  %v12688_v62 = vcombine.high %v9777_v18, %v9777_v18  ;;  %v10264_v36 = vmul.bf16 %v9772_v38, %v15844_v43  ;;  %v10517_v41 = vmul.bf16 %v9771_v10, %v14037_v48  ;;  %v15854_v43 = vld [vmem:[#allocation22_spill] sm:$0xff] }
 0x7f0   :  { %v10518_v9 = vmul.bf16 %v9772_v38, %v14047_v29  ;;  %v10999_v4 = vmul.bf16 %v15188_v6, %v15847_v47 }
 0x7f1   :  { %v12706_v1 = vcombine.high %v10264_v36, %v10264_v36 }
 0x7f2   :  { %9815 = vrot.lane.b32.xlu0 %v12671_v51, %s12933_s9  ;;  %9813 = vrot.lane.b32.xlu1 %v12670_v58, %s12933_s9  ;;  %v12723_v23 = vcombine.low %v10518_v9, %v10518_v9  ;;  %v12724_v48 = vcombine.high %v10518_v9, %v10518_v9  ;;  %v12754_v38 = vcombine.low %v10999_v4, %v10999_v4  ;;  %v15848_v58 = vld [vmem:[#allocation16_spill] sm:$0xff] }
 0x7f3   :  { %v9773_v34 = vld [vmem:[#allocation3 + $0x18] sm:$0xff]  ;;  %v9774_v15 = vld [vmem:[#allocation3 + $0x20] sm:$0xf]  ;;  %v12755_v51 = vcombine.high %v10999_v4, %v10999_v4  ;;  %v11000_v55 = vmul.bf16 %v15212_v63, %v15848_v58  ;;  %v12665_v4 = vld [vmem:[%s15775_s5 + $0x4] sm:$0xf] }
 0x7f4   :  { %v12672_v52 = vcombine.low %v9773_v34, %v9773_v34  ;;  %v12674_v61 = vcombine.low %v9774_v15, %v9774_v15  ;;  %v12673_v40 = vcombine.high %v9773_v34, %v9773_v34  ;;  %v9778_v53 = vmul.bf16 %v9773_v34, %v13991_v50 }
 0x7f5   :  { %v9779_v30 = vmul.bf16 %v9774_v15, %v13971_v2  ;;  %v12703_v50 = vcombine.low %v10263_v60, %v10263_v60  ;;  %v12705_v2 = vcombine.low %v10264_v36, %v10264_v36  ;;  %v10265_v39 = vmul.bf16 %v9773_v34, %v14029_v3 }
 0x7f6   :  { %9817 = vrot.lane.b32.xlu1 %v12672_v52, %s12933_s9  ;;  %10049 = vrot.lane.b32.xlu0 %v12685_v54, %s12941_s17  ;;  %v12689_v45 = vcombine.low %v9778_v53, %v9778_v53  ;;  %v12690_v14 = vcombine.high %v9778_v53, %v9778_v53  ;;  %v10266_v44 = vmul.bf16 %v9774_v15, %v14014_v16  ;;  %v15849_v54 = vld [vmem:[#allocation17_spill] sm:$0xff] }
 0x7f7   :  { %v12691_v57 = vcombine.low %v9779_v30, %v9779_v30  ;;  %v12707_v5 = vcombine.low %v10265_v39, %v10265_v39  ;;  %v12708_v25 = vcombine.high %v10265_v39, %v10265_v39  ;;  %v12721_v3 = vcombine.low %v10517_v41, %v10517_v41  ;;  %v15855_v39 = vld [vmem:[#allocation23_spill] sm:$0xff] }
 0x7f8   :  { %v12709_v35 = vcombine.low %v10266_v44, %v10266_v44  ;;  %v12722_v16 = vcombine.high %v10517_v41, %v10517_v41  ;;  %v10519_v56 = vmul.bf16 %v9773_v34, %v15845_v11  ;;  %v10520_v20 = vmul.bf16 %v9774_v15, %v15846_v49 }
 0x7f9   :  { %v12756_v34 = vcombine.low %v11000_v55, %v11000_v55  ;;  %v12757_v52 = vcombine.high %v11000_v55, %v11000_v55  ;;  %v11001_v15 = vmul.bf16 %v15217_v12, %v15849_v54  ;;  %v11255_v36 = vmul.bf16 %v15217_v12, %v15854_v43 }
 0x7fa   :  { %9821 = vrot.lane.b32.xlu1 %v12674_v61, %s12933_s9  ;;  %9819 = vrot.lane.b32.xlu0 %v12673_v40, %s12933_s9  ;;  %v12725_v33 = vcombine.low %v10519_v56, %v10519_v56  ;;  %v12726_v29 = vcombine.high %v10519_v56, %v10519_v56  ;;  %v12727_v10 = vcombine.low %v10520_v20, %v10520_v20  ;;  %v15301_v61 = vld [vmem:[#allocation3 + $0x24] sm:$0xf] }
 0x7fb   :  { %v12758_v40 = vcombine.low %v11001_v15, %v11001_v15  ;;  %v12759_v18 = vcombine.high %v11001_v15, %v11001_v15  ;;  %v11257_v27 = vmul.bf16 %v15301_v61, %v15855_v39  ;;  %v15331_v44 = vpack.c.bf16 %v15179_v28, %v15179_v28 }
 0x7fc   :  { %v15347_v28 = vpack.c.bf16 %v15202_v32, %v15202_v32  ;;  %v15363_v32 = vpack.c.bf16 %v15208_v8, %v15208_v8  ;;  %v15371_v56 = vpack.c.bf16 %v15234_v46, %v15234_v46 }
 0x7fe   :  { %10051 = vrot.lane.b32.xlu1 %v12686_v19, %s12941_s17  ;;  %10053 = vrot.lane.b32.xlu0 %v12687_v59, %s12941_s17  ;;  %v15850_v19 = vld [vmem:[#allocation18_spill] sm:$0xff] }
 0x7ff   :  { %v11003_v59 = vmul.bf16 %v15301_v61, %v15850_v19 }
 0x802   :  { %10055 = vrot.lane.b32.xlu1 %v12688_v62, %s12941_s17  ;;  %10293 = vrot.lane.b32.xlu0 %v12702_v0, %s12942_s18  ;;  %v11253_v62 = vmul.bf16 %v15188_v6, %v15851_v37  ;;  %v12762_v0 = vcombine.low %v11003_v59, %v11003_v59  ;;  %v15860_v59 = vmov 0  }
 0x804   :  { %v12772_v53 = vcombine.low %v11253_v62, %v11253_v62  ;;  %v12773_v30 = vcombine.high %v11253_v62, %v11253_v62 }
 0x806   :  { %10291 = vrot.lane.b32.xlu1 %v12701_v17, %s12942_s18  ;;  %10057 = vrot.lane.b32.xlu0 %v12689_v45, %s12941_s17  ;;  %v15852_v17 = vld [vmem:[#allocation21_spill] sm:$0xff] }
 0x807   :  { %v11254_v45 = vmul.bf16 %v15212_v63, %v15852_v17 }
 0x80a   :  { %10059 = vrot.lane.b32.xlu1 %v12690_v14, %s12941_s17  ;;  %10061 = vrot.lane.b32.xlu0 %v12691_v57, %s12941_s17  ;;  %v12774_v14 = vcombine.low %v11254_v45, %v11254_v45  ;;  %v15853_v57 = vld [vmem:[#allocation19_spill] sm:$0xff] }
 0x80b   :  { %v11002_v60 = vmul.bf16 %v15240_v22, %v15853_v57 }
 0x80e   :  { %10295 = vrot.lane.b32.xlu1 %v12703_v50, %s12942_s18  ;;  %10297 = vrot.lane.b32.xlu0 %v12704_v26, %s12942_s18  ;;  %v12760_v50 = vcombine.low %v11002_v60, %v11002_v60  ;;  %v12761_v26 = vcombine.high %v11002_v60, %v11002_v60 }
 0x812   :  { %10299 = vrot.lane.b32.xlu1 %v12705_v2, %s12942_s18  ;;  %10301 = vrot.lane.b32.xlu0 %v12706_v1, %s12942_s18  ;;  %v12775_v2 = vcombine.high %v11254_v45, %v11254_v45  ;;  %v12776_v1 = vcombine.low %v11255_v36, %v11255_v36 }
 0x816   :  { %10303 = vrot.lane.b32.xlu1 %v12707_v5, %s12942_s18  ;;  %10545 = vrot.lane.b32.xlu0 %v12719_v31, %s12939_s16  ;;  %v12777_v5 = vcombine.high %v11255_v36, %v11255_v36  ;;  %v12780_v31 = vcombine.low %v11257_v27, %v11257_v27  ;;  %v15862_v36 = vld [vmem:[#allocation26_spill] sm:$0xff] }
 0x81a   :  { %10307 = vrot.lane.b32.xlu1 %v12709_v35, %s12942_s18  ;;  %10305 = vrot.lane.b32.xlu0 %v12708_v25, %s12942_s18  ;;  %v15335_v35 = vpack.c.bf16 %v15181_v13, %v15181_v13  ;;  %v15856_v25 = vld [vmem:[#allocation24_spill] sm:$0xff]  ;;  %v15351_v13 = vpack.c.bf16 %v15204_v21, %v15204_v21 }
 0x81b   :  { %v11256_v41 = vmul.bf16 %v15240_v22, %v15856_v25 }
 0x81e   :  { %10547 = vrot.lane.b32.xlu1 %v12720_v24, %s12939_s16  ;;  %10549 = vrot.lane.b32.xlu0 %v12721_v3, %s12939_s16  ;;  %v12779_v24 = vcombine.high %v11256_v41, %v11256_v41  ;;  %v12778_v3 = vcombine.low %v11256_v41, %v11256_v41 }
 0x822   :  { %10551 = vrot.lane.b32.xlu1 %v12722_v16, %s12939_s16  ;;  %10553 = vrot.lane.b32.xlu0 %v12723_v23, %s12939_s16  ;;  %v15359_v23 = vpack.c.bf16 %v15206_v42, %v15206_v42  ;;  %v15375_v42 = vpack.c.bf16 %v15236_v7, %v15236_v7 }
 0x826   :  { %10555 = vrot.lane.b32.xlu1 %v12724_v48, %s12939_s16  ;;  %10557 = vrot.lane.b32.xlu0 %v12725_v33, %s12939_s16  ;;  %v15857_v48 = vld [vmem:[#allocation25_spill] sm:$0xff]  ;;  %v12798_v33 = vcombine.low %v15301_v61, %v15301_v61 }
 0x827   :  { %v11756_v8 = vmul.bf16 %v15188_v6, %v15857_v48 }
 0x829   :  { %v12808_v7 = vcombine.low %v11756_v8, %v11756_v8 }
 0x82a   :  { %10559 = vrot.lane.b32.xlu1 %v12726_v29, %s12939_s16  ;;  %10561 = vrot.lane.b32.xlu0 %v12727_v10, %s12939_s16  ;;  %v15858_v10 = vld [vmem:[#allocation27_spill] sm:$0xff] }
 0x82b   :  { %v11757_v47 = vmul.bf16 %v15212_v63, %v15858_v10  ;;  %v12809_v63 = vcombine.high %v11756_v8, %v11756_v8  ;;  %v6256_v8 = vld [vmem:[%s15777_s7] sm:$0xff] }
 0x82d   :  { %v12811_v62 = vcombine.high %v11757_v47, %v11757_v47 }
 0x82e   :  { %11028 = vrot.lane.b32.xlu1 %v12754_v38, %s12938_s15  ;;  %11030 = vrot.lane.b32.xlu0 %v12755_v51, %s12938_s15 }
 0x832   :  { %11032 = vrot.lane.b32.xlu1 %v12756_v34, %s12938_s15  ;;  %11034 = vrot.lane.b32.xlu0 %v12757_v52, %s12938_s15  ;;  %v12810_v34 = vcombine.low %v11757_v47, %v11757_v47  ;;  %v15859_v52 = vld [vmem:[#allocation28_spill] sm:$0xff] }
 0x833   :  { %v11758_v54 = vmul.bf16 %v15217_v12, %v15859_v52  ;;  %v15861_v12 = vld [vmem:[#allocation29_spill] sm:$0xff] }
 0x835   :  { %v12813_v57 = vcombine.high %v11758_v54, %v11758_v54 }
 0x836   :  { %11036 = vrot.lane.b32.xlu1 %v12758_v40, %s12938_s15  ;;  %11038 = vrot.lane.b32.xlu0 %v12759_v18, %s12938_s15 }
 0x83a   :  { %11044 = vrot.lane.b32.xlu1 %v12762_v0, %s12938_s15  ;;  %11282 = vrot.lane.b32.xlu0 %v12772_v53, %s12936_s13  ;;  %v12812_v0 = vcombine.low %v11758_v54, %v11758_v54  ;;  %v11759_v53 = vmul.bf16 %v15240_v22, %v15861_v12 }
 0x83c   :  { %v12814_v43 = vcombine.low %v11759_v53, %v11759_v53  ;;  %v12815_v25 = vcombine.high %v11759_v53, %v11759_v53 }
 0x83e   :  { %11284 = vrot.lane.b32.xlu1 %v12773_v30, %s12936_s13  ;;  %11286 = vrot.lane.b32.xlu0 %v12774_v14, %s12936_s13 }
 0x842   :  { %11040 = vrot.lane.b32.xlu1 %v12760_v50, %s12938_s15  ;;  %11042 = vrot.lane.b32.xlu0 %v12761_v26, %s12938_s15 }
 0x846   :  { %11288 = vrot.lane.b32.xlu1 %v12775_v2, %s12936_s13  ;;  %11290 = vrot.lane.b32.xlu0 %v12776_v1, %s12936_s13  ;;  %v11760_v2 = vmul.bf16 %v15301_v61, %v15862_v36 }
 0x848   :  { %v12816_v41 = vcombine.low %v11760_v2, %v11760_v2 }
 0x84a   :  { %11292 = vrot.lane.b32.xlu1 %v12777_v5, %s12936_s13  ;;  %11298 = vrot.lane.b32.xlu0 %v12780_v31, %s12936_s13 }
 0x84e   :  { %11531 = vrot.lane.b32.xlu1 %v15331_v44, %s12943_s25  ;;  %11533 = vrot.lane.b32.xlu0 %v15335_v35, %s12943_s25 }
 0x852   :  { %11296 = vrot.lane.b32.xlu1 %v12779_v24, %s12936_s13  ;;  %11294 = vrot.lane.b32.xlu0 %v12778_v3, %s12936_s13 }
 0x856   :  { %11535 = vrot.lane.b32.xlu1 %v15347_v28, %s12943_s25  ;;  %11537 = vrot.lane.b32.xlu0 %v15351_v13, %s12943_s25 }
 0x858   :  { %v9808_v9 = vpop.permute.xlu0 %9807  ;;  %v9806_v16 = vpop.permute.xlu1 %9805 }
 0x859   :  { %v9823_v49 = vsel %vm1282_vm7, %v9806_v16, %v9808_v9  ;;  %v9780_v16 = vld [vmem:[%s15775_s5] sm:$0xf] }
 0x85a   :  { %11539 = vrot.lane.b32.xlu1 %v15359_v23, %s12943_s25  ;;  %11541 = vrot.lane.b32.xlu0 %v15363_v32, %s12943_s25  ;;  %v9835_v6 = vsel %vm3853_vm14, %v9823_v49, 0 }
 0x85c   :  { %v10048_v21 = vpop.permute.xlu1 %10047  ;;  %v10046_v11 = vpop.permute.xlu0 %10045 }
 0x85d   :  { %v10063_v60 = vsel %vm1546_vm9, %v10046_v11, %v10048_v21 }
 0x85e   :  { %11543 = vrot.lane.b32.xlu1 %v15371_v56, %s12943_s25  ;;  %11545 = vrot.lane.b32.xlu0 %v15375_v42, %s12943_s25  ;;  %v10075_v1 = vsel %vm3853_vm14, %v10063_v60, 0 }
 0x860   :  { %v9812_v46 = vpop.permute.xlu0 %9811  ;;  %v9810_v20 = vpop.permute.xlu1 %9809 }
 0x861   :  { %v9824_v29 = vsel %vm1282_vm7, %v9808_v9, %v9810_v20  ;;  %v9825_v38 = vsel %vm1282_vm7, %v9810_v20, %v9812_v46  ;;  %v6242_v9 = vld [vmem:[%s15776_s6] sm:$0xff] }
 0x862   :  { %12675 = vmatprep.subr.msk.bf16.mxu0 %vm3853_vm14, %v9824_v29  ;;  %11547 = vrot.lane.b32.xlu1 %v12798_v33, %s12943_s25  ;;  %v9841_v15 = vsel %vm3853_vm14, %v9825_v38, 0 }
 0x863   :  { %11785 = vrot.lane.b32.xlu0 %v12808_v7, %s12937_s14  ;;  %9873 = vmatpush1.bf16.msra.mxu0 %v9835_v6 }
 0x864   :  { %v9816_v51 = vpop.permute.xlu0 %9815  ;;  %v9814_v58 = vpop.permute.xlu1 %9813 }
 0x865   :  { %v9826_v55 = vsel %vm1282_vm7, %v9812_v46, %v9814_v58  ;;  %v9827_v40 = vsel %vm1282_vm7, %v9814_v58, %v9816_v51 }
 0x866   :  { %12676 = vmatmul.mubr.msk.bf16.vlgmr.msra.gmra.mxu0 %vm3922_vm15, %v12665_v4  ;;  %12677 = vmatprep.subr.msk.bf16.mxu1 %vm3853_vm14, %v9826_v55  ;;  %v9847_v17 = vsel %vm3853_vm14, %v9827_v40, 0 }
 0x867   :  { %11787 = vrot.lane.b32.xlu1 %v12809_v63, %s12937_s14  ;;  %11789 = vrot.lane.b32.xlu0 %v12810_v34, %s12937_s14  ;;  %v12700_v34 = vld [vmem:[%s15775_s5 + $0x8] sm:$0xf] }
 0x868   :  { %9914 = vmatpush1.bf16.msra.mxu1 %v9841_v15  ;;  %v9818_v18 = vpop.permute.xlu1 %9817  ;;  %v10050_v19 = vpop.permute.xlu0 %10049  ;;  %9972 = vmatprep.mubr.bf16.mxu0 %v15860_v59 }
 0x869   :  { %v9828_v37 = vsel %vm1282_vm7, %v9816_v51, %v9818_v18  ;;  %v10064_v45 = vsel %vm1546_vm9, %v10048_v21, %v10050_v19 }
 0x86a   :  { %12679 = vmatprep.subr.msk.bf16.mxu0 %vm3853_vm14, %v9828_v37 }
 0x86b   :  { %12678 = vmatmul.mubr.msk.bf16.vlgmr.msra.gmra.mxu1 %vm3922_vm15, %v12665_v4  ;;  %11791 = vrot.lane.b32.xlu1 %v12811_v62, %s12937_s14 }
 0x86c   :  { %11793 = vrot.lane.b32.xlu0 %v12812_v0, %s12937_s14  ;;  %9955 = vmatpush1.bf16.msra.mxu0 %v9847_v17  ;;  %v9822_v30 = vpop.permute.xlu1 %9821  ;;  %v9820_v14 = vpop.permute.xlu0 %9819 }
 0x86d   :  { %12692 = vmatprep.subr.msk.bf16.mxu0 %vm3853_vm14, %v10064_v45  ;;  %v9829_v22 = vsel %vm1282_vm7, %v9818_v18, %v9820_v14  ;;  %v9830_v50 = vsel %vm1282_vm7, %v9820_v14, %v9822_v30  ;;  %10013 = vmatprep.mubr.bf16.mxu1 %v15860_v59 }
 0x86e   :  { %v9853_v26 = vsel %vm3853_vm14, %v9829_v22, 0  ;;  %12681 = vmatprep.subr.msk.bf16.mxu1 %vm3853_vm14, %v9830_v50 }
 0x86f   :  { %12680 = vmatmul.mubr.msk.bf16.vlgmr.msra.gmra.mxu0 %vm3922_vm15, %v12665_v4  ;;  %11795 = vrot.lane.b32.xlu1 %v12813_v57, %s12937_s14 }
 0x870   :  { %11797 = vrot.lane.b32.xlu0 %v12814_v43, %s12937_s14  ;;  %9996 = vmatpush1.bf16.msra.mxu1 %v9853_v26  ;;  %v10052_v39 = vpop.permute.xlu1 %10051  ;;  %v10054_v27 = vpop.permute.xlu0 %10053  ;;  %v12718_v26 = vld [vmem:[%s15775_s5 + $0xc] sm:$0xf] }
 0x871   :  { %10113 = vmatpush1.bf16.msra.mxu0 %v10075_v1  ;;  %v10065_v5 = vsel %vm1546_vm9, %v10050_v19, %v10052_v39  ;;  %v10066_v31 = vsel %vm1546_vm9, %v10052_v39, %v10054_v27  ;;  %10130 = vmatprep.mubr.bf16.mxu0 %v15860_v59 }
 0x872   :  { %v10081_v61 = vsel %vm3853_vm14, %v10065_v5, 0  ;;  %12694 = vmatprep.subr.msk.bf16.mxu1 %vm3853_vm14, %v10066_v31 }
 0x873   :  { %11799 = vrot.lane.b32.xlu1 %v12815_v25, %s12937_s14  ;;  %12682 = vmatmul.mubr.msk.bf16.vlgmr.msra.gmra.mxu1 %vm3922_vm15, %v12665_v4 }
 0x874   :  { %11801 = vrot.lane.b32.xlu0 %v12816_v41, %s12937_s14  ;;  %10154 = vmatpush1.bf16.msra.mxu1 %v10081_v61  ;;  %v10056_v24 = vpop.permute.xlu1 %10055  ;;  %v10294_v3 = vpop.permute.xlu0 %10293 }
 0x875   :  { %10171 = vmatprep.mubr.bf16.mxu1 %v15860_v59  ;;  %v10067_v21 = vsel %vm1546_vm9, %v10054_v27, %v10056_v24 }
 0x876   :  { %v10087_v49 = vsel %vm3853_vm14, %v10067_v21, 0  ;;  %v10805_v21 = vsel %vm3853_vm14, %v15347_v28, 0 }
 0x877   :  { %6245 = vperm.xlu1 %12863, %v6242_v9   ;;  %12693 = vmatmul.mubr.msk.bf16.vlgmr.msra.gmra.mxu0 %vm3922_vm15, %v9780_v16 }
 0x878   :  { %12013 = vperm.xlu0 %12862, %v6242_v9   ;;  %v10292_v11 = vpop.permute.xlu1 %10291  ;;  %v10058_v48 = vpop.permute.xlu0 %10057  ;;  %10212 = vmatprep.mubr.bf16.mxu0 %v15860_v59  ;;  %v10799_v9 = vsel %vm3853_vm14, %v15331_v44, 0  ;;  %v12736_v44 = vld [vmem:[%s15775_s5 + $0x10] sm:$0xf] }
 0x879   :  { %v10068_v33 = vsel %vm1546_vm9, %v10056_v24, %v10058_v48  ;;  %v10309_v47 = vsel %vm1871_vm10, %v10292_v11, %v10294_v3 }
 0x87a   :  { %12696 = vmatprep.subr.msk.bf16.mxu0 %vm3853_vm14, %v10068_v33  ;;  %v10321_v51 = vsel %vm3853_vm14, %v10309_v47, 0 }
 0x87b   :  { %6259 = vperm.xlu1 %12863, %v6256_v8   ;;  %12695 = vmatmul.mubr.msk.bf16.vlgmr.msra.gmra.mxu1 %vm3922_vm15, %v9780_v16 }
 0x87c   :  { %12027 = vperm.xlu0 %12862, %v6256_v8   ;;  %10195 = vmatpush1.bf16.msra.mxu0 %v10087_v49  ;;  %v10060_v46 = vpop.permute.xlu1 %10059  ;;  %v10062_v20 = vpop.permute.xlu0 %10061 }
 0x87d   :  { %v10069_v29 = vsel %vm1546_vm9, %v10058_v48, %v10060_v46  ;;  %v10070_v7 = vsel %vm1546_vm9, %v10060_v46, %v10062_v20  ;;  %10253 = vmatprep.mubr.bf16.mxu1 %v15860_v59 }
 0x87e   :  { %v10093_v10 = vsel %vm3853_vm14, %v10069_v29, 0  ;;  %12698 = vmatprep.subr.msk.bf16.mxu1 %vm3853_vm14, %v10070_v7 }
 0x87f   :  { %12697 = vmatmul.mubr.msk.bf16.vlgmr.msra.gmra.mxu0 %vm3922_vm15, %v9780_v16  ;;  %10236 = vmatpush1.bf16.msra.mxu1 %v10093_v10 }
 0x880   :  { %v10296_v6 = vpop.permute.xlu1 %10295  ;;  %v10298_v4 = vpop.permute.xlu0 %10297  ;;  %10376 = vmatprep.mubr.bf16.mxu0 %v15860_v59 }
 0x881   :  { %v10310_v38 = vsel %vm1871_vm10, %v10294_v3, %v10296_v6  ;;  %v10311_v58 = vsel %vm1871_vm10, %v10296_v6, %v10298_v4 }
 0x882   :  { %12710 = vmatprep.subr.msk.bf16.mxu0 %vm3853_vm14, %v10310_v38  ;;  %v10327_v54 = vsel %vm3853_vm14, %v10311_v58, 0  ;;  %v12753_v38 = vld [vmem:[%s15775_s5 + $0x14] sm:$0xf] }
 0x883   :  { %12699 = vmatmul.mubr.msk.bf16.vlgmr.msra.gmra.mxu1 %vm3922_vm15, %v9780_v16  ;;  %10359 = vmatpush1.bf16.msra.mxu0 %v10321_v51 }
 0x884   :  { %v10300_v55 = vpop.permute.xlu1 %10299  ;;  %v10302_v63 = vpop.permute.xlu0 %10301  ;;  %10417 = vmatprep.mubr.bf16.mxu1 %v15860_v59 }
 0x885   :  { %v10312_v52 = vsel %vm1871_vm10, %v10298_v4, %v10300_v55  ;;  %v10313_v15 = vsel %vm1871_vm10, %v10300_v55, %v10302_v63 }
 0x886   :  { %12712 = vmatprep.subr.msk.bf16.mxu1 %vm3853_vm14, %v10312_v52  ;;  %v10333_v37 = vsel %vm3853_vm14, %v10313_v15, 0 }
 0x887   :  { %12711 = vmatmul.mubr.msk.bf16.vlgmr.msra.gmra.mxu0 %vm3922_vm15, %v12700_v34  ;;  %10400 = vmatpush1.bf16.msra.mxu1 %v10327_v54 }
 0x888   :  { %v10304_v40 = vpop.permute.xlu1 %10303  ;;  %v10546_v18 = vpop.permute.xlu0 %10545  ;;  %10458 = vmatprep.mubr.bf16.mxu0 %v15860_v59 }
 0x889   :  { %v10314_v19 = vsel %vm1871_vm10, %v10302_v63, %v10304_v40 }
 0x88a   :  { %12714 = vmatprep.subr.msk.bf16.mxu0 %vm3853_vm14, %v10314_v19 }
 0x88b   :  { %12713 = vmatmul.mubr.msk.bf16.vlgmr.msra.gmra.mxu1 %vm3922_vm15, %v12700_v34  ;;  %10441 = vmatpush1.bf16.msra.mxu0 %v10333_v37 }
 0x88c   :  { %v10308_v62 = vpop.permute.xlu1 %10307  ;;  %v10306_v0 = vpop.permute.xlu0 %10305  ;;  %10499 = vmatprep.mubr.bf16.mxu1 %v15860_v59 }
 0x88d   :  { %v10315_v12 = vsel %vm1871_vm10, %v10304_v40, %v10306_v0  ;;  %v10316_v53 = vsel %vm1871_vm10, %v10306_v0, %v10308_v62 }
 0x88e   :  { %v10339_v17 = vsel %vm3853_vm14, %v10315_v12, 0  ;;  %12716 = vmatprep.subr.msk.bf16.mxu1 %vm3853_vm14, %v10316_v53 }
 0x88f   :  { %12715 = vmatmul.mubr.msk.bf16.vlgmr.msra.gmra.mxu0 %vm3922_vm15, %v12700_v34  ;;  %10482 = vmatpush1.bf16.msra.mxu1 %v10339_v17 }
 0x890   :  { %v10548_v45 = vpop.permute.xlu1 %10547  ;;  %v10550_v30 = vpop.permute.xlu0 %10549  ;;  %10630 = vmatprep.mubr.bf16.mxu0 %v15860_v59 }
 0x891   :  { %v10563_v14 = vsel %vm2162_vm6, %v10546_v18, %v10548_v45  ;;  %v10564_v57 = vsel %vm2162_vm6, %v10548_v45, %v10550_v30 }
 0x892   :  { %v10575_v60 = vsel %vm3853_vm14, %v10563_v14, 0  ;;  %12728 = vmatprep.subr.msk.bf16.mxu0 %vm3853_vm14, %v10564_v57  ;;  %v12771_v57 = vld [vmem:[%s15775_s5 + $0x18] sm:$0xf] }
 0x893   :  { %12717 = vmatmul.mubr.msk.bf16.vlgmr.msra.gmra.mxu1 %vm3922_vm15, %v12700_v34  ;;  %10613 = vmatpush1.bf16.msra.mxu0 %v10575_v60 }
 0x894   :  { %v10552_v22 = vpop.permute.xlu1 %10551  ;;  %v10554_v50 = vpop.permute.xlu0 %10553  ;;  %10671 = vmatprep.mubr.bf16.mxu1 %v15860_v59 }
 0x895   :  { %v10565_v43 = vsel %vm2162_vm6, %v10550_v30, %v10552_v22  ;;  %v10566_v36 = vsel %vm2162_vm6, %v10552_v22, %v10554_v50 }
 0x896   :  { %v10581_v2 = vsel %vm3853_vm14, %v10565_v43, 0  ;;  %12730 = vmatprep.subr.msk.bf16.mxu1 %vm3853_vm14, %v10566_v36 }
 0x897   :  { %12729 = vmatmul.mubr.msk.bf16.vlgmr.msra.gmra.mxu0 %vm3922_vm15, %v12718_v26  ;;  %10654 = vmatpush1.bf16.msra.mxu1 %v10581_v2 }
 0x898   :  { %v10556_v1 = vpop.permute.xlu1 %10555  ;;  %v10558_v39 = vpop.permute.xlu0 %10557  ;;  %10712 = vmatprep.mubr.bf16.mxu0 %v15860_v59 }
 0x899   :  { %v10567_v27 = vsel %vm2162_vm6, %v10554_v50, %v10556_v1  ;;  %v10568_v5 = vsel %vm2162_vm6, %v10556_v1, %v10558_v39 }
 0x89a   :  { %v10587_v31 = vsel %vm3853_vm14, %v10567_v27, 0  ;;  %12732 = vmatprep.subr.msk.bf16.mxu0 %vm3853_vm14, %v10568_v5 }
 0x89b   :  { %12731 = vmatmul.mubr.msk.bf16.vlgmr.msra.gmra.mxu1 %vm3922_vm15, %v12718_v26  ;;  %10695 = vmatpush1.bf16.msra.mxu0 %v10587_v31 }
 0x89c   :  { %v10560_v25 = vpop.permute.xlu1 %10559  ;;  %12745 = vmatprep.subr.msk.bf16.mxu0 %vm3853_vm14, %v15335_v35  ;;  %v10562_v61 = vpop.permute.xlu0 %10561  ;;  %10753 = vmatprep.mubr.bf16.mxu1 %v15860_v59 }
 0x89d   :  { %v10569_v41 = vsel %vm2162_vm6, %v10558_v39, %v10560_v25  ;;  %v10570_v24 = vsel %vm2162_vm6, %v10560_v25, %v10562_v61 }
 0x89e   :  { %v10593_v3 = vsel %vm3853_vm14, %v10569_v41, 0  ;;  %12734 = vmatprep.subr.msk.bf16.mxu1 %vm3853_vm14, %v10570_v24 }
 0x89f   :  { %12733 = vmatmul.mubr.msk.bf16.vlgmr.msra.gmra.mxu0 %vm3922_vm15, %v12718_v26  ;;  %10736 = vmatpush1.bf16.msra.mxu1 %v10593_v3 }
 0x8a0   :  { %10837 = vmatpush1.bf16.msra.mxu0 %v10799_v9  ;;  %v11029_v16 = vpop.permute.xlu1 %11028  ;;  %12747 = vmatprep.subr.msk.bf16.mxu1 %vm3853_vm14, %v15351_v13  ;;  %v11031_v35 = vpop.permute.xlu0 %11030 }
 0x8a1   :  { %12749 = vmatprep.subr.msk.bf16.mxu0 %vm3853_vm14, %v15363_v32  ;;  %10854 = vmatprep.mubr.bf16.mxu0 %v15860_v59  ;;  %v10811_v32 = vsel %vm3853_vm14, %v15359_v23, 0  ;;  %v11046_v49 = vsel %vm2088_vm5, %v11029_v16, %v11031_v35 }
 0x8a2   :  { %v11058_v23 = vsel %vm3853_vm14, %v11046_v49, 0 }
 0x8a3   :  { %12735 = vmatmul.mubr.msk.bf16.vlgmr.msra.gmra.mxu1 %vm3922_vm15, %v12718_v26 }
 0x8a4   :  { %10878 = vmatpush1.bf16.msra.mxu1 %v10805_v21  ;;  %v11033_v11 = vpop.permute.xlu1 %11032  ;;  %v11035_v48 = vpop.permute.xlu0 %11034  ;;  %10895 = vmatprep.mubr.bf16.mxu1 %v15860_v59  ;;  %v12789_v21 = vld [vmem:[%s15775_s5 + $0x1c] sm:$0xf] }
 0x8a5   :  { %12751 = vmatprep.subr.msk.bf16.mxu1 %vm3853_vm14, %v15375_v42  ;;  %v11047_v13 = vsel %vm2088_vm5, %v11031_v35, %v11033_v11  ;;  %v10817_v42 = vsel %vm3853_vm14, %v15371_v56, 0  ;;  %v11048_v29 = vsel %vm2088_vm5, %v11033_v11, %v11035_v48 }
 0x8a6   :  { %v11064_v56 = vsel %vm3853_vm14, %v11048_v29, 0 }
 0x8a7   :  { %12746 = vmatmul.mubr.msk.bf16.vlgmr.msra.gmra.mxu0 %vm3922_vm15, %v12736_v44 }
 0x8a8   :  { %10919 = vmatpush1.bf16.msra.mxu0 %v10811_v32  ;;  %v11037_v28 = vpop.permute.xlu1 %11036  ;;  %v11039_v8 = vpop.permute.xlu0 %11038  ;;  %10936 = vmatprep.mubr.bf16.mxu0 %v15860_v59 }
 0x8a9   :  { %12763 = vmatprep.subr.msk.bf16.mxu0 %vm3853_vm14, %v11047_v13  ;;  %v11049_v33 = vsel %vm2088_vm5, %v11035_v48, %v11037_v28  ;;  %v11050_v47 = vsel %vm2088_vm5, %v11037_v28, %v11039_v8 }
 0x8aa   :  { %v11070_v55 = vsel %vm3853_vm14, %v11050_v47, 0 }
 0x8ab   :  { %12748 = vmatmul.mubr.msk.bf16.vlgmr.msra.gmra.mxu1 %vm3922_vm15, %v12736_v44 }
 0x8ac   :  { %10960 = vmatpush1.bf16.msra.mxu1 %v10817_v42  ;;  %v11045_v46 = vpop.permute.xlu1 %11044  ;;  %v11283_v20 = vpop.permute.xlu0 %11282  ;;  %10977 = vmatprep.mubr.bf16.mxu1 %v15860_v59 }
 0x8ad   :  { %12765 = vmatprep.subr.msk.bf16.mxu1 %vm3853_vm14, %v11049_v33 }
 0x8af   :  { %12750 = vmatmul.mubr.msk.bf16.vlgmr.msra.gmra.mxu0 %vm3922_vm15, %v12736_v44 }
 0x8b0   :  { %11096 = vmatpush1.bf16.msra.mxu0 %v11058_v23  ;;  %v11285_v7 = vpop.permute.xlu1 %11284  ;;  %v11287_v10 = vpop.permute.xlu0 %11286  ;;  %11113 = vmatprep.mubr.bf16.mxu0 %v15860_v59 }
 0x8b1   :  { %v11301_v63 = vsel %vm1797_vm4, %v11285_v7, %v11287_v10  ;;  %v11300_v18 = vsel %vm1797_vm4, %v11283_v20, %v11285_v7 }
 0x8b2   :  { %v11312_v62 = vsel %vm3853_vm14, %v11300_v18, 0 }
 0x8b3   :  { %12752 = vmatmul.mubr.msk.bf16.vlgmr.msra.gmra.mxu1 %vm3922_vm15, %v12736_v44 }
 0x8b4   :  { %11137 = vmatpush1.bf16.msra.mxu1 %v11064_v56  ;;  %v11041_v6 = vpop.permute.xlu1 %11040  ;;  %v11043_v4 = vpop.permute.xlu0 %11042  ;;  %11154 = vmatprep.mubr.bf16.mxu1 %v15860_v59 }
 0x8b5   :  { %v11051_v51 = vsel %vm2088_vm5, %v11039_v8, %v11041_v6  ;;  %v11053_v58 = vsel %vm2088_vm5, %v11043_v4, %v11045_v46  ;;  %v11052_v34 = vsel %vm2088_vm5, %v11041_v6, %v11043_v4  ;;  %v12807_v4 = vld [vmem:[%s15775_s5 + $0x20] sm:$0xf] }
 0x8b6   :  { %12767 = vmatprep.subr.msk.bf16.mxu0 %vm3853_vm14, %v11051_v51  ;;  %12769 = vmatprep.subr.msk.bf16.mxu1 %vm3853_vm14, %v11053_v58  ;;  %v11076_v40 = vsel %vm3853_vm14, %v11052_v34, 0 }
 0x8b7   :  { %12764 = vmatmul.mubr.msk.bf16.vlgmr.msra.gmra.mxu0 %vm3922_vm15, %v12753_v38 }
 0x8b8   :  { %11178 = vmatpush1.bf16.msra.mxu0 %v11070_v55  ;;  %v11289_v52 = vpop.permute.xlu1 %11288  ;;  %v11291_v54 = vpop.permute.xlu0 %11290  ;;  %11195 = vmatprep.mubr.bf16.mxu0 %v15860_v59 }
 0x8b9   :  { %12781 = vmatprep.subr.msk.bf16.mxu0 %vm3853_vm14, %v11301_v63  ;;  %v11303_v15 = vsel %vm1797_vm4, %v11289_v52, %v11291_v54  ;;  %v11302_v0 = vsel %vm1797_vm4, %v11287_v10, %v11289_v52 }
 0x8ba   :  { %v11318_v17 = vsel %vm3853_vm14, %v11302_v0, 0 }
 0x8bb   :  { %12766 = vmatmul.mubr.msk.bf16.vlgmr.msra.gmra.mxu1 %vm3922_vm15, %v12753_v38 }
 0x8bc   :  { %11219 = vmatpush1.bf16.msra.mxu1 %v11076_v40  ;;  %v11293_v19 = vpop.permute.xlu1 %11292  ;;  %v11299_v37 = vpop.permute.xlu0 %11298  ;;  %11236 = vmatprep.mubr.bf16.mxu1 %v15860_v59  ;;  %v15864_v40 = vld [vmem:[#allocation31_spill] sm:$0xff] }
 0x8bd   :  { %12783 = vmatprep.subr.msk.bf16.mxu1 %vm3853_vm14, %v11303_v15  ;;  %v11304_v45 = vsel %vm1797_vm4, %v11291_v54, %v11293_v19  ;;  %v15863_v54 = vld [vmem:[#allocation30_spill] sm:$0xff] }
 0x8be   :  { %v11324_v50 = vsel %vm3853_vm14, %v11304_v45, 0 }
 0x8bf   :  { %12768 = vmatmul.mubr.msk.bf16.vlgmr.msra.gmra.mxu0 %vm3922_vm15, %v12753_v38 }
 0x8c0   :  { %11350 = vmatpush1.bf16.msra.mxu0 %v11312_v62  ;;  %v11532_v12 = vpop.permute.xlu1 %11531  ;;  %v11534_v53 = vpop.permute.xlu0 %11533  ;;  %11367 = vmatprep.mubr.bf16.mxu0 %v15860_v59  ;;  %v15866_v62 = vld [vmem:[#allocation33_spill] sm:$0xff] }
 0x8c1   :  { %v11549_v39 = vsel %vm3254_vm11, %v11532_v12, %v11534_v53  ;;  %v15867_v12 = vld [vmem:[#allocation34_spill] sm:$0xff] }
 0x8c2   :  { %v11561_v25 = vsel %vm3853_vm14, %v11549_v39, 0 }
 0x8c3   :  { %12770 = vmatmul.mubr.msk.bf16.vlgmr.msra.gmra.mxu1 %vm3922_vm15, %v12753_v38 }
 0x8c4   :  { %11391 = vmatpush1.bf16.msra.mxu1 %v11318_v17  ;;  %v11297_v30 = vpop.permute.xlu1 %11296  ;;  %v11295_v14 = vpop.permute.xlu0 %11294  ;;  %11408 = vmatprep.mubr.bf16.mxu1 %v15860_v59  ;;  %v15868_v17 = vld [vmem:[#allocation35_spill] sm:$0xff] }
 0x8c5   :  { %v11307_v60 = vsel %vm1797_vm4, %v11297_v30, %v11299_v37  ;;  %v11305_v22 = vsel %vm1797_vm4, %v11293_v19, %v11295_v14  ;;  %v11306_v26 = vsel %vm1797_vm4, %v11295_v14, %v11297_v30  ;;  %v15865_v19 = vld [vmem:[#allocation32_spill] sm:$0xff] }
 0x8c6   :  { %12785 = vmatprep.subr.msk.bf16.mxu0 %vm3853_vm14, %v11305_v22  ;;  %12787 = vmatprep.subr.msk.bf16.mxu1 %vm3853_vm14, %v11307_v60  ;;  %v11330_v1 = vsel %vm3853_vm14, %v11306_v26, 0  ;;  %v15869_v30 = vld [vmem:[#allocation36_spill] sm:$0xff] }
 0x8c7   :  { %12782 = vmatmul.mubr.msk.bf16.vlgmr.msra.gmra.mxu0 %vm3922_vm15, %v12771_v57 }
 0x8c8   :  { %11432 = vmatpush1.bf16.msra.mxu0 %v11324_v50  ;;  %v11536_v43 = vpop.permute.xlu1 %11535  ;;  %v11538_v36 = vpop.permute.xlu0 %11537  ;;  %11449 = vmatprep.mubr.bf16.mxu0 %v15860_v59 }
 0x8c9   :  { %v11550_v2 = vsel %vm3254_vm11, %v11534_v53, %v11536_v43  ;;  %v11551_v61 = vsel %vm3254_vm11, %v11536_v43, %v11538_v36 }
 0x8ca   :  { %12799 = vmatprep.subr.msk.bf16.mxu0 %vm3853_vm14, %v11550_v2  ;;  %v11567_v9 = vsel %vm3853_vm14, %v11551_v61, 0 }
 0x8cb   :  { %12784 = vmatmul.mubr.msk.bf16.vlgmr.msra.gmra.mxu1 %vm3922_vm15, %v12771_v57 }
 0x8cc   :  { %11473 = vmatpush1.bf16.msra.mxu1 %v11330_v1  ;;  %v11540_v27 = vpop.permute.xlu1 %11539  ;;  %v11542_v5 = vpop.permute.xlu0 %11541  ;;  %11490 = vmatprep.mubr.bf16.mxu1 %v15860_v59 }
 0x8cd   :  { %v11552_v31 = vsel %vm3254_vm11, %v11538_v36, %v11540_v27  ;;  %v11553_v16 = vsel %vm3254_vm11, %v11540_v27, %v11542_v5 }
 0x8ce   :  { %12801 = vmatprep.subr.msk.bf16.mxu1 %vm3853_vm14, %v11552_v31  ;;  %v11573_v44 = vsel %vm3853_vm14, %v11553_v16, 0 }
 0x8cf   :  { %12786 = vmatmul.mubr.msk.bf16.vlgmr.msra.gmra.mxu0 %vm3922_vm15, %v12771_v57 }
 0x8d0   :  { %11599 = vmatpush1.bf16.msra.mxu0 %v11561_v25  ;;  %v11544_v41 = vpop.permute.xlu1 %11543  ;;  %v11546_v24 = vpop.permute.xlu0 %11545  ;;  %11616 = vmatprep.mubr.bf16.mxu0 %v15860_v59 }
 0x8d1   :  { %v11554_v3 = vsel %vm3254_vm11, %v11542_v5, %v11544_v41  ;;  %v11555_v13 = vsel %vm3254_vm11, %v11544_v41, %v11546_v24 }
 0x8d2   :  { %12803 = vmatprep.subr.msk.bf16.mxu0 %vm3853_vm14, %v11554_v3  ;;  %v11579_v33 = vsel %vm3853_vm14, %v11555_v13, 0 }
 0x8d3   :  { %12788 = vmatmul.mubr.msk.bf16.vlgmr.msra.gmra.mxu1 %vm3922_vm15, %v12771_v57 }
 0x8d4   :  { %11640 = vmatpush1.bf16.msra.mxu1 %v11567_v9  ;;  %v11548_v35 = vpop.permute.xlu1 %11547  ;;  %11657 = vmatprep.mubr.bf16.mxu1 %v15860_v59 }
 0x8d5   :  { %v11556_v11 = vsel %vm3254_vm11, %v11546_v24, %v11548_v35  ;;  %v11786_v48 = vpop.permute.xlu0 %11785 }
 0x8d6   :  { %12805 = vmatprep.subr.msk.bf16.mxu1 %vm3853_vm14, %v11556_v11 }
 0x8d7   :  { %12800 = vmatmul.mubr.msk.bf16.vlgmr.msra.gmra.mxu0 %vm3922_vm15, %v12789_v21 }
 0x8d8   :  { %11681 = vmatpush1.bf16.msra.mxu0 %v11573_v44  ;;  %11698 = vmatprep.mubr.bf16.mxu0 %v15860_v59 }
 0x8d9   :  { %v11788_v32 = vpop.permute.xlu1 %11787  ;;  %v11790_v28 = vpop.permute.xlu0 %11789 }
 0x8da   :  { %v11804_v8 = vsel %vm1206_vm2, %v11788_v32, %v11790_v28  ;;  %v11803_v42 = vsel %vm1206_vm2, %v11786_v48, %v11788_v32 }
 0x8db   :  { %12802 = vmatmul.mubr.msk.bf16.vlgmr.msra.gmra.mxu1 %vm3922_vm15, %v12789_v21  ;;  %12817 = vmatprep.subr.msk.bf16.mxu0 %vm3853_vm14, %v11804_v8  ;;  %v11815_v20 = vsel %vm3853_vm14, %v11803_v42, 0 }
 0x8dc   :  { %11722 = vmatpush1.bf16.msra.mxu1 %v11579_v33  ;;  %11739 = vmatprep.mubr.bf16.mxu1 %v15860_v59 }
 0x8dd   :  { %v11792_v49 = vpop.permute.xlu1 %11791 }
 0x8de   :  { %v11794_v46 = vpop.permute.xlu0 %11793  ;;  %v11805_v29 = vsel %vm1206_vm2, %v11790_v28, %v11792_v49 }
 0x8df   :  { %v11806_v23 = vsel %vm1206_vm2, %v11792_v49, %v11794_v46  ;;  %12804 = vmatmul.mubr.msk.bf16.vlgmr.msra.gmra.mxu0 %vm3922_vm15, %v12789_v21  ;;  %v11821_v56 = vsel %vm3853_vm14, %v11805_v29, 0 }
 0x8e0   :  { %11853 = vmatpush1.bf16.msra.mxu0 %v11815_v20  ;;  %12819 = vmatprep.subr.msk.bf16.mxu1 %vm3853_vm14, %v11806_v23 }
 0x8e1   :  { %v11796_v7 = vpop.permute.xlu1 %11795  ;;  %11870 = vmatprep.mubr.bf16.mxu0 %v15860_v59 }
 0x8e2   :  { %v11798_v10 = vpop.permute.xlu0 %11797  ;;  %v11807_v6 = vsel %vm1206_vm2, %v11794_v46, %v11796_v7 }
 0x8e3   :  { %v11808_v47 = vsel %vm1206_vm2, %v11796_v7, %v11798_v10  ;;  %12806 = vmatmul.mubr.msk.bf16.vlgmr.msra.gmra.mxu1 %vm3922_vm15, %v12789_v21  ;;  %v11827_v58 = vsel %vm3853_vm14, %v11807_v6, 0 }
 0x8e4   :  { %11894 = vmatpush1.bf16.msra.mxu1 %v11821_v56  ;;  %12821 = vmatprep.subr.msk.bf16.mxu0 %vm3853_vm14, %v11808_v47 }
 0x8e5   :  { %v11800_v38 = vpop.permute.xlu1 %11799  ;;  %11911 = vmatprep.mubr.bf16.mxu1 %v15860_v59 }
 0x8e6   :  { %v11802_v51 = vpop.permute.xlu0 %11801  ;;  %v11809_v63 = vsel %vm1206_vm2, %v11798_v10, %v11800_v38 }
 0x8e7   :  { %v11810_v55 = vsel %vm1206_vm2, %v11800_v38, %v11802_v51  ;;  %12818 = vmatmul.mubr.msk.bf16.vlgmr.msra.gmra.mxu0 %vm3922_vm15, %v12807_v4  ;;  %v11833_v34 = vsel %vm3853_vm14, %v11809_v63, 0 }
 0x8e8   :  { %11935 = vmatpush1.bf16.msra.mxu0 %v11827_v58  ;;  %12823 = vmatprep.subr.msk.bf16.mxu1 %vm3853_vm14, %v11810_v55 }
 0x8e9   :  { %11952 = vmatprep.mubr.bf16.mxu0 %v15860_v59 }
 0x8eb   :  { %12820 = vmatmul.mubr.msk.bf16.vlgmr.msra.gmra.mxu1 %vm3922_vm15, %v12807_v4 }
 0x8ec   :  { %11976 = vmatpush1.bf16.msra.mxu1 %v11833_v34  ;;  %11993 = vmatprep.mubr.bf16.mxu1 %v15860_v59  ;;  %v15870_v59 = vld [vmem:[#allocation37_spill] sm:$0xff] }
 0x8ef   :  { %12822 = vmatmul.mubr.msk.bf16.vlgmr.msra.gmra.mxu0 %vm3922_vm15, %v12807_v4 }
 0x8f2   :  { %v6246_v52 = vpop.permute.xlu1 %6245 }
 0x8f3   :  { %12824 = vmatmul.mubr.msk.bf16.vlgmr.msra.gmra.mxu1 %vm3922_vm15, %v12807_v4  ;;  %v6248_v15 = vmul.f32 %v6246_v52, %v15863_v54  ;;  %v6249_v18 = vmul.f32 %v6246_v52, %v15864_v40  ;;  %v6250_v37 = vmul.f32 %v6246_v52, %v15865_v19  ;;  %v6251_v0 = vmul.f32 %v6246_v52, %v15866_v62 }
 0x8f4   :  { %v6252_v53 = vmul.f32 %v6246_v52, %v15867_v12  ;;  %v6253_v45 = vmul.f32 %v6246_v52, %v15868_v17  ;;  %v6254_v14 = vmul.f32 %v6246_v52, %v15869_v30  ;;  %v6255_v57 = vmul.f32 %v6246_v52, %v15870_v59 }
 0x8f6   :  { %v6260_v60 = vpop.permute.xlu1 %6259 }
 0x8f7   :  { %v6262_v22 = vadd.f32 %v6260_v60, %v6248_v15  ;;  %v6263_v50 = vadd.f32 %v6260_v60, %v6249_v18  ;;  %v6264_v26 = vadd.f32 %v6260_v60, %v6250_v37  ;;  %v6265_v43 = vadd.f32 %v6260_v60, %v6251_v0 }
 0x8f8   :  { %v6266_v36 = vadd.f32 %v6260_v60, %v6252_v53  ;;  %v6267_v2 = vadd.f32 %v6260_v60, %v6253_v45  ;;  %v6268_v1 = vadd.f32 %v6260_v60, %v6254_v14  ;;  %v6269_v39 = vadd.f32 %v6260_v60, %v6255_v57 }
 0x8f9   :  { %6270 = vst [vmem:[%s15778_s8] sm:$0xff] %v6262_v22  ;;  %6271 = vst [vmem:[%s15778_s8 + $0x8] sm:$0xff] %v6263_v50 }
 0x8fa   :  { %6272 = vst [vmem:[%s15778_s8 + $0x10] sm:$0xff] %v6264_v26  ;;  %6273 = vst [vmem:[%s15778_s8 + $0x18] sm:$0xff] %v6265_v43 }
 0x8fb   :  { %6274 = vst [vmem:[%s15778_s8 + $0x20] sm:$0xff] %v6266_v36  ;;  %6275 = vst [vmem:[%s15778_s8 + $0x28] sm:$0xff] %v6267_v2 }
 0x8fc   :  { %6276 = vst [vmem:[%s15778_s8 + $0x30] sm:$0xff] %v6268_v1  ;;  %6277 = vst [vmem:[%s15778_s8 + $0x38] sm:$0xff] %v6269_v39 }
 0x926   :  { %v9892_v27 = vpop.f32.mrf.mxu0 }
 0x928   :  { %v9894_v5 = vpop.f32.mrf.mxu0 }
 0x92a   :  { %v9896_v31 = vpop.f32.mrf.mxu0 }
 0x92b   :  { %v9933_v25 = vpop.f32.mrf.mxu1 }
 0x92c   :  { %v9897_v61 = vpop.f32.mrf.mxu0 }
 0x92d   :  { %v9935_v41 = vpop.f32.mrf.mxu1 }
 0x92f   :  { %v9937_v24 = vpop.f32.mrf.mxu1  ;;  %v9974_v3 = vpop.f32.mrf.mxu0 }
 0x931   :  { %v9938_v9 = vpop.f32.mrf.mxu1  ;;  %v9976_v16 = vpop.f32.mrf.mxu0 }
 0x933   :  { %v9978_v35 = vpop.f32.mrf.mxu0  ;;  %v10015_v21 = vpop.f32.mrf.mxu1 }
 0x935   :  { %v9979_v11 = vpop.f32.mrf.mxu0  ;;  %v10017_v48 = vpop.f32.mrf.mxu1 }
 0x937   :  { %v10019_v44 = vpop.f32.mrf.mxu1  ;;  %v10132_v13 = vpop.f32.mrf.mxu0 }
 0x938   :  { %v10133_v32 = vadd.f32 %v10132_v13, %v9892_v27 }
 0x939   :  { %v10020_v28 = vpop.f32.mrf.mxu1  ;;  %v10134_v8 = vpop.f32.mrf.mxu0 }
 0x93a   :  { %v10135_v33 = vadd.f32 %v10134_v8, %v9894_v5 }
 0x93b   :  { %v10136_v42 = vpop.f32.mrf.mxu0  ;;  %v10173_v49 = vpop.f32.mrf.mxu1 }
 0x93c   :  { %v10174_v46 = vadd.f32 %v10173_v49, %v9933_v25 }
 0x93d   :  { %v10137_v20 = vpop.f32.mrf.mxu0  ;;  %v10175_v23 = vpop.f32.mrf.mxu1 }
 0x93e   :  { %v10176_v29 = vadd.f32 %v10175_v23, %v9935_v41 }
 0x93f   :  { %v10177_v7 = vpop.f32.mrf.mxu1  ;;  %v10214_v10 = vpop.f32.mrf.mxu0 }
 0x940   :  { %v10215_v56 = vadd.f32 %v10214_v10, %v9974_v3 }
 0x941   :  { %v10178_v47 = vpop.f32.mrf.mxu1  ;;  %v10216_v6 = vpop.f32.mrf.mxu0 }
 0x942   :  { %v10217_v4 = vadd.f32 %v10216_v6, %v9976_v16 }
 0x943   :  { %v10218_v38 = vpop.f32.mrf.mxu0  ;;  %v10255_v51 = vpop.f32.mrf.mxu1 }
 0x944   :  { %v10256_v58 = vadd.f32 %v10255_v51, %v10015_v21 }
 0x945   :  { %v10219_v55 = vpop.f32.mrf.mxu0  ;;  %v10257_v63 = vpop.f32.mrf.mxu1 }
 0x946   :  { %v10258_v34 = vadd.f32 %v10257_v63, %v10017_v48 }
 0x947   :  { %v10259_v52 = vpop.f32.mrf.mxu1  ;;  %v10378_v54 = vpop.f32.mrf.mxu0 }
 0x948   :  { %v10508_v15 = vadd.f32 %v10378_v54, %v10133_v32 }
 0x949   :  { %v10260_v40 = vpop.f32.mrf.mxu1  ;;  %v10380_v18 = vpop.f32.mrf.mxu0 }
 0x94a   :  { %v10509_v19 = vadd.f32 %v10380_v18, %v10135_v33 }
 0x94b   :  { %v10382_v37 = vpop.f32.mrf.mxu0  ;;  %v10419_v62 = vpop.f32.mrf.mxu1 }
 0x94c   :  { %v10510_v0 = vadd.f32 %v10419_v62, %v10174_v46 }
 0x94d   :  { %v10383_v12 = vpop.f32.mrf.mxu0  ;;  %v10421_v53 = vpop.f32.mrf.mxu1 }
 0x94e   :  { %v10511_v17 = vadd.f32 %v10421_v53, %v10176_v29 }
 0x94f   :  { %v10423_v45 = vpop.f32.mrf.mxu1  ;;  %v10460_v30 = vpop.f32.mrf.mxu0 }
 0x950   :  { %v10512_v14 = vadd.f32 %v10460_v30, %v10215_v56 }
 0x951   :  { %v10424_v59 = vpop.f32.mrf.mxu1  ;;  %v10462_v57 = vpop.f32.mrf.mxu0 }
 0x952   :  { %v10513_v60 = vadd.f32 %v10462_v57, %v10217_v4 }
 0x953   :  { %v10464_v22 = vpop.f32.mrf.mxu0  ;;  %v10501_v50 = vpop.f32.mrf.mxu1 }
 0x954   :  { %v10514_v26 = vadd.f32 %v10501_v50, %v10256_v58 }
 0x955   :  { %v10465_v43 = vpop.f32.mrf.mxu0  ;;  %v10503_v36 = vpop.f32.mrf.mxu1 }
 0x956   :  { %v10515_v2 = vadd.f32 %v10503_v36, %v10258_v34 }
 0x957   :  { %v10505_v1 = vpop.f32.mrf.mxu1  ;;  %v10632_v39 = vpop.f32.mrf.mxu0 }
 0x958   :  { %v15682_v27 = vadd.f32 %v10632_v39, %v10508_v15 }
 0x959   :  { %v10506_v5 = vpop.f32.mrf.mxu1  ;;  %v10634_v31 = vpop.f32.mrf.mxu0 }
 0x95a   :  { %v15684_v25 = vadd.f32 %v10634_v31, %v10509_v19 }
 0x95b   :  { %v10636_v61 = vpop.f32.mrf.mxu0  ;;  %v10673_v41 = vpop.f32.mrf.mxu1 }
 0x95c   :  { %v15686_v24 = vadd.f32 %v10673_v41, %v10510_v0 }
 0x95d   :  { %v10637_v3 = vpop.f32.mrf.mxu0  ;;  %v10675_v9 = vpop.f32.mrf.mxu1 }
 0x95e   :  { %v15688_v16 = vadd.f32 %v10675_v9, %v10511_v17 }
 0x95f   :  { %v10677_v35 = vpop.f32.mrf.mxu1  ;;  %v10714_v21 = vpop.f32.mrf.mxu0 }
 0x960   :  { %v15690_v11 = vadd.f32 %v10714_v21, %v10512_v14 }
 0x961   :  { %v10678_v48 = vpop.f32.mrf.mxu1  ;;  %v10716_v44 = vpop.f32.mrf.mxu0 }
 0x962   :  { %v15692_v13 = vadd.f32 %v10716_v44, %v10513_v60 }
 0x963   :  { %v10718_v32 = vpop.f32.mrf.mxu0  ;;  %v10755_v28 = vpop.f32.mrf.mxu1 }
 0x964   :  { %v15694_v8 = vadd.f32 %v10755_v28, %v10514_v26 }
 0x965   :  { %v10719_v33 = vpop.f32.mrf.mxu0  ;;  %v10757_v42 = vpop.f32.mrf.mxu1 }
 0x966   :  { %v15696_v49 = vadd.f32 %v10757_v42, %v10515_v2 }
 0x967   :  { %v10759_v46 = vpop.f32.mrf.mxu1  ;;  %v10856_v20 = vpop.f32.mrf.mxu0 }
 0x969   :  { %v10760_v23 = vpop.f32.mrf.mxu1  ;;  %v10858_v29 = vpop.f32.mrf.mxu0 }
 0x96b   :  { %v10860_v7 = vpop.f32.mrf.mxu0  ;;  %v10897_v10 = vpop.f32.mrf.mxu1 }
 0x96c   :  { %v10986_v7 = vadd.f32 %v10856_v20, %v15682_v27 }
 0x96d   :  { %v10861_v56 = vpop.f32.mrf.mxu0  ;;  %v15698_v47 = vpop.f32.mrf.mxu1 }
 0x96f   :  { %v10901_v6 = vpop.f32.mrf.mxu1  ;;  %v15700_v4 = vpop.f32.mrf.mxu0 }
 0x971   :  { %v10902_v38 = vpop.f32.mrf.mxu1  ;;  %v15702_v51 = vpop.f32.mrf.mxu0 }
 0x972   :  { %v10987_v38 = vadd.f32 %v10858_v29, %v15684_v25  ;;  %v10990_v25 = vadd.f32 %v15700_v4, %v15690_v11 }
 0x973   :  { %v10942_v58 = vpop.f32.mrf.mxu0  ;;  %v15704_v55 = vpop.f32.mrf.mxu1 }
 0x974   :  { %v10992_v11 = vadd.f32 %v15704_v55, %v15694_v8 }
 0x975   :  { %v10943_v63 = vpop.f32.mrf.mxu0  ;;  %v15706_v34 = vpop.f32.mrf.mxu1 }
 0x977   :  { %v10983_v52 = vpop.f32.mrf.mxu1  ;;  %v11115_v54 = vpop.f32.mrf.mxu0 }
 0x978   :  { %v11245_v58 = vadd.f32 %v11115_v54, %v10986_v7 }
 0x979   :  { %v10984_v15 = vpop.f32.mrf.mxu1  ;;  %v11117_v40 = vpop.f32.mrf.mxu0 }
 0x97a   :  { %v15720_v15 = vpop.permute.xlu0 %12013 }
 0x97b   :  { %v11119_v18 = vpop.f32.mrf.mxu0  ;;  %v11156_v19 = vpop.f32.mrf.mxu1 }
 0x97c   :  { %v10988_v18 = vadd.f32 %v10897_v10, %v15686_v24  ;;  %v10991_v24 = vadd.f32 %v15702_v51, %v15692_v13 }
 0x97d   :  { %v11120_v37 = vpop.f32.mrf.mxu0  ;;  %v11158_v62 = vpop.f32.mrf.mxu1 }
 0x97e   :  { %v11246_v37 = vadd.f32 %v11117_v40, %v10987_v38 }
 0x97f   :  { %v11160_v0 = vpop.f32.mrf.mxu1  ;;  %v11197_v12 = vpop.f32.mrf.mxu0 }
 0x980   :  { %v11249_v10 = vadd.f32 %v11197_v12, %v10990_v25  ;;  %v10993_v12 = vadd.f32 %v15706_v34, %v15696_v49 }
 0x981   :  { %v11161_v53 = vpop.f32.mrf.mxu1  ;;  %v15708_v17 = vpop.f32.mrf.mxu0 }
 0x982   :  { %v11250_v4 = vadd.f32 %v15708_v17, %v10991_v24 }
 0x983   :  { %v11201_v45 = vpop.f32.mrf.mxu0  ;;  %v15710_v30 = vpop.f32.mrf.mxu1 }
 0x985   :  { %v11202_v14 = vpop.f32.mrf.mxu0  ;;  %v15712_v59 = vpop.f32.mrf.mxu1 }
 0x986   :  { %v10989_v14 = vadd.f32 %v15698_v47, %v15688_v16 }
 0x987   :  { %v11242_v57 = vpop.f32.mrf.mxu1  ;;  %v11369_v60 = vpop.f32.mrf.mxu0 }
 0x988   :  { %v11499_v0 = vadd.f32 %v11369_v60, %v11245_v58  ;;  %v11247_v57 = vadd.f32 %v11156_v19, %v10988_v18 }
 0x989   :  { %v11243_v22 = vpop.f32.mrf.mxu1  ;;  %v11371_v50 = vpop.f32.mrf.mxu0 }
 0x98a   :  { %v11500_v27 = vadd.f32 %v11371_v50, %v11246_v37  ;;  %v11248_v22 = vadd.f32 %v11158_v62, %v10989_v14 }
 0x98b   :  { %v11373_v26 = vpop.f32.mrf.mxu0  ;;  %v11410_v43 = vpop.f32.mrf.mxu1 }
 0x98c   :  { %v11501_v26 = vadd.f32 %v11410_v43, %v11247_v57 }
 0x98d   :  { %v11374_v36 = vpop.f32.mrf.mxu0  ;;  %v11412_v2 = vpop.f32.mrf.mxu1 }
 0x98e   :  { %v11502_v16 = vadd.f32 %v11412_v2, %v11248_v22  ;;  %v11251_v2 = vadd.f32 %v15710_v30, %v10992_v11 }
 0x98f   :  { %v11414_v1 = vpop.f32.mrf.mxu1  ;;  %v11451_v39 = vpop.f32.mrf.mxu0 }
 0x990   :  { %v11503_v62 = vadd.f32 %v11451_v39, %v11249_v10  ;;  %v11252_v39 = vadd.f32 %v15712_v59, %v10993_v12 }
 0x991   :  { %v11415_v5 = vpop.f32.mrf.mxu1  ;;  %v11453_v31 = vpop.f32.mrf.mxu0 }
 0x992   :  { %v12028_v5 = vpop.permute.xlu0 %12027 }
 0x993   :  { %v11455_v61 = vpop.f32.mrf.mxu0  ;;  %v15714_v41 = vpop.f32.mrf.mxu1 }
 0x995   :  { %v11456_v3 = vpop.f32.mrf.mxu0  ;;  %v15716_v9 = vpop.f32.mrf.mxu1 }
 0x997   :  { %v11496_v35 = vpop.f32.mrf.mxu1  ;;  %v11618_v21 = vpop.f32.mrf.mxu0 }
 0x998   :  { %v11748_v20 = vadd.f32 %v11618_v21, %v11499_v0  ;;  %v11504_v21 = vadd.f32 %v11453_v31, %v11250_v4 }
 0x999   :  { %v11497_v48 = vpop.f32.mrf.mxu1  ;;  %v11620_v44 = vpop.f32.mrf.mxu0 }
 0x99a   :  { %v11749_v36 = vadd.f32 %v11620_v44, %v11500_v27 }
 0x99b   :  { %v11622_v32 = vpop.f32.mrf.mxu0  ;;  %v11659_v28 = vpop.f32.mrf.mxu1 }
 0x99c   :  { %v11750_v47 = vadd.f32 %v11659_v28, %v11501_v26  ;;  %v11505_v28 = vadd.f32 %v15714_v41, %v11251_v2 }
 0x99d   :  { %v11623_v33 = vpop.f32.mrf.mxu0  ;;  %v11661_v42 = vpop.f32.mrf.mxu1 }
 0x99e   :  { %v11751_v3 = vadd.f32 %v11661_v42, %v11502_v16 }
 0x99f   :  { %v11663_v46 = vpop.f32.mrf.mxu1  ;;  %v11700_v23 = vpop.f32.mrf.mxu0 }
 0x9a0   :  { %v11752_v32 = vadd.f32 %v11700_v23, %v11503_v62  ;;  %v11506_v46 = vadd.f32 %v15716_v9, %v11252_v39 }
 0x9a1   :  { %v11664_v56 = vpop.f32.mrf.mxu1  ;;  %v11702_v6 = vpop.f32.mrf.mxu0 }
 0x9a2   :  { %v11753_v34 = vadd.f32 %v11702_v6, %v11504_v21 }
 0x9a3   :  { %v11704_v63 = vpop.f32.mrf.mxu0  ;;  %v11741_v52 = vpop.f32.mrf.mxu1 }
 0x9a4   :  { %v11754_v56 = vadd.f32 %v11741_v52, %v11505_v28 }
 0x9a5   :  { %v11705_v53 = vpop.f32.mrf.mxu0  ;;  %v11743_v45 = vpop.f32.mrf.mxu1 }
 0x9a6   :  { %v11755_v63 = vadd.f32 %v11743_v45, %v11506_v46 }
 0x9a7   :  { %v11745_v29 = vpop.f32.mrf.mxu1  ;;  %v11872_v54 = vpop.f32.mrf.mxu0 }
 0x9a8   :  { %v12002_v1 = vadd.f32 %v11872_v54, %v11748_v20 }
 0x9a9   :  { %v11746_v40 = vpop.f32.mrf.mxu1  ;;  %v11874_v60 = vpop.f32.mrf.mxu0 }
 0x9aa   :  { %v12016_v19 = vmul.f32 %v15720_v15, %v12002_v1  ;;  %v12003_v50 = vadd.f32 %v11874_v60, %v11749_v36 }
 0x9ab   :  { %v11876_v43 = vpop.f32.mrf.mxu0  ;;  %v11913_v61 = vpop.f32.mrf.mxu1 }
 0x9ac   :  { %v12030_v35 = vadd.f32 %v12028_v5, %v12016_v19  ;;  %v12017_v13 = vmul.f32 %v15720_v15, %v12003_v50  ;;  %v12004_v51 = vadd.f32 %v11913_v61, %v11750_v47 }
 0x9ad   :  { %v11877_v48 = vpop.f32.mrf.mxu0  ;;  %v11915_v44 = vpop.f32.mrf.mxu1 }
 0x9ae   :  { %12825 = vst [vmem:[%s15778_s8 + $0x40] sm:$0xff] %v12030_v35  ;;  %v12031_v8 = vadd.f32 %v12028_v5, %v12017_v13  ;;  %v12018_v55 = vmul.f32 %v15720_v15, %v12004_v51  ;;  %v12005_v17 = vadd.f32 %v11915_v44, %v11751_v3 }
 0x9af   :  { %v11917_v33 = vpop.f32.mrf.mxu1  ;;  %v11954_v49 = vpop.f32.mrf.mxu0 }
 0x9b0   :  { %12826 = vst [vmem:[%s15778_s8 + $0x48] sm:$0xff] %v12031_v8  ;;  %v12032_v30 = vadd.f32 %v12028_v5, %v12018_v55  ;;  %v12019_v31 = vmul.f32 %v15720_v15, %v12005_v17  ;;  %v12006_v42 = vadd.f32 %v11954_v49, %v11752_v32 }
 0x9b1   :  { %v11918_v23 = vpop.f32.mrf.mxu1  ;;  %v11956_v7 = vpop.f32.mrf.mxu0 }
 0x9b2   :  { %12827 = vst [vmem:[%s15778_s8 + $0x50] sm:$0xff] %v12032_v30  ;;  %v12033_v59 = vadd.f32 %v12028_v5, %v12019_v31  ;;  %v12020_v41 = vmul.f32 %v15720_v15, %v12006_v42  ;;  %v12007_v6 = vadd.f32 %v11956_v7, %v11753_v34 }
 0x9b3   :  { %v11995_v38 = vpop.f32.mrf.mxu1  ;;  %v11958_v58 = vpop.f32.mrf.mxu0 }
 0x9b4   :  { %12828 = vst [vmem:[%s15778_s8 + $0x58] sm:$0xff] %v12033_v59  ;;  %v12034_v18 = vadd.f32 %v12028_v5, %v12020_v41  ;;  %v12021_v9 = vmul.f32 %v15720_v15, %v12007_v6  ;;  %v12008_v37 = vadd.f32 %v11995_v38, %v11754_v56 }
 0x9b5   :  { %v11997_v52 = vpop.f32.mrf.mxu1  ;;  %v11959_v0 = vpop.f32.mrf.mxu0 }
 0x9b6   :  { %12829 = vst [vmem:[%s15778_s8 + $0x60] sm:$0xff] %v12034_v18  ;;  %v12035_v53 = vadd.f32 %v12028_v5, %v12021_v9  ;;  %v12022_v14 = vmul.f32 %v15720_v15, %v12008_v37  ;;  %v12009_v57 = vadd.f32 %v11997_v52, %v11755_v63 }
 0x9b7   :  { %v11999_v27 = vpop.f32.mrf.mxu1 }
 0x9b8   :  { %12830 = vst [vmem:[%s15778_s8 + $0x68] sm:$0xff] %v12035_v53  ;;  %v12036_v45 = vadd.f32 %v12028_v5, %v12022_v14  ;;  %v12023_v20 = vmul.f32 %v15720_v15, %v12009_v57 }
 0x9b9   :  { %v12000_v25 = vpop.f32.mrf.mxu1 }
 0x9ba   :  { %12831 = vst [vmem:[%s15778_s8 + $0x70] sm:$0xff] %v12036_v45  ;;  %v12037_v29 = vadd.f32 %v12028_v5, %v12023_v20 }
 0x9bc   :  { %12832 = vst [vmem:[%s15778_s8 + $0x78] sm:$0xff] %v12037_v29 }
 0x9bd   :  { %12051 = vsyncpa [#allocation5], 1 }

</bundles_post_ra>
